<compile_context>
chip_gen: v7x
topology: tpu7x:2x2x1
jax: 0.10.0
libtpu: 0.0.40
codegen_flags: <defaults>
</compile_context>

<pallas_src>
import math

import jax
import jax.numpy as jnp
from jax import lax
from jax.experimental import pallas as pl
from jax.experimental.pallas import tpu as pltpu

_LANE = 128
_MAX_UNROLL_STRIPS = 8      # static-unroll threshold for full (non-halo) strips
_MIN_GRID_STEPS = 8         # feed both v7x TensorCores / the DMA pipeline


def _build_kernel(*, kh, kw, d, s, Wo_pad, Cin_g, Cout_g, groups,
                  has_halo, n_full, halo_splits):
    """Builds the per-tile kernel body; every size below is a static int."""
    Lg = Cout_g * Cin_g * kh * kw

    def _body(w_ref, xm_ref, xh_ref, o_ref, acc_ref):
        # w_ref : (groups*Lg,) f32 scalars in SMEM (full table; per-group base)
        # xm_ref: (1, Cin_g, TH_in, Wp)     main input row block (VMEM)
        # xh_ref: (1, Cin_g, halo_blk, Wp)  rows just below the main block
        # o_ref : (1, Cout_g, TH, Wo_pad)
        # acc_ref: (Cout_g, 8, Wo_pad) f32 scratch, only for halo strip(s)
        wbase = 0 if groups == 1 else pl.program_id(1) * Lg
        # Hoist all scalar weight reads out of the strip loop (read once/step).
        wvals = [[[[w_ref[wbase + ((co * Cin_g + ci) * kh + i) * kw + j]
                    for j in range(kw)]
                   for i in range(kh)]
                  for ci in range(Cin_g)]
                 for co in range(Cout_g)]

        def _taps(ref, ci, r, n):
            """kw column taps, each (n, Wo_pad) f32, from one row window."""
            if s == 1:
                win = ref[0, ci, pl.ds(r, n), :]
                if win.dtype != jnp.float32:
                    win = win.astype(jnp.float32)
                return [win[:, j * d:j * d + Wo_pad] for j in range(kw)]
            # TODO(synk): stride>1 path (sublane/lane-strided reads) is
            # implemented but not exercised by the tests below.
            taps = []
            for j in range(kw):
                t = ref[0, ci, pl.ds(r, n, stride=s),
                        pl.ds(j * d, Wo_pad, stride=s)]
                taps.append(t.astype(jnp.float32)
                            if t.dtype != jnp.float32 else t)
            return taps

        def full_strip(row0):
            """8 output rows entirely served by the main block (vreg acc)."""
            acc = [None] * Cout_g
            for i in range(kh):
                r_in = row0 * s + i * d
                for ci in range(Cin_g):
                    taps = _taps(xm_ref, ci, r_in, 8)
                    for j in range(kw):
                        for co in range(Cout_g):
                            t = wvals[co][ci][i][j] * taps[j]
                            acc[co] = t if acc[co] is None else acc[co] + t
            for co in range(Cout_g):
                o_ref[0, co, pl.ds(row0, 8), :] = acc[co].astype(o_ref.dtype)

        def halo_strip(st, splits):
            """Trailing strip whose taps split between main and halo blocks."""
            row0 = st * 8
            acc_ref[...] = jnp.zeros_like(acc_ref)
            for i in range(kh):
                n1, n2, off2 = splits[i]
                r_in = row0 * s + i * d
                top = [None] * Cout_g      # strip rows [0, n1)
                bot = [None] * Cout_g      # strip rows [n1, 8)
                for ci in range(Cin_g):
                    taps1 = _taps(xm_ref, ci, r_in, n1) if n1 else None
                    taps2 = _taps(xh_ref, ci, off2, n2) if n2 else None
                    for j in range(kw):
                        for co in range(Cout_g):
                            w = wvals[co][ci][i][j]
                            if n1:
                                t = w * taps1[j]
                                top[co] = t if top[co] is None else top[co] + t
                            if n2:
                                t = w * taps2[j]
                                bot[co] = t if bot[co] is None else bot[co] + t
                for co in range(Cout_g):       # one RMW per (row-tap, co)
                    if n1:
                        acc_ref[co, 0:n1, :] += top[co]
                    if n2:
                        acc_ref[co, n1:8, :] += bot[co]
            for co in range(Cout_g):
                o_ref[0, co, pl.ds(row0, 8), :] = acc_ref[co].astype(o_ref.dtype)

        if n_full > 0:
            if n_full <= _MAX_UNROLL_STRIPS:
                for st in range(n_full):
                    full_strip(st * 8)
            else:
                @pl.loop(0, n_full)
                def _(st):
                    full_strip(pl.multiple_of(st * 8, 8))
        for st, splits in halo_splits:          # static, at most a few
            halo_strip(st, splits)

    if has_halo:
        def kernel(w_ref, xm_ref, xh_ref, o_ref, acc_ref):
            _body(w_ref, xm_ref, xh_ref, o_ref, acc_ref)
    else:
        def kernel(w_ref, xm_ref, o_ref):
            _body(w_ref, xm_ref, None, o_ref, None)
    return kernel


def _tile_budget_bytes():
    """Per-step input-block byte budget, chosen per TPU generation."""
    try:
        vmem = int(pltpu.get_tpu_info().vmem_capacity_bytes)
    except Exception:
        vmem = 64 << 20
    # v5e / v6e: 128 MiB VMEM -> big blocks amortize the ~0.35us per-step cost.
    # v7x: 64 MiB VMEM -> keep the double-buffered blocks comfortably small.
    return (8 << 20) if vmem >= (96 << 20) else (2 << 20)


def dilated_conv(x_nchw, w_oihw, kSize, stride=1, d=1, groups=1, row_tile=None):
    """Forward pass of DilatedConv.  x: (N,Cin,H,W), w: (Cout,Cin//groups,k,k)."""
    N, Cin, H, W = x_nchw.shape
    Cout = w_oihw.shape[0]
    kh = kw = kSize
    s = stride
    assert Cin % groups == 0 and Cout % groups == 0
    assert w_oihw.shape == (Cout, Cin // groups, kh, kw)

    pad = ((kSize - 1) // 2) * d
    Ho = (H + 2 * pad - d * (kSize - 1) - 1) // s + 1
    Wo = (W + 2 * pad - d * (kSize - 1) - 1) // s + 1
    Cin_g = Cin // groups
    Cout_g = Cout // groups
    itemsize = x_nchw.dtype.itemsize

    # ----- lane-dense width: outputs padded to 128 lanes; input wide enough
    #       that every column tap is an in-bounds slice ----------------------
    Wo_pad = _LANE * (-(-Wo // _LANE))
    Wp_arr = max(W + 2 * pad, (Wo_pad - 1) * s + (kw - 1) * d + 1)

    # ----- row tiling (output rows per grid step) ---------------------------
    halo = max(0, (kh - 1) * d + 1 - s)          # input rows needed past main blk
    if halo > 0:
        halo_blk = 8 * (-(-halo // 8))           # 8-row aligned halo fetch
        m = halo_blk // math.gcd(halo_blk, s)
        th_unit = (8 * m) // math.gcd(8, m)      # TH granularity: lcm(8, m)
    else:
        halo_blk = 0
        th_unit = 8
    th_cap = th_unit * (-(-Ho // th_unit))       # smallest multiple covering Ho
    if row_tile is not None:
        TH = min(th_unit * max(1, row_tile // th_unit), th_cap)
    else:
        budget = _tile_budget_bytes()
        TH = th_unit * max(1, (budget // max(1, Cin_g * s * Wp_arr * itemsize))
                           // th_unit)
        TH = min(TH, th_cap)
        # Keep enough grid steps for both v7x TensorCores / pipeline overlap.
        while TH > th_unit and N * groups * (-(-Ho // TH)) < _MIN_GRID_STEPS:
            TH -= th_unit
    RT = -(-Ho // TH)                            # number of row tiles
    TH_in = TH * s                               # input rows in the main block

    # ----- per-strip split bookkeeping (all static) -------------------------
    n_strips = TH // 8

    def _tap_split(st, i):
        n1 = min(8, max(0, (TH_in - 1 - i * d) // s - st * 8 + 1))
        n2 = 8 - n1
        off2 = (st * 8 + n1) * s + i * d - TH_in if n2 else 0
        return (n1, n2, off2)

    n_full = 0
    for st in range(n_strips):
        if all(_tap_split(st, i)[1] == 0 for i in range(kh)):
            n_full = st + 1
        else:
            break
    halo_splits = [(st, [_tap_split(st, i) for i in range(kh)])
                   for st in range(n_full, n_strips)]

    # ----- pad input: conv zero-padding + extra rows/cols so every block
    #       (incl. the last tile's halo and lane-padded taps) is in range ----
    Hp_arr = max(H + 2 * pad, RT * TH_in + halo_blk)
    x_pad = jnp.pad(x_nchw, ((0, 0), (0, 0),
                             (pad, Hp_arr - H - pad),
                             (pad, Wp_arr - W - pad)))

    # ----- weights: flat f32 scalar table in SMEM ---------------------------
    w_flat = w_oihw.astype(jnp.float32).reshape(-1)
    Lw = int(w_flat.shape[0])

    kernel = _build_kernel(kh=kh, kw=kw, d=d, s=s, Wo_pad=Wo_pad,
                           Cin_g=Cin_g, Cout_g=Cout_g, groups=groups,
                           has_halo=halo > 0, n_full=n_full,
                           halo_splits=halo_splits)

    in_specs = [
        pl.BlockSpec((Lw,), lambda n, g, r: (0,),
                     memory_space=pltpu.MemorySpace.SMEM),
        pl.BlockSpec((1, Cin_g, TH_in, Wp_arr), lambda n, g, r: (n, g, r, 0)),
    ]
    args = [w_flat, x_pad]
    scratch = []
    if halo > 0:
        hb = TH_in // halo_blk
        in_specs.append(pl.BlockSpec((1, Cin_g, halo_blk, Wp_arr),
                                     lambda n, g, r: (n, g, (r + 1) * hb, 0)))
        args.append(x_pad)
        scratch.append(pltpu.VMEM((Cout_g, 8, Wo_pad), jnp.float32))

    # Raise the scoped VMEM limit only when the generation-sized blocks need it.
    need = 2 * ((Cin_g * (TH_in + halo_blk) * Wp_arr
                 + Cout_g * TH * Wo_pad) * itemsize)
    vmem_limit = (int(min(64 << 20, max(32 << 20, 2 * need)))
                  if need > (12 << 20) else None)

    flops = 2 * N * Ho * Wo * kh * kw * Cin_g * Cout
    bytes_acc = (N * groups * RT * Cin_g * (TH_in + halo_blk) * Wp_arr * itemsize
                 + Lw * 4 + N * Cout * RT * TH * Wo_pad * itemsize)

    out_pad = pl.pallas_call(
        kernel,
        out_shape=jax.ShapeDtypeStruct((N, Cout, RT * TH, Wo_pad), x_nchw.dtype),
        grid_spec=pltpu.PrefetchScalarGridSpec(
            num_scalar_prefetch=0,
            grid=(N, groups, RT),
            in_specs=in_specs,
            out_specs=pl.BlockSpec((1, Cout_g, TH, Wo_pad),
                                   lambda n, g, r: (n, g, r, 0)),
            scratch_shapes=scratch,
        ),
        compiler_params=pltpu.CompilerParams(
            dimension_semantics=("parallel", "parallel", "parallel"),
            vmem_limit_bytes=vmem_limit),
        cost_estimate=pl.CostEstimate(flops=int(flops), transcendentals=0,
                                      bytes_accessed=int(bytes_acc)),
    )(*args)

    return out_pad[:, :, :Ho, :Wo]


if __name__ == "__main__":
    def reference(x, w, kSize, stride, d, groups):
        pad = ((kSize - 1) // 2) * d
        return lax.conv_general_dilated(
            x, w,
            window_strides=(stride, stride),
            padding=[(pad, pad), (pad, pad)],
            rhs_dilation=(d, d),
            feature_group_count=groups,
            dimension_numbers=("NCHW", "OIHW", "NCHW"))

    key = jax.random.PRNGKey(0)

    # (nIn, nOut, k, stride, d, groups, N, H, W, row_tile)
    configs = [
        (4, 8, 3, 1, 2, 1, 2, 16, 16, 8),     # module config; cross-tile halo
        (4, 8, 3, 1, 1, 2, 2, 16, 16, None),  # grouped conv, auto row tile
        (4, 8, 3, 1, 1, 1, 1, 32, 24, 16),    # full (vreg) strips + halo strip
        (8, 8, 1, 1, 1, 1, 1, 16, 16, None),  # 1x1: halo spec dropped entirely
    ]

    for idx, (nIn, nOut, k, s, d, g, N, H, W, rt) in enumerate(configs):
        key, kx, kw_ = jax.random.split(key, 3)
        x = jax.random.normal(kx, (N, nIn, H, W), dtype=jnp.float32)
        w = 0.1 * jax.random.normal(kw_, (nOut, nIn // g, k, k), dtype=jnp.float32)

        out = dilated_conv(x, w, k, stride=s, d=d, groups=g, row_tile=rt)
        out = jax.block_until_ready(out)

        ref = reference(x, w, k, s, d, g)
        assert out.shape == ref.shape, (idx, out.shape, ref.shape)
        err = float(jnp.max(jnp.abs(out - ref)))
        assert err < 1e-4, (idx, err)

    print("KERNEL_OK")
</pallas_src>

<mosaic_0001>
module attributes {stable_mosaic.version = 11 : i64} {
  func.func @kernel(%arg0: i32, %arg1: i32, %arg2: i32, %arg3: memref<288xf32, #tpu.memory_space<smem>>, %arg4: memref<1x4x8x132xf32, #tpu.memory_space<vmem>>, %arg5: memref<1x4x8x132xf32, #tpu.memory_space<vmem>>, %arg6: memref<1x8x8x128xf32, #tpu.memory_space<vmem>>, %arg7: memref<8x8x128xf32, #tpu.memory_space<vmem>>) attributes {dimension_semantics = [#tpu.dimension_semantics<parallel>, #tpu.dimension_semantics<parallel>, #tpu.dimension_semantics<parallel>], iteration_bounds = array<i64: 2, 1, 2>, scalar_prefetch = 0 : i64, scratch_operands = 1 : i64, tpu.core_type = #tpu.core_type<tc>, window_params = [{transform_indices = @transform_0, window_bounds = array<i64: 288>}, {transform_indices = @transform_1, window_bounds = array<i64: 1, 4, 8, 132>}, {transform_indices = @transform_2, window_bounds = array<i64: 1, 4, 8, 132>}, {transform_indices = @transform_3, window_bounds = array<i64: 1, 8, 8, 128>}]} {
    %c0 = arith.constant 0 : index
    %0 = memref.load %arg3[%c0] : memref<288xf32, #tpu.memory_space<smem>>
    %c1 = arith.constant 1 : index
    %1 = memref.load %arg3[%c1] : memref<288xf32, #tpu.memory_space<smem>>
    %c2 = arith.constant 2 : index
    %2 = memref.load %arg3[%c2] : memref<288xf32, #tpu.memory_space<smem>>
    %c3 = arith.constant 3 : index
    %3 = memref.load %arg3[%c3] : memref<288xf32, #tpu.memory_space<smem>>
    %c4 = arith.constant 4 : index
    %4 = memref.load %arg3[%c4] : memref<288xf32, #tpu.memory_space<smem>>
    %c5 = arith.constant 5 : index
    %5 = memref.load %arg3[%c5] : memref<288xf32, #tpu.memory_space<smem>>
    %c6 = arith.constant 6 : index
    %6 = memref.load %arg3[%c6] : memref<288xf32, #tpu.memory_space<smem>>
    %c7 = arith.constant 7 : index
    %7 = memref.load %arg3[%c7] : memref<288xf32, #tpu.memory_space<smem>>
    %c8 = arith.constant 8 : index
    %8 = memref.load %arg3[%c8] : memref<288xf32, #tpu.memory_space<smem>>
    %c9 = arith.constant 9 : index
    %9 = memref.load %arg3[%c9] : memref<288xf32, #tpu.memory_space<smem>>
    %c10 = arith.constant 10 : index
    %10 = memref.load %arg3[%c10] : memref<288xf32, #tpu.memory_space<smem>>
    %c11 = arith.constant 11 : index
    %11 = memref.load %arg3[%c11] : memref<288xf32, #tpu.memory_space<smem>>
    %c12 = arith.constant 12 : index
    %12 = memref.load %arg3[%c12] : memref<288xf32, #tpu.memory_space<smem>>
    %c13 = arith.constant 13 : index
    %13 = memref.load %arg3[%c13] : memref<288xf32, #tpu.memory_space<smem>>
    %c14 = arith.constant 14 : index
    %14 = memref.load %arg3[%c14] : memref<288xf32, #tpu.memory_space<smem>>
    %c15 = arith.constant 15 : index
    %15 = memref.load %arg3[%c15] : memref<288xf32, #tpu.memory_space<smem>>
    %c16 = arith.constant 16 : index
    %16 = memref.load %arg3[%c16] : memref<288xf32, #tpu.memory_space<smem>>
    %c17 = arith.constant 17 : index
    %17 = memref.load %arg3[%c17] : memref<288xf32, #tpu.memory_space<smem>>
    %c18 = arith.constant 18 : index
    %18 = memref.load %arg3[%c18] : memref<288xf32, #tpu.memory_space<smem>>
    %c19 = arith.constant 19 : index
    %19 = memref.load %arg3[%c19] : memref<288xf32, #tpu.memory_space<smem>>
    %c20 = arith.constant 20 : index
    %20 = memref.load %arg3[%c20] : memref<288xf32, #tpu.memory_space<smem>>
    %c21 = arith.constant 21 : index
    %21 = memref.load %arg3[%c21] : memref<288xf32, #tpu.memory_space<smem>>
    %c22 = arith.constant 22 : index
    %22 = memref.load %arg3[%c22] : memref<288xf32, #tpu.memory_space<smem>>
    %c23 = arith.constant 23 : index
    %23 = memref.load %arg3[%c23] : memref<288xf32, #tpu.memory_space<smem>>
    %c24 = arith.constant 24 : index
    %24 = memref.load %arg3[%c24] : memref<288xf32, #tpu.memory_space<smem>>
    %c25 = arith.constant 25 : index
    %25 = memref.load %arg3[%c25] : memref<288xf32, #tpu.memory_space<smem>>
    %c26 = arith.constant 26 : index
    %26 = memref.load %arg3[%c26] : memref<288xf32, #tpu.memory_space<smem>>
    %c27 = arith.constant 27 : index
    %27 = memref.load %arg3[%c27] : memref<288xf32, #tpu.memory_space<smem>>
    %c28 = arith.constant 28 : index
    %28 = memref.load %arg3[%c28] : memref<288xf32, #tpu.memory_space<smem>>
    %c29 = arith.constant 29 : index
    %29 = memref.load %arg3[%c29] : memref<288xf32, #tpu.memory_space<smem>>
    %c30 = arith.constant 30 : index
    %30 = memref.load %arg3[%c30] : memref<288xf32, #tpu.memory_space<smem>>
    %c31 = arith.constant 31 : index
    %31 = memref.load %arg3[%c31] : memref<288xf32, #tpu.memory_space<smem>>
    %c32 = arith.constant 32 : index
    %32 = memref.load %arg3[%c32] : memref<288xf32, #tpu.memory_space<smem>>
    %c33 = arith.constant 33 : index
    %33 = memref.load %arg3[%c33] : memref<288xf32, #tpu.memory_space<smem>>
    %c34 = arith.constant 34 : index
    %34 = memref.load %arg3[%c34] : memref<288xf32, #tpu.memory_space<smem>>
    %c35 = arith.constant 35 : index
    %35 = memref.load %arg3[%c35] : memref<288xf32, #tpu.memory_space<smem>>
    %c36 = arith.constant 36 : index
    %36 = memref.load %arg3[%c36] : memref<288xf32, #tpu.memory_space<smem>>
    %c37 = arith.constant 37 : index
    %37 = memref.load %arg3[%c37] : memref<288xf32, #tpu.memory_space<smem>>
    %c38 = arith.constant 38 : index
    %38 = memref.load %arg3[%c38] : memref<288xf32, #tpu.memory_space<smem>>
    %c39 = arith.constant 39 : index
    %39 = memref.load %arg3[%c39] : memref<288xf32, #tpu.memory_space<smem>>
    %c40 = arith.constant 40 : index
    %40 = memref.load %arg3[%c40] : memref<288xf32, #tpu.memory_space<smem>>
    %c41 = arith.constant 41 : index
    %41 = memref.load %arg3[%c41] : memref<288xf32, #tpu.memory_space<smem>>
    %c42 = arith.constant 42 : index
    %42 = memref.load %arg3[%c42] : memref<288xf32, #tpu.memory_space<smem>>
    %c43 = arith.constant 43 : index
    %43 = memref.load %arg3[%c43] : memref<288xf32, #tpu.memory_space<smem>>
    %c44 = arith.constant 44 : index
    %44 = memref.load %arg3[%c44] : memref<288xf32, #tpu.memory_space<smem>>
    %c45 = arith.constant 45 : index
    %45 = memref.load %arg3[%c45] : memref<288xf32, #tpu.memory_space<smem>>
    %c46 = arith.constant 46 : index
    %46 = memref.load %arg3[%c46] : memref<288xf32, #tpu.memory_space<smem>>
    %c47 = arith.constant 47 : index
    %47 = memref.load %arg3[%c47] : memref<288xf32, #tpu.memory_space<smem>>
    %c48 = arith.constant 48 : index
    %48 = memref.load %arg3[%c48] : memref<288xf32, #tpu.memory_space<smem>>
    %c49 = arith.constant 49 : index
    %49 = memref.load %arg3[%c49] : memref<288xf32, #tpu.memory_space<smem>>
    %c50 = arith.constant 50 : index
    %50 = memref.load %arg3[%c50] : memref<288xf32, #tpu.memory_space<smem>>
    %c51 = arith.constant 51 : index
    %51 = memref.load %arg3[%c51] : memref<288xf32, #tpu.memory_space<smem>>
    %c52 = arith.constant 52 : index
    %52 = memref.load %arg3[%c52] : memref<288xf32, #tpu.memory_space<smem>>
    %c53 = arith.constant 53 : index
    %53 = memref.load %arg3[%c53] : memref<288xf32, #tpu.memory_space<smem>>
    %c54 = arith.constant 54 : index
    %54 = memref.load %arg3[%c54] : memref<288xf32, #tpu.memory_space<smem>>
    %c55 = arith.constant 55 : index
    %55 = memref.load %arg3[%c55] : memref<288xf32, #tpu.memory_space<smem>>
    %c56 = arith.constant 56 : index
    %56 = memref.load %arg3[%c56] : memref<288xf32, #tpu.memory_space<smem>>
    %c57 = arith.constant 57 : index
    %57 = memref.load %arg3[%c57] : memref<288xf32, #tpu.memory_space<smem>>
    %c58 = arith.constant 58 : index
    %58 = memref.load %arg3[%c58] : memref<288xf32, #tpu.memory_space<smem>>
    %c59 = arith.constant 59 : index
    %59 = memref.load %arg3[%c59] : memref<288xf32, #tpu.memory_space<smem>>
    %c60 = arith.constant 60 : index
    %60 = memref.load %arg3[%c60] : memref<288xf32, #tpu.memory_space<smem>>
    %c61 = arith.constant 61 : index
    %61 = memref.load %arg3[%c61] : memref<288xf32, #tpu.memory_space<smem>>
    %c62 = arith.constant 62 : index
    %62 = memref.load %arg3[%c62] : memref<288xf32, #tpu.memory_space<smem>>
    %c63 = arith.constant 63 : index
    %63 = memref.load %arg3[%c63] : memref<288xf32, #tpu.memory_space<smem>>
    %c64 = arith.constant 64 : index
    %64 = memref.load %arg3[%c64] : memref<288xf32, #tpu.memory_space<smem>>
    %c65 = arith.constant 65 : index
    %65 = memref.load %arg3[%c65] : memref<288xf32, #tpu.memory_space<smem>>
    %c66 = arith.constant 66 : index
    %66 = memref.load %arg3[%c66] : memref<288xf32, #tpu.memory_space<smem>>
    %c67 = arith.constant 67 : index
    %67 = memref.load %arg3[%c67] : memref<288xf32, #tpu.memory_space<smem>>
    %c68 = arith.constant 68 : index
    %68 = memref.load %arg3[%c68] : memref<288xf32, #tpu.memory_space<smem>>
    %c69 = arith.constant 69 : index
    %69 = memref.load %arg3[%c69] : memref<288xf32, #tpu.memory_space<smem>>
    %c70 = arith.constant 70 : index
    %70 = memref.load %arg3[%c70] : memref<288xf32, #tpu.memory_space<smem>>
    %c71 = arith.constant 71 : index
    %71 = memref.load %arg3[%c71] : memref<288xf32, #tpu.memory_space<smem>>
    %c72 = arith.constant 72 : index
    %72 = memref.load %arg3[%c72] : memref<288xf32, #tpu.memory_space<smem>>
    %c73 = arith.constant 73 : index
    %73 = memref.load %arg3[%c73] : memref<288xf32, #tpu.memory_space<smem>>
    %c74 = arith.constant 74 : index
    %74 = memref.load %arg3[%c74] : memref<288xf32, #tpu.memory_space<smem>>
    %c75 = arith.constant 75 : index
    %75 = memref.load %arg3[%c75] : memref<288xf32, #tpu.memory_space<smem>>
    %c76 = arith.constant 76 : index
    %76 = memref.load %arg3[%c76] : memref<288xf32, #tpu.memory_space<smem>>
    %c77 = arith.constant 77 : index
    %77 = memref.load %arg3[%c77] : memref<288xf32, #tpu.memory_space<smem>>
    %c78 = arith.constant 78 : index
    %78 = memref.load %arg3[%c78] : memref<288xf32, #tpu.memory_space<smem>>
    %c79 = arith.constant 79 : index
    %79 = memref.load %arg3[%c79] : memref<288xf32, #tpu.memory_space<smem>>
    %c80 = arith.constant 80 : index
    %80 = memref.load %arg3[%c80] : memref<288xf32, #tpu.memory_space<smem>>
    %c81 = arith.constant 81 : index
    %81 = memref.load %arg3[%c81] : memref<288xf32, #tpu.memory_space<smem>>
    %c82 = arith.constant 82 : index
    %82 = memref.load %arg3[%c82] : memref<288xf32, #tpu.memory_space<smem>>
    %c83 = arith.constant 83 : index
    %83 = memref.load %arg3[%c83] : memref<288xf32, #tpu.memory_space<smem>>
    %c84 = arith.constant 84 : index
    %84 = memref.load %arg3[%c84] : memref<288xf32, #tpu.memory_space<smem>>
    %c85 = arith.constant 85 : index
    %85 = memref.load %arg3[%c85] : memref<288xf32, #tpu.memory_space<smem>>
    %c86 = arith.constant 86 : index
    %86 = memref.load %arg3[%c86] : memref<288xf32, #tpu.memory_space<smem>>
    %c87 = arith.constant 87 : index
    %87 = memref.load %arg3[%c87] : memref<288xf32, #tpu.memory_space<smem>>
    %c88 = arith.constant 88 : index
    %88 = memref.load %arg3[%c88] : memref<288xf32, #tpu.memory_space<smem>>
    %c89 = arith.constant 89 : index
    %89 = memref.load %arg3[%c89] : memref<288xf32, #tpu.memory_space<smem>>
    %c90 = arith.constant 90 : index
    %90 = memref.load %arg3[%c90] : memref<288xf32, #tpu.memory_space<smem>>
    %c91 = arith.constant 91 : index
    %91 = memref.load %arg3[%c91] : memref<288xf32, #tpu.memory_space<smem>>
    %c92 = arith.constant 92 : index
    %92 = memref.load %arg3[%c92] : memref<288xf32, #tpu.memory_space<smem>>
    %c93 = arith.constant 93 : index
    %93 = memref.load %arg3[%c93] : memref<288xf32, #tpu.memory_space<smem>>
    %c94 = arith.constant 94 : index
    %94 = memref.load %arg3[%c94] : memref<288xf32, #tpu.memory_space<smem>>
    %c95 = arith.constant 95 : index
    %95 = memref.load %arg3[%c95] : memref<288xf32, #tpu.memory_space<smem>>
    %c96 = arith.constant 96 : index
    %96 = memref.load %arg3[%c96] : memref<288xf32, #tpu.memory_space<smem>>
    %c97 = arith.constant 97 : index
    %97 = memref.load %arg3[%c97] : memref<288xf32, #tpu.memory_space<smem>>
    %c98 = arith.constant 98 : index
    %98 = memref.load %arg3[%c98] : memref<288xf32, #tpu.memory_space<smem>>
    %c99 = arith.constant 99 : index
    %99 = memref.load %arg3[%c99] : memref<288xf32, #tpu.memory_space<smem>>
    %c100 = arith.constant 100 : index
    %100 = memref.load %arg3[%c100] : memref<288xf32, #tpu.memory_space<smem>>
    %c101 = arith.constant 101 : index
    %101 = memref.load %arg3[%c101] : memref<288xf32, #tpu.memory_space<smem>>
    %c102 = arith.constant 102 : index
    %102 = memref.load %arg3[%c102] : memref<288xf32, #tpu.memory_space<smem>>
    %c103 = arith.constant 103 : index
    %103 = memref.load %arg3[%c103] : memref<288xf32, #tpu.memory_space<smem>>
    %c104 = arith.constant 104 : index
    %104 = memref.load %arg3[%c104] : memref<288xf32, #tpu.memory_space<smem>>
    %c105 = arith.constant 105 : index
    %105 = memref.load %arg3[%c105] : memref<288xf32, #tpu.memory_space<smem>>
    %c106 = arith.constant 106 : index
    %106 = memref.load %arg3[%c106] : memref<288xf32, #tpu.memory_space<smem>>
    %c107 = arith.constant 107 : index
    %107 = memref.load %arg3[%c107] : memref<288xf32, #tpu.memory_space<smem>>
    %c108 = arith.constant 108 : index
    %108 = memref.load %arg3[%c108] : memref<288xf32, #tpu.memory_space<smem>>
    %c109 = arith.constant 109 : index
    %109 = memref.load %arg3[%c109] : memref<288xf32, #tpu.memory_space<smem>>
    %c110 = arith.constant 110 : index
    %110 = memref.load %arg3[%c110] : memref<288xf32, #tpu.memory_space<smem>>
    %c111 = arith.constant 111 : index
    %111 = memref.load %arg3[%c111] : memref<288xf32, #tpu.memory_space<smem>>
    %c112 = arith.constant 112 : index
    %112 = memref.load %arg3[%c112] : memref<288xf32, #tpu.memory_space<smem>>
    %c113 = arith.constant 113 : index
    %113 = memref.load %arg3[%c113] : memref<288xf32, #tpu.memory_space<smem>>
    %c114 = arith.constant 114 : index
    %114 = memref.load %arg3[%c114] : memref<288xf32, #tpu.memory_space<smem>>
    %c115 = arith.constant 115 : index
    %115 = memref.load %arg3[%c115] : memref<288xf32, #tpu.memory_space<smem>>
    %c116 = arith.constant 116 : index
    %116 = memref.load %arg3[%c116] : memref<288xf32, #tpu.memory_space<smem>>
    %c117 = arith.constant 117 : index
    %117 = memref.load %arg3[%c117] : memref<288xf32, #tpu.memory_space<smem>>
    %c118 = arith.constant 118 : index
    %118 = memref.load %arg3[%c118] : memref<288xf32, #tpu.memory_space<smem>>
    %c119 = arith.constant 119 : index
    %119 = memref.load %arg3[%c119] : memref<288xf32, #tpu.memory_space<smem>>
    %c120 = arith.constant 120 : index
    %120 = memref.load %arg3[%c120] : memref<288xf32, #tpu.memory_space<smem>>
    %c121 = arith.constant 121 : index
    %121 = memref.load %arg3[%c121] : memref<288xf32, #tpu.memory_space<smem>>
    %c122 = arith.constant 122 : index
    %122 = memref.load %arg3[%c122] : memref<288xf32, #tpu.memory_space<smem>>
    %c123 = arith.constant 123 : index
    %123 = memref.load %arg3[%c123] : memref<288xf32, #tpu.memory_space<smem>>
    %c124 = arith.constant 124 : index
    %124 = memref.load %arg3[%c124] : memref<288xf32, #tpu.memory_space<smem>>
    %c125 = arith.constant 125 : index
    %125 = memref.load %arg3[%c125] : memref<288xf32, #tpu.memory_space<smem>>
    %c126 = arith.constant 126 : index
    %126 = memref.load %arg3[%c126] : memref<288xf32, #tpu.memory_space<smem>>
    %c127 = arith.constant 127 : index
    %127 = memref.load %arg3[%c127] : memref<288xf32, #tpu.memory_space<smem>>
    %c128 = arith.constant 128 : index
    %128 = memref.load %arg3[%c128] : memref<288xf32, #tpu.memory_space<smem>>
    %c129 = arith.constant 129 : index
    %129 = memref.load %arg3[%c129] : memref<288xf32, #tpu.memory_space<smem>>
    %c130 = arith.constant 130 : index
    %130 = memref.load %arg3[%c130] : memref<288xf32, #tpu.memory_space<smem>>
    %c131 = arith.constant 131 : index
    %131 = memref.load %arg3[%c131] : memref<288xf32, #tpu.memory_space<smem>>
    %c132 = arith.constant 132 : index
    %132 = memref.load %arg3[%c132] : memref<288xf32, #tpu.memory_space<smem>>
    %c133 = arith.constant 133 : index
    %133 = memref.load %arg3[%c133] : memref<288xf32, #tpu.memory_space<smem>>
    %c134 = arith.constant 134 : index
    %134 = memref.load %arg3[%c134] : memref<288xf32, #tpu.memory_space<smem>>
    %c135 = arith.constant 135 : index
    %135 = memref.load %arg3[%c135] : memref<288xf32, #tpu.memory_space<smem>>
    %c136 = arith.constant 136 : index
    %136 = memref.load %arg3[%c136] : memref<288xf32, #tpu.memory_space<smem>>
    %c137 = arith.constant 137 : index
    %137 = memref.load %arg3[%c137] : memref<288xf32, #tpu.memory_space<smem>>
    %c138 = arith.constant 138 : index
    %138 = memref.load %arg3[%c138] : memref<288xf32, #tpu.memory_space<smem>>
    %c139 = arith.constant 139 : index
    %139 = memref.load %arg3[%c139] : memref<288xf32, #tpu.memory_space<smem>>
    %c140 = arith.constant 140 : index
    %140 = memref.load %arg3[%c140] : memref<288xf32, #tpu.memory_space<smem>>
    %c141 = arith.constant 141 : index
    %141 = memref.load %arg3[%c141] : memref<288xf32, #tpu.memory_space<smem>>
    %c142 = arith.constant 142 : index
    %142 = memref.load %arg3[%c142] : memref<288xf32, #tpu.memory_space<smem>>
    %c143 = arith.constant 143 : index
    %143 = memref.load %arg3[%c143] : memref<288xf32, #tpu.memory_space<smem>>
    %c144 = arith.constant 144 : index
    %144 = memref.load %arg3[%c144] : memref<288xf32, #tpu.memory_space<smem>>
    %c145 = arith.constant 145 : index
    %145 = memref.load %arg3[%c145] : memref<288xf32, #tpu.memory_space<smem>>
    %c146 = arith.constant 146 : index
    %146 = memref.load %arg3[%c146] : memref<288xf32, #tpu.memory_space<smem>>
    %c147 = arith.constant 147 : index
    %147 = memref.load %arg3[%c147] : memref<288xf32, #tpu.memory_space<smem>>
    %c148 = arith.constant 148 : index
    %148 = memref.load %arg3[%c148] : memref<288xf32, #tpu.memory_space<smem>>
    %c149 = arith.constant 149 : index
    %149 = memref.load %arg3[%c149] : memref<288xf32, #tpu.memory_space<smem>>
    %c150 = arith.constant 150 : index
    %150 = memref.load %arg3[%c150] : memref<288xf32, #tpu.memory_space<smem>>
    %c151 = arith.constant 151 : index
    %151 = memref.load %arg3[%c151] : memref<288xf32, #tpu.memory_space<smem>>
    %c152 = arith.constant 152 : index
    %152 = memref.load %arg3[%c152] : memref<288xf32, #tpu.memory_space<smem>>
    %c153 = arith.constant 153 : index
    %153 = memref.load %arg3[%c153] : memref<288xf32, #tpu.memory_space<smem>>
    %c154 = arith.constant 154 : index
    %154 = memref.load %arg3[%c154] : memref<288xf32, #tpu.memory_space<smem>>
    %c155 = arith.constant 155 : index
    %155 = memref.load %arg3[%c155] : memref<288xf32, #tpu.memory_space<smem>>
    %c156 = arith.constant 156 : index
    %156 = memref.load %arg3[%c156] : memref<288xf32, #tpu.memory_space<smem>>
    %c157 = arith.constant 157 : index
    %157 = memref.load %arg3[%c157] : memref<288xf32, #tpu.memory_space<smem>>
    %c158 = arith.constant 158 : index
    %158 = memref.load %arg3[%c158] : memref<288xf32, #tpu.memory_space<smem>>
    %c159 = arith.constant 159 : index
    %159 = memref.load %arg3[%c159] : memref<288xf32, #tpu.memory_space<smem>>
    %c160 = arith.constant 160 : index
    %160 = memref.load %arg3[%c160] : memref<288xf32, #tpu.memory_space<smem>>
    %c161 = arith.constant 161 : index
    %161 = memref.load %arg3[%c161] : memref<288xf32, #tpu.memory_space<smem>>
    %c162 = arith.constant 162 : index
    %162 = memref.load %arg3[%c162] : memref<288xf32, #tpu.memory_space<smem>>
    %c163 = arith.constant 163 : index
    %163 = memref.load %arg3[%c163] : memref<288xf32, #tpu.memory_space<smem>>
    %c164 = arith.constant 164 : index
    %164 = memref.load %arg3[%c164] : memref<288xf32, #tpu.memory_space<smem>>
    %c165 = arith.constant 165 : index
    %165 = memref.load %arg3[%c165] : memref<288xf32, #tpu.memory_space<smem>>
    %c166 = arith.constant 166 : index
    %166 = memref.load %arg3[%c166] : memref<288xf32, #tpu.memory_space<smem>>
    %c167 = arith.constant 167 : index
    %167 = memref.load %arg3[%c167] : memref<288xf32, #tpu.memory_space<smem>>
    %c168 = arith.constant 168 : index
    %168 = memref.load %arg3[%c168] : memref<288xf32, #tpu.memory_space<smem>>
    %c169 = arith.constant 169 : index
    %169 = memref.load %arg3[%c169] : memref<288xf32, #tpu.memory_space<smem>>
    %c170 = arith.constant 170 : index
    %170 = memref.load %arg3[%c170] : memref<288xf32, #tpu.memory_space<smem>>
    %c171 = arith.constant 171 : index
    %171 = memref.load %arg3[%c171] : memref<288xf32, #tpu.memory_space<smem>>
    %c172 = arith.constant 172 : index
    %172 = memref.load %arg3[%c172] : memref<288xf32, #tpu.memory_space<smem>>
    %c173 = arith.constant 173 : index
    %173 = memref.load %arg3[%c173] : memref<288xf32, #tpu.memory_space<smem>>
    %c174 = arith.constant 174 : index
    %174 = memref.load %arg3[%c174] : memref<288xf32, #tpu.memory_space<smem>>
    %c175 = arith.constant 175 : index
    %175 = memref.load %arg3[%c175] : memref<288xf32, #tpu.memory_space<smem>>
    %c176 = arith.constant 176 : index
    %176 = memref.load %arg3[%c176] : memref<288xf32, #tpu.memory_space<smem>>
    %c177 = arith.constant 177 : index
    %177 = memref.load %arg3[%c177] : memref<288xf32, #tpu.memory_space<smem>>
    %c178 = arith.constant 178 : index
    %178 = memref.load %arg3[%c178] : memref<288xf32, #tpu.memory_space<smem>>
    %c179 = arith.constant 179 : index
    %179 = memref.load %arg3[%c179] : memref<288xf32, #tpu.memory_space<smem>>
    %c180 = arith.constant 180 : index
    %180 = memref.load %arg3[%c180] : memref<288xf32, #tpu.memory_space<smem>>
    %c181 = arith.constant 181 : index
    %181 = memref.load %arg3[%c181] : memref<288xf32, #tpu.memory_space<smem>>
    %c182 = arith.constant 182 : index
    %182 = memref.load %arg3[%c182] : memref<288xf32, #tpu.memory_space<smem>>
    %c183 = arith.constant 183 : index
    %183 = memref.load %arg3[%c183] : memref<288xf32, #tpu.memory_space<smem>>
    %c184 = arith.constant 184 : index
    %184 = memref.load %arg3[%c184] : memref<288xf32, #tpu.memory_space<smem>>
    %c185 = arith.constant 185 : index
    %185 = memref.load %arg3[%c185] : memref<288xf32, #tpu.memory_space<smem>>
    %c186 = arith.constant 186 : index
    %186 = memref.load %arg3[%c186] : memref<288xf32, #tpu.memory_space<smem>>
    %c187 = arith.constant 187 : index
    %187 = memref.load %arg3[%c187] : memref<288xf32, #tpu.memory_space<smem>>
    %c188 = arith.constant 188 : index
    %188 = memref.load %arg3[%c188] : memref<288xf32, #tpu.memory_space<smem>>
    %c189 = arith.constant 189 : index
    %189 = memref.load %arg3[%c189] : memref<288xf32, #tpu.memory_space<smem>>
    %c190 = arith.constant 190 : index
    %190 = memref.load %arg3[%c190] : memref<288xf32, #tpu.memory_space<smem>>
    %c191 = arith.constant 191 : index
    %191 = memref.load %arg3[%c191] : memref<288xf32, #tpu.memory_space<smem>>
    %c192 = arith.constant 192 : index
    %192 = memref.load %arg3[%c192] : memref<288xf32, #tpu.memory_space<smem>>
    %c193 = arith.constant 193 : index
    %193 = memref.load %arg3[%c193] : memref<288xf32, #tpu.memory_space<smem>>
    %c194 = arith.constant 194 : index
    %194 = memref.load %arg3[%c194] : memref<288xf32, #tpu.memory_space<smem>>
    %c195 = arith.constant 195 : index
    %195 = memref.load %arg3[%c195] : memref<288xf32, #tpu.memory_space<smem>>
    %c196 = arith.constant 196 : index
    %196 = memref.load %arg3[%c196] : memref<288xf32, #tpu.memory_space<smem>>
    %c197 = arith.constant 197 : index
    %197 = memref.load %arg3[%c197] : memref<288xf32, #tpu.memory_space<smem>>
    %c198 = arith.constant 198 : index
    %198 = memref.load %arg3[%c198] : memref<288xf32, #tpu.memory_space<smem>>
    %c199 = arith.constant 199 : index
    %199 = memref.load %arg3[%c199] : memref<288xf32, #tpu.memory_space<smem>>
    %c200 = arith.constant 200 : index
    %200 = memref.load %arg3[%c200] : memref<288xf32, #tpu.memory_space<smem>>
    %c201 = arith.constant 201 : index
    %201 = memref.load %arg3[%c201] : memref<288xf32, #tpu.memory_space<smem>>
    %c202 = arith.constant 202 : index
    %202 = memref.load %arg3[%c202] : memref<288xf32, #tpu.memory_space<smem>>
    %c203 = arith.constant 203 : index
    %203 = memref.load %arg3[%c203] : memref<288xf32, #tpu.memory_space<smem>>
    %c204 = arith.constant 204 : index
    %204 = memref.load %arg3[%c204] : memref<288xf32, #tpu.memory_space<smem>>
    %c205 = arith.constant 205 : index
    %205 = memref.load %arg3[%c205] : memref<288xf32, #tpu.memory_space<smem>>
    %c206 = arith.constant 206 : index
    %206 = memref.load %arg3[%c206] : memref<288xf32, #tpu.memory_space<smem>>
    %c207 = arith.constant 207 : index
    %207 = memref.load %arg3[%c207] : memref<288xf32, #tpu.memory_space<smem>>
    %c208 = arith.constant 208 : index
    %208 = memref.load %arg3[%c208] : memref<288xf32, #tpu.memory_space<smem>>
    %c209 = arith.constant 209 : index
    %209 = memref.load %arg3[%c209] : memref<288xf32, #tpu.memory_space<smem>>
    %c210 = arith.constant 210 : index
    %210 = memref.load %arg3[%c210] : memref<288xf32, #tpu.memory_space<smem>>
    %c211 = arith.constant 211 : index
    %211 = memref.load %arg3[%c211] : memref<288xf32, #tpu.memory_space<smem>>
    %c212 = arith.constant 212 : index
    %212 = memref.load %arg3[%c212] : memref<288xf32, #tpu.memory_space<smem>>
    %c213 = arith.constant 213 : index
    %213 = memref.load %arg3[%c213] : memref<288xf32, #tpu.memory_space<smem>>
    %c214 = arith.constant 214 : index
    %214 = memref.load %arg3[%c214] : memref<288xf32, #tpu.memory_space<smem>>
    %c215 = arith.constant 215 : index
    %215 = memref.load %arg3[%c215] : memref<288xf32, #tpu.memory_space<smem>>
    %c216 = arith.constant 216 : index
    %216 = memref.load %arg3[%c216] : memref<288xf32, #tpu.memory_space<smem>>
    %c217 = arith.constant 217 : index
    %217 = memref.load %arg3[%c217] : memref<288xf32, #tpu.memory_space<smem>>
    %c218 = arith.constant 218 : index
    %218 = memref.load %arg3[%c218] : memref<288xf32, #tpu.memory_space<smem>>
    %c219 = arith.constant 219 : index
    %219 = memref.load %arg3[%c219] : memref<288xf32, #tpu.memory_space<smem>>
    %c220 = arith.constant 220 : index
    %220 = memref.load %arg3[%c220] : memref<288xf32, #tpu.memory_space<smem>>
    %c221 = arith.constant 221 : index
    %221 = memref.load %arg3[%c221] : memref<288xf32, #tpu.memory_space<smem>>
    %c222 = arith.constant 222 : index
    %222 = memref.load %arg3[%c222] : memref<288xf32, #tpu.memory_space<smem>>
    %c223 = arith.constant 223 : index
    %223 = memref.load %arg3[%c223] : memref<288xf32, #tpu.memory_space<smem>>
    %c224 = arith.constant 224 : index
    %224 = memref.load %arg3[%c224] : memref<288xf32, #tpu.memory_space<smem>>
    %c225 = arith.constant 225 : index
    %225 = memref.load %arg3[%c225] : memref<288xf32, #tpu.memory_space<smem>>
    %c226 = arith.constant 226 : index
    %226 = memref.load %arg3[%c226] : memref<288xf32, #tpu.memory_space<smem>>
    %c227 = arith.constant 227 : index
    %227 = memref.load %arg3[%c227] : memref<288xf32, #tpu.memory_space<smem>>
    %c228 = arith.constant 228 : index
    %228 = memref.load %arg3[%c228] : memref<288xf32, #tpu.memory_space<smem>>
    %c229 = arith.constant 229 : index
    %229 = memref.load %arg3[%c229] : memref<288xf32, #tpu.memory_space<smem>>
    %c230 = arith.constant 230 : index
    %230 = memref.load %arg3[%c230] : memref<288xf32, #tpu.memory_space<smem>>
    %c231 = arith.constant 231 : index
    %231 = memref.load %arg3[%c231] : memref<288xf32, #tpu.memory_space<smem>>
    %c232 = arith.constant 232 : index
    %232 = memref.load %arg3[%c232] : memref<288xf32, #tpu.memory_space<smem>>
    %c233 = arith.constant 233 : index
    %233 = memref.load %arg3[%c233] : memref<288xf32, #tpu.memory_space<smem>>
    %c234 = arith.constant 234 : index
    %234 = memref.load %arg3[%c234] : memref<288xf32, #tpu.memory_space<smem>>
    %c235 = arith.constant 235 : index
    %235 = memref.load %arg3[%c235] : memref<288xf32, #tpu.memory_space<smem>>
    %c236 = arith.constant 236 : index
    %236 = memref.load %arg3[%c236] : memref<288xf32, #tpu.memory_space<smem>>
    %c237 = arith.constant 237 : index
    %237 = memref.load %arg3[%c237] : memref<288xf32, #tpu.memory_space<smem>>
    %c238 = arith.constant 238 : index
    %238 = memref.load %arg3[%c238] : memref<288xf32, #tpu.memory_space<smem>>
    %c239 = arith.constant 239 : index
    %239 = memref.load %arg3[%c239] : memref<288xf32, #tpu.memory_space<smem>>
    %c240 = arith.constant 240 : index
    %240 = memref.load %arg3[%c240] : memref<288xf32, #tpu.memory_space<smem>>
    %c241 = arith.constant 241 : index
    %241 = memref.load %arg3[%c241] : memref<288xf32, #tpu.memory_space<smem>>
    %c242 = arith.constant 242 : index
    %242 = memref.load %arg3[%c242] : memref<288xf32, #tpu.memory_space<smem>>
    %c243 = arith.constant 243 : index
    %243 = memref.load %arg3[%c243] : memref<288xf32, #tpu.memory_space<smem>>
    %c244 = arith.constant 244 : index
    %244 = memref.load %arg3[%c244] : memref<288xf32, #tpu.memory_space<smem>>
    %c245 = arith.constant 245 : index
    %245 = memref.load %arg3[%c245] : memref<288xf32, #tpu.memory_space<smem>>
    %c246 = arith.constant 246 : index
    %246 = memref.load %arg3[%c246] : memref<288xf32, #tpu.memory_space<smem>>
    %c247 = arith.constant 247 : index
    %247 = memref.load %arg3[%c247] : memref<288xf32, #tpu.memory_space<smem>>
    %c248 = arith.constant 248 : index
    %248 = memref.load %arg3[%c248] : memref<288xf32, #tpu.memory_space<smem>>
    %c249 = arith.constant 249 : index
    %249 = memref.load %arg3[%c249] : memref<288xf32, #tpu.memory_space<smem>>
    %c250 = arith.constant 250 : index
    %250 = memref.load %arg3[%c250] : memref<288xf32, #tpu.memory_space<smem>>
    %c251 = arith.constant 251 : index
    %251 = memref.load %arg3[%c251] : memref<288xf32, #tpu.memory_space<smem>>
    %c252 = arith.constant 252 : index
    %252 = memref.load %arg3[%c252] : memref<288xf32, #tpu.memory_space<smem>>
    %c253 = arith.constant 253 : index
    %253 = memref.load %arg3[%c253] : memref<288xf32, #tpu.memory_space<smem>>
    %c254 = arith.constant 254 : index
    %254 = memref.load %arg3[%c254] : memref<288xf32, #tpu.memory_space<smem>>
    %c255 = arith.constant 255 : index
    %255 = memref.load %arg3[%c255] : memref<288xf32, #tpu.memory_space<smem>>
    %c256 = arith.constant 256 : index
    %256 = memref.load %arg3[%c256] : memref<288xf32, #tpu.memory_space<smem>>
    %c257 = arith.constant 257 : index
    %257 = memref.load %arg3[%c257] : memref<288xf32, #tpu.memory_space<smem>>
    %c258 = arith.constant 258 : index
    %258 = memref.load %arg3[%c258] : memref<288xf32, #tpu.memory_space<smem>>
    %c259 = arith.constant 259 : index
    %259 = memref.load %arg3[%c259] : memref<288xf32, #tpu.memory_space<smem>>
    %c260 = arith.constant 260 : index
    %260 = memref.load %arg3[%c260] : memref<288xf32, #tpu.memory_space<smem>>
    %c261 = arith.constant 261 : index
    %261 = memref.load %arg3[%c261] : memref<288xf32, #tpu.memory_space<smem>>
    %c262 = arith.constant 262 : index
    %262 = memref.load %arg3[%c262] : memref<288xf32, #tpu.memory_space<smem>>
    %c263 = arith.constant 263 : index
    %263 = memref.load %arg3[%c263] : memref<288xf32, #tpu.memory_space<smem>>
    %c264 = arith.constant 264 : index
    %264 = memref.load %arg3[%c264] : memref<288xf32, #tpu.memory_space<smem>>
    %c265 = arith.constant 265 : index
    %265 = memref.load %arg3[%c265] : memref<288xf32, #tpu.memory_space<smem>>
    %c266 = arith.constant 266 : index
    %266 = memref.load %arg3[%c266] : memref<288xf32, #tpu.memory_space<smem>>
    %c267 = arith.constant 267 : index
    %267 = memref.load %arg3[%c267] : memref<288xf32, #tpu.memory_space<smem>>
    %c268 = arith.constant 268 : index
    %268 = memref.load %arg3[%c268] : memref<288xf32, #tpu.memory_space<smem>>
    %c269 = arith.constant 269 : index
    %269 = memref.load %arg3[%c269] : memref<288xf32, #tpu.memory_space<smem>>
    %c270 = arith.constant 270 : index
    %270 = memref.load %arg3[%c270] : memref<288xf32, #tpu.memory_space<smem>>
    %c271 = arith.constant 271 : index
    %271 = memref.load %arg3[%c271] : memref<288xf32, #tpu.memory_space<smem>>
    %c272 = arith.constant 272 : index
    %272 = memref.load %arg3[%c272] : memref<288xf32, #tpu.memory_space<smem>>
    %c273 = arith.constant 273 : index
    %273 = memref.load %arg3[%c273] : memref<288xf32, #tpu.memory_space<smem>>
    %c274 = arith.constant 274 : index
    %274 = memref.load %arg3[%c274] : memref<288xf32, #tpu.memory_space<smem>>
    %c275 = arith.constant 275 : index
    %275 = memref.load %arg3[%c275] : memref<288xf32, #tpu.memory_space<smem>>
    %c276 = arith.constant 276 : index
    %276 = memref.load %arg3[%c276] : memref<288xf32, #tpu.memory_space<smem>>
    %c277 = arith.constant 277 : index
    %277 = memref.load %arg3[%c277] : memref<288xf32, #tpu.memory_space<smem>>
    %c278 = arith.constant 278 : index
    %278 = memref.load %arg3[%c278] : memref<288xf32, #tpu.memory_space<smem>>
    %c279 = arith.constant 279 : index
    %279 = memref.load %arg3[%c279] : memref<288xf32, #tpu.memory_space<smem>>
    %c280 = arith.constant 280 : index
    %280 = memref.load %arg3[%c280] : memref<288xf32, #tpu.memory_space<smem>>
    %c281 = arith.constant 281 : index
    %281 = memref.load %arg3[%c281] : memref<288xf32, #tpu.memory_space<smem>>
    %c282 = arith.constant 282 : index
    %282 = memref.load %arg3[%c282] : memref<288xf32, #tpu.memory_space<smem>>
    %c283 = arith.constant 283 : index
    %283 = memref.load %arg3[%c283] : memref<288xf32, #tpu.memory_space<smem>>
    %c284 = arith.constant 284 : index
    %284 = memref.load %arg3[%c284] : memref<288xf32, #tpu.memory_space<smem>>
    %c285 = arith.constant 285 : index
    %285 = memref.load %arg3[%c285] : memref<288xf32, #tpu.memory_space<smem>>
    %c286 = arith.constant 286 : index
    %286 = memref.load %arg3[%c286] : memref<288xf32, #tpu.memory_space<smem>>
    %c287 = arith.constant 287 : index
    %287 = memref.load %arg3[%c287] : memref<288xf32, #tpu.memory_space<smem>>
    %cst = arith.constant 0.000000e+00 : f32
    %288 = vector.broadcast %cst : f32 to vector<8x8x128xf32>
    %c0_0 = arith.constant 0 : index
    %c0_1 = arith.constant 0 : index
    %c0_2 = arith.constant 0 : index
    %289 = vector.load %arg7[%c0_0, %c0_1, %c0_2] : memref<8x8x128xf32, #tpu.memory_space<vmem>>, vector<8x8x128xf32>
    tpu.vector_store %arg7[%c0_0, %c0_1, %c0_2], %288 {strides = array<i32>} : memref<8x8x128xf32, #tpu.memory_space<vmem>>, vector<8x8x128xf32>,
    %c0_3 = arith.constant 0 : index
    %c0_4 = arith.constant 0 : index
    %c0_5 = arith.constant 0 : index
    %c0_6 = arith.constant 0 : index
    %290 = vector.load %arg4[%c0_3, %c0_4, %c0_5, %c0_6] : memref<1x4x8x132xf32, #tpu.memory_space<vmem>>, vector<1x1x8x132xf32>
    %291 = vector.shape_cast %290 : vector<1x1x8x132xf32> to vector<8x132xf32>
    %292 = vector.extract_strided_slice %291 {offsets = [0, 0], sizes = [8, 128], strides = [1, 1]} : vector<8x132xf32> to vector<8x128xf32>
    %293 = vector.extract_strided_slice %291 {offsets = [0, 2], sizes = [8, 128], strides = [1, 1]} : vector<8x132xf32> to vector<8x128xf32>
    %294 = vector.extract_strided_slice %291 {offsets = [0, 4], sizes = [8, 128], strides = [1, 1]} : vector<8x132xf32> to vector<8x128xf32>
    %295 = vector.broadcast %0 : f32 to vector<8x128xf32>
    %296 = arith.mulf %295, %292 : vector<8x128xf32>
    %297 = vector.broadcast %36 : f32 to vector<8x128xf32>
    %298 = arith.mulf %297, %292 : vector<8x128xf32>
    %299 = vector.broadcast %72 : f32 to vector<8x128xf32>
    %300 = arith.mulf %299, %292 : vector<8x128xf32>
    %301 = vector.broadcast %108 : f32 to vector<8x128xf32>
    %302 = arith.mulf %301, %292 : vector<8x128xf32>
    %303 = vector.broadcast %144 : f32 to vector<8x128xf32>
    %304 = arith.mulf %303, %292 : vector<8x128xf32>
    %305 = vector.broadcast %180 : f32 to vector<8x128xf32>
    %306 = arith.mulf %305, %292 : vector<8x128xf32>
    %307 = vector.broadcast %216 : f32 to vector<8x128xf32>
    %308 = arith.mulf %307, %292 : vector<8x128xf32>
    %309 = vector.broadcast %252 : f32 to vector<8x128xf32>
    %310 = arith.mulf %309, %292 : vector<8x128xf32>
    %311 = vector.broadcast %1 : f32 to vector<8x128xf32>
    %312 = arith.mulf %311, %293 : vector<8x128xf32>
    %313 = arith.addf %296, %312 : vector<8x128xf32>
    %314 = vector.broadcast %37 : f32 to vector<8x128xf32>
    %315 = arith.mulf %314, %293 : vector<8x128xf32>
    %316 = arith.addf %298, %315 : vector<8x128xf32>
    %317 = vector.broadcast %73 : f32 to vector<8x128xf32>
    %318 = arith.mulf %317, %293 : vector<8x128xf32>
    %319 = arith.addf %300, %318 : vector<8x128xf32>
    %320 = vector.broadcast %109 : f32 to vector<8x128xf32>
    %321 = arith.mulf %320, %293 : vector<8x128xf32>
    %322 = arith.addf %302, %321 : vector<8x128xf32>
    %323 = vector.broadcast %145 : f32 to vector<8x128xf32>
    %324 = arith.mulf %323, %293 : vector<8x128xf32>
    %325 = arith.addf %304, %324 : vector<8x128xf32>
    %326 = vector.broadcast %181 : f32 to vector<8x128xf32>
    %327 = arith.mulf %326, %293 : vector<8x128xf32>
    %328 = arith.addf %306, %327 : vector<8x128xf32>
    %329 = vector.broadcast %217 : f32 to vector<8x128xf32>
    %330 = arith.mulf %329, %293 : vector<8x128xf32>
    %331 = arith.addf %308, %330 : vector<8x128xf32>
    %332 = vector.broadcast %253 : f32 to vector<8x128xf32>
    %333 = arith.mulf %332, %293 : vector<8x128xf32>
    %334 = arith.addf %310, %333 : vector<8x128xf32>
    %335 = vector.broadcast %2 : f32 to vector<8x128xf32>
    %336 = arith.mulf %335, %294 : vector<8x128xf32>
    %337 = arith.addf %313, %336 : vector<8x128xf32>
    %338 = vector.broadcast %38 : f32 to vector<8x128xf32>
    %339 = arith.mulf %338, %294 : vector<8x128xf32>
    %340 = arith.addf %316, %339 : vector<8x128xf32>
    %341 = vector.broadcast %74 : f32 to vector<8x128xf32>
    %342 = arith.mulf %341, %294 : vector<8x128xf32>
    %343 = arith.addf %319, %342 : vector<8x128xf32>
    %344 = vector.broadcast %110 : f32 to vector<8x128xf32>
    %345 = arith.mulf %344, %294 : vector<8x128xf32>
    %346 = arith.addf %322, %345 : vector<8x128xf32>
    %347 = vector.broadcast %146 : f32 to vector<8x128xf32>
    %348 = arith.mulf %347, %294 : vector<8x128xf32>
    %349 = arith.addf %325, %348 : vector<8x128xf32>
    %350 = vector.broadcast %182 : f32 to vector<8x128xf32>
    %351 = arith.mulf %350, %294 : vector<8x128xf32>
    %352 = arith.addf %328, %351 : vector<8x128xf32>
    %353 = vector.broadcast %218 : f32 to vector<8x128xf32>
    %354 = arith.mulf %353, %294 : vector<8x128xf32>
    %355 = arith.addf %331, %354 : vector<8x128xf32>
    %356 = vector.broadcast %254 : f32 to vector<8x128xf32>
    %357 = arith.mulf %356, %294 : vector<8x128xf32>
    %358 = arith.addf %334, %357 : vector<8x128xf32>
    %c0_7 = arith.constant 0 : index
    %c1_8 = arith.constant 1 : index
    %c0_9 = arith.constant 0 : index
    %c0_10 = arith.constant 0 : index
    %359 = vector.load %arg4[%c0_7, %c1_8, %c0_9, %c0_10] : memref<1x4x8x132xf32, #tpu.memory_space<vmem>>, vector<1x1x8x132xf32>
    %360 = vector.shape_cast %359 : vector<1x1x8x132xf32> to vector<8x132xf32>
    %361 = vector.extract_strided_slice %360 {offsets = [0, 0], sizes = [8, 128], strides = [1, 1]} : vector<8x132xf32> to vector<8x128xf32>
    %362 = vector.extract_strided_slice %360 {offsets = [0, 2], sizes = [8, 128], strides = [1, 1]} : vector<8x132xf32> to vector<8x128xf32>
    %363 = vector.extract_strided_slice %360 {offsets = [0, 4], sizes = [8, 128], strides = [1, 1]} : vector<8x132xf32> to vector<8x128xf32>
    %364 = vector.broadcast %9 : f32 to vector<8x128xf32>
    %365 = arith.mulf %364, %361 : vector<8x128xf32>
    %366 = arith.addf %337, %365 : vector<8x128xf32>
    %367 = vector.broadcast %45 : f32 to vector<8x128xf32>
    %368 = arith.mulf %367, %361 : vector<8x128xf32>
    %369 = arith.addf %340, %368 : vector<8x128xf32>
    %370 = vector.broadcast %81 : f32 to vector<8x128xf32>
    %371 = arith.mulf %370, %361 : vector<8x128xf32>
    %372 = arith.addf %343, %371 : vector<8x128xf32>
    %373 = vector.broadcast %117 : f32 to vector<8x128xf32>
    %374 = arith.mulf %373, %361 : vector<8x128xf32>
    %375 = arith.addf %346, %374 : vector<8x128xf32>
    %376 = vector.broadcast %153 : f32 to vector<8x128xf32>
    %377 = arith.mulf %376, %361 : vector<8x128xf32>
    %378 = arith.addf %349, %377 : vector<8x128xf32>
    %379 = vector.broadcast %189 : f32 to vector<8x128xf32>
    %380 = arith.mulf %379, %361 : vector<8x128xf32>
    %381 = arith.addf %352, %380 : vector<8x128xf32>
    %382 = vector.broadcast %225 : f32 to vector<8x128xf32>
    %383 = arith.mulf %382, %361 : vector<8x128xf32>
    %384 = arith.addf %355, %383 : vector<8x128xf32>
    %385 = vector.broadcast %261 : f32 to vector<8x128xf32>
    %386 = arith.mulf %385, %361 : vector<8x128xf32>
    %387 = arith.addf %358, %386 : vector<8x128xf32>
    %388 = vector.broadcast %10 : f32 to vector<8x128xf32>
    %389 = arith.mulf %388, %362 : vector<8x128xf32>
    %390 = arith.addf %366, %389 : vector<8x128xf32>
    %391 = vector.broadcast %46 : f32 to vector<8x128xf32>
    %392 = arith.mulf %391, %362 : vector<8x128xf32>
    %393 = arith.addf %369, %392 : vector<8x128xf32>
    %394 = vector.broadcast %82 : f32 to vector<8x128xf32>
    %395 = arith.mulf %394, %362 : vector<8x128xf32>
    %396 = arith.addf %372, %395 : vector<8x128xf32>
    %397 = vector.broadcast %118 : f32 to vector<8x128xf32>
    %398 = arith.mulf %397, %362 : vector<8x128xf32>
    %399 = arith.addf %375, %398 : vector<8x128xf32>
    %400 = vector.broadcast %154 : f32 to vector<8x128xf32>
    %401 = arith.mulf %400, %362 : vector<8x128xf32>
    %402 = arith.addf %378, %401 : vector<8x128xf32>
    %403 = vector.broadcast %190 : f32 to vector<8x128xf32>
    %404 = arith.mulf %403, %362 : vector<8x128xf32>
    %405 = arith.addf %381, %404 : vector<8x128xf32>
    %406 = vector.broadcast %226 : f32 to vector<8x128xf32>
    %407 = arith.mulf %406, %362 : vector<8x128xf32>
    %408 = arith.addf %384, %407 : vector<8x128xf32>
    %409 = vector.broadcast %262 : f32 to vector<8x128xf32>
    %410 = arith.mulf %409, %362 : vector<8x128xf32>
    %411 = arith.addf %387, %410 : vector<8x128xf32>
    %412 = vector.broadcast %11 : f32 to vector<8x128xf32>
    %413 = arith.mulf %412, %363 : vector<8x128xf32>
    %414 = arith.addf %390, %413 : vector<8x128xf32>
    %415 = vector.broadcast %47 : f32 to vector<8x128xf32>
    %416 = arith.mulf %415, %363 : vector<8x128xf32>
    %417 = arith.addf %393, %416 : vector<8x128xf32>
    %418 = vector.broadcast %83 : f32 to vector<8x128xf32>
    %419 = arith.mulf %418, %363 : vector<8x128xf32>
    %420 = arith.addf %396, %419 : vector<8x128xf32>
    %421 = vector.broadcast %119 : f32 to vector<8x128xf32>
    %422 = arith.mulf %421, %363 : vector<8x128xf32>
    %423 = arith.addf %399, %422 : vector<8x128xf32>
    %424 = vector.broadcast %155 : f32 to vector<8x128xf32>
    %425 = arith.mulf %424, %363 : vector<8x128xf32>
    %426 = arith.addf %402, %425 : vector<8x128xf32>
    %427 = vector.broadcast %191 : f32 to vector<8x128xf32>
    %428 = arith.mulf %427, %363 : vector<8x128xf32>
    %429 = arith.addf %405, %428 : vector<8x128xf32>
    %430 = vector.broadcast %227 : f32 to vector<8x128xf32>
    %431 = arith.mulf %430, %363 : vector<8x128xf32>
    %432 = arith.addf %408, %431 : vector<8x128xf32>
    %433 = vector.broadcast %263 : f32 to vector<8x128xf32>
    %434 = arith.mulf %433, %363 : vector<8x128xf32>
    %435 = arith.addf %411, %434 : vector<8x128xf32>
    %c0_11 = arith.constant 0 : index
    %c2_12 = arith.constant 2 : index
    %c0_13 = arith.constant 0 : index
    %c0_14 = arith.constant 0 : index
    %436 = vector.load %arg4[%c0_11, %c2_12, %c0_13, %c0_14] : memref<1x4x8x132xf32, #tpu.memory_space<vmem>>, vector<1x1x8x132xf32>
    %437 = vector.shape_cast %436 : vector<1x1x8x132xf32> to vector<8x132xf32>
    %438 = vector.extract_strided_slice %437 {offsets = [0, 0], sizes = [8, 128], strides = [1, 1]} : vector<8x132xf32> to vector<8x128xf32>
    %439 = vector.extract_strided_slice %437 {offsets = [0, 2], sizes = [8, 128], strides = [1, 1]} : vector<8x132xf32> to vector<8x128xf32>
    %440 = vector.extract_strided_slice %437 {offsets = [0, 4], sizes = [8, 128], strides = [1, 1]} : vector<8x132xf32> to vector<8x128xf32>
    %441 = vector.broadcast %18 : f32 to vector<8x128xf32>
    %442 = arith.mulf %441, %438 : vector<8x128xf32>
    %443 = arith.addf %414, %442 : vector<8x128xf32>
    %444 = vector.broadcast %54 : f32 to vector<8x128xf32>
    %445 = arith.mulf %444, %438 : vector<8x128xf32>
    %446 = arith.addf %417, %445 : vector<8x128xf32>
    %447 = vector.broadcast %90 : f32 to vector<8x128xf32>
    %448 = arith.mulf %447, %438 : vector<8x128xf32>
    %449 = arith.addf %420, %448 : vector<8x128xf32>
    %450 = vector.broadcast %126 : f32 to vector<8x128xf32>
    %451 = arith.mulf %450, %438 : vector<8x128xf32>
    %452 = arith.addf %423, %451 : vector<8x128xf32>
    %453 = vector.broadcast %162 : f32 to vector<8x128xf32>
    %454 = arith.mulf %453, %438 : vector<8x128xf32>
    %455 = arith.addf %426, %454 : vector<8x128xf32>
    %456 = vector.broadcast %198 : f32 to vector<8x128xf32>
    %457 = arith.mulf %456, %438 : vector<8x128xf32>
    %458 = arith.addf %429, %457 : vector<8x128xf32>
    %459 = vector.broadcast %234 : f32 to vector<8x128xf32>
    %460 = arith.mulf %459, %438 : vector<8x128xf32>
    %461 = arith.addf %432, %460 : vector<8x128xf32>
    %462 = vector.broadcast %270 : f32 to vector<8x128xf32>
    %463 = arith.mulf %462, %438 : vector<8x128xf32>
    %464 = arith.addf %435, %463 : vector<8x128xf32>
    %465 = vector.broadcast %19 : f32 to vector<8x128xf32>
    %466 = arith.mulf %465, %439 : vector<8x128xf32>
    %467 = arith.addf %443, %466 : vector<8x128xf32>
    %468 = vector.broadcast %55 : f32 to vector<8x128xf32>
    %469 = arith.mulf %468, %439 : vector<8x128xf32>
    %470 = arith.addf %446, %469 : vector<8x128xf32>
    %471 = vector.broadcast %91 : f32 to vector<8x128xf32>
    %472 = arith.mulf %471, %439 : vector<8x128xf32>
    %473 = arith.addf %449, %472 : vector<8x128xf32>
    %474 = vector.broadcast %127 : f32 to vector<8x128xf32>
    %475 = arith.mulf %474, %439 : vector<8x128xf32>
    %476 = arith.addf %452, %475 : vector<8x128xf32>
    %477 = vector.broadcast %163 : f32 to vector<8x128xf32>
    %478 = arith.mulf %477, %439 : vector<8x128xf32>
    %479 = arith.addf %455, %478 : vector<8x128xf32>
    %480 = vector.broadcast %199 : f32 to vector<8x128xf32>
    %481 = arith.mulf %480, %439 : vector<8x128xf32>
    %482 = arith.addf %458, %481 : vector<8x128xf32>
    %483 = vector.broadcast %235 : f32 to vector<8x128xf32>
    %484 = arith.mulf %483, %439 : vector<8x128xf32>
    %485 = arith.addf %461, %484 : vector<8x128xf32>
    %486 = vector.broadcast %271 : f32 to vector<8x128xf32>
    %487 = arith.mulf %486, %439 : vector<8x128xf32>
    %488 = arith.addf %464, %487 : vector<8x128xf32>
    %489 = vector.broadcast %20 : f32 to vector<8x128xf32>
    %490 = arith.mulf %489, %440 : vector<8x128xf32>
    %491 = arith.addf %467, %490 : vector<8x128xf32>
    %492 = vector.broadcast %56 : f32 to vector<8x128xf32>
    %493 = arith.mulf %492, %440 : vector<8x128xf32>
    %494 = arith.addf %470, %493 : vector<8x128xf32>
    %495 = vector.broadcast %92 : f32 to vector<8x128xf32>
    %496 = arith.mulf %495, %440 : vector<8x128xf32>
    %497 = arith.addf %473, %496 : vector<8x128xf32>
    %498 = vector.broadcast %128 : f32 to vector<8x128xf32>
    %499 = arith.mulf %498, %440 : vector<8x128xf32>
    %500 = arith.addf %476, %499 : vector<8x128xf32>
    %501 = vector.broadcast %164 : f32 to vector<8x128xf32>
    %502 = arith.mulf %501, %440 : vector<8x128xf32>
    %503 = arith.addf %479, %502 : vector<8x128xf32>
    %504 = vector.broadcast %200 : f32 to vector<8x128xf32>
    %505 = arith.mulf %504, %440 : vector<8x128xf32>
    %506 = arith.addf %482, %505 : vector<8x128xf32>
    %507 = vector.broadcast %236 : f32 to vector<8x128xf32>
    %508 = arith.mulf %507, %440 : vector<8x128xf32>
    %509 = arith.addf %485, %508 : vector<8x128xf32>
    %510 = vector.broadcast %272 : f32 to vector<8x128xf32>
    %511 = arith.mulf %510, %440 : vector<8x128xf32>
    %512 = arith.addf %488, %511 : vector<8x128xf32>
    %c0_15 = arith.constant 0 : index
    %c3_16 = arith.constant 3 : index
    %c0_17 = arith.constant 0 : index
    %c0_18 = arith.constant 0 : index
    %513 = vector.load %arg4[%c0_15, %c3_16, %c0_17, %c0_18] : memref<1x4x8x132xf32, #tpu.memory_space<vmem>>, vector<1x1x8x132xf32>
    %514 = vector.shape_cast %513 : vector<1x1x8x132xf32> to vector<8x132xf32>
    %515 = vector.extract_strided_slice %514 {offsets = [0, 0], sizes = [8, 128], strides = [1, 1]} : vector<8x132xf32> to vector<8x128xf32>
    %516 = vector.extract_strided_slice %514 {offsets = [0, 2], sizes = [8, 128], strides = [1, 1]} : vector<8x132xf32> to vector<8x128xf32>
    %517 = vector.extract_strided_slice %514 {offsets = [0, 4], sizes = [8, 128], strides = [1, 1]} : vector<8x132xf32> to vector<8x128xf32>
    %518 = vector.broadcast %27 : f32 to vector<8x128xf32>
    %519 = arith.mulf %518, %515 : vector<8x128xf32>
    %520 = arith.addf %491, %519 : vector<8x128xf32>
    %521 = vector.broadcast %63 : f32 to vector<8x128xf32>
    %522 = arith.mulf %521, %515 : vector<8x128xf32>
    %523 = arith.addf %494, %522 : vector<8x128xf32>
    %524 = vector.broadcast %99 : f32 to vector<8x128xf32>
    %525 = arith.mulf %524, %515 : vector<8x128xf32>
    %526 = arith.addf %497, %525 : vector<8x128xf32>
    %527 = vector.broadcast %135 : f32 to vector<8x128xf32>
    %528 = arith.mulf %527, %515 : vector<8x128xf32>
    %529 = arith.addf %500, %528 : vector<8x128xf32>
    %530 = vector.broadcast %171 : f32 to vector<8x128xf32>
    %531 = arith.mulf %530, %515 : vector<8x128xf32>
    %532 = arith.addf %503, %531 : vector<8x128xf32>
    %533 = vector.broadcast %207 : f32 to vector<8x128xf32>
    %534 = arith.mulf %533, %515 : vector<8x128xf32>
    %535 = arith.addf %506, %534 : vector<8x128xf32>
    %536 = vector.broadcast %243 : f32 to vector<8x128xf32>
    %537 = arith.mulf %536, %515 : vector<8x128xf32>
    %538 = arith.addf %509, %537 : vector<8x128xf32>
    %539 = vector.broadcast %279 : f32 to vector<8x128xf32>
    %540 = arith.mulf %539, %515 : vector<8x128xf32>
    %541 = arith.addf %512, %540 : vector<8x128xf32>
    %542 = vector.broadcast %28 : f32 to vector<8x128xf32>
    %543 = arith.mulf %542, %516 : vector<8x128xf32>
    %544 = arith.addf %520, %543 : vector<8x128xf32>
    %545 = vector.broadcast %64 : f32 to vector<8x128xf32>
    %546 = arith.mulf %545, %516 : vector<8x128xf32>
    %547 = arith.addf %523, %546 : vector<8x128xf32>
    %548 = vector.broadcast %100 : f32 to vector<8x128xf32>
    %549 = arith.mulf %548, %516 : vector<8x128xf32>
    %550 = arith.addf %526, %549 : vector<8x128xf32>
    %551 = vector.broadcast %136 : f32 to vector<8x128xf32>
    %552 = arith.mulf %551, %516 : vector<8x128xf32>
    %553 = arith.addf %529, %552 : vector<8x128xf32>
    %554 = vector.broadcast %172 : f32 to vector<8x128xf32>
    %555 = arith.mulf %554, %516 : vector<8x128xf32>
    %556 = arith.addf %532, %555 : vector<8x128xf32>
    %557 = vector.broadcast %208 : f32 to vector<8x128xf32>
    %558 = arith.mulf %557, %516 : vector<8x128xf32>
    %559 = arith.addf %535, %558 : vector<8x128xf32>
    %560 = vector.broadcast %244 : f32 to vector<8x128xf32>
    %561 = arith.mulf %560, %516 : vector<8x128xf32>
    %562 = arith.addf %538, %561 : vector<8x128xf32>
    %563 = vector.broadcast %280 : f32 to vector<8x128xf32>
    %564 = arith.mulf %563, %516 : vector<8x128xf32>
    %565 = arith.addf %541, %564 : vector<8x128xf32>
    %566 = vector.broadcast %29 : f32 to vector<8x128xf32>
    %567 = arith.mulf %566, %517 : vector<8x128xf32>
    %568 = arith.addf %544, %567 : vector<8x128xf32>
    %569 = vector.broadcast %65 : f32 to vector<8x128xf32>
    %570 = arith.mulf %569, %517 : vector<8x128xf32>
    %571 = arith.addf %547, %570 : vector<8x128xf32>
    %572 = vector.broadcast %101 : f32 to vector<8x128xf32>
    %573 = arith.mulf %572, %517 : vector<8x128xf32>
    %574 = arith.addf %550, %573 : vector<8x128xf32>
    %575 = vector.broadcast %137 : f32 to vector<8x128xf32>
    %576 = arith.mulf %575, %517 : vector<8x128xf32>
    %577 = arith.addf %553, %576 : vector<8x128xf32>
    %578 = vector.broadcast %173 : f32 to vector<8x128xf32>
    %579 = arith.mulf %578, %517 : vector<8x128xf32>
    %580 = arith.addf %556, %579 : vector<8x128xf32>
    %581 = vector.broadcast %209 : f32 to vector<8x128xf32>
    %582 = arith.mulf %581, %517 : vector<8x128xf32>
    %583 = arith.addf %559, %582 : vector<8x128xf32>
    %584 = vector.broadcast %245 : f32 to vector<8x128xf32>
    %585 = arith.mulf %584, %517 : vector<8x128xf32>
    %586 = arith.addf %562, %585 : vector<8x128xf32>
    %587 = vector.broadcast %281 : f32 to vector<8x128xf32>
    %588 = arith.mulf %587, %517 : vector<8x128xf32>
    %589 = arith.addf %565, %588 : vector<8x128xf32>
    %c0_19 = arith.constant 0 : index
    %c0_20 = arith.constant 0 : index
    %c0_21 = arith.constant 0 : index
    %590 = vector.load %arg7[%c0_19, %c0_20, %c0_21] : memref<8x8x128xf32, #tpu.memory_space<vmem>>, vector<1x8x128xf32>
    %591 = vector.shape_cast %590 : vector<1x8x128xf32> to vector<8x128xf32>
    %592 = arith.addf %591, %568 : vector<8x128xf32>
    %c0_22 = arith.constant 0 : index
    %c0_23 = arith.constant 0 : index
    %c0_24 = arith.constant 0 : index
    %593 = vector.load %arg7[%c0_22, %c0_23, %c0_24] : memref<8x8x128xf32, #tpu.memory_space<vmem>>, vector<1x8x128xf32>
    %594 = vector.shape_cast %593 : vector<1x8x128xf32> to vector<8x128xf32>
    %595 = vector.shape_cast %592 : vector<8x128xf32> to vector<1x8x128xf32>
    tpu.vector_store %arg7[%c0_22, %c0_23, %c0_24], %595 {strides = array<i32>} : memref<8x8x128xf32, #tpu.memory_space<vmem>>, vector<1x8x128xf32>,
    %c1_25 = arith.constant 1 : index
    %c0_26 = arith.constant 0 : index
    %c0_27 = arith.constant 0 : index
    %596 = vector.load %arg7[%c1_25, %c0_26, %c0_27] : memref<8x8x128xf32, #tpu.memory_space<vmem>>, vector<1x8x128xf32>
    %597 = vector.shape_cast %596 : vector<1x8x128xf32> to vector<8x128xf32>
    %598 = arith.addf %597, %571 : vector<8x128xf32>
    %c1_28 = arith.constant 1 : index
    %c0_29 = arith.constant 0 : index
    %c0_30 = arith.constant 0 : index
    %599 = vector.load %arg7[%c1_28, %c0_29, %c0_30] : memref<8x8x128xf32, #tpu.memory_space<vmem>>, vector<1x8x128xf32>
    %600 = vector.shape_cast %599 : vector<1x8x128xf32> to vector<8x128xf32>
    %601 = vector.shape_cast %598 : vector<8x128xf32> to vector<1x8x128xf32>
    tpu.vector_store %arg7[%c1_28, %c0_29, %c0_30], %601 {strides = array<i32>} : memref<8x8x128xf32, #tpu.memory_space<vmem>>, vector<1x8x128xf32>,
    %c2_31 = arith.constant 2 : index
    %c0_32 = arith.constant 0 : index
    %c0_33 = arith.constant 0 : index
    %602 = vector.load %arg7[%c2_31, %c0_32, %c0_33] : memref<8x8x128xf32, #tpu.memory_space<vmem>>, vector<1x8x128xf32>
    %603 = vector.shape_cast %602 : vector<1x8x128xf32> to vector<8x128xf32>
    %604 = arith.addf %603, %574 : vector<8x128xf32>
    %c2_34 = arith.constant 2 : index
    %c0_35 = arith.constant 0 : index
    %c0_36 = arith.constant 0 : index
    %605 = vector.load %arg7[%c2_34, %c0_35, %c0_36] : memref<8x8x128xf32, #tpu.memory_space<vmem>>, vector<1x8x128xf32>
    %606 = vector.shape_cast %605 : vector<1x8x128xf32> to vector<8x128xf32>
    %607 = vector.shape_cast %604 : vector<8x128xf32> to vector<1x8x128xf32>
    tpu.vector_store %arg7[%c2_34, %c0_35, %c0_36], %607 {strides = array<i32>} : memref<8x8x128xf32, #tpu.memory_space<vmem>>, vector<1x8x128xf32>,
    %c3_37 = arith.constant 3 : index
    %c0_38 = arith.constant 0 : index
    %c0_39 = arith.constant 0 : index
    %608 = vector.load %arg7[%c3_37, %c0_38, %c0_39] : memref<8x8x128xf32, #tpu.memory_space<vmem>>, vector<1x8x128xf32>
    %609 = vector.shape_cast %608 : vector<1x8x128xf32> to vector<8x128xf32>
    %610 = arith.addf %609, %577 : vector<8x128xf32>
    %c3_40 = arith.constant 3 : index
    %c0_41 = arith.constant 0 : index
    %c0_42 = arith.constant 0 : index
    %611 = vector.load %arg7[%c3_40, %c0_41, %c0_42] : memref<8x8x128xf32, #tpu.memory_space<vmem>>, vector<1x8x128xf32>
    %612 = vector.shape_cast %611 : vector<1x8x128xf32> to vector<8x128xf32>
    %613 = vector.shape_cast %610 : vector<8x128xf32> to vector<1x8x128xf32>
    tpu.vector_store %arg7[%c3_40, %c0_41, %c0_42], %613 {strides = array<i32>} : memref<8x8x128xf32, #tpu.memory_space<vmem>>, vector<1x8x128xf32>,
    %c4_43 = arith.constant 4 : index
    %c0_44 = arith.constant 0 : index
    %c0_45 = arith.constant 0 : index
    %614 = vector.load %arg7[%c4_43, %c0_44, %c0_45] : memref<8x8x128xf32, #tpu.memory_space<vmem>>, vector<1x8x128xf32>
    %615 = vector.shape_cast %614 : vector<1x8x128xf32> to vector<8x128xf32>
    %616 = arith.addf %615, %580 : vector<8x128xf32>
    %c4_46 = arith.constant 4 : index
    %c0_47 = arith.constant 0 : index
    %c0_48 = arith.constant 0 : index
    %617 = vector.load %arg7[%c4_46, %c0_47, %c0_48] : memref<8x8x128xf32, #tpu.memory_space<vmem>>, vector<1x8x128xf32>
    %618 = vector.shape_cast %617 : vector<1x8x128xf32> to vector<8x128xf32>
    %619 = vector.shape_cast %616 : vector<8x128xf32> to vector<1x8x128xf32>
    tpu.vector_store %arg7[%c4_46, %c0_47, %c0_48], %619 {strides = array<i32>} : memref<8x8x128xf32, #tpu.memory_space<vmem>>, vector<1x8x128xf32>,
    %c5_49 = arith.constant 5 : index
    %c0_50 = arith.constant 0 : index
    %c0_51 = arith.constant 0 : index
    %620 = vector.load %arg7[%c5_49, %c0_50, %c0_51] : memref<8x8x128xf32, #tpu.memory_space<vmem>>, vector<1x8x128xf32>
    %621 = vector.shape_cast %620 : vector<1x8x128xf32> to vector<8x128xf32>
    %622 = arith.addf %621, %583 : vector<8x128xf32>
    %c5_52 = arith.constant 5 : index
    %c0_53 = arith.constant 0 : index
    %c0_54 = arith.constant 0 : index
    %623 = vector.load %arg7[%c5_52, %c0_53, %c0_54] : memref<8x8x128xf32, #tpu.memory_space<vmem>>, vector<1x8x128xf32>
    %624 = vector.shape_cast %623 : vector<1x8x128xf32> to vector<8x128xf32>
    %625 = vector.shape_cast %622 : vector<8x128xf32> to vector<1x8x128xf32>
    tpu.vector_store %arg7[%c5_52, %c0_53, %c0_54], %625 {strides = array<i32>} : memref<8x8x128xf32, #tpu.memory_space<vmem>>, vector<1x8x128xf32>,
    %c6_55 = arith.constant 6 : index
    %c0_56 = arith.constant 0 : index
    %c0_57 = arith.constant 0 : index
    %626 = vector.load %arg7[%c6_55, %c0_56, %c0_57] : memref<8x8x128xf32, #tpu.memory_space<vmem>>, vector<1x8x128xf32>
    %627 = vector.shape_cast %626 : vector<1x8x128xf32> to vector<8x128xf32>
    %628 = arith.addf %627, %586 : vector<8x128xf32>
    %c6_58 = arith.constant 6 : index
    %c0_59 = arith.constant 0 : index
    %c0_60 = arith.constant 0 : index
    %629 = vector.load %arg7[%c6_58, %c0_59, %c0_60] : memref<8x8x128xf32, #tpu.memory_space<vmem>>, vector<1x8x128xf32>
    %630 = vector.shape_cast %629 : vector<1x8x128xf32> to vector<8x128xf32>
    %631 = vector.shape_cast %628 : vector<8x128xf32> to vector<1x8x128xf32>
    tpu.vector_store %arg7[%c6_58, %c0_59, %c0_60], %631 {strides = array<i32>} : memref<8x8x128xf32, #tpu.memory_space<vmem>>, vector<1x8x128xf32>,
    %c7_61 = arith.constant 7 : index
    %c0_62 = arith.constant 0 : index
    %c0_63 = arith.constant 0 : index
    %632 = vector.load %arg7[%c7_61, %c0_62, %c0_63] : memref<8x8x128xf32, #tpu.memory_space<vmem>>, vector<1x8x128xf32>
    %633 = vector.shape_cast %632 : vector<1x8x128xf32> to vector<8x128xf32>
    %634 = arith.addf %633, %589 : vector<8x128xf32>
    %c7_64 = arith.constant 7 : index
    %c0_65 = arith.constant 0 : index
    %c0_66 = arith.constant 0 : index
    %635 = vector.load %arg7[%c7_64, %c0_65, %c0_66] : memref<8x8x128xf32, #tpu.memory_space<vmem>>, vector<1x8x128xf32>
    %636 = vector.shape_cast %635 : vector<1x8x128xf32> to vector<8x128xf32>
    %637 = vector.shape_cast %634 : vector<8x128xf32> to vector<1x8x128xf32>
    tpu.vector_store %arg7[%c7_64, %c0_65, %c0_66], %637 {strides = array<i32>} : memref<8x8x128xf32, #tpu.memory_space<vmem>>, vector<1x8x128xf32>,
    %c0_67 = arith.constant 0 : index
    %c0_68 = arith.constant 0 : index
    %c2_69 = arith.constant 2 : index
    %c0_70 = arith.constant 0 : index
    %638 = vector.load %arg4[%c0_67, %c0_68, %c2_69, %c0_70] : memref<1x4x8x132xf32, #tpu.memory_space<vmem>>, vector<1x1x6x132xf32>
    %639 = vector.shape_cast %638 : vector<1x1x6x132xf32> to vector<6x132xf32>
    %640 = vector.extract_strided_slice %639 {offsets = [0, 0], sizes = [6, 128], strides = [1, 1]} : vector<6x132xf32> to vector<6x128xf32>
    %641 = vector.extract_strided_slice %639 {offsets = [0, 2], sizes = [6, 128], strides = [1, 1]} : vector<6x132xf32> to vector<6x128xf32>
    %642 = vector.extract_strided_slice %639 {offsets = [0, 4], sizes = [6, 128], strides = [1, 1]} : vector<6x132xf32> to vector<6x128xf32>
    %c0_71 = arith.constant 0 : index
    %c0_72 = arith.constant 0 : index
    %c0_73 = arith.constant 0 : index
    %c0_74 = arith.constant 0 : index
    %643 = vector.load %arg5[%c0_71, %c0_72, %c0_73, %c0_74] : memref<1x4x8x132xf32, #tpu.memory_space<vmem>>, vector<1x1x2x132xf32>
    %644 = vector.shape_cast %643 : vector<1x1x2x132xf32> to vector<2x132xf32>
    %645 = vector.extract_strided_slice %644 {offsets = [0, 0], sizes = [2, 128], strides = [1, 1]} : vector<2x132xf32> to vector<2x128xf32>
    %646 = vector.extract_strided_slice %644 {offsets = [0, 2], sizes = [2, 128], strides = [1, 1]} : vector<2x132xf32> to vector<2x128xf32>
    %647 = vector.extract_strided_slice %644 {offsets = [0, 4], sizes = [2, 128], strides = [1, 1]} : vector<2x132xf32> to vector<2x128xf32>
    %648 = vector.broadcast %3 : f32 to vector<6x128xf32>
    %649 = arith.mulf %648, %640 : vector<6x128xf32>
    %650 = vector.broadcast %3 : f32 to vector<2x128xf32>
    %651 = arith.mulf %650, %645 : vector<2x128xf32>
    %652 = vector.broadcast %39 : f32 to vector<6x128xf32>
    %653 = arith.mulf %652, %640 : vector<6x128xf32>
    %654 = vector.broadcast %39 : f32 to vector<2x128xf32>
    %655 = arith.mulf %654, %645 : vector<2x128xf32>
    %656 = vector.broadcast %75 : f32 to vector<6x128xf32>
    %657 = arith.mulf %656, %640 : vector<6x128xf32>
    %658 = vector.broadcast %75 : f32 to vector<2x128xf32>
    %659 = arith.mulf %658, %645 : vector<2x128xf32>
    %660 = vector.broadcast %111 : f32 to vector<6x128xf32>
    %661 = arith.mulf %660, %640 : vector<6x128xf32>
    %662 = vector.broadcast %111 : f32 to vector<2x128xf32>
    %663 = arith.mulf %662, %645 : vector<2x128xf32>
    %664 = vector.broadcast %147 : f32 to vector<6x128xf32>
    %665 = arith.mulf %664, %640 : vector<6x128xf32>
    %666 = vector.broadcast %147 : f32 to vector<2x128xf32>
    %667 = arith.mulf %666, %645 : vector<2x128xf32>
    %668 = vector.broadcast %183 : f32 to vector<6x128xf32>
    %669 = arith.mulf %668, %640 : vector<6x128xf32>
    %670 = vector.broadcast %183 : f32 to vector<2x128xf32>
    %671 = arith.mulf %670, %645 : vector<2x128xf32>
    %672 = vector.broadcast %219 : f32 to vector<6x128xf32>
    %673 = arith.mulf %672, %640 : vector<6x128xf32>
    %674 = vector.broadcast %219 : f32 to vector<2x128xf32>
    %675 = arith.mulf %674, %645 : vector<2x128xf32>
    %676 = vector.broadcast %255 : f32 to vector<6x128xf32>
    %677 = arith.mulf %676, %640 : vector<6x128xf32>
    %678 = vector.broadcast %255 : f32 to vector<2x128xf32>
    %679 = arith.mulf %678, %645 : vector<2x128xf32>
    %680 = vector.broadcast %4 : f32 to vector<6x128xf32>
    %681 = arith.mulf %680, %641 : vector<6x128xf32>
    %682 = arith.addf %649, %681 : vector<6x128xf32>
    %683 = vector.broadcast %4 : f32 to vector<2x128xf32>
    %684 = arith.mulf %683, %646 : vector<2x128xf32>
    %685 = arith.addf %651, %684 : vector<2x128xf32>
    %686 = vector.broadcast %40 : f32 to vector<6x128xf32>
    %687 = arith.mulf %686, %641 : vector<6x128xf32>
    %688 = arith.addf %653, %687 : vector<6x128xf32>
    %689 = vector.broadcast %40 : f32 to vector<2x128xf32>
    %690 = arith.mulf %689, %646 : vector<2x128xf32>
    %691 = arith.addf %655, %690 : vector<2x128xf32>
    %692 = vector.broadcast %76 : f32 to vector<6x128xf32>
    %693 = arith.mulf %692, %641 : vector<6x128xf32>
    %694 = arith.addf %657, %693 : vector<6x128xf32>
    %695 = vector.broadcast %76 : f32 to vector<2x128xf32>
    %696 = arith.mulf %695, %646 : vector<2x128xf32>
    %697 = arith.addf %659, %696 : vector<2x128xf32>
    %698 = vector.broadcast %112 : f32 to vector<6x128xf32>
    %699 = arith.mulf %698, %641 : vector<6x128xf32>
    %700 = arith.addf %661, %699 : vector<6x128xf32>
    %701 = vector.broadcast %112 : f32 to vector<2x128xf32>
    %702 = arith.mulf %701, %646 : vector<2x128xf32>
    %703 = arith.addf %663, %702 : vector<2x128xf32>
    %704 = vector.broadcast %148 : f32 to vector<6x128xf32>
    %705 = arith.mulf %704, %641 : vector<6x128xf32>
    %706 = arith.addf %665, %705 : vector<6x128xf32>
    %707 = vector.broadcast %148 : f32 to vector<2x128xf32>
    %708 = arith.mulf %707, %646 : vector<2x128xf32>
    %709 = arith.addf %667, %708 : vector<2x128xf32>
    %710 = vector.broadcast %184 : f32 to vector<6x128xf32>
    %711 = arith.mulf %710, %641 : vector<6x128xf32>
    %712 = arith.addf %669, %711 : vector<6x128xf32>
    %713 = vector.broadcast %184 : f32 to vector<2x128xf32>
    %714 = arith.mulf %713, %646 : vector<2x128xf32>
    %715 = arith.addf %671, %714 : vector<2x128xf32>
    %716 = vector.broadcast %220 : f32 to vector<6x128xf32>
    %717 = arith.mulf %716, %641 : vector<6x128xf32>
    %718 = arith.addf %673, %717 : vector<6x128xf32>
    %719 = vector.broadcast %220 : f32 to vector<2x128xf32>
    %720 = arith.mulf %719, %646 : vector<2x128xf32>
    %721 = arith.addf %675, %720 : vector<2x128xf32>
    %722 = vector.broadcast %256 : f32 to vector<6x128xf32>
    %723 = arith.mulf %722, %641 : vector<6x128xf32>
    %724 = arith.addf %677, %723 : vector<6x128xf32>
    %725 = vector.broadcast %256 : f32 to vector<2x128xf32>
    %726 = arith.mulf %725, %646 : vector<2x128xf32>
    %727 = arith.addf %679, %726 : vector<2x128xf32>
    %728 = vector.broadcast %5 : f32 to vector<6x128xf32>
    %729 = arith.mulf %728, %642 : vector<6x128xf32>
    %730 = arith.addf %682, %729 : vector<6x128xf32>
    %731 = vector.broadcast %5 : f32 to vector<2x128xf32>
    %732 = arith.mulf %731, %647 : vector<2x128xf32>
    %733 = arith.addf %685, %732 : vector<2x128xf32>
    %734 = vector.broadcast %41 : f32 to vector<6x128xf32>
    %735 = arith.mulf %734, %642 : vector<6x128xf32>
    %736 = arith.addf %688, %735 : vector<6x128xf32>
    %737 = vector.broadcast %41 : f32 to vector<2x128xf32>
    %738 = arith.mulf %737, %647 : vector<2x128xf32>
    %739 = arith.addf %691, %738 : vector<2x128xf32>
    %740 = vector.broadcast %77 : f32 to vector<6x128xf32>
    %741 = arith.mulf %740, %642 : vector<6x128xf32>
    %742 = arith.addf %694, %741 : vector<6x128xf32>
    %743 = vector.broadcast %77 : f32 to vector<2x128xf32>
    %744 = arith.mulf %743, %647 : vector<2x128xf32>
    %745 = arith.addf %697, %744 : vector<2x128xf32>
    %746 = vector.broadcast %113 : f32 to vector<6x128xf32>
    %747 = arith.mulf %746, %642 : vector<6x128xf32>
    %748 = arith.addf %700, %747 : vector<6x128xf32>
    %749 = vector.broadcast %113 : f32 to vector<2x128xf32>
    %750 = arith.mulf %749, %647 : vector<2x128xf32>
    %751 = arith.addf %703, %750 : vector<2x128xf32>
    %752 = vector.broadcast %149 : f32 to vector<6x128xf32>
    %753 = arith.mulf %752, %642 : vector<6x128xf32>
    %754 = arith.addf %706, %753 : vector<6x128xf32>
    %755 = vector.broadcast %149 : f32 to vector<2x128xf32>
    %756 = arith.mulf %755, %647 : vector<2x128xf32>
    %757 = arith.addf %709, %756 : vector<2x128xf32>
    %758 = vector.broadcast %185 : f32 to vector<6x128xf32>
    %759 = arith.mulf %758, %642 : vector<6x128xf32>
    %760 = arith.addf %712, %759 : vector<6x128xf32>
    %761 = vector.broadcast %185 : f32 to vector<2x128xf32>
    %762 = arith.mulf %761, %647 : vector<2x128xf32>
    %763 = arith.addf %715, %762 : vector<2x128xf32>
    %764 = vector.broadcast %221 : f32 to vector<6x128xf32>
    %765 = arith.mulf %764, %642 : vector<6x128xf32>
    %766 = arith.addf %718, %765 : vector<6x128xf32>
    %767 = vector.broadcast %221 : f32 to vector<2x128xf32>
    %768 = arith.mulf %767, %647 : vector<2x128xf32>
    %769 = arith.addf %721, %768 : vector<2x128xf32>
    %770 = vector.broadcast %257 : f32 to vector<6x128xf32>
    %771 = arith.mulf %770, %642 : vector<6x128xf32>
    %772 = arith.addf %724, %771 : vector<6x128xf32>
    %773 = vector.broadcast %257 : f32 to vector<2x128xf32>
    %774 = arith.mulf %773, %647 : vector<2x128xf32>
    %775 = arith.addf %727, %774 : vector<2x128xf32>
    %c0_75 = arith.constant 0 : index
    %c1_76 = arith.constant 1 : index
    %c2_77 = arith.constant 2 : index
    %c0_78 = arith.constant 0 : index
    %776 = vector.load %arg4[%c0_75, %c1_76, %c2_77, %c0_78] : memref<1x4x8x132xf32, #tpu.memory_space<vmem>>, vector<1x1x6x132xf32>
    %777 = vector.shape_cast %776 : vector<1x1x6x132xf32> to vector<6x132xf32>
    %778 = vector.extract_strided_slice %777 {offsets = [0, 0], sizes = [6, 128], strides = [1, 1]} : vector<6x132xf32> to vector<6x128xf32>
    %779 = vector.extract_strided_slice %777 {offsets = [0, 2], sizes = [6, 128], strides = [1, 1]} : vector<6x132xf32> to vector<6x128xf32>
    %780 = vector.extract_strided_slice %777 {offsets = [0, 4], sizes = [6, 128], strides = [1, 1]} : vector<6x132xf32> to vector<6x128xf32>
    %c0_79 = arith.constant 0 : index
    %c1_80 = arith.constant 1 : index
    %c0_81 = arith.constant 0 : index
    %c0_82 = arith.constant 0 : index
    %781 = vector.load %arg5[%c0_79, %c1_80, %c0_81, %c0_82] : memref<1x4x8x132xf32, #tpu.memory_space<vmem>>, vector<1x1x2x132xf32>
    %782 = vector.shape_cast %781 : vector<1x1x2x132xf32> to vector<2x132xf32>
    %783 = vector.extract_strided_slice %782 {offsets = [0, 0], sizes = [2, 128], strides = [1, 1]} : vector<2x132xf32> to vector<2x128xf32>
    %784 = vector.extract_strided_slice %782 {offsets = [0, 2], sizes = [2, 128], strides = [1, 1]} : vector<2x132xf32> to vector<2x128xf32>
    %785 = vector.extract_strided_slice %782 {offsets = [0, 4], sizes = [2, 128], strides = [1, 1]} : vector<2x132xf32> to vector<2x128xf32>
    %786 = vector.broadcast %12 : f32 to vector<6x128xf32>
    %787 = arith.mulf %786, %778 : vector<6x128xf32>
    %788 = arith.addf %730, %787 : vector<6x128xf32>
    %789 = vector.broadcast %12 : f32 to vector<2x128xf32>
    %790 = arith.mulf %789, %783 : vector<2x128xf32>
    %791 = arith.addf %733, %790 : vector<2x128xf32>
    %792 = vector.broadcast %48 : f32 to vector<6x128xf32>
    %793 = arith.mulf %792, %778 : vector<6x128xf32>
    %794 = arith.addf %736, %793 : vector<6x128xf32>
    %795 = vector.broadcast %48 : f32 to vector<2x128xf32>
    %796 = arith.mulf %795, %783 : vector<2x128xf32>
    %797 = arith.addf %739, %796 : vector<2x128xf32>
    %798 = vector.broadcast %84 : f32 to vector<6x128xf32>
    %799 = arith.mulf %798, %778 : vector<6x128xf32>
    %800 = arith.addf %742, %799 : vector<6x128xf32>
    %801 = vector.broadcast %84 : f32 to vector<2x128xf32>
    %802 = arith.mulf %801, %783 : vector<2x128xf32>
    %803 = arith.addf %745, %802 : vector<2x128xf32>
    %804 = vector.broadcast %120 : f32 to vector<6x128xf32>
    %805 = arith.mulf %804, %778 : vector<6x128xf32>
    %806 = arith.addf %748, %805 : vector<6x128xf32>
    %807 = vector.broadcast %120 : f32 to vector<2x128xf32>
    %808 = arith.mulf %807, %783 : vector<2x128xf32>
    %809 = arith.addf %751, %808 : vector<2x128xf32>
    %810 = vector.broadcast %156 : f32 to vector<6x128xf32>
    %811 = arith.mulf %810, %778 : vector<6x128xf32>
    %812 = arith.addf %754, %811 : vector<6x128xf32>
    %813 = vector.broadcast %156 : f32 to vector<2x128xf32>
    %814 = arith.mulf %813, %783 : vector<2x128xf32>
    %815 = arith.addf %757, %814 : vector<2x128xf32>
    %816 = vector.broadcast %192 : f32 to vector<6x128xf32>
    %817 = arith.mulf %816, %778 : vector<6x128xf32>
    %818 = arith.addf %760, %817 : vector<6x128xf32>
    %819 = vector.broadcast %192 : f32 to vector<2x128xf32>
    %820 = arith.mulf %819, %783 : vector<2x128xf32>
    %821 = arith.addf %763, %820 : vector<2x128xf32>
    %822 = vector.broadcast %228 : f32 to vector<6x128xf32>
    %823 = arith.mulf %822, %778 : vector<6x128xf32>
    %824 = arith.addf %766, %823 : vector<6x128xf32>
    %825 = vector.broadcast %228 : f32 to vector<2x128xf32>
    %826 = arith.mulf %825, %783 : vector<2x128xf32>
    %827 = arith.addf %769, %826 : vector<2x128xf32>
    %828 = vector.broadcast %264 : f32 to vector<6x128xf32>
    %829 = arith.mulf %828, %778 : vector<6x128xf32>
    %830 = arith.addf %772, %829 : vector<6x128xf32>
    %831 = vector.broadcast %264 : f32 to vector<2x128xf32>
    %832 = arith.mulf %831, %783 : vector<2x128xf32>
    %833 = arith.addf %775, %832 : vector<2x128xf32>
    %834 = vector.broadcast %13 : f32 to vector<6x128xf32>
    %835 = arith.mulf %834, %779 : vector<6x128xf32>
    %836 = arith.addf %788, %835 : vector<6x128xf32>
    %837 = vector.broadcast %13 : f32 to vector<2x128xf32>
    %838 = arith.mulf %837, %784 : vector<2x128xf32>
    %839 = arith.addf %791, %838 : vector<2x128xf32>
    %840 = vector.broadcast %49 : f32 to vector<6x128xf32>
    %841 = arith.mulf %840, %779 : vector<6x128xf32>
    %842 = arith.addf %794, %841 : vector<6x128xf32>
    %843 = vector.broadcast %49 : f32 to vector<2x128xf32>
    %844 = arith.mulf %843, %784 : vector<2x128xf32>
    %845 = arith.addf %797, %844 : vector<2x128xf32>
    %846 = vector.broadcast %85 : f32 to vector<6x128xf32>
    %847 = arith.mulf %846, %779 : vector<6x128xf32>
    %848 = arith.addf %800, %847 : vector<6x128xf32>
    %849 = vector.broadcast %85 : f32 to vector<2x128xf32>
    %850 = arith.mulf %849, %784 : vector<2x128xf32>
    %851 = arith.addf %803, %850 : vector<2x128xf32>
    %852 = vector.broadcast %121 : f32 to vector<6x128xf32>
    %853 = arith.mulf %852, %779 : vector<6x128xf32>
    %854 = arith.addf %806, %853 : vector<6x128xf32>
    %855 = vector.broadcast %121 : f32 to vector<2x128xf32>
    %856 = arith.mulf %855, %784 : vector<2x128xf32>
    %857 = arith.addf %809, %856 : vector<2x128xf32>
    %858 = vector.broadcast %157 : f32 to vector<6x128xf32>
    %859 = arith.mulf %858, %779 : vector<6x128xf32>
    %860 = arith.addf %812, %859 : vector<6x128xf32>
    %861 = vector.broadcast %157 : f32 to vector<2x128xf32>
    %862 = arith.mulf %861, %784 : vector<2x128xf32>
    %863 = arith.addf %815, %862 : vector<2x128xf32>
    %864 = vector.broadcast %193 : f32 to vector<6x128xf32>
    %865 = arith.mulf %864, %779 : vector<6x128xf32>
    %866 = arith.addf %818, %865 : vector<6x128xf32>
    %867 = vector.broadcast %193 : f32 to vector<2x128xf32>
    %868 = arith.mulf %867, %784 : vector<2x128xf32>
    %869 = arith.addf %821, %868 : vector<2x128xf32>
    %870 = vector.broadcast %229 : f32 to vector<6x128xf32>
    %871 = arith.mulf %870, %779 : vector<6x128xf32>
    %872 = arith.addf %824, %871 : vector<6x128xf32>
    %873 = vector.broadcast %229 : f32 to vector<2x128xf32>
    %874 = arith.mulf %873, %784 : vector<2x128xf32>
    %875 = arith.addf %827, %874 : vector<2x128xf32>
    %876 = vector.broadcast %265 : f32 to vector<6x128xf32>
    %877 = arith.mulf %876, %779 : vector<6x128xf32>
    %878 = arith.addf %830, %877 : vector<6x128xf32>
    %879 = vector.broadcast %265 : f32 to vector<2x128xf32>
    %880 = arith.mulf %879, %784 : vector<2x128xf32>
    %881 = arith.addf %833, %880 : vector<2x128xf32>
    %882 = vector.broadcast %14 : f32 to vector<6x128xf32>
    %883 = arith.mulf %882, %780 : vector<6x128xf32>
    %884 = arith.addf %836, %883 : vector<6x128xf32>
    %885 = vector.broadcast %14 : f32 to vector<2x128xf32>
    %886 = arith.mulf %885, %785 : vector<2x128xf32>
    %887 = arith.addf %839, %886 : vector<2x128xf32>
    %888 = vector.broadcast %50 : f32 to vector<6x128xf32>
    %889 = arith.mulf %888, %780 : vector<6x128xf32>
    %890 = arith.addf %842, %889 : vector<6x128xf32>
    %891 = vector.broadcast %50 : f32 to vector<2x128xf32>
    %892 = arith.mulf %891, %785 : vector<2x128xf32>
    %893 = arith.addf %845, %892 : vector<2x128xf32>
    %894 = vector.broadcast %86 : f32 to vector<6x128xf32>
    %895 = arith.mulf %894, %780 : vector<6x128xf32>
    %896 = arith.addf %848, %895 : vector<6x128xf32>
    %897 = vector.broadcast %86 : f32 to vector<2x128xf32>
    %898 = arith.mulf %897, %785 : vector<2x128xf32>
    %899 = arith.addf %851, %898 : vector<2x128xf32>
    %900 = vector.broadcast %122 : f32 to vector<6x128xf32>
    %901 = arith.mulf %900, %780 : vector<6x128xf32>
    %902 = arith.addf %854, %901 : vector<6x128xf32>
    %903 = vector.broadcast %122 : f32 to vector<2x128xf32>
    %904 = arith.mulf %903, %785 : vector<2x128xf32>
    %905 = arith.addf %857, %904 : vector<2x128xf32>
    %906 = vector.broadcast %158 : f32 to vector<6x128xf32>
    %907 = arith.mulf %906, %780 : vector<6x128xf32>
    %908 = arith.addf %860, %907 : vector<6x128xf32>
    %909 = vector.broadcast %158 : f32 to vector<2x128xf32>
    %910 = arith.mulf %909, %785 : vector<2x128xf32>
    %911 = arith.addf %863, %910 : vector<2x128xf32>
    %912 = vector.broadcast %194 : f32 to vector<6x128xf32>
    %913 = arith.mulf %912, %780 : vector<6x128xf32>
    %914 = arith.addf %866, %913 : vector<6x128xf32>
    %915 = vector.broadcast %194 : f32 to vector<2x128xf32>
    %916 = arith.mulf %915, %785 : vector<2x128xf32>
    %917 = arith.addf %869, %916 : vector<2x128xf32>
    %918 = vector.broadcast %230 : f32 to vector<6x128xf32>
    %919 = arith.mulf %918, %780 : vector<6x128xf32>
    %920 = arith.addf %872, %919 : vector<6x128xf32>
    %921 = vector.broadcast %230 : f32 to vector<2x128xf32>
    %922 = arith.mulf %921, %785 : vector<2x128xf32>
    %923 = arith.addf %875, %922 : vector<2x128xf32>
    %924 = vector.broadcast %266 : f32 to vector<6x128xf32>
    %925 = arith.mulf %924, %780 : vector<6x128xf32>
    %926 = arith.addf %878, %925 : vector<6x128xf32>
    %927 = vector.broadcast %266 : f32 to vector<2x128xf32>
    %928 = arith.mulf %927, %785 : vector<2x128xf32>
    %929 = arith.addf %881, %928 : vector<2x128xf32>
    %c0_83 = arith.constant 0 : index
    %c2_84 = arith.constant 2 : index
    %c2_85 = arith.constant 2 : index
    %c0_86 = arith.constant 0 : index
    %930 = vector.load %arg4[%c0_83, %c2_84, %c2_85, %c0_86] : memref<1x4x8x132xf32, #tpu.memory_space<vmem>>, vector<1x1x6x132xf32>
    %931 = vector.shape_cast %930 : vector<1x1x6x132xf32> to vector<6x132xf32>
    %932 = vector.extract_strided_slice %931 {offsets = [0, 0], sizes = [6, 128], strides = [1, 1]} : vector<6x132xf32> to vector<6x128xf32>
    %933 = vector.extract_strided_slice %931 {offsets = [0, 2], sizes = [6, 128], strides = [1, 1]} : vector<6x132xf32> to vector<6x128xf32>
    %934 = vector.extract_strided_slice %931 {offsets = [0, 4], sizes = [6, 128], strides = [1, 1]} : vector<6x132xf32> to vector<6x128xf32>
    %c0_87 = arith.constant 0 : index
    %c2_88 = arith.constant 2 : index
    %c0_89 = arith.constant 0 : index
    %c0_90 = arith.constant 0 : index
    %935 = vector.load %arg5[%c0_87, %c2_88, %c0_89, %c0_90] : memref<1x4x8x132xf32, #tpu.memory_space<vmem>>, vector<1x1x2x132xf32>
    %936 = vector.shape_cast %935 : vector<1x1x2x132xf32> to vector<2x132xf32>
    %937 = vector.extract_strided_slice %936 {offsets = [0, 0], sizes = [2, 128], strides = [1, 1]} : vector<2x132xf32> to vector<2x128xf32>
    %938 = vector.extract_strided_slice %936 {offsets = [0, 2], sizes = [2, 128], strides = [1, 1]} : vector<2x132xf32> to vector<2x128xf32>
    %939 = vector.extract_strided_slice %936 {offsets = [0, 4], sizes = [2, 128], strides = [1, 1]} : vector<2x132xf32> to vector<2x128xf32>
    %940 = vector.broadcast %21 : f32 to vector<6x128xf32>
    %941 = arith.mulf %940, %932 : vector<6x128xf32>
    %942 = arith.addf %884, %941 : vector<6x128xf32>
    %943 = vector.broadcast %21 : f32 to vector<2x128xf32>
    %944 = arith.mulf %943, %937 : vector<2x128xf32>
    %945 = arith.addf %887, %944 : vector<2x128xf32>
    %946 = vector.broadcast %57 : f32 to vector<6x128xf32>
    %947 = arith.mulf %946, %932 : vector<6x128xf32>
    %948 = arith.addf %890, %947 : vector<6x128xf32>
    %949 = vector.broadcast %57 : f32 to vector<2x128xf32>
    %950 = arith.mulf %949, %937 : vector<2x128xf32>
    %951 = arith.addf %893, %950 : vector<2x128xf32>
    %952 = vector.broadcast %93 : f32 to vector<6x128xf32>
    %953 = arith.mulf %952, %932 : vector<6x128xf32>
    %954 = arith.addf %896, %953 : vector<6x128xf32>
    %955 = vector.broadcast %93 : f32 to vector<2x128xf32>
    %956 = arith.mulf %955, %937 : vector<2x128xf32>
    %957 = arith.addf %899, %956 : vector<2x128xf32>
    %958 = vector.broadcast %129 : f32 to vector<6x128xf32>
    %959 = arith.mulf %958, %932 : vector<6x128xf32>
    %960 = arith.addf %902, %959 : vector<6x128xf32>
    %961 = vector.broadcast %129 : f32 to vector<2x128xf32>
    %962 = arith.mulf %961, %937 : vector<2x128xf32>
    %963 = arith.addf %905, %962 : vector<2x128xf32>
    %964 = vector.broadcast %165 : f32 to vector<6x128xf32>
    %965 = arith.mulf %964, %932 : vector<6x128xf32>
    %966 = arith.addf %908, %965 : vector<6x128xf32>
    %967 = vector.broadcast %165 : f32 to vector<2x128xf32>
    %968 = arith.mulf %967, %937 : vector<2x128xf32>
    %969 = arith.addf %911, %968 : vector<2x128xf32>
    %970 = vector.broadcast %201 : f32 to vector<6x128xf32>
    %971 = arith.mulf %970, %932 : vector<6x128xf32>
    %972 = arith.addf %914, %971 : vector<6x128xf32>
    %973 = vector.broadcast %201 : f32 to vector<2x128xf32>
    %974 = arith.mulf %973, %937 : vector<2x128xf32>
    %975 = arith.addf %917, %974 : vector<2x128xf32>
    %976 = vector.broadcast %237 : f32 to vector<6x128xf32>
    %977 = arith.mulf %976, %932 : vector<6x128xf32>
    %978 = arith.addf %920, %977 : vector<6x128xf32>
    %979 = vector.broadcast %237 : f32 to vector<2x128xf32>
    %980 = arith.mulf %979, %937 : vector<2x128xf32>
    %981 = arith.addf %923, %980 : vector<2x128xf32>
    %982 = vector.broadcast %273 : f32 to vector<6x128xf32>
    %983 = arith.mulf %982, %932 : vector<6x128xf32>
    %984 = arith.addf %926, %983 : vector<6x128xf32>
    %985 = vector.broadcast %273 : f32 to vector<2x128xf32>
    %986 = arith.mulf %985, %937 : vector<2x128xf32>
    %987 = arith.addf %929, %986 : vector<2x128xf32>
    %988 = vector.broadcast %22 : f32 to vector<6x128xf32>
    %989 = arith.mulf %988, %933 : vector<6x128xf32>
    %990 = arith.addf %942, %989 : vector<6x128xf32>
    %991 = vector.broadcast %22 : f32 to vector<2x128xf32>
    %992 = arith.mulf %991, %938 : vector<2x128xf32>
    %993 = arith.addf %945, %992 : vector<2x128xf32>
    %994 = vector.broadcast %58 : f32 to vector<6x128xf32>
    %995 = arith.mulf %994, %933 : vector<6x128xf32>
    %996 = arith.addf %948, %995 : vector<6x128xf32>
    %997 = vector.broadcast %58 : f32 to vector<2x128xf32>
    %998 = arith.mulf %997, %938 : vector<2x128xf32>
    %999 = arith.addf %951, %998 : vector<2x128xf32>
    %1000 = vector.broadcast %94 : f32 to vector<6x128xf32>
    %1001 = arith.mulf %1000, %933 : vector<6x128xf32>
    %1002 = arith.addf %954, %1001 : vector<6x128xf32>
    %1003 = vector.broadcast %94 : f32 to vector<2x128xf32>
    %1004 = arith.mulf %1003, %938 : vector<2x128xf32>
    %1005 = arith.addf %957, %1004 : vector<2x128xf32>
    %1006 = vector.broadcast %130 : f32 to vector<6x128xf32>
    %1007 = arith.mulf %1006, %933 : vector<6x128xf32>
    %1008 = arith.addf %960, %1007 : vector<6x128xf32>
    %1009 = vector.broadcast %130 : f32 to vector<2x128xf32>
    %1010 = arith.mulf %1009, %938 : vector<2x128xf32>
    %1011 = arith.addf %963, %1010 : vector<2x128xf32>
    %1012 = vector.broadcast %166 : f32 to vector<6x128xf32>
    %1013 = arith.mulf %1012, %933 : vector<6x128xf32>
    %1014 = arith.addf %966, %1013 : vector<6x128xf32>
    %1015 = vector.broadcast %166 : f32 to vector<2x128xf32>
    %1016 = arith.mulf %1015, %938 : vector<2x128xf32>
    %1017 = arith.addf %969, %1016 : vector<2x128xf32>
    %1018 = vector.broadcast %202 : f32 to vector<6x128xf32>
    %1019 = arith.mulf %1018, %933 : vector<6x128xf32>
    %1020 = arith.addf %972, %1019 : vector<6x128xf32>
    %1021 = vector.broadcast %202 : f32 to vector<2x128xf32>
    %1022 = arith.mulf %1021, %938 : vector<2x128xf32>
    %1023 = arith.addf %975, %1022 : vector<2x128xf32>
    %1024 = vector.broadcast %238 : f32 to vector<6x128xf32>
    %1025 = arith.mulf %1024, %933 : vector<6x128xf32>
    %1026 = arith.addf %978, %1025 : vector<6x128xf32>
    %1027 = vector.broadcast %238 : f32 to vector<2x128xf32>
    %1028 = arith.mulf %1027, %938 : vector<2x128xf32>
    %1029 = arith.addf %981, %1028 : vector<2x128xf32>
    %1030 = vector.broadcast %274 : f32 to vector<6x128xf32>
    %1031 = arith.mulf %1030, %933 : vector<6x128xf32>
    %1032 = arith.addf %984, %1031 : vector<6x128xf32>
    %1033 = vector.broadcast %274 : f32 to vector<2x128xf32>
    %1034 = arith.mulf %1033, %938 : vector<2x128xf32>
    %1035 = arith.addf %987, %1034 : vector<2x128xf32>
    %1036 = vector.broadcast %23 : f32 to vector<6x128xf32>
    %1037 = arith.mulf %1036, %934 : vector<6x128xf32>
    %1038 = arith.addf %990, %1037 : vector<6x128xf32>
    %1039 = vector.broadcast %23 : f32 to vector<2x128xf32>
    %1040 = arith.mulf %1039, %939 : vector<2x128xf32>
    %1041 = arith.addf %993, %1040 : vector<2x128xf32>
    %1042 = vector.broadcast %59 : f32 to vector<6x128xf32>
    %1043 = arith.mulf %1042, %934 : vector<6x128xf32>
    %1044 = arith.addf %996, %1043 : vector<6x128xf32>
    %1045 = vector.broadcast %59 : f32 to vector<2x128xf32>
    %1046 = arith.mulf %1045, %939 : vector<2x128xf32>
    %1047 = arith.addf %999, %1046 : vector<2x128xf32>
    %1048 = vector.broadcast %95 : f32 to vector<6x128xf32>
    %1049 = arith.mulf %1048, %934 : vector<6x128xf32>
    %1050 = arith.addf %1002, %1049 : vector<6x128xf32>
    %1051 = vector.broadcast %95 : f32 to vector<2x128xf32>
    %1052 = arith.mulf %1051, %939 : vector<2x128xf32>
    %1053 = arith.addf %1005, %1052 : vector<2x128xf32>
    %1054 = vector.broadcast %131 : f32 to vector<6x128xf32>
    %1055 = arith.mulf %1054, %934 : vector<6x128xf32>
    %1056 = arith.addf %1008, %1055 : vector<6x128xf32>
    %1057 = vector.broadcast %131 : f32 to vector<2x128xf32>
    %1058 = arith.mulf %1057, %939 : vector<2x128xf32>
    %1059 = arith.addf %1011, %1058 : vector<2x128xf32>
    %1060 = vector.broadcast %167 : f32 to vector<6x128xf32>
    %1061 = arith.mulf %1060, %934 : vector<6x128xf32>
    %1062 = arith.addf %1014, %1061 : vector<6x128xf32>
    %1063 = vector.broadcast %167 : f32 to vector<2x128xf32>
    %1064 = arith.mulf %1063, %939 : vector<2x128xf32>
    %1065 = arith.addf %1017, %1064 : vector<2x128xf32>
    %1066 = vector.broadcast %203 : f32 to vector<6x128xf32>
    %1067 = arith.mulf %1066, %934 : vector<6x128xf32>
    %1068 = arith.addf %1020, %1067 : vector<6x128xf32>
    %1069 = vector.broadcast %203 : f32 to vector<2x128xf32>
    %1070 = arith.mulf %1069, %939 : vector<2x128xf32>
    %1071 = arith.addf %1023, %1070 : vector<2x128xf32>
    %1072 = vector.broadcast %239 : f32 to vector<6x128xf32>
    %1073 = arith.mulf %1072, %934 : vector<6x128xf32>
    %1074 = arith.addf %1026, %1073 : vector<6x128xf32>
    %1075 = vector.broadcast %239 : f32 to vector<2x128xf32>
    %1076 = arith.mulf %1075, %939 : vector<2x128xf32>
    %1077 = arith.addf %1029, %1076 : vector<2x128xf32>
    %1078 = vector.broadcast %275 : f32 to vector<6x128xf32>
    %1079 = arith.mulf %1078, %934 : vector<6x128xf32>
    %1080 = arith.addf %1032, %1079 : vector<6x128xf32>
    %1081 = vector.broadcast %275 : f32 to vector<2x128xf32>
    %1082 = arith.mulf %1081, %939 : vector<2x128xf32>
    %1083 = arith.addf %1035, %1082 : vector<2x128xf32>
    %c0_91 = arith.constant 0 : index
    %c3_92 = arith.constant 3 : index
    %c2_93 = arith.constant 2 : index
    %c0_94 = arith.constant 0 : index
    %1084 = vector.load %arg4[%c0_91, %c3_92, %c2_93, %c0_94] : memref<1x4x8x132xf32, #tpu.memory_space<vmem>>, vector<1x1x6x132xf32>
    %1085 = vector.shape_cast %1084 : vector<1x1x6x132xf32> to vector<6x132xf32>
    %1086 = vector.extract_strided_slice %1085 {offsets = [0, 0], sizes = [6, 128], strides = [1, 1]} : vector<6x132xf32> to vector<6x128xf32>
    %1087 = vector.extract_strided_slice %1085 {offsets = [0, 2], sizes = [6, 128], strides = [1, 1]} : vector<6x132xf32> to vector<6x128xf32>
    %1088 = vector.extract_strided_slice %1085 {offsets = [0, 4], sizes = [6, 128], strides = [1, 1]} : vector<6x132xf32> to vector<6x128xf32>
    %c0_95 = arith.constant 0 : index
    %c3_96 = arith.constant 3 : index
    %c0_97 = arith.constant 0 : index
    %c0_98 = arith.constant 0 : index
    %1089 = vector.load %arg5[%c0_95, %c3_96, %c0_97, %c0_98] : memref<1x4x8x132xf32, #tpu.memory_space<vmem>>, vector<1x1x2x132xf32>
    %1090 = vector.shape_cast %1089 : vector<1x1x2x132xf32> to vector<2x132xf32>
    %1091 = vector.extract_strided_slice %1090 {offsets = [0, 0], sizes = [2, 128], strides = [1, 1]} : vector<2x132xf32> to vector<2x128xf32>
    %1092 = vector.extract_strided_slice %1090 {offsets = [0, 2], sizes = [2, 128], strides = [1, 1]} : vector<2x132xf32> to vector<2x128xf32>
    %1093 = vector.extract_strided_slice %1090 {offsets = [0, 4], sizes = [2, 128], strides = [1, 1]} : vector<2x132xf32> to vector<2x128xf32>
    %1094 = vector.broadcast %30 : f32 to vector<6x128xf32>
    %1095 = arith.mulf %1094, %1086 : vector<6x128xf32>
    %1096 = arith.addf %1038, %1095 : vector<6x128xf32>
    %1097 = vector.broadcast %30 : f32 to vector<2x128xf32>
    %1098 = arith.mulf %1097, %1091 : vector<2x128xf32>
    %1099 = arith.addf %1041, %1098 : vector<2x128xf32>
    %1100 = vector.broadcast %66 : f32 to vector<6x128xf32>
    %1101 = arith.mulf %1100, %1086 : vector<6x128xf32>
    %1102 = arith.addf %1044, %1101 : vector<6x128xf32>
    %1103 = vector.broadcast %66 : f32 to vector<2x128xf32>
    %1104 = arith.mulf %1103, %1091 : vector<2x128xf32>
    %1105 = arith.addf %1047, %1104 : vector<2x128xf32>
    %1106 = vector.broadcast %102 : f32 to vector<6x128xf32>
    %1107 = arith.mulf %1106, %1086 : vector<6x128xf32>
    %1108 = arith.addf %1050, %1107 : vector<6x128xf32>
    %1109 = vector.broadcast %102 : f32 to vector<2x128xf32>
    %1110 = arith.mulf %1109, %1091 : vector<2x128xf32>
    %1111 = arith.addf %1053, %1110 : vector<2x128xf32>
    %1112 = vector.broadcast %138 : f32 to vector<6x128xf32>
    %1113 = arith.mulf %1112, %1086 : vector<6x128xf32>
    %1114 = arith.addf %1056, %1113 : vector<6x128xf32>
    %1115 = vector.broadcast %138 : f32 to vector<2x128xf32>
    %1116 = arith.mulf %1115, %1091 : vector<2x128xf32>
    %1117 = arith.addf %1059, %1116 : vector<2x128xf32>
    %1118 = vector.broadcast %174 : f32 to vector<6x128xf32>
    %1119 = arith.mulf %1118, %1086 : vector<6x128xf32>
    %1120 = arith.addf %1062, %1119 : vector<6x128xf32>
    %1121 = vector.broadcast %174 : f32 to vector<2x128xf32>
    %1122 = arith.mulf %1121, %1091 : vector<2x128xf32>
    %1123 = arith.addf %1065, %1122 : vector<2x128xf32>
    %1124 = vector.broadcast %210 : f32 to vector<6x128xf32>
    %1125 = arith.mulf %1124, %1086 : vector<6x128xf32>
    %1126 = arith.addf %1068, %1125 : vector<6x128xf32>
    %1127 = vector.broadcast %210 : f32 to vector<2x128xf32>
    %1128 = arith.mulf %1127, %1091 : vector<2x128xf32>
    %1129 = arith.addf %1071, %1128 : vector<2x128xf32>
    %1130 = vector.broadcast %246 : f32 to vector<6x128xf32>
    %1131 = arith.mulf %1130, %1086 : vector<6x128xf32>
    %1132 = arith.addf %1074, %1131 : vector<6x128xf32>
    %1133 = vector.broadcast %246 : f32 to vector<2x128xf32>
    %1134 = arith.mulf %1133, %1091 : vector<2x128xf32>
    %1135 = arith.addf %1077, %1134 : vector<2x128xf32>
    %1136 = vector.broadcast %282 : f32 to vector<6x128xf32>
    %1137 = arith.mulf %1136, %1086 : vector<6x128xf32>
    %1138 = arith.addf %1080, %1137 : vector<6x128xf32>
    %1139 = vector.broadcast %282 : f32 to vector<2x128xf32>
    %1140 = arith.mulf %1139, %1091 : vector<2x128xf32>
    %1141 = arith.addf %1083, %1140 : vector<2x128xf32>
    %1142 = vector.broadcast %31 : f32 to vector<6x128xf32>
    %1143 = arith.mulf %1142, %1087 : vector<6x128xf32>
    %1144 = arith.addf %1096, %1143 : vector<6x128xf32>
    %1145 = vector.broadcast %31 : f32 to vector<2x128xf32>
    %1146 = arith.mulf %1145, %1092 : vector<2x128xf32>
    %1147 = arith.addf %1099, %1146 : vector<2x128xf32>
    %1148 = vector.broadcast %67 : f32 to vector<6x128xf32>
    %1149 = arith.mulf %1148, %1087 : vector<6x128xf32>
    %1150 = arith.addf %1102, %1149 : vector<6x128xf32>
    %1151 = vector.broadcast %67 : f32 to vector<2x128xf32>
    %1152 = arith.mulf %1151, %1092 : vector<2x128xf32>
    %1153 = arith.addf %1105, %1152 : vector<2x128xf32>
    %1154 = vector.broadcast %103 : f32 to vector<6x128xf32>
    %1155 = arith.mulf %1154, %1087 : vector<6x128xf32>
    %1156 = arith.addf %1108, %1155 : vector<6x128xf32>
    %1157 = vector.broadcast %103 : f32 to vector<2x128xf32>
    %1158 = arith.mulf %1157, %1092 : vector<2x128xf32>
    %1159 = arith.addf %1111, %1158 : vector<2x128xf32>
    %1160 = vector.broadcast %139 : f32 to vector<6x128xf32>
    %1161 = arith.mulf %1160, %1087 : vector<6x128xf32>
    %1162 = arith.addf %1114, %1161 : vector<6x128xf32>
    %1163 = vector.broadcast %139 : f32 to vector<2x128xf32>
    %1164 = arith.mulf %1163, %1092 : vector<2x128xf32>
    %1165 = arith.addf %1117, %1164 : vector<2x128xf32>
    %1166 = vector.broadcast %175 : f32 to vector<6x128xf32>
    %1167 = arith.mulf %1166, %1087 : vector<6x128xf32>
    %1168 = arith.addf %1120, %1167 : vector<6x128xf32>
    %1169 = vector.broadcast %175 : f32 to vector<2x128xf32>
    %1170 = arith.mulf %1169, %1092 : vector<2x128xf32>
    %1171 = arith.addf %1123, %1170 : vector<2x128xf32>
    %1172 = vector.broadcast %211 : f32 to vector<6x128xf32>
    %1173 = arith.mulf %1172, %1087 : vector<6x128xf32>
    %1174 = arith.addf %1126, %1173 : vector<6x128xf32>
    %1175 = vector.broadcast %211 : f32 to vector<2x128xf32>
    %1176 = arith.mulf %1175, %1092 : vector<2x128xf32>
    %1177 = arith.addf %1129, %1176 : vector<2x128xf32>
    %1178 = vector.broadcast %247 : f32 to vector<6x128xf32>
    %1179 = arith.mulf %1178, %1087 : vector<6x128xf32>
    %1180 = arith.addf %1132, %1179 : vector<6x128xf32>
    %1181 = vector.broadcast %247 : f32 to vector<2x128xf32>
    %1182 = arith.mulf %1181, %1092 : vector<2x128xf32>
    %1183 = arith.addf %1135, %1182 : vector<2x128xf32>
    %1184 = vector.broadcast %283 : f32 to vector<6x128xf32>
    %1185 = arith.mulf %1184, %1087 : vector<6x128xf32>
    %1186 = arith.addf %1138, %1185 : vector<6x128xf32>
    %1187 = vector.broadcast %283 : f32 to vector<2x128xf32>
    %1188 = arith.mulf %1187, %1092 : vector<2x128xf32>
    %1189 = arith.addf %1141, %1188 : vector<2x128xf32>
    %1190 = vector.broadcast %32 : f32 to vector<6x128xf32>
    %1191 = arith.mulf %1190, %1088 : vector<6x128xf32>
    %1192 = arith.addf %1144, %1191 : vector<6x128xf32>
    %1193 = vector.broadcast %32 : f32 to vector<2x128xf32>
    %1194 = arith.mulf %1193, %1093 : vector<2x128xf32>
    %1195 = arith.addf %1147, %1194 : vector<2x128xf32>
    %1196 = vector.broadcast %68 : f32 to vector<6x128xf32>
    %1197 = arith.mulf %1196, %1088 : vector<6x128xf32>
    %1198 = arith.addf %1150, %1197 : vector<6x128xf32>
    %1199 = vector.broadcast %68 : f32 to vector<2x128xf32>
    %1200 = arith.mulf %1199, %1093 : vector<2x128xf32>
    %1201 = arith.addf %1153, %1200 : vector<2x128xf32>
    %1202 = vector.broadcast %104 : f32 to vector<6x128xf32>
    %1203 = arith.mulf %1202, %1088 : vector<6x128xf32>
    %1204 = arith.addf %1156, %1203 : vector<6x128xf32>
    %1205 = vector.broadcast %104 : f32 to vector<2x128xf32>
    %1206 = arith.mulf %1205, %1093 : vector<2x128xf32>
    %1207 = arith.addf %1159, %1206 : vector<2x128xf32>
    %1208 = vector.broadcast %140 : f32 to vector<6x128xf32>
    %1209 = arith.mulf %1208, %1088 : vector<6x128xf32>
    %1210 = arith.addf %1162, %1209 : vector<6x128xf32>
    %1211 = vector.broadcast %140 : f32 to vector<2x128xf32>
    %1212 = arith.mulf %1211, %1093 : vector<2x128xf32>
    %1213 = arith.addf %1165, %1212 : vector<2x128xf32>
    %1214 = vector.broadcast %176 : f32 to vector<6x128xf32>
    %1215 = arith.mulf %1214, %1088 : vector<6x128xf32>
    %1216 = arith.addf %1168, %1215 : vector<6x128xf32>
    %1217 = vector.broadcast %176 : f32 to vector<2x128xf32>
    %1218 = arith.mulf %1217, %1093 : vector<2x128xf32>
    %1219 = arith.addf %1171, %1218 : vector<2x128xf32>
    %1220 = vector.broadcast %212 : f32 to vector<6x128xf32>
    %1221 = arith.mulf %1220, %1088 : vector<6x128xf32>
    %1222 = arith.addf %1174, %1221 : vector<6x128xf32>
    %1223 = vector.broadcast %212 : f32 to vector<2x128xf32>
    %1224 = arith.mulf %1223, %1093 : vector<2x128xf32>
    %1225 = arith.addf %1177, %1224 : vector<2x128xf32>
    %1226 = vector.broadcast %248 : f32 to vector<6x128xf32>
    %1227 = arith.mulf %1226, %1088 : vector<6x128xf32>
    %1228 = arith.addf %1180, %1227 : vector<6x128xf32>
    %1229 = vector.broadcast %248 : f32 to vector<2x128xf32>
    %1230 = arith.mulf %1229, %1093 : vector<2x128xf32>
    %1231 = arith.addf %1183, %1230 : vector<2x128xf32>
    %1232 = vector.broadcast %284 : f32 to vector<6x128xf32>
    %1233 = arith.mulf %1232, %1088 : vector<6x128xf32>
    %1234 = arith.addf %1186, %1233 : vector<6x128xf32>
    %1235 = vector.broadcast %284 : f32 to vector<2x128xf32>
    %1236 = arith.mulf %1235, %1093 : vector<2x128xf32>
    %1237 = arith.addf %1189, %1236 : vector<2x128xf32>
    %c0_99 = arith.constant 0 : index
    %c0_100 = arith.constant 0 : index
    %c0_101 = arith.constant 0 : index
    %1238 = vector.load %arg7[%c0_99, %c0_100, %c0_101] : memref<8x8x128xf32, #tpu.memory_space<vmem>>, vector<1x6x128xf32>
    %1239 = vector.shape_cast %1238 : vector<1x6x128xf32> to vector<6x128xf32>
    %1240 = arith.addf %1239, %1192 : vector<6x128xf32>
    %c0_102 = arith.constant 0 : index
    %c0_103 = arith.constant 0 : index
    %c0_104 = arith.constant 0 : index
    %1241 = vector.load %arg7[%c0_102, %c0_103, %c0_104] : memref<8x8x128xf32, #tpu.memory_space<vmem>>, vector<1x6x128xf32>
    %1242 = vector.shape_cast %1241 : vector<1x6x128xf32> to vector<6x128xf32>
    %1243 = vector.shape_cast %1240 : vector<6x128xf32> to vector<1x6x128xf32>
    tpu.vector_store %arg7[%c0_102, %c0_103, %c0_104], %1243 {strides = array<i32>} : memref<8x8x128xf32, #tpu.memory_space<vmem>>, vector<1x6x128xf32>,
    %c0_105 = arith.constant 0 : index
    %c6_106 = arith.constant 6 : index
    %c0_107 = arith.constant 0 : index
    %1244 = vector.load %arg7[%c0_105, %c6_106, %c0_107] : memref<8x8x128xf32, #tpu.memory_space<vmem>>, vector<1x2x128xf32>
    %1245 = vector.shape_cast %1244 : vector<1x2x128xf32> to vector<2x128xf32>
    %1246 = arith.addf %1245, %1195 : vector<2x128xf32>
    %c0_108 = arith.constant 0 : index
    %c6_109 = arith.constant 6 : index
    %c0_110 = arith.constant 0 : index
    %1247 = vector.load %arg7[%c0_108, %c6_109, %c0_110] : memref<8x8x128xf32, #tpu.memory_space<vmem>>, vector<1x2x128xf32>
    %1248 = vector.shape_cast %1247 : vector<1x2x128xf32> to vector<2x128xf32>
    %1249 = vector.shape_cast %1246 : vector<2x128xf32> to vector<1x2x128xf32>
    tpu.vector_store %arg7[%c0_108, %c6_109, %c0_110], %1249 {strides = array<i32>} : memref<8x8x128xf32, #tpu.memory_space<vmem>>, vector<1x2x128xf32>,
    %c1_111 = arith.constant 1 : index
    %c0_112 = arith.constant 0 : index
    %c0_113 = arith.constant 0 : index
    %1250 = vector.load %arg7[%c1_111, %c0_112, %c0_113] : memref<8x8x128xf32, #tpu.memory_space<vmem>>, vector<1x6x128xf32>
    %1251 = vector.shape_cast %1250 : vector<1x6x128xf32> to vector<6x128xf32>
    %1252 = arith.addf %1251, %1198 : vector<6x128xf32>
    %c1_114 = arith.constant 1 : index
    %c0_115 = arith.constant 0 : index
    %c0_116 = arith.constant 0 : index
    %1253 = vector.load %arg7[%c1_114, %c0_115, %c0_116] : memref<8x8x128xf32, #tpu.memory_space<vmem>>, vector<1x6x128xf32>
    %1254 = vector.shape_cast %1253 : vector<1x6x128xf32> to vector<6x128xf32>
    %1255 = vector.shape_cast %1252 : vector<6x128xf32> to vector<1x6x128xf32>
    tpu.vector_store %arg7[%c1_114, %c0_115, %c0_116], %1255 {strides = array<i32>} : memref<8x8x128xf32, #tpu.memory_space<vmem>>, vector<1x6x128xf32>,
    %c1_117 = arith.constant 1 : index
    %c6_118 = arith.constant 6 : index
    %c0_119 = arith.constant 0 : index
    %1256 = vector.load %arg7[%c1_117, %c6_118, %c0_119] : memref<8x8x128xf32, #tpu.memory_space<vmem>>, vector<1x2x128xf32>
    %1257 = vector.shape_cast %1256 : vector<1x2x128xf32> to vector<2x128xf32>
    %1258 = arith.addf %1257, %1201 : vector<2x128xf32>
    %c1_120 = arith.constant 1 : index
    %c6_121 = arith.constant 6 : index
    %c0_122 = arith.constant 0 : index
    %1259 = vector.load %arg7[%c1_120, %c6_121, %c0_122] : memref<8x8x128xf32, #tpu.memory_space<vmem>>, vector<1x2x128xf32>
    %1260 = vector.shape_cast %1259 : vector<1x2x128xf32> to vector<2x128xf32>
    %1261 = vector.shape_cast %1258 : vector<2x128xf32> to vector<1x2x128xf32>
    tpu.vector_store %arg7[%c1_120, %c6_121, %c0_122], %1261 {strides = array<i32>} : memref<8x8x128xf32, #tpu.memory_space<vmem>>, vector<1x2x128xf32>,
    %c2_123 = arith.constant 2 : index
    %c0_124 = arith.constant 0 : index
    %c0_125 = arith.constant 0 : index
    %1262 = vector.load %arg7[%c2_123, %c0_124, %c0_125] : memref<8x8x128xf32, #tpu.memory_space<vmem>>, vector<1x6x128xf32>
    %1263 = vector.shape_cast %1262 : vector<1x6x128xf32> to vector<6x128xf32>
    %1264 = arith.addf %1263, %1204 : vector<6x128xf32>
    %c2_126 = arith.constant 2 : index
    %c0_127 = arith.constant 0 : index
    %c0_128 = arith.constant 0 : index
    %1265 = vector.load %arg7[%c2_126, %c0_127, %c0_128] : memref<8x8x128xf32, #tpu.memory_space<vmem>>, vector<1x6x128xf32>
    %1266 = vector.shape_cast %1265 : vector<1x6x128xf32> to vector<6x128xf32>
    %1267 = vector.shape_cast %1264 : vector<6x128xf32> to vector<1x6x128xf32>
    tpu.vector_store %arg7[%c2_126, %c0_127, %c0_128], %1267 {strides = array<i32>} : memref<8x8x128xf32, #tpu.memory_space<vmem>>, vector<1x6x128xf32>,
    %c2_129 = arith.constant 2 : index
    %c6_130 = arith.constant 6 : index
    %c0_131 = arith.constant 0 : index
    %1268 = vector.load %arg7[%c2_129, %c6_130, %c0_131] : memref<8x8x128xf32, #tpu.memory_space<vmem>>, vector<1x2x128xf32>
    %1269 = vector.shape_cast %1268 : vector<1x2x128xf32> to vector<2x128xf32>
    %1270 = arith.addf %1269, %1207 : vector<2x128xf32>
    %c2_132 = arith.constant 2 : index
    %c6_133 = arith.constant 6 : index
    %c0_134 = arith.constant 0 : index
    %1271 = vector.load %arg7[%c2_132, %c6_133, %c0_134] : memref<8x8x128xf32, #tpu.memory_space<vmem>>, vector<1x2x128xf32>
    %1272 = vector.shape_cast %1271 : vector<1x2x128xf32> to vector<2x128xf32>
    %1273 = vector.shape_cast %1270 : vector<2x128xf32> to vector<1x2x128xf32>
    tpu.vector_store %arg7[%c2_132, %c6_133, %c0_134], %1273 {strides = array<i32>} : memref<8x8x128xf32, #tpu.memory_space<vmem>>, vector<1x2x128xf32>,
    %c3_135 = arith.constant 3 : index
    %c0_136 = arith.constant 0 : index
    %c0_137 = arith.constant 0 : index
    %1274 = vector.load %arg7[%c3_135, %c0_136, %c0_137] : memref<8x8x128xf32, #tpu.memory_space<vmem>>, vector<1x6x128xf32>
    %1275 = vector.shape_cast %1274 : vector<1x6x128xf32> to vector<6x128xf32>
    %1276 = arith.addf %1275, %1210 : vector<6x128xf32>
    %c3_138 = arith.constant 3 : index
    %c0_139 = arith.constant 0 : index
    %c0_140 = arith.constant 0 : index
    %1277 = vector.load %arg7[%c3_138, %c0_139, %c0_140] : memref<8x8x128xf32, #tpu.memory_space<vmem>>, vector<1x6x128xf32>
    %1278 = vector.shape_cast %1277 : vector<1x6x128xf32> to vector<6x128xf32>
    %1279 = vector.shape_cast %1276 : vector<6x128xf32> to vector<1x6x128xf32>
    tpu.vector_store %arg7[%c3_138, %c0_139, %c0_140], %1279 {strides = array<i32>} : memref<8x8x128xf32, #tpu.memory_space<vmem>>, vector<1x6x128xf32>,
    %c3_141 = arith.constant 3 : index
    %c6_142 = arith.constant 6 : index
    %c0_143 = arith.constant 0 : index
    %1280 = vector.load %arg7[%c3_141, %c6_142, %c0_143] : memref<8x8x128xf32, #tpu.memory_space<vmem>>, vector<1x2x128xf32>
    %1281 = vector.shape_cast %1280 : vector<1x2x128xf32> to vector<2x128xf32>
    %1282 = arith.addf %1281, %1213 : vector<2x128xf32>
    %c3_144 = arith.constant 3 : index
    %c6_145 = arith.constant 6 : index
    %c0_146 = arith.constant 0 : index
    %1283 = vector.load %arg7[%c3_144, %c6_145, %c0_146] : memref<8x8x128xf32, #tpu.memory_space<vmem>>, vector<1x2x128xf32>
    %1284 = vector.shape_cast %1283 : vector<1x2x128xf32> to vector<2x128xf32>
    %1285 = vector.shape_cast %1282 : vector<2x128xf32> to vector<1x2x128xf32>
    tpu.vector_store %arg7[%c3_144, %c6_145, %c0_146], %1285 {strides = array<i32>} : memref<8x8x128xf32, #tpu.memory_space<vmem>>, vector<1x2x128xf32>,
    %c4_147 = arith.constant 4 : index
    %c0_148 = arith.constant 0 : index
    %c0_149 = arith.constant 0 : index
    %1286 = vector.load %arg7[%c4_147, %c0_148, %c0_149] : memref<8x8x128xf32, #tpu.memory_space<vmem>>, vector<1x6x128xf32>
    %1287 = vector.shape_cast %1286 : vector<1x6x128xf32> to vector<6x128xf32>
    %1288 = arith.addf %1287, %1216 : vector<6x128xf32>
    %c4_150 = arith.constant 4 : index
    %c0_151 = arith.constant 0 : index
    %c0_152 = arith.constant 0 : index
    %1289 = vector.load %arg7[%c4_150, %c0_151, %c0_152] : memref<8x8x128xf32, #tpu.memory_space<vmem>>, vector<1x6x128xf32>
    %1290 = vector.shape_cast %1289 : vector<1x6x128xf32> to vector<6x128xf32>
    %1291 = vector.shape_cast %1288 : vector<6x128xf32> to vector<1x6x128xf32>
    tpu.vector_store %arg7[%c4_150, %c0_151, %c0_152], %1291 {strides = array<i32>} : memref<8x8x128xf32, #tpu.memory_space<vmem>>, vector<1x6x128xf32>,
    %c4_153 = arith.constant 4 : index
    %c6_154 = arith.constant 6 : index
    %c0_155 = arith.constant 0 : index
    %1292 = vector.load %arg7[%c4_153, %c6_154, %c0_155] : memref<8x8x128xf32, #tpu.memory_space<vmem>>, vector<1x2x128xf32>
    %1293 = vector.shape_cast %1292 : vector<1x2x128xf32> to vector<2x128xf32>
    %1294 = arith.addf %1293, %1219 : vector<2x128xf32>
    %c4_156 = arith.constant 4 : index
    %c6_157 = arith.constant 6 : index
    %c0_158 = arith.constant 0 : index
    %1295 = vector.load %arg7[%c4_156, %c6_157, %c0_158] : memref<8x8x128xf32, #tpu.memory_space<vmem>>, vector<1x2x128xf32>
    %1296 = vector.shape_cast %1295 : vector<1x2x128xf32> to vector<2x128xf32>
    %1297 = vector.shape_cast %1294 : vector<2x128xf32> to vector<1x2x128xf32>
    tpu.vector_store %arg7[%c4_156, %c6_157, %c0_158], %1297 {strides = array<i32>} : memref<8x8x128xf32, #tpu.memory_space<vmem>>, vector<1x2x128xf32>,
    %c5_159 = arith.constant 5 : index
    %c0_160 = arith.constant 0 : index
    %c0_161 = arith.constant 0 : index
    %1298 = vector.load %arg7[%c5_159, %c0_160, %c0_161] : memref<8x8x128xf32, #tpu.memory_space<vmem>>, vector<1x6x128xf32>
    %1299 = vector.shape_cast %1298 : vector<1x6x128xf32> to vector<6x128xf32>
    %1300 = arith.addf %1299, %1222 : vector<6x128xf32>
    %c5_162 = arith.constant 5 : index
    %c0_163 = arith.constant 0 : index
    %c0_164 = arith.constant 0 : index
    %1301 = vector.load %arg7[%c5_162, %c0_163, %c0_164] : memref<8x8x128xf32, #tpu.memory_space<vmem>>, vector<1x6x128xf32>
    %1302 = vector.shape_cast %1301 : vector<1x6x128xf32> to vector<6x128xf32>
    %1303 = vector.shape_cast %1300 : vector<6x128xf32> to vector<1x6x128xf32>
    tpu.vector_store %arg7[%c5_162, %c0_163, %c0_164], %1303 {strides = array<i32>} : memref<8x8x128xf32, #tpu.memory_space<vmem>>, vector<1x6x128xf32>,
    %c5_165 = arith.constant 5 : index
    %c6_166 = arith.constant 6 : index
    %c0_167 = arith.constant 0 : index
    %1304 = vector.load %arg7[%c5_165, %c6_166, %c0_167] : memref<8x8x128xf32, #tpu.memory_space<vmem>>, vector<1x2x128xf32>
    %1305 = vector.shape_cast %1304 : vector<1x2x128xf32> to vector<2x128xf32>
    %1306 = arith.addf %1305, %1225 : vector<2x128xf32>
    %c5_168 = arith.constant 5 : index
    %c6_169 = arith.constant 6 : index
    %c0_170 = arith.constant 0 : index
    %1307 = vector.load %arg7[%c5_168, %c6_169, %c0_170] : memref<8x8x128xf32, #tpu.memory_space<vmem>>, vector<1x2x128xf32>
    %1308 = vector.shape_cast %1307 : vector<1x2x128xf32> to vector<2x128xf32>
    %1309 = vector.shape_cast %1306 : vector<2x128xf32> to vector<1x2x128xf32>
    tpu.vector_store %arg7[%c5_168, %c6_169, %c0_170], %1309 {strides = array<i32>} : memref<8x8x128xf32, #tpu.memory_space<vmem>>, vector<1x2x128xf32>,
    %c6_171 = arith.constant 6 : index
    %c0_172 = arith.constant 0 : index
    %c0_173 = arith.constant 0 : index
    %1310 = vector.load %arg7[%c6_171, %c0_172, %c0_173] : memref<8x8x128xf32, #tpu.memory_space<vmem>>, vector<1x6x128xf32>
    %1311 = vector.shape_cast %1310 : vector<1x6x128xf32> to vector<6x128xf32>
    %1312 = arith.addf %1311, %1228 : vector<6x128xf32>
    %c6_174 = arith.constant 6 : index
    %c0_175 = arith.constant 0 : index
    %c0_176 = arith.constant 0 : index
    %1313 = vector.load %arg7[%c6_174, %c0_175, %c0_176] : memref<8x8x128xf32, #tpu.memory_space<vmem>>, vector<1x6x128xf32>
    %1314 = vector.shape_cast %1313 : vector<1x6x128xf32> to vector<6x128xf32>
    %1315 = vector.shape_cast %1312 : vector<6x128xf32> to vector<1x6x128xf32>
    tpu.vector_store %arg7[%c6_174, %c0_175, %c0_176], %1315 {strides = array<i32>} : memref<8x8x128xf32, #tpu.memory_space<vmem>>, vector<1x6x128xf32>,
    %c6_177 = arith.constant 6 : index
    %c6_178 = arith.constant 6 : index
    %c0_179 = arith.constant 0 : index
    %1316 = vector.load %arg7[%c6_177, %c6_178, %c0_179] : memref<8x8x128xf32, #tpu.memory_space<vmem>>, vector<1x2x128xf32>
    %1317 = vector.shape_cast %1316 : vector<1x2x128xf32> to vector<2x128xf32>
    %1318 = arith.addf %1317, %1231 : vector<2x128xf32>
    %c6_180 = arith.constant 6 : index
    %c6_181 = arith.constant 6 : index
    %c0_182 = arith.constant 0 : index
    %1319 = vector.load %arg7[%c6_180, %c6_181, %c0_182] : memref<8x8x128xf32, #tpu.memory_space<vmem>>, vector<1x2x128xf32>
    %1320 = vector.shape_cast %1319 : vector<1x2x128xf32> to vector<2x128xf32>
    %1321 = vector.shape_cast %1318 : vector<2x128xf32> to vector<1x2x128xf32>
    tpu.vector_store %arg7[%c6_180, %c6_181, %c0_182], %1321 {strides = array<i32>} : memref<8x8x128xf32, #tpu.memory_space<vmem>>, vector<1x2x128xf32>,
    %c7_183 = arith.constant 7 : index
    %c0_184 = arith.constant 0 : index
    %c0_185 = arith.constant 0 : index
    %1322 = vector.load %arg7[%c7_183, %c0_184, %c0_185] : memref<8x8x128xf32, #tpu.memory_space<vmem>>, vector<1x6x128xf32>
    %1323 = vector.shape_cast %1322 : vector<1x6x128xf32> to vector<6x128xf32>
    %1324 = arith.addf %1323, %1234 : vector<6x128xf32>
    %c7_186 = arith.constant 7 : index
    %c0_187 = arith.constant 0 : index
    %c0_188 = arith.constant 0 : index
    %1325 = vector.load %arg7[%c7_186, %c0_187, %c0_188] : memref<8x8x128xf32, #tpu.memory_space<vmem>>, vector<1x6x128xf32>
    %1326 = vector.shape_cast %1325 : vector<1x6x128xf32> to vector<6x128xf32>
    %1327 = vector.shape_cast %1324 : vector<6x128xf32> to vector<1x6x128xf32>
    tpu.vector_store %arg7[%c7_186, %c0_187, %c0_188], %1327 {strides = array<i32>} : memref<8x8x128xf32, #tpu.memory_space<vmem>>, vector<1x6x128xf32>,
    %c7_189 = arith.constant 7 : index
    %c6_190 = arith.constant 6 : index
    %c0_191 = arith.constant 0 : index
    %1328 = vector.load %arg7[%c7_189, %c6_190, %c0_191] : memref<8x8x128xf32, #tpu.memory_space<vmem>>, vector<1x2x128xf32>
    %1329 = vector.shape_cast %1328 : vector<1x2x128xf32> to vector<2x128xf32>
    %1330 = arith.addf %1329, %1237 : vector<2x128xf32>
    %c7_192 = arith.constant 7 : index
    %c6_193 = arith.constant 6 : index
    %c0_194 = arith.constant 0 : index
    %1331 = vector.load %arg7[%c7_192, %c6_193, %c0_194] : memref<8x8x128xf32, #tpu.memory_space<vmem>>, vector<1x2x128xf32>
    %1332 = vector.shape_cast %1331 : vector<1x2x128xf32> to vector<2x128xf32>
    %1333 = vector.shape_cast %1330 : vector<2x128xf32> to vector<1x2x128xf32>
    tpu.vector_store %arg7[%c7_192, %c6_193, %c0_194], %1333 {strides = array<i32>} : memref<8x8x128xf32, #tpu.memory_space<vmem>>, vector<1x2x128xf32>,
    %c0_195 = arith.constant 0 : index
    %c0_196 = arith.constant 0 : index
    %c4_197 = arith.constant 4 : index
    %c0_198 = arith.constant 0 : index
    %1334 = vector.load %arg4[%c0_195, %c0_196, %c4_197, %c0_198] : memref<1x4x8x132xf32, #tpu.memory_space<vmem>>, vector<1x1x4x132xf32>
    %1335 = vector.shape_cast %1334 : vector<1x1x4x132xf32> to vector<4x132xf32>
    %1336 = vector.extract_strided_slice %1335 {offsets = [0, 0], sizes = [4, 128], strides = [1, 1]} : vector<4x132xf32> to vector<4x128xf32>
    %1337 = vector.extract_strided_slice %1335 {offsets = [0, 2], sizes = [4, 128], strides = [1, 1]} : vector<4x132xf32> to vector<4x128xf32>
    %1338 = vector.extract_strided_slice %1335 {offsets = [0, 4], sizes = [4, 128], strides = [1, 1]} : vector<4x132xf32> to vector<4x128xf32>
    %c0_199 = arith.constant 0 : index
    %c0_200 = arith.constant 0 : index
    %c0_201 = arith.constant 0 : index
    %c0_202 = arith.constant 0 : index
    %1339 = vector.load %arg5[%c0_199, %c0_200, %c0_201, %c0_202] : memref<1x4x8x132xf32, #tpu.memory_space<vmem>>, vector<1x1x4x132xf32>
    %1340 = vector.shape_cast %1339 : vector<1x1x4x132xf32> to vector<4x132xf32>
    %1341 = vector.extract_strided_slice %1340 {offsets = [0, 0], sizes = [4, 128], strides = [1, 1]} : vector<4x132xf32> to vector<4x128xf32>
    %1342 = vector.extract_strided_slice %1340 {offsets = [0, 2], sizes = [4, 128], strides = [1, 1]} : vector<4x132xf32> to vector<4x128xf32>
    %1343 = vector.extract_strided_slice %1340 {offsets = [0, 4], sizes = [4, 128], strides = [1, 1]} : vector<4x132xf32> to vector<4x128xf32>
    %1344 = vector.broadcast %6 : f32 to vector<4x128xf32>
    %1345 = arith.mulf %1344, %1336 : vector<4x128xf32>
    %1346 = vector.broadcast %6 : f32 to vector<4x128xf32>
    %1347 = arith.mulf %1346, %1341 : vector<4x128xf32>
    %1348 = vector.broadcast %42 : f32 to vector<4x128xf32>
    %1349 = arith.mulf %1348, %1336 : vector<4x128xf32>
    %1350 = vector.broadcast %42 : f32 to vector<4x128xf32>
    %1351 = arith.mulf %1350, %1341 : vector<4x128xf32>
    %1352 = vector.broadcast %78 : f32 to vector<4x128xf32>
    %1353 = arith.mulf %1352, %1336 : vector<4x128xf32>
    %1354 = vector.broadcast %78 : f32 to vector<4x128xf32>
    %1355 = arith.mulf %1354, %1341 : vector<4x128xf32>
    %1356 = vector.broadcast %114 : f32 to vector<4x128xf32>
    %1357 = arith.mulf %1356, %1336 : vector<4x128xf32>
    %1358 = vector.broadcast %114 : f32 to vector<4x128xf32>
    %1359 = arith.mulf %1358, %1341 : vector<4x128xf32>
    %1360 = vector.broadcast %150 : f32 to vector<4x128xf32>
    %1361 = arith.mulf %1360, %1336 : vector<4x128xf32>
    %1362 = vector.broadcast %150 : f32 to vector<4x128xf32>
    %1363 = arith.mulf %1362, %1341 : vector<4x128xf32>
    %1364 = vector.broadcast %186 : f32 to vector<4x128xf32>
    %1365 = arith.mulf %1364, %1336 : vector<4x128xf32>
    %1366 = vector.broadcast %186 : f32 to vector<4x128xf32>
    %1367 = arith.mulf %1366, %1341 : vector<4x128xf32>
    %1368 = vector.broadcast %222 : f32 to vector<4x128xf32>
    %1369 = arith.mulf %1368, %1336 : vector<4x128xf32>
    %1370 = vector.broadcast %222 : f32 to vector<4x128xf32>
    %1371 = arith.mulf %1370, %1341 : vector<4x128xf32>
    %1372 = vector.broadcast %258 : f32 to vector<4x128xf32>
    %1373 = arith.mulf %1372, %1336 : vector<4x128xf32>
    %1374 = vector.broadcast %258 : f32 to vector<4x128xf32>
    %1375 = arith.mulf %1374, %1341 : vector<4x128xf32>
    %1376 = vector.broadcast %7 : f32 to vector<4x128xf32>
    %1377 = arith.mulf %1376, %1337 : vector<4x128xf32>
    %1378 = arith.addf %1345, %1377 : vector<4x128xf32>
    %1379 = vector.broadcast %7 : f32 to vector<4x128xf32>
    %1380 = arith.mulf %1379, %1342 : vector<4x128xf32>
    %1381 = arith.addf %1347, %1380 : vector<4x128xf32>
    %1382 = vector.broadcast %43 : f32 to vector<4x128xf32>
    %1383 = arith.mulf %1382, %1337 : vector<4x128xf32>
    %1384 = arith.addf %1349, %1383 : vector<4x128xf32>
    %1385 = vector.broadcast %43 : f32 to vector<4x128xf32>
    %1386 = arith.mulf %1385, %1342 : vector<4x128xf32>
    %1387 = arith.addf %1351, %1386 : vector<4x128xf32>
    %1388 = vector.broadcast %79 : f32 to vector<4x128xf32>
    %1389 = arith.mulf %1388, %1337 : vector<4x128xf32>
    %1390 = arith.addf %1353, %1389 : vector<4x128xf32>
    %1391 = vector.broadcast %79 : f32 to vector<4x128xf32>
    %1392 = arith.mulf %1391, %1342 : vector<4x128xf32>
    %1393 = arith.addf %1355, %1392 : vector<4x128xf32>
    %1394 = vector.broadcast %115 : f32 to vector<4x128xf32>
    %1395 = arith.mulf %1394, %1337 : vector<4x128xf32>
    %1396 = arith.addf %1357, %1395 : vector<4x128xf32>
    %1397 = vector.broadcast %115 : f32 to vector<4x128xf32>
    %1398 = arith.mulf %1397, %1342 : vector<4x128xf32>
    %1399 = arith.addf %1359, %1398 : vector<4x128xf32>
    %1400 = vector.broadcast %151 : f32 to vector<4x128xf32>
    %1401 = arith.mulf %1400, %1337 : vector<4x128xf32>
    %1402 = arith.addf %1361, %1401 : vector<4x128xf32>
    %1403 = vector.broadcast %151 : f32 to vector<4x128xf32>
    %1404 = arith.mulf %1403, %1342 : vector<4x128xf32>
    %1405 = arith.addf %1363, %1404 : vector<4x128xf32>
    %1406 = vector.broadcast %187 : f32 to vector<4x128xf32>
    %1407 = arith.mulf %1406, %1337 : vector<4x128xf32>
    %1408 = arith.addf %1365, %1407 : vector<4x128xf32>
    %1409 = vector.broadcast %187 : f32 to vector<4x128xf32>
    %1410 = arith.mulf %1409, %1342 : vector<4x128xf32>
    %1411 = arith.addf %1367, %1410 : vector<4x128xf32>
    %1412 = vector.broadcast %223 : f32 to vector<4x128xf32>
    %1413 = arith.mulf %1412, %1337 : vector<4x128xf32>
    %1414 = arith.addf %1369, %1413 : vector<4x128xf32>
    %1415 = vector.broadcast %223 : f32 to vector<4x128xf32>
    %1416 = arith.mulf %1415, %1342 : vector<4x128xf32>
    %1417 = arith.addf %1371, %1416 : vector<4x128xf32>
    %1418 = vector.broadcast %259 : f32 to vector<4x128xf32>
    %1419 = arith.mulf %1418, %1337 : vector<4x128xf32>
    %1420 = arith.addf %1373, %1419 : vector<4x128xf32>
    %1421 = vector.broadcast %259 : f32 to vector<4x128xf32>
    %1422 = arith.mulf %1421, %1342 : vector<4x128xf32>
    %1423 = arith.addf %1375, %1422 : vector<4x128xf32>
    %1424 = vector.broadcast %8 : f32 to vector<4x128xf32>
    %1425 = arith.mulf %1424, %1338 : vector<4x128xf32>
    %1426 = arith.addf %1378, %1425 : vector<4x128xf32>
    %1427 = vector.broadcast %8 : f32 to vector<4x128xf32>
    %1428 = arith.mulf %1427, %1343 : vector<4x128xf32>
    %1429 = arith.addf %1381, %1428 : vector<4x128xf32>
    %1430 = vector.broadcast %44 : f32 to vector<4x128xf32>
    %1431 = arith.mulf %1430, %1338 : vector<4x128xf32>
    %1432 = arith.addf %1384, %1431 : vector<4x128xf32>
    %1433 = vector.broadcast %44 : f32 to vector<4x128xf32>
    %1434 = arith.mulf %1433, %1343 : vector<4x128xf32>
    %1435 = arith.addf %1387, %1434 : vector<4x128xf32>
    %1436 = vector.broadcast %80 : f32 to vector<4x128xf32>
    %1437 = arith.mulf %1436, %1338 : vector<4x128xf32>
    %1438 = arith.addf %1390, %1437 : vector<4x128xf32>
    %1439 = vector.broadcast %80 : f32 to vector<4x128xf32>
    %1440 = arith.mulf %1439, %1343 : vector<4x128xf32>
    %1441 = arith.addf %1393, %1440 : vector<4x128xf32>
    %1442 = vector.broadcast %116 : f32 to vector<4x128xf32>
    %1443 = arith.mulf %1442, %1338 : vector<4x128xf32>
    %1444 = arith.addf %1396, %1443 : vector<4x128xf32>
    %1445 = vector.broadcast %116 : f32 to vector<4x128xf32>
    %1446 = arith.mulf %1445, %1343 : vector<4x128xf32>
    %1447 = arith.addf %1399, %1446 : vector<4x128xf32>
    %1448 = vector.broadcast %152 : f32 to vector<4x128xf32>
    %1449 = arith.mulf %1448, %1338 : vector<4x128xf32>
    %1450 = arith.addf %1402, %1449 : vector<4x128xf32>
    %1451 = vector.broadcast %152 : f32 to vector<4x128xf32>
    %1452 = arith.mulf %1451, %1343 : vector<4x128xf32>
    %1453 = arith.addf %1405, %1452 : vector<4x128xf32>
    %1454 = vector.broadcast %188 : f32 to vector<4x128xf32>
    %1455 = arith.mulf %1454, %1338 : vector<4x128xf32>
    %1456 = arith.addf %1408, %1455 : vector<4x128xf32>
    %1457 = vector.broadcast %188 : f32 to vector<4x128xf32>
    %1458 = arith.mulf %1457, %1343 : vector<4x128xf32>
    %1459 = arith.addf %1411, %1458 : vector<4x128xf32>
    %1460 = vector.broadcast %224 : f32 to vector<4x128xf32>
    %1461 = arith.mulf %1460, %1338 : vector<4x128xf32>
    %1462 = arith.addf %1414, %1461 : vector<4x128xf32>
    %1463 = vector.broadcast %224 : f32 to vector<4x128xf32>
    %1464 = arith.mulf %1463, %1343 : vector<4x128xf32>
    %1465 = arith.addf %1417, %1464 : vector<4x128xf32>
    %1466 = vector.broadcast %260 : f32 to vector<4x128xf32>
    %1467 = arith.mulf %1466, %1338 : vector<4x128xf32>
    %1468 = arith.addf %1420, %1467 : vector<4x128xf32>
    %1469 = vector.broadcast %260 : f32 to vector<4x128xf32>
    %1470 = arith.mulf %1469, %1343 : vector<4x128xf32>
    %1471 = arith.addf %1423, %1470 : vector<4x128xf32>
    %c0_203 = arith.constant 0 : index
    %c1_204 = arith.constant 1 : index
    %c4_205 = arith.constant 4 : index
    %c0_206 = arith.constant 0 : index
    %1472 = vector.load %arg4[%c0_203, %c1_204, %c4_205, %c0_206] : memref<1x4x8x132xf32, #tpu.memory_space<vmem>>, vector<1x1x4x132xf32>
    %1473 = vector.shape_cast %1472 : vector<1x1x4x132xf32> to vector<4x132xf32>
    %1474 = vector.extract_strided_slice %1473 {offsets = [0, 0], sizes = [4, 128], strides = [1, 1]} : vector<4x132xf32> to vector<4x128xf32>
    %1475 = vector.extract_strided_slice %1473 {offsets = [0, 2], sizes = [4, 128], strides = [1, 1]} : vector<4x132xf32> to vector<4x128xf32>
    %1476 = vector.extract_strided_slice %1473 {offsets = [0, 4], sizes = [4, 128], strides = [1, 1]} : vector<4x132xf32> to vector<4x128xf32>
    %c0_207 = arith.constant 0 : index
    %c1_208 = arith.constant 1 : index
    %c0_209 = arith.constant 0 : index
    %c0_210 = arith.constant 0 : index
    %1477 = vector.load %arg5[%c0_207, %c1_208, %c0_209, %c0_210] : memref<1x4x8x132xf32, #tpu.memory_space<vmem>>, vector<1x1x4x132xf32>
    %1478 = vector.shape_cast %1477 : vector<1x1x4x132xf32> to vector<4x132xf32>
    %1479 = vector.extract_strided_slice %1478 {offsets = [0, 0], sizes = [4, 128], strides = [1, 1]} : vector<4x132xf32> to vector<4x128xf32>
    %1480 = vector.extract_strided_slice %1478 {offsets = [0, 2], sizes = [4, 128], strides = [1, 1]} : vector<4x132xf32> to vector<4x128xf32>
    %1481 = vector.extract_strided_slice %1478 {offsets = [0, 4], sizes = [4, 128], strides = [1, 1]} : vector<4x132xf32> to vector<4x128xf32>
    %1482 = vector.broadcast %15 : f32 to vector<4x128xf32>
    %1483 = arith.mulf %1482, %1474 : vector<4x128xf32>
    %1484 = arith.addf %1426, %1483 : vector<4x128xf32>
    %1485 = vector.broadcast %15 : f32 to vector<4x128xf32>
    %1486 = arith.mulf %1485, %1479 : vector<4x128xf32>
    %1487 = arith.addf %1429, %1486 : vector<4x128xf32>
    %1488 = vector.broadcast %51 : f32 to vector<4x128xf32>
    %1489 = arith.mulf %1488, %1474 : vector<4x128xf32>
    %1490 = arith.addf %1432, %1489 : vector<4x128xf32>
    %1491 = vector.broadcast %51 : f32 to vector<4x128xf32>
    %1492 = arith.mulf %1491, %1479 : vector<4x128xf32>
    %1493 = arith.addf %1435, %1492 : vector<4x128xf32>
    %1494 = vector.broadcast %87 : f32 to vector<4x128xf32>
    %1495 = arith.mulf %1494, %1474 : vector<4x128xf32>
    %1496 = arith.addf %1438, %1495 : vector<4x128xf32>
    %1497 = vector.broadcast %87 : f32 to vector<4x128xf32>
    %1498 = arith.mulf %1497, %1479 : vector<4x128xf32>
    %1499 = arith.addf %1441, %1498 : vector<4x128xf32>
    %1500 = vector.broadcast %123 : f32 to vector<4x128xf32>
    %1501 = arith.mulf %1500, %1474 : vector<4x128xf32>
    %1502 = arith.addf %1444, %1501 : vector<4x128xf32>
    %1503 = vector.broadcast %123 : f32 to vector<4x128xf32>
    %1504 = arith.mulf %1503, %1479 : vector<4x128xf32>
    %1505 = arith.addf %1447, %1504 : vector<4x128xf32>
    %1506 = vector.broadcast %159 : f32 to vector<4x128xf32>
    %1507 = arith.mulf %1506, %1474 : vector<4x128xf32>
    %1508 = arith.addf %1450, %1507 : vector<4x128xf32>
    %1509 = vector.broadcast %159 : f32 to vector<4x128xf32>
    %1510 = arith.mulf %1509, %1479 : vector<4x128xf32>
    %1511 = arith.addf %1453, %1510 : vector<4x128xf32>
    %1512 = vector.broadcast %195 : f32 to vector<4x128xf32>
    %1513 = arith.mulf %1512, %1474 : vector<4x128xf32>
    %1514 = arith.addf %1456, %1513 : vector<4x128xf32>
    %1515 = vector.broadcast %195 : f32 to vector<4x128xf32>
    %1516 = arith.mulf %1515, %1479 : vector<4x128xf32>
    %1517 = arith.addf %1459, %1516 : vector<4x128xf32>
    %1518 = vector.broadcast %231 : f32 to vector<4x128xf32>
    %1519 = arith.mulf %1518, %1474 : vector<4x128xf32>
    %1520 = arith.addf %1462, %1519 : vector<4x128xf32>
    %1521 = vector.broadcast %231 : f32 to vector<4x128xf32>
    %1522 = arith.mulf %1521, %1479 : vector<4x128xf32>
    %1523 = arith.addf %1465, %1522 : vector<4x128xf32>
    %1524 = vector.broadcast %267 : f32 to vector<4x128xf32>
    %1525 = arith.mulf %1524, %1474 : vector<4x128xf32>
    %1526 = arith.addf %1468, %1525 : vector<4x128xf32>
    %1527 = vector.broadcast %267 : f32 to vector<4x128xf32>
    %1528 = arith.mulf %1527, %1479 : vector<4x128xf32>
    %1529 = arith.addf %1471, %1528 : vector<4x128xf32>
    %1530 = vector.broadcast %16 : f32 to vector<4x128xf32>
    %1531 = arith.mulf %1530, %1475 : vector<4x128xf32>
    %1532 = arith.addf %1484, %1531 : vector<4x128xf32>
    %1533 = vector.broadcast %16 : f32 to vector<4x128xf32>
    %1534 = arith.mulf %1533, %1480 : vector<4x128xf32>
    %1535 = arith.addf %1487, %1534 : vector<4x128xf32>
    %1536 = vector.broadcast %52 : f32 to vector<4x128xf32>
    %1537 = arith.mulf %1536, %1475 : vector<4x128xf32>
    %1538 = arith.addf %1490, %1537 : vector<4x128xf32>
    %1539 = vector.broadcast %52 : f32 to vector<4x128xf32>
    %1540 = arith.mulf %1539, %1480 : vector<4x128xf32>
    %1541 = arith.addf %1493, %1540 : vector<4x128xf32>
    %1542 = vector.broadcast %88 : f32 to vector<4x128xf32>
    %1543 = arith.mulf %1542, %1475 : vector<4x128xf32>
    %1544 = arith.addf %1496, %1543 : vector<4x128xf32>
    %1545 = vector.broadcast %88 : f32 to vector<4x128xf32>
    %1546 = arith.mulf %1545, %1480 : vector<4x128xf32>
    %1547 = arith.addf %1499, %1546 : vector<4x128xf32>
    %1548 = vector.broadcast %124 : f32 to vector<4x128xf32>
    %1549 = arith.mulf %1548, %1475 : vector<4x128xf32>
    %1550 = arith.addf %1502, %1549 : vector<4x128xf32>
    %1551 = vector.broadcast %124 : f32 to vector<4x128xf32>
    %1552 = arith.mulf %1551, %1480 : vector<4x128xf32>
    %1553 = arith.addf %1505, %1552 : vector<4x128xf32>
    %1554 = vector.broadcast %160 : f32 to vector<4x128xf32>
    %1555 = arith.mulf %1554, %1475 : vector<4x128xf32>
    %1556 = arith.addf %1508, %1555 : vector<4x128xf32>
    %1557 = vector.broadcast %160 : f32 to vector<4x128xf32>
    %1558 = arith.mulf %1557, %1480 : vector<4x128xf32>
    %1559 = arith.addf %1511, %1558 : vector<4x128xf32>
    %1560 = vector.broadcast %196 : f32 to vector<4x128xf32>
    %1561 = arith.mulf %1560, %1475 : vector<4x128xf32>
    %1562 = arith.addf %1514, %1561 : vector<4x128xf32>
    %1563 = vector.broadcast %196 : f32 to vector<4x128xf32>
    %1564 = arith.mulf %1563, %1480 : vector<4x128xf32>
    %1565 = arith.addf %1517, %1564 : vector<4x128xf32>
    %1566 = vector.broadcast %232 : f32 to vector<4x128xf32>
    %1567 = arith.mulf %1566, %1475 : vector<4x128xf32>
    %1568 = arith.addf %1520, %1567 : vector<4x128xf32>
    %1569 = vector.broadcast %232 : f32 to vector<4x128xf32>
    %1570 = arith.mulf %1569, %1480 : vector<4x128xf32>
    %1571 = arith.addf %1523, %1570 : vector<4x128xf32>
    %1572 = vector.broadcast %268 : f32 to vector<4x128xf32>
    %1573 = arith.mulf %1572, %1475 : vector<4x128xf32>
    %1574 = arith.addf %1526, %1573 : vector<4x128xf32>
    %1575 = vector.broadcast %268 : f32 to vector<4x128xf32>
    %1576 = arith.mulf %1575, %1480 : vector<4x128xf32>
    %1577 = arith.addf %1529, %1576 : vector<4x128xf32>
    %1578 = vector.broadcast %17 : f32 to vector<4x128xf32>
    %1579 = arith.mulf %1578, %1476 : vector<4x128xf32>
    %1580 = arith.addf %1532, %1579 : vector<4x128xf32>
    %1581 = vector.broadcast %17 : f32 to vector<4x128xf32>
    %1582 = arith.mulf %1581, %1481 : vector<4x128xf32>
    %1583 = arith.addf %1535, %1582 : vector<4x128xf32>
    %1584 = vector.broadcast %53 : f32 to vector<4x128xf32>
    %1585 = arith.mulf %1584, %1476 : vector<4x128xf32>
    %1586 = arith.addf %1538, %1585 : vector<4x128xf32>
    %1587 = vector.broadcast %53 : f32 to vector<4x128xf32>
    %1588 = arith.mulf %1587, %1481 : vector<4x128xf32>
    %1589 = arith.addf %1541, %1588 : vector<4x128xf32>
    %1590 = vector.broadcast %89 : f32 to vector<4x128xf32>
    %1591 = arith.mulf %1590, %1476 : vector<4x128xf32>
    %1592 = arith.addf %1544, %1591 : vector<4x128xf32>
    %1593 = vector.broadcast %89 : f32 to vector<4x128xf32>
    %1594 = arith.mulf %1593, %1481 : vector<4x128xf32>
    %1595 = arith.addf %1547, %1594 : vector<4x128xf32>
    %1596 = vector.broadcast %125 : f32 to vector<4x128xf32>
    %1597 = arith.mulf %1596, %1476 : vector<4x128xf32>
    %1598 = arith.addf %1550, %1597 : vector<4x128xf32>
    %1599 = vector.broadcast %125 : f32 to vector<4x128xf32>
    %1600 = arith.mulf %1599, %1481 : vector<4x128xf32>
    %1601 = arith.addf %1553, %1600 : vector<4x128xf32>
    %1602 = vector.broadcast %161 : f32 to vector<4x128xf32>
    %1603 = arith.mulf %1602, %1476 : vector<4x128xf32>
    %1604 = arith.addf %1556, %1603 : vector<4x128xf32>
    %1605 = vector.broadcast %161 : f32 to vector<4x128xf32>
    %1606 = arith.mulf %1605, %1481 : vector<4x128xf32>
    %1607 = arith.addf %1559, %1606 : vector<4x128xf32>
    %1608 = vector.broadcast %197 : f32 to vector<4x128xf32>
    %1609 = arith.mulf %1608, %1476 : vector<4x128xf32>
    %1610 = arith.addf %1562, %1609 : vector<4x128xf32>
    %1611 = vector.broadcast %197 : f32 to vector<4x128xf32>
    %1612 = arith.mulf %1611, %1481 : vector<4x128xf32>
    %1613 = arith.addf %1565, %1612 : vector<4x128xf32>
    %1614 = vector.broadcast %233 : f32 to vector<4x128xf32>
    %1615 = arith.mulf %1614, %1476 : vector<4x128xf32>
    %1616 = arith.addf %1568, %1615 : vector<4x128xf32>
    %1617 = vector.broadcast %233 : f32 to vector<4x128xf32>
    %1618 = arith.mulf %1617, %1481 : vector<4x128xf32>
    %1619 = arith.addf %1571, %1618 : vector<4x128xf32>
    %1620 = vector.broadcast %269 : f32 to vector<4x128xf32>
    %1621 = arith.mulf %1620, %1476 : vector<4x128xf32>
    %1622 = arith.addf %1574, %1621 : vector<4x128xf32>
    %1623 = vector.broadcast %269 : f32 to vector<4x128xf32>
    %1624 = arith.mulf %1623, %1481 : vector<4x128xf32>
    %1625 = arith.addf %1577, %1624 : vector<4x128xf32>
    %c0_211 = arith.constant 0 : index
    %c2_212 = arith.constant 2 : index
    %c4_213 = arith.constant 4 : index
    %c0_214 = arith.constant 0 : index
    %1626 = vector.load %arg4[%c0_211, %c2_212, %c4_213, %c0_214] : memref<1x4x8x132xf32, #tpu.memory_space<vmem>>, vector<1x1x4x132xf32>
    %1627 = vector.shape_cast %1626 : vector<1x1x4x132xf32> to vector<4x132xf32>
    %1628 = vector.extract_strided_slice %1627 {offsets = [0, 0], sizes = [4, 128], strides = [1, 1]} : vector<4x132xf32> to vector<4x128xf32>
    %1629 = vector.extract_strided_slice %1627 {offsets = [0, 2], sizes = [4, 128], strides = [1, 1]} : vector<4x132xf32> to vector<4x128xf32>
    %1630 = vector.extract_strided_slice %1627 {offsets = [0, 4], sizes = [4, 128], strides = [1, 1]} : vector<4x132xf32> to vector<4x128xf32>
    %c0_215 = arith.constant 0 : index
    %c2_216 = arith.constant 2 : index
    %c0_217 = arith.constant 0 : index
    %c0_218 = arith.constant 0 : index
    %1631 = vector.load %arg5[%c0_215, %c2_216, %c0_217, %c0_218] : memref<1x4x8x132xf32, #tpu.memory_space<vmem>>, vector<1x1x4x132xf32>
    %1632 = vector.shape_cast %1631 : vector<1x1x4x132xf32> to vector<4x132xf32>
    %1633 = vector.extract_strided_slice %1632 {offsets = [0, 0], sizes = [4, 128], strides = [1, 1]} : vector<4x132xf32> to vector<4x128xf32>
    %1634 = vector.extract_strided_slice %1632 {offsets = [0, 2], sizes = [4, 128], strides = [1, 1]} : vector<4x132xf32> to vector<4x128xf32>
    %1635 = vector.extract_strided_slice %1632 {offsets = [0, 4], sizes = [4, 128], strides = [1, 1]} : vector<4x132xf32> to vector<4x128xf32>
    %1636 = vector.broadcast %24 : f32 to vector<4x128xf32>
    %1637 = arith.mulf %1636, %1628 : vector<4x128xf32>
    %1638 = arith.addf %1580, %1637 : vector<4x128xf32>
    %1639 = vector.broadcast %24 : f32 to vector<4x128xf32>
    %1640 = arith.mulf %1639, %1633 : vector<4x128xf32>
    %1641 = arith.addf %1583, %1640 : vector<4x128xf32>
    %1642 = vector.broadcast %60 : f32 to vector<4x128xf32>
    %1643 = arith.mulf %1642, %1628 : vector<4x128xf32>
    %1644 = arith.addf %1586, %1643 : vector<4x128xf32>
    %1645 = vector.broadcast %60 : f32 to vector<4x128xf32>
    %1646 = arith.mulf %1645, %1633 : vector<4x128xf32>
    %1647 = arith.addf %1589, %1646 : vector<4x128xf32>
    %1648 = vector.broadcast %96 : f32 to vector<4x128xf32>
    %1649 = arith.mulf %1648, %1628 : vector<4x128xf32>
    %1650 = arith.addf %1592, %1649 : vector<4x128xf32>
    %1651 = vector.broadcast %96 : f32 to vector<4x128xf32>
    %1652 = arith.mulf %1651, %1633 : vector<4x128xf32>
    %1653 = arith.addf %1595, %1652 : vector<4x128xf32>
    %1654 = vector.broadcast %132 : f32 to vector<4x128xf32>
    %1655 = arith.mulf %1654, %1628 : vector<4x128xf32>
    %1656 = arith.addf %1598, %1655 : vector<4x128xf32>
    %1657 = vector.broadcast %132 : f32 to vector<4x128xf32>
    %1658 = arith.mulf %1657, %1633 : vector<4x128xf32>
    %1659 = arith.addf %1601, %1658 : vector<4x128xf32>
    %1660 = vector.broadcast %168 : f32 to vector<4x128xf32>
    %1661 = arith.mulf %1660, %1628 : vector<4x128xf32>
    %1662 = arith.addf %1604, %1661 : vector<4x128xf32>
    %1663 = vector.broadcast %168 : f32 to vector<4x128xf32>
    %1664 = arith.mulf %1663, %1633 : vector<4x128xf32>
    %1665 = arith.addf %1607, %1664 : vector<4x128xf32>
    %1666 = vector.broadcast %204 : f32 to vector<4x128xf32>
    %1667 = arith.mulf %1666, %1628 : vector<4x128xf32>
    %1668 = arith.addf %1610, %1667 : vector<4x128xf32>
    %1669 = vector.broadcast %204 : f32 to vector<4x128xf32>
    %1670 = arith.mulf %1669, %1633 : vector<4x128xf32>
    %1671 = arith.addf %1613, %1670 : vector<4x128xf32>
    %1672 = vector.broadcast %240 : f32 to vector<4x128xf32>
    %1673 = arith.mulf %1672, %1628 : vector<4x128xf32>
    %1674 = arith.addf %1616, %1673 : vector<4x128xf32>
    %1675 = vector.broadcast %240 : f32 to vector<4x128xf32>
    %1676 = arith.mulf %1675, %1633 : vector<4x128xf32>
    %1677 = arith.addf %1619, %1676 : vector<4x128xf32>
    %1678 = vector.broadcast %276 : f32 to vector<4x128xf32>
    %1679 = arith.mulf %1678, %1628 : vector<4x128xf32>
    %1680 = arith.addf %1622, %1679 : vector<4x128xf32>
    %1681 = vector.broadcast %276 : f32 to vector<4x128xf32>
    %1682 = arith.mulf %1681, %1633 : vector<4x128xf32>
    %1683 = arith.addf %1625, %1682 : vector<4x128xf32>
    %1684 = vector.broadcast %25 : f32 to vector<4x128xf32>
    %1685 = arith.mulf %1684, %1629 : vector<4x128xf32>
    %1686 = arith.addf %1638, %1685 : vector<4x128xf32>
    %1687 = vector.broadcast %25 : f32 to vector<4x128xf32>
    %1688 = arith.mulf %1687, %1634 : vector<4x128xf32>
    %1689 = arith.addf %1641, %1688 : vector<4x128xf32>
    %1690 = vector.broadcast %61 : f32 to vector<4x128xf32>
    %1691 = arith.mulf %1690, %1629 : vector<4x128xf32>
    %1692 = arith.addf %1644, %1691 : vector<4x128xf32>
    %1693 = vector.broadcast %61 : f32 to vector<4x128xf32>
    %1694 = arith.mulf %1693, %1634 : vector<4x128xf32>
    %1695 = arith.addf %1647, %1694 : vector<4x128xf32>
    %1696 = vector.broadcast %97 : f32 to vector<4x128xf32>
    %1697 = arith.mulf %1696, %1629 : vector<4x128xf32>
    %1698 = arith.addf %1650, %1697 : vector<4x128xf32>
    %1699 = vector.broadcast %97 : f32 to vector<4x128xf32>
    %1700 = arith.mulf %1699, %1634 : vector<4x128xf32>
    %1701 = arith.addf %1653, %1700 : vector<4x128xf32>
    %1702 = vector.broadcast %133 : f32 to vector<4x128xf32>
    %1703 = arith.mulf %1702, %1629 : vector<4x128xf32>
    %1704 = arith.addf %1656, %1703 : vector<4x128xf32>
    %1705 = vector.broadcast %133 : f32 to vector<4x128xf32>
    %1706 = arith.mulf %1705, %1634 : vector<4x128xf32>
    %1707 = arith.addf %1659, %1706 : vector<4x128xf32>
    %1708 = vector.broadcast %169 : f32 to vector<4x128xf32>
    %1709 = arith.mulf %1708, %1629 : vector<4x128xf32>
    %1710 = arith.addf %1662, %1709 : vector<4x128xf32>
    %1711 = vector.broadcast %169 : f32 to vector<4x128xf32>
    %1712 = arith.mulf %1711, %1634 : vector<4x128xf32>
    %1713 = arith.addf %1665, %1712 : vector<4x128xf32>
    %1714 = vector.broadcast %205 : f32 to vector<4x128xf32>
    %1715 = arith.mulf %1714, %1629 : vector<4x128xf32>
    %1716 = arith.addf %1668, %1715 : vector<4x128xf32>
    %1717 = vector.broadcast %205 : f32 to vector<4x128xf32>
    %1718 = arith.mulf %1717, %1634 : vector<4x128xf32>
    %1719 = arith.addf %1671, %1718 : vector<4x128xf32>
    %1720 = vector.broadcast %241 : f32 to vector<4x128xf32>
    %1721 = arith.mulf %1720, %1629 : vector<4x128xf32>
    %1722 = arith.addf %1674, %1721 : vector<4x128xf32>
    %1723 = vector.broadcast %241 : f32 to vector<4x128xf32>
    %1724 = arith.mulf %1723, %1634 : vector<4x128xf32>
    %1725 = arith.addf %1677, %1724 : vector<4x128xf32>
    %1726 = vector.broadcast %277 : f32 to vector<4x128xf32>
    %1727 = arith.mulf %1726, %1629 : vector<4x128xf32>
    %1728 = arith.addf %1680, %1727 : vector<4x128xf32>
    %1729 = vector.broadcast %277 : f32 to vector<4x128xf32>
    %1730 = arith.mulf %1729, %1634 : vector<4x128xf32>
    %1731 = arith.addf %1683, %1730 : vector<4x128xf32>
    %1732 = vector.broadcast %26 : f32 to vector<4x128xf32>
    %1733 = arith.mulf %1732, %1630 : vector<4x128xf32>
    %1734 = arith.addf %1686, %1733 : vector<4x128xf32>
    %1735 = vector.broadcast %26 : f32 to vector<4x128xf32>
    %1736 = arith.mulf %1735, %1635 : vector<4x128xf32>
    %1737 = arith.addf %1689, %1736 : vector<4x128xf32>
    %1738 = vector.broadcast %62 : f32 to vector<4x128xf32>
    %1739 = arith.mulf %1738, %1630 : vector<4x128xf32>
    %1740 = arith.addf %1692, %1739 : vector<4x128xf32>
    %1741 = vector.broadcast %62 : f32 to vector<4x128xf32>
    %1742 = arith.mulf %1741, %1635 : vector<4x128xf32>
    %1743 = arith.addf %1695, %1742 : vector<4x128xf32>
    %1744 = vector.broadcast %98 : f32 to vector<4x128xf32>
    %1745 = arith.mulf %1744, %1630 : vector<4x128xf32>
    %1746 = arith.addf %1698, %1745 : vector<4x128xf32>
    %1747 = vector.broadcast %98 : f32 to vector<4x128xf32>
    %1748 = arith.mulf %1747, %1635 : vector<4x128xf32>
    %1749 = arith.addf %1701, %1748 : vector<4x128xf32>
    %1750 = vector.broadcast %134 : f32 to vector<4x128xf32>
    %1751 = arith.mulf %1750, %1630 : vector<4x128xf32>
    %1752 = arith.addf %1704, %1751 : vector<4x128xf32>
    %1753 = vector.broadcast %134 : f32 to vector<4x128xf32>
    %1754 = arith.mulf %1753, %1635 : vector<4x128xf32>
    %1755 = arith.addf %1707, %1754 : vector<4x128xf32>
    %1756 = vector.broadcast %170 : f32 to vector<4x128xf32>
    %1757 = arith.mulf %1756, %1630 : vector<4x128xf32>
    %1758 = arith.addf %1710, %1757 : vector<4x128xf32>
    %1759 = vector.broadcast %170 : f32 to vector<4x128xf32>
    %1760 = arith.mulf %1759, %1635 : vector<4x128xf32>
    %1761 = arith.addf %1713, %1760 : vector<4x128xf32>
    %1762 = vector.broadcast %206 : f32 to vector<4x128xf32>
    %1763 = arith.mulf %1762, %1630 : vector<4x128xf32>
    %1764 = arith.addf %1716, %1763 : vector<4x128xf32>
    %1765 = vector.broadcast %206 : f32 to vector<4x128xf32>
    %1766 = arith.mulf %1765, %1635 : vector<4x128xf32>
    %1767 = arith.addf %1719, %1766 : vector<4x128xf32>
    %1768 = vector.broadcast %242 : f32 to vector<4x128xf32>
    %1769 = arith.mulf %1768, %1630 : vector<4x128xf32>
    %1770 = arith.addf %1722, %1769 : vector<4x128xf32>
    %1771 = vector.broadcast %242 : f32 to vector<4x128xf32>
    %1772 = arith.mulf %1771, %1635 : vector<4x128xf32>
    %1773 = arith.addf %1725, %1772 : vector<4x128xf32>
    %1774 = vector.broadcast %278 : f32 to vector<4x128xf32>
    %1775 = arith.mulf %1774, %1630 : vector<4x128xf32>
    %1776 = arith.addf %1728, %1775 : vector<4x128xf32>
    %1777 = vector.broadcast %278 : f32 to vector<4x128xf32>
    %1778 = arith.mulf %1777, %1635 : vector<4x128xf32>
    %1779 = arith.addf %1731, %1778 : vector<4x128xf32>
    %c0_219 = arith.constant 0 : index
    %c3_220 = arith.constant 3 : index
    %c4_221 = arith.constant 4 : index
    %c0_222 = arith.constant 0 : index
    %1780 = vector.load %arg4[%c0_219, %c3_220, %c4_221, %c0_222] : memref<1x4x8x132xf32, #tpu.memory_space<vmem>>, vector<1x1x4x132xf32>
    %1781 = vector.shape_cast %1780 : vector<1x1x4x132xf32> to vector<4x132xf32>
    %1782 = vector.extract_strided_slice %1781 {offsets = [0, 0], sizes = [4, 128], strides = [1, 1]} : vector<4x132xf32> to vector<4x128xf32>
    %1783 = vector.extract_strided_slice %1781 {offsets = [0, 2], sizes = [4, 128], strides = [1, 1]} : vector<4x132xf32> to vector<4x128xf32>
    %1784 = vector.extract_strided_slice %1781 {offsets = [0, 4], sizes = [4, 128], strides = [1, 1]} : vector<4x132xf32> to vector<4x128xf32>
    %c0_223 = arith.constant 0 : index
    %c3_224 = arith.constant 3 : index
    %c0_225 = arith.constant 0 : index
    %c0_226 = arith.constant 0 : index
    %1785 = vector.load %arg5[%c0_223, %c3_224, %c0_225, %c0_226] : memref<1x4x8x132xf32, #tpu.memory_space<vmem>>, vector<1x1x4x132xf32>
    %1786 = vector.shape_cast %1785 : vector<1x1x4x132xf32> to vector<4x132xf32>
    %1787 = vector.extract_strided_slice %1786 {offsets = [0, 0], sizes = [4, 128], strides = [1, 1]} : vector<4x132xf32> to vector<4x128xf32>
    %1788 = vector.extract_strided_slice %1786 {offsets = [0, 2], sizes = [4, 128], strides = [1, 1]} : vector<4x132xf32> to vector<4x128xf32>
    %1789 = vector.extract_strided_slice %1786 {offsets = [0, 4], sizes = [4, 128], strides = [1, 1]} : vector<4x132xf32> to vector<4x128xf32>
    %1790 = vector.broadcast %33 : f32 to vector<4x128xf32>
    %1791 = arith.mulf %1790, %1782 : vector<4x128xf32>
    %1792 = arith.addf %1734, %1791 : vector<4x128xf32>
    %1793 = vector.broadcast %33 : f32 to vector<4x128xf32>
    %1794 = arith.mulf %1793, %1787 : vector<4x128xf32>
    %1795 = arith.addf %1737, %1794 : vector<4x128xf32>
    %1796 = vector.broadcast %69 : f32 to vector<4x128xf32>
    %1797 = arith.mulf %1796, %1782 : vector<4x128xf32>
    %1798 = arith.addf %1740, %1797 : vector<4x128xf32>
    %1799 = vector.broadcast %69 : f32 to vector<4x128xf32>
    %1800 = arith.mulf %1799, %1787 : vector<4x128xf32>
    %1801 = arith.addf %1743, %1800 : vector<4x128xf32>
    %1802 = vector.broadcast %105 : f32 to vector<4x128xf32>
    %1803 = arith.mulf %1802, %1782 : vector<4x128xf32>
    %1804 = arith.addf %1746, %1803 : vector<4x128xf32>
    %1805 = vector.broadcast %105 : f32 to vector<4x128xf32>
    %1806 = arith.mulf %1805, %1787 : vector<4x128xf32>
    %1807 = arith.addf %1749, %1806 : vector<4x128xf32>
    %1808 = vector.broadcast %141 : f32 to vector<4x128xf32>
    %1809 = arith.mulf %1808, %1782 : vector<4x128xf32>
    %1810 = arith.addf %1752, %1809 : vector<4x128xf32>
    %1811 = vector.broadcast %141 : f32 to vector<4x128xf32>
    %1812 = arith.mulf %1811, %1787 : vector<4x128xf32>
    %1813 = arith.addf %1755, %1812 : vector<4x128xf32>
    %1814 = vector.broadcast %177 : f32 to vector<4x128xf32>
    %1815 = arith.mulf %1814, %1782 : vector<4x128xf32>
    %1816 = arith.addf %1758, %1815 : vector<4x128xf32>
    %1817 = vector.broadcast %177 : f32 to vector<4x128xf32>
    %1818 = arith.mulf %1817, %1787 : vector<4x128xf32>
    %1819 = arith.addf %1761, %1818 : vector<4x128xf32>
    %1820 = vector.broadcast %213 : f32 to vector<4x128xf32>
    %1821 = arith.mulf %1820, %1782 : vector<4x128xf32>
    %1822 = arith.addf %1764, %1821 : vector<4x128xf32>
    %1823 = vector.broadcast %213 : f32 to vector<4x128xf32>
    %1824 = arith.mulf %1823, %1787 : vector<4x128xf32>
    %1825 = arith.addf %1767, %1824 : vector<4x128xf32>
    %1826 = vector.broadcast %249 : f32 to vector<4x128xf32>
    %1827 = arith.mulf %1826, %1782 : vector<4x128xf32>
    %1828 = arith.addf %1770, %1827 : vector<4x128xf32>
    %1829 = vector.broadcast %249 : f32 to vector<4x128xf32>
    %1830 = arith.mulf %1829, %1787 : vector<4x128xf32>
    %1831 = arith.addf %1773, %1830 : vector<4x128xf32>
    %1832 = vector.broadcast %285 : f32 to vector<4x128xf32>
    %1833 = arith.mulf %1832, %1782 : vector<4x128xf32>
    %1834 = arith.addf %1776, %1833 : vector<4x128xf32>
    %1835 = vector.broadcast %285 : f32 to vector<4x128xf32>
    %1836 = arith.mulf %1835, %1787 : vector<4x128xf32>
    %1837 = arith.addf %1779, %1836 : vector<4x128xf32>
    %1838 = vector.broadcast %34 : f32 to vector<4x128xf32>
    %1839 = arith.mulf %1838, %1783 : vector<4x128xf32>
    %1840 = arith.addf %1792, %1839 : vector<4x128xf32>
    %1841 = vector.broadcast %34 : f32 to vector<4x128xf32>
    %1842 = arith.mulf %1841, %1788 : vector<4x128xf32>
    %1843 = arith.addf %1795, %1842 : vector<4x128xf32>
    %1844 = vector.broadcast %70 : f32 to vector<4x128xf32>
    %1845 = arith.mulf %1844, %1783 : vector<4x128xf32>
    %1846 = arith.addf %1798, %1845 : vector<4x128xf32>
    %1847 = vector.broadcast %70 : f32 to vector<4x128xf32>
    %1848 = arith.mulf %1847, %1788 : vector<4x128xf32>
    %1849 = arith.addf %1801, %1848 : vector<4x128xf32>
    %1850 = vector.broadcast %106 : f32 to vector<4x128xf32>
    %1851 = arith.mulf %1850, %1783 : vector<4x128xf32>
    %1852 = arith.addf %1804, %1851 : vector<4x128xf32>
    %1853 = vector.broadcast %106 : f32 to vector<4x128xf32>
    %1854 = arith.mulf %1853, %1788 : vector<4x128xf32>
    %1855 = arith.addf %1807, %1854 : vector<4x128xf32>
    %1856 = vector.broadcast %142 : f32 to vector<4x128xf32>
    %1857 = arith.mulf %1856, %1783 : vector<4x128xf32>
    %1858 = arith.addf %1810, %1857 : vector<4x128xf32>
    %1859 = vector.broadcast %142 : f32 to vector<4x128xf32>
    %1860 = arith.mulf %1859, %1788 : vector<4x128xf32>
    %1861 = arith.addf %1813, %1860 : vector<4x128xf32>
    %1862 = vector.broadcast %178 : f32 to vector<4x128xf32>
    %1863 = arith.mulf %1862, %1783 : vector<4x128xf32>
    %1864 = arith.addf %1816, %1863 : vector<4x128xf32>
    %1865 = vector.broadcast %178 : f32 to vector<4x128xf32>
    %1866 = arith.mulf %1865, %1788 : vector<4x128xf32>
    %1867 = arith.addf %1819, %1866 : vector<4x128xf32>
    %1868 = vector.broadcast %214 : f32 to vector<4x128xf32>
    %1869 = arith.mulf %1868, %1783 : vector<4x128xf32>
    %1870 = arith.addf %1822, %1869 : vector<4x128xf32>
    %1871 = vector.broadcast %214 : f32 to vector<4x128xf32>
    %1872 = arith.mulf %1871, %1788 : vector<4x128xf32>
    %1873 = arith.addf %1825, %1872 : vector<4x128xf32>
    %1874 = vector.broadcast %250 : f32 to vector<4x128xf32>
    %1875 = arith.mulf %1874, %1783 : vector<4x128xf32>
    %1876 = arith.addf %1828, %1875 : vector<4x128xf32>
    %1877 = vector.broadcast %250 : f32 to vector<4x128xf32>
    %1878 = arith.mulf %1877, %1788 : vector<4x128xf32>
    %1879 = arith.addf %1831, %1878 : vector<4x128xf32>
    %1880 = vector.broadcast %286 : f32 to vector<4x128xf32>
    %1881 = arith.mulf %1880, %1783 : vector<4x128xf32>
    %1882 = arith.addf %1834, %1881 : vector<4x128xf32>
    %1883 = vector.broadcast %286 : f32 to vector<4x128xf32>
    %1884 = arith.mulf %1883, %1788 : vector<4x128xf32>
    %1885 = arith.addf %1837, %1884 : vector<4x128xf32>
    %1886 = vector.broadcast %35 : f32 to vector<4x128xf32>
    %1887 = arith.mulf %1886, %1784 : vector<4x128xf32>
    %1888 = arith.addf %1840, %1887 : vector<4x128xf32>
    %1889 = vector.broadcast %35 : f32 to vector<4x128xf32>
    %1890 = arith.mulf %1889, %1789 : vector<4x128xf32>
    %1891 = arith.addf %1843, %1890 : vector<4x128xf32>
    %1892 = vector.broadcast %71 : f32 to vector<4x128xf32>
    %1893 = arith.mulf %1892, %1784 : vector<4x128xf32>
    %1894 = arith.addf %1846, %1893 : vector<4x128xf32>
    %1895 = vector.broadcast %71 : f32 to vector<4x128xf32>
    %1896 = arith.mulf %1895, %1789 : vector<4x128xf32>
    %1897 = arith.addf %1849, %1896 : vector<4x128xf32>
    %1898 = vector.broadcast %107 : f32 to vector<4x128xf32>
    %1899 = arith.mulf %1898, %1784 : vector<4x128xf32>
    %1900 = arith.addf %1852, %1899 : vector<4x128xf32>
    %1901 = vector.broadcast %107 : f32 to vector<4x128xf32>
    %1902 = arith.mulf %1901, %1789 : vector<4x128xf32>
    %1903 = arith.addf %1855, %1902 : vector<4x128xf32>
    %1904 = vector.broadcast %143 : f32 to vector<4x128xf32>
    %1905 = arith.mulf %1904, %1784 : vector<4x128xf32>
    %1906 = arith.addf %1858, %1905 : vector<4x128xf32>
    %1907 = vector.broadcast %143 : f32 to vector<4x128xf32>
    %1908 = arith.mulf %1907, %1789 : vector<4x128xf32>
    %1909 = arith.addf %1861, %1908 : vector<4x128xf32>
    %1910 = vector.broadcast %179 : f32 to vector<4x128xf32>
    %1911 = arith.mulf %1910, %1784 : vector<4x128xf32>
    %1912 = arith.addf %1864, %1911 : vector<4x128xf32>
    %1913 = vector.broadcast %179 : f32 to vector<4x128xf32>
    %1914 = arith.mulf %1913, %1789 : vector<4x128xf32>
    %1915 = arith.addf %1867, %1914 : vector<4x128xf32>
    %1916 = vector.broadcast %215 : f32 to vector<4x128xf32>
    %1917 = arith.mulf %1916, %1784 : vector<4x128xf32>
    %1918 = arith.addf %1870, %1917 : vector<4x128xf32>
    %1919 = vector.broadcast %215 : f32 to vector<4x128xf32>
    %1920 = arith.mulf %1919, %1789 : vector<4x128xf32>
    %1921 = arith.addf %1873, %1920 : vector<4x128xf32>
    %1922 = vector.broadcast %251 : f32 to vector<4x128xf32>
    %1923 = arith.mulf %1922, %1784 : vector<4x128xf32>
    %1924 = arith.addf %1876, %1923 : vector<4x128xf32>
    %1925 = vector.broadcast %251 : f32 to vector<4x128xf32>
    %1926 = arith.mulf %1925, %1789 : vector<4x128xf32>
    %1927 = arith.addf %1879, %1926 : vector<4x128xf32>
    %1928 = vector.broadcast %287 : f32 to vector<4x128xf32>
    %1929 = arith.mulf %1928, %1784 : vector<4x128xf32>
    %1930 = arith.addf %1882, %1929 : vector<4x128xf32>
    %1931 = vector.broadcast %287 : f32 to vector<4x128xf32>
    %1932 = arith.mulf %1931, %1789 : vector<4x128xf32>
    %1933 = arith.addf %1885, %1932 : vector<4x128xf32>
    %c0_227 = arith.constant 0 : index
    %c0_228 = arith.constant 0 : index
    %c0_229 = arith.constant 0 : index
    %1934 = vector.load %arg7[%c0_227, %c0_228, %c0_229] : memref<8x8x128xf32, #tpu.memory_space<vmem>>, vector<1x4x128xf32>
    %1935 = vector.shape_cast %1934 : vector<1x4x128xf32> to vector<4x128xf32>
    %1936 = arith.addf %1935, %1888 : vector<4x128xf32>
    %c0_230 = arith.constant 0 : index
    %c0_231 = arith.constant 0 : index
    %c0_232 = arith.constant 0 : index
    %1937 = vector.load %arg7[%c0_230, %c0_231, %c0_232] : memref<8x8x128xf32, #tpu.memory_space<vmem>>, vector<1x4x128xf32>
    %1938 = vector.shape_cast %1937 : vector<1x4x128xf32> to vector<4x128xf32>
    %1939 = vector.shape_cast %1936 : vector<4x128xf32> to vector<1x4x128xf32>
    tpu.vector_store %arg7[%c0_230, %c0_231, %c0_232], %1939 {strides = array<i32>} : memref<8x8x128xf32, #tpu.memory_space<vmem>>, vector<1x4x128xf32>,
    %c0_233 = arith.constant 0 : index
    %c4_234 = arith.constant 4 : index
    %c0_235 = arith.constant 0 : index
    %1940 = vector.load %arg7[%c0_233, %c4_234, %c0_235] : memref<8x8x128xf32, #tpu.memory_space<vmem>>, vector<1x4x128xf32>
    %1941 = vector.shape_cast %1940 : vector<1x4x128xf32> to vector<4x128xf32>
    %1942 = arith.addf %1941, %1891 : vector<4x128xf32>
    %c0_236 = arith.constant 0 : index
    %c4_237 = arith.constant 4 : index
    %c0_238 = arith.constant 0 : index
    %1943 = vector.load %arg7[%c0_236, %c4_237, %c0_238] : memref<8x8x128xf32, #tpu.memory_space<vmem>>, vector<1x4x128xf32>
    %1944 = vector.shape_cast %1943 : vector<1x4x128xf32> to vector<4x128xf32>
    %1945 = vector.shape_cast %1942 : vector<4x128xf32> to vector<1x4x128xf32>
    tpu.vector_store %arg7[%c0_236, %c4_237, %c0_238], %1945 {strides = array<i32>} : memref<8x8x128xf32, #tpu.memory_space<vmem>>, vector<1x4x128xf32>,
    %c1_239 = arith.constant 1 : index
    %c0_240 = arith.constant 0 : index
    %c0_241 = arith.constant 0 : index
    %1946 = vector.load %arg7[%c1_239, %c0_240, %c0_241] : memref<8x8x128xf32, #tpu.memory_space<vmem>>, vector<1x4x128xf32>
    %1947 = vector.shape_cast %1946 : vector<1x4x128xf32> to vector<4x128xf32>
    %1948 = arith.addf %1947, %1894 : vector<4x128xf32>
    %c1_242 = arith.constant 1 : index
    %c0_243 = arith.constant 0 : index
    %c0_244 = arith.constant 0 : index
    %1949 = vector.load %arg7[%c1_242, %c0_243, %c0_244] : memref<8x8x128xf32, #tpu.memory_space<vmem>>, vector<1x4x128xf32>
    %1950 = vector.shape_cast %1949 : vector<1x4x128xf32> to vector<4x128xf32>
    %1951 = vector.shape_cast %1948 : vector<4x128xf32> to vector<1x4x128xf32>
    tpu.vector_store %arg7[%c1_242, %c0_243, %c0_244], %1951 {strides = array<i32>} : memref<8x8x128xf32, #tpu.memory_space<vmem>>, vector<1x4x128xf32>,
    %c1_245 = arith.constant 1 : index
    %c4_246 = arith.constant 4 : index
    %c0_247 = arith.constant 0 : index
    %1952 = vector.load %arg7[%c1_245, %c4_246, %c0_247] : memref<8x8x128xf32, #tpu.memory_space<vmem>>, vector<1x4x128xf32>
    %1953 = vector.shape_cast %1952 : vector<1x4x128xf32> to vector<4x128xf32>
    %1954 = arith.addf %1953, %1897 : vector<4x128xf32>
    %c1_248 = arith.constant 1 : index
    %c4_249 = arith.constant 4 : index
    %c0_250 = arith.constant 0 : index
    %1955 = vector.load %arg7[%c1_248, %c4_249, %c0_250] : memref<8x8x128xf32, #tpu.memory_space<vmem>>, vector<1x4x128xf32>
    %1956 = vector.shape_cast %1955 : vector<1x4x128xf32> to vector<4x128xf32>
    %1957 = vector.shape_cast %1954 : vector<4x128xf32> to vector<1x4x128xf32>
    tpu.vector_store %arg7[%c1_248, %c4_249, %c0_250], %1957 {strides = array<i32>} : memref<8x8x128xf32, #tpu.memory_space<vmem>>, vector<1x4x128xf32>,
    %c2_251 = arith.constant 2 : index
    %c0_252 = arith.constant 0 : index
    %c0_253 = arith.constant 0 : index
    %1958 = vector.load %arg7[%c2_251, %c0_252, %c0_253] : memref<8x8x128xf32, #tpu.memory_space<vmem>>, vector<1x4x128xf32>
    %1959 = vector.shape_cast %1958 : vector<1x4x128xf32> to vector<4x128xf32>
    %1960 = arith.addf %1959, %1900 : vector<4x128xf32>
    %c2_254 = arith.constant 2 : index
    %c0_255 = arith.constant 0 : index
    %c0_256 = arith.constant 0 : index
    %1961 = vector.load %arg7[%c2_254, %c0_255, %c0_256] : memref<8x8x128xf32, #tpu.memory_space<vmem>>, vector<1x4x128xf32>
    %1962 = vector.shape_cast %1961 : vector<1x4x128xf32> to vector<4x128xf32>
    %1963 = vector.shape_cast %1960 : vector<4x128xf32> to vector<1x4x128xf32>
    tpu.vector_store %arg7[%c2_254, %c0_255, %c0_256], %1963 {strides = array<i32>} : memref<8x8x128xf32, #tpu.memory_space<vmem>>, vector<1x4x128xf32>,
    %c2_257 = arith.constant 2 : index
    %c4_258 = arith.constant 4 : index
    %c0_259 = arith.constant 0 : index
    %1964 = vector.load %arg7[%c2_257, %c4_258, %c0_259] : memref<8x8x128xf32, #tpu.memory_space<vmem>>, vector<1x4x128xf32>
    %1965 = vector.shape_cast %1964 : vector<1x4x128xf32> to vector<4x128xf32>
    %1966 = arith.addf %1965, %1903 : vector<4x128xf32>
    %c2_260 = arith.constant 2 : index
    %c4_261 = arith.constant 4 : index
    %c0_262 = arith.constant 0 : index
    %1967 = vector.load %arg7[%c2_260, %c4_261, %c0_262] : memref<8x8x128xf32, #tpu.memory_space<vmem>>, vector<1x4x128xf32>
    %1968 = vector.shape_cast %1967 : vector<1x4x128xf32> to vector<4x128xf32>
    %1969 = vector.shape_cast %1966 : vector<4x128xf32> to vector<1x4x128xf32>
    tpu.vector_store %arg7[%c2_260, %c4_261, %c0_262], %1969 {strides = array<i32>} : memref<8x8x128xf32, #tpu.memory_space<vmem>>, vector<1x4x128xf32>,
    %c3_263 = arith.constant 3 : index
    %c0_264 = arith.constant 0 : index
    %c0_265 = arith.constant 0 : index
    %1970 = vector.load %arg7[%c3_263, %c0_264, %c0_265] : memref<8x8x128xf32, #tpu.memory_space<vmem>>, vector<1x4x128xf32>
    %1971 = vector.shape_cast %1970 : vector<1x4x128xf32> to vector<4x128xf32>
    %1972 = arith.addf %1971, %1906 : vector<4x128xf32>
    %c3_266 = arith.constant 3 : index
    %c0_267 = arith.constant 0 : index
    %c0_268 = arith.constant 0 : index
    %1973 = vector.load %arg7[%c3_266, %c0_267, %c0_268] : memref<8x8x128xf32, #tpu.memory_space<vmem>>, vector<1x4x128xf32>
    %1974 = vector.shape_cast %1973 : vector<1x4x128xf32> to vector<4x128xf32>
    %1975 = vector.shape_cast %1972 : vector<4x128xf32> to vector<1x4x128xf32>
    tpu.vector_store %arg7[%c3_266, %c0_267, %c0_268], %1975 {strides = array<i32>} : memref<8x8x128xf32, #tpu.memory_space<vmem>>, vector<1x4x128xf32>,
    %c3_269 = arith.constant 3 : index
    %c4_270 = arith.constant 4 : index
    %c0_271 = arith.constant 0 : index
    %1976 = vector.load %arg7[%c3_269, %c4_270, %c0_271] : memref<8x8x128xf32, #tpu.memory_space<vmem>>, vector<1x4x128xf32>
    %1977 = vector.shape_cast %1976 : vector<1x4x128xf32> to vector<4x128xf32>
    %1978 = arith.addf %1977, %1909 : vector<4x128xf32>
    %c3_272 = arith.constant 3 : index
    %c4_273 = arith.constant 4 : index
    %c0_274 = arith.constant 0 : index
    %1979 = vector.load %arg7[%c3_272, %c4_273, %c0_274] : memref<8x8x128xf32, #tpu.memory_space<vmem>>, vector<1x4x128xf32>
    %1980 = vector.shape_cast %1979 : vector<1x4x128xf32> to vector<4x128xf32>
    %1981 = vector.shape_cast %1978 : vector<4x128xf32> to vector<1x4x128xf32>
    tpu.vector_store %arg7[%c3_272, %c4_273, %c0_274], %1981 {strides = array<i32>} : memref<8x8x128xf32, #tpu.memory_space<vmem>>, vector<1x4x128xf32>,
    %c4_275 = arith.constant 4 : index
    %c0_276 = arith.constant 0 : index
    %c0_277 = arith.constant 0 : index
    %1982 = vector.load %arg7[%c4_275, %c0_276, %c0_277] : memref<8x8x128xf32, #tpu.memory_space<vmem>>, vector<1x4x128xf32>
    %1983 = vector.shape_cast %1982 : vector<1x4x128xf32> to vector<4x128xf32>
    %1984 = arith.addf %1983, %1912 : vector<4x128xf32>
    %c4_278 = arith.constant 4 : index
    %c0_279 = arith.constant 0 : index
    %c0_280 = arith.constant 0 : index
    %1985 = vector.load %arg7[%c4_278, %c0_279, %c0_280] : memref<8x8x128xf32, #tpu.memory_space<vmem>>, vector<1x4x128xf32>
    %1986 = vector.shape_cast %1985 : vector<1x4x128xf32> to vector<4x128xf32>
    %1987 = vector.shape_cast %1984 : vector<4x128xf32> to vector<1x4x128xf32>
    tpu.vector_store %arg7[%c4_278, %c0_279, %c0_280], %1987 {strides = array<i32>} : memref<8x8x128xf32, #tpu.memory_space<vmem>>, vector<1x4x128xf32>,
    %c4_281 = arith.constant 4 : index
    %c4_282 = arith.constant 4 : index
    %c0_283 = arith.constant 0 : index
    %1988 = vector.load %arg7[%c4_281, %c4_282, %c0_283] : memref<8x8x128xf32, #tpu.memory_space<vmem>>, vector<1x4x128xf32>
    %1989 = vector.shape_cast %1988 : vector<1x4x128xf32> to vector<4x128xf32>
    %1990 = arith.addf %1989, %1915 : vector<4x128xf32>
    %c4_284 = arith.constant 4 : index
    %c4_285 = arith.constant 4 : index
    %c0_286 = arith.constant 0 : index
    %1991 = vector.load %arg7[%c4_284, %c4_285, %c0_286] : memref<8x8x128xf32, #tpu.memory_space<vmem>>, vector<1x4x128xf32>
    %1992 = vector.shape_cast %1991 : vector<1x4x128xf32> to vector<4x128xf32>
    %1993 = vector.shape_cast %1990 : vector<4x128xf32> to vector<1x4x128xf32>
    tpu.vector_store %arg7[%c4_284, %c4_285, %c0_286], %1993 {strides = array<i32>} : memref<8x8x128xf32, #tpu.memory_space<vmem>>, vector<1x4x128xf32>,
    %c5_287 = arith.constant 5 : index
    %c0_288 = arith.constant 0 : index
    %c0_289 = arith.constant 0 : index
    %1994 = vector.load %arg7[%c5_287, %c0_288, %c0_289] : memref<8x8x128xf32, #tpu.memory_space<vmem>>, vector<1x4x128xf32>
    %1995 = vector.shape_cast %1994 : vector<1x4x128xf32> to vector<4x128xf32>
    %1996 = arith.addf %1995, %1918 : vector<4x128xf32>
    %c5_290 = arith.constant 5 : index
    %c0_291 = arith.constant 0 : index
    %c0_292 = arith.constant 0 : index
    %1997 = vector.load %arg7[%c5_290, %c0_291, %c0_292] : memref<8x8x128xf32, #tpu.memory_space<vmem>>, vector<1x4x128xf32>
    %1998 = vector.shape_cast %1997 : vector<1x4x128xf32> to vector<4x128xf32>
    %1999 = vector.shape_cast %1996 : vector<4x128xf32> to vector<1x4x128xf32>
    tpu.vector_store %arg7[%c5_290, %c0_291, %c0_292], %1999 {strides = array<i32>} : memref<8x8x128xf32, #tpu.memory_space<vmem>>, vector<1x4x128xf32>,
    %c5_293 = arith.constant 5 : index
    %c4_294 = arith.constant 4 : index
    %c0_295 = arith.constant 0 : index
    %2000 = vector.load %arg7[%c5_293, %c4_294, %c0_295] : memref<8x8x128xf32, #tpu.memory_space<vmem>>, vector<1x4x128xf32>
    %2001 = vector.shape_cast %2000 : vector<1x4x128xf32> to vector<4x128xf32>
    %2002 = arith.addf %2001, %1921 : vector<4x128xf32>
    %c5_296 = arith.constant 5 : index
    %c4_297 = arith.constant 4 : index
    %c0_298 = arith.constant 0 : index
    %2003 = vector.load %arg7[%c5_296, %c4_297, %c0_298] : memref<8x8x128xf32, #tpu.memory_space<vmem>>, vector<1x4x128xf32>
    %2004 = vector.shape_cast %2003 : vector<1x4x128xf32> to vector<4x128xf32>
    %2005 = vector.shape_cast %2002 : vector<4x128xf32> to vector<1x4x128xf32>
    tpu.vector_store %arg7[%c5_296, %c4_297, %c0_298], %2005 {strides = array<i32>} : memref<8x8x128xf32, #tpu.memory_space<vmem>>, vector<1x4x128xf32>,
    %c6_299 = arith.constant 6 : index
    %c0_300 = arith.constant 0 : index
    %c0_301 = arith.constant 0 : index
    %2006 = vector.load %arg7[%c6_299, %c0_300, %c0_301] : memref<8x8x128xf32, #tpu.memory_space<vmem>>, vector<1x4x128xf32>
    %2007 = vector.shape_cast %2006 : vector<1x4x128xf32> to vector<4x128xf32>
    %2008 = arith.addf %2007, %1924 : vector<4x128xf32>
    %c6_302 = arith.constant 6 : index
    %c0_303 = arith.constant 0 : index
    %c0_304 = arith.constant 0 : index
    %2009 = vector.load %arg7[%c6_302, %c0_303, %c0_304] : memref<8x8x128xf32, #tpu.memory_space<vmem>>, vector<1x4x128xf32>
    %2010 = vector.shape_cast %2009 : vector<1x4x128xf32> to vector<4x128xf32>
    %2011 = vector.shape_cast %2008 : vector<4x128xf32> to vector<1x4x128xf32>
    tpu.vector_store %arg7[%c6_302, %c0_303, %c0_304], %2011 {strides = array<i32>} : memref<8x8x128xf32, #tpu.memory_space<vmem>>, vector<1x4x128xf32>,
    %c6_305 = arith.constant 6 : index
    %c4_306 = arith.constant 4 : index
    %c0_307 = arith.constant 0 : index
    %2012 = vector.load %arg7[%c6_305, %c4_306, %c0_307] : memref<8x8x128xf32, #tpu.memory_space<vmem>>, vector<1x4x128xf32>
    %2013 = vector.shape_cast %2012 : vector<1x4x128xf32> to vector<4x128xf32>
    %2014 = arith.addf %2013, %1927 : vector<4x128xf32>
    %c6_308 = arith.constant 6 : index
    %c4_309 = arith.constant 4 : index
    %c0_310 = arith.constant 0 : index
    %2015 = vector.load %arg7[%c6_308, %c4_309, %c0_310] : memref<8x8x128xf32, #tpu.memory_space<vmem>>, vector<1x4x128xf32>
    %2016 = vector.shape_cast %2015 : vector<1x4x128xf32> to vector<4x128xf32>
    %2017 = vector.shape_cast %2014 : vector<4x128xf32> to vector<1x4x128xf32>
    tpu.vector_store %arg7[%c6_308, %c4_309, %c0_310], %2017 {strides = array<i32>} : memref<8x8x128xf32, #tpu.memory_space<vmem>>, vector<1x4x128xf32>,
    %c7_311 = arith.constant 7 : index
    %c0_312 = arith.constant 0 : index
    %c0_313 = arith.constant 0 : index
    %2018 = vector.load %arg7[%c7_311, %c0_312, %c0_313] : memref<8x8x128xf32, #tpu.memory_space<vmem>>, vector<1x4x128xf32>
    %2019 = vector.shape_cast %2018 : vector<1x4x128xf32> to vector<4x128xf32>
    %2020 = arith.addf %2019, %1930 : vector<4x128xf32>
    %c7_314 = arith.constant 7 : index
    %c0_315 = arith.constant 0 : index
    %c0_316 = arith.constant 0 : index
    %2021 = vector.load %arg7[%c7_314, %c0_315, %c0_316] : memref<8x8x128xf32, #tpu.memory_space<vmem>>, vector<1x4x128xf32>
    %2022 = vector.shape_cast %2021 : vector<1x4x128xf32> to vector<4x128xf32>
    %2023 = vector.shape_cast %2020 : vector<4x128xf32> to vector<1x4x128xf32>
    tpu.vector_store %arg7[%c7_314, %c0_315, %c0_316], %2023 {strides = array<i32>} : memref<8x8x128xf32, #tpu.memory_space<vmem>>, vector<1x4x128xf32>,
    %c7_317 = arith.constant 7 : index
    %c4_318 = arith.constant 4 : index
    %c0_319 = arith.constant 0 : index
    %2024 = vector.load %arg7[%c7_317, %c4_318, %c0_319] : memref<8x8x128xf32, #tpu.memory_space<vmem>>, vector<1x4x128xf32>
    %2025 = vector.shape_cast %2024 : vector<1x4x128xf32> to vector<4x128xf32>
    %2026 = arith.addf %2025, %1933 : vector<4x128xf32>
    %c7_320 = arith.constant 7 : index
    %c4_321 = arith.constant 4 : index
    %c0_322 = arith.constant 0 : index
    %2027 = vector.load %arg7[%c7_320, %c4_321, %c0_322] : memref<8x8x128xf32, #tpu.memory_space<vmem>>, vector<1x4x128xf32>
    %2028 = vector.shape_cast %2027 : vector<1x4x128xf32> to vector<4x128xf32>
    %2029 = vector.shape_cast %2026 : vector<4x128xf32> to vector<1x4x128xf32>
    tpu.vector_store %arg7[%c7_320, %c4_321, %c0_322], %2029 {strides = array<i32>} : memref<8x8x128xf32, #tpu.memory_space<vmem>>, vector<1x4x128xf32>,
    %c0_323 = arith.constant 0 : index
    %c0_324 = arith.constant 0 : index
    %c0_325 = arith.constant 0 : index
    %2030 = vector.load %arg7[%c0_323, %c0_324, %c0_325] : memref<8x8x128xf32, #tpu.memory_space<vmem>>, vector<1x8x128xf32>
    %2031 = vector.shape_cast %2030 : vector<1x8x128xf32> to vector<8x128xf32>
    %c0_326 = arith.constant 0 : index
    %c0_327 = arith.constant 0 : index
    %c0_328 = arith.constant 0 : index
    %c0_329 = arith.constant 0 : index
    %2032 = vector.load %arg6[%c0_326, %c0_327, %c0_328, %c0_329] : memref<1x8x8x128xf32, #tpu.memory_space<vmem>>, vector<1x1x8x128xf32>
    %2033 = vector.shape_cast %2032 : vector<1x1x8x128xf32> to vector<8x128xf32>
    %2034 = vector.shape_cast %2031 : vector<8x128xf32> to vector<1x1x8x128xf32>
    tpu.vector_store %arg6[%c0_326, %c0_327, %c0_328, %c0_329], %2034 {strides = array<i32>} : memref<1x8x8x128xf32, #tpu.memory_space<vmem>>, vector<1x1x8x128xf32>,
    %c1_330 = arith.constant 1 : index
    %c0_331 = arith.constant 0 : index
    %c0_332 = arith.constant 0 : index
    %2035 = vector.load %arg7[%c1_330, %c0_331, %c0_332] : memref<8x8x128xf32, #tpu.memory_space<vmem>>, vector<1x8x128xf32>
    %2036 = vector.shape_cast %2035 : vector<1x8x128xf32> to vector<8x128xf32>
    %c0_333 = arith.constant 0 : index
    %c1_334 = arith.constant 1 : index
    %c0_335 = arith.constant 0 : index
    %c0_336 = arith.constant 0 : index
    %2037 = vector.load %arg6[%c0_333, %c1_334, %c0_335, %c0_336] : memref<1x8x8x128xf32, #tpu.memory_space<vmem>>, vector<1x1x8x128xf32>
    %2038 = vector.shape_cast %2037 : vector<1x1x8x128xf32> to vector<8x128xf32>
    %2039 = vector.shape_cast %2036 : vector<8x128xf32> to vector<1x1x8x128xf32>
    tpu.vector_store %arg6[%c0_333, %c1_334, %c0_335, %c0_336], %2039 {strides = array<i32>} : memref<1x8x8x128xf32, #tpu.memory_space<vmem>>, vector<1x1x8x128xf32>,
    %c2_337 = arith.constant 2 : index
    %c0_338 = arith.constant 0 : index
    %c0_339 = arith.constant 0 : index
    %2040 = vector.load %arg7[%c2_337, %c0_338, %c0_339] : memref<8x8x128xf32, #tpu.memory_space<vmem>>, vector<1x8x128xf32>
    %2041 = vector.shape_cast %2040 : vector<1x8x128xf32> to vector<8x128xf32>
    %c0_340 = arith.constant 0 : index
    %c2_341 = arith.constant 2 : index
    %c0_342 = arith.constant 0 : index
    %c0_343 = arith.constant 0 : index
    %2042 = vector.load %arg6[%c0_340, %c2_341, %c0_342, %c0_343] : memref<1x8x8x128xf32, #tpu.memory_space<vmem>>, vector<1x1x8x128xf32>
    %2043 = vector.shape_cast %2042 : vector<1x1x8x128xf32> to vector<8x128xf32>
    %2044 = vector.shape_cast %2041 : vector<8x128xf32> to vector<1x1x8x128xf32>
    tpu.vector_store %arg6[%c0_340, %c2_341, %c0_342, %c0_343], %2044 {strides = array<i32>} : memref<1x8x8x128xf32, #tpu.memory_space<vmem>>, vector<1x1x8x128xf32>,
    %c3_344 = arith.constant 3 : index
    %c0_345 = arith.constant 0 : index
    %c0_346 = arith.constant 0 : index
    %2045 = vector.load %arg7[%c3_344, %c0_345, %c0_346] : memref<8x8x128xf32, #tpu.memory_space<vmem>>, vector<1x8x128xf32>
    %2046 = vector.shape_cast %2045 : vector<1x8x128xf32> to vector<8x128xf32>
    %c0_347 = arith.constant 0 : index
    %c3_348 = arith.constant 3 : index
    %c0_349 = arith.constant 0 : index
    %c0_350 = arith.constant 0 : index
    %2047 = vector.load %arg6[%c0_347, %c3_348, %c0_349, %c0_350] : memref<1x8x8x128xf32, #tpu.memory_space<vmem>>, vector<1x1x8x128xf32>
    %2048 = vector.shape_cast %2047 : vector<1x1x8x128xf32> to vector<8x128xf32>
    %2049 = vector.shape_cast %2046 : vector<8x128xf32> to vector<1x1x8x128xf32>
    tpu.vector_store %arg6[%c0_347, %c3_348, %c0_349, %c0_350], %2049 {strides = array<i32>} : memref<1x8x8x128xf32, #tpu.memory_space<vmem>>, vector<1x1x8x128xf32>,
    %c4_351 = arith.constant 4 : index
    %c0_352 = arith.constant 0 : index
    %c0_353 = arith.constant 0 : index
    %2050 = vector.load %arg7[%c4_351, %c0_352, %c0_353] : memref<8x8x128xf32, #tpu.memory_space<vmem>>, vector<1x8x128xf32>
    %2051 = vector.shape_cast %2050 : vector<1x8x128xf32> to vector<8x128xf32>
    %c0_354 = arith.constant 0 : index
    %c4_355 = arith.constant 4 : index
    %c0_356 = arith.constant 0 : index
    %c0_357 = arith.constant 0 : index
    %2052 = vector.load %arg6[%c0_354, %c4_355, %c0_356, %c0_357] : memref<1x8x8x128xf32, #tpu.memory_space<vmem>>, vector<1x1x8x128xf32>
    %2053 = vector.shape_cast %2052 : vector<1x1x8x128xf32> to vector<8x128xf32>
    %2054 = vector.shape_cast %2051 : vector<8x128xf32> to vector<1x1x8x128xf32>
    tpu.vector_store %arg6[%c0_354, %c4_355, %c0_356, %c0_357], %2054 {strides = array<i32>} : memref<1x8x8x128xf32, #tpu.memory_space<vmem>>, vector<1x1x8x128xf32>,
    %c5_358 = arith.constant 5 : index
    %c0_359 = arith.constant 0 : index
    %c0_360 = arith.constant 0 : index
    %2055 = vector.load %arg7[%c5_358, %c0_359, %c0_360] : memref<8x8x128xf32, #tpu.memory_space<vmem>>, vector<1x8x128xf32>
    %2056 = vector.shape_cast %2055 : vector<1x8x128xf32> to vector<8x128xf32>
    %c0_361 = arith.constant 0 : index
    %c5_362 = arith.constant 5 : index
    %c0_363 = arith.constant 0 : index
    %c0_364 = arith.constant 0 : index
    %2057 = vector.load %arg6[%c0_361, %c5_362, %c0_363, %c0_364] : memref<1x8x8x128xf32, #tpu.memory_space<vmem>>, vector<1x1x8x128xf32>
    %2058 = vector.shape_cast %2057 : vector<1x1x8x128xf32> to vector<8x128xf32>
    %2059 = vector.shape_cast %2056 : vector<8x128xf32> to vector<1x1x8x128xf32>
    tpu.vector_store %arg6[%c0_361, %c5_362, %c0_363, %c0_364], %2059 {strides = array<i32>} : memref<1x8x8x128xf32, #tpu.memory_space<vmem>>, vector<1x1x8x128xf32>,
    %c6_365 = arith.constant 6 : index
    %c0_366 = arith.constant 0 : index
    %c0_367 = arith.constant 0 : index
    %2060 = vector.load %arg7[%c6_365, %c0_366, %c0_367] : memref<8x8x128xf32, #tpu.memory_space<vmem>>, vector<1x8x128xf32>
    %2061 = vector.shape_cast %2060 : vector<1x8x128xf32> to vector<8x128xf32>
    %c0_368 = arith.constant 0 : index
    %c6_369 = arith.constant 6 : index
    %c0_370 = arith.constant 0 : index
    %c0_371 = arith.constant 0 : index
    %2062 = vector.load %arg6[%c0_368, %c6_369, %c0_370, %c0_371] : memref<1x8x8x128xf32, #tpu.memory_space<vmem>>, vector<1x1x8x128xf32>
    %2063 = vector.shape_cast %2062 : vector<1x1x8x128xf32> to vector<8x128xf32>
    %2064 = vector.shape_cast %2061 : vector<8x128xf32> to vector<1x1x8x128xf32>
    tpu.vector_store %arg6[%c0_368, %c6_369, %c0_370, %c0_371], %2064 {strides = array<i32>} : memref<1x8x8x128xf32, #tpu.memory_space<vmem>>, vector<1x1x8x128xf32>,
    %c7_372 = arith.constant 7 : index
    %c0_373 = arith.constant 0 : index
    %c0_374 = arith.constant 0 : index
    %2065 = vector.load %arg7[%c7_372, %c0_373, %c0_374] : memref<8x8x128xf32, #tpu.memory_space<vmem>>, vector<1x8x128xf32>
    %2066 = vector.shape_cast %2065 : vector<1x8x128xf32> to vector<8x128xf32>
    %c0_375 = arith.constant 0 : index
    %c7_376 = arith.constant 7 : index
    %c0_377 = arith.constant 0 : index
    %c0_378 = arith.constant 0 : index
    %2067 = vector.load %arg6[%c0_375, %c7_376, %c0_377, %c0_378] : memref<1x8x8x128xf32, #tpu.memory_space<vmem>>, vector<1x1x8x128xf32>
    %2068 = vector.shape_cast %2067 : vector<1x1x8x128xf32> to vector<8x128xf32>
    %2069 = vector.shape_cast %2066 : vector<8x128xf32> to vector<1x1x8x128xf32>
    tpu.vector_store %arg6[%c0_375, %c7_376, %c0_377, %c0_378], %2069 {strides = array<i32>} : memref<1x8x8x128xf32, #tpu.memory_space<vmem>>, vector<1x1x8x128xf32>,
    return
  }
  func.func @transform_0(%arg0: i32, %arg1: i32, %arg2: i32) -> i32 {
    %c0_i32 = arith.constant 0 : i32
    %c0_i32_0 = arith.constant 0 : i32
    return %c0_i32 : i32
  }
  func.func @transform_1(%arg0: i32, %arg1: i32, %arg2: i32) -> (i32, i32, i32, i32) {
    %c0_i32 = arith.constant 0 : i32
    %c0_i32_0 = arith.constant 0 : i32
    return %arg0, %arg1, %arg2, %c0_i32 : i32, i32, i32, i32
  }
  func.func @transform_2(%arg0: i32, %arg1: i32, %arg2: i32) -> (i32, i32, i32, i32) {
    %c1_i32 = arith.constant 1 : i32
    %0 = arith.addi %arg2, %c1_i32 : i32
    %c1_i32_0 = arith.constant 1 : i32
    %1 = arith.muli %0, %c1_i32_0 : i32
    %c0_i32 = arith.constant 0 : i32
    %c0_i32_1 = arith.constant 0 : i32
    return %arg0, %arg1, %1, %c0_i32 : i32, i32, i32, i32
  }
  func.func @transform_3(%arg0: i32, %arg1: i32, %arg2: i32) -> (i32, i32, i32, i32) {
    %c0_i32 = arith.constant 0 : i32
    %c0_i32_0 = arith.constant 0 : i32
    return %arg0, %arg1, %arg2, %c0_i32 : i32, i32, i32, i32
  }
}

</mosaic_0001>

<bundles_post_ra>
// kernel: tpu_custom_call.1
= control target key start
LH: loop header
LB: loop body
LE: loop exit
PB: predicated region body
PF: predicated region fallthrough
CT: control target
= control target key end

     0   :  { %s10553_s0 = inlined_call_operand.hbm [shape: f32[288], index: 0, kind: input, shape index: {}]   ;;  %s10554_s1 = inlined_call_operand.hbm [shape: f32[2,4,24,132], index: 1, kind: input, shape index: {}]   ;;  %s10555_s2 = inlined_call_operand.hbm [shape: f32[2,4,24,132], index: 2, kind: input, shape index: {}]   ;;  %s10556_s3 = inlined_call_operand.hbm [shape: f32[2,8,16,128], index: 3, kind: output, shape index: {}]  }
   0x1   :  { %10596 = sst [smem:[#allocation209_spill]] %s10553_s0 }
   0x2   :  { %10597 = sst [smem:[#allocation210_spill]] %s10554_s1 }
   0x3   :  { %10598 = sst [smem:[#allocation211_spill]] %s10555_s2 }
   0x4   :  { %10599 = sst [smem:[#allocation212_spill]] %s10556_s3 }
   0x5   :  { %8 = vsyncpa [#allocation6], 0 }
   0x6   :  { %9 = vsyncpa [#allocation4], 0 }
   0x7   :  { %11 = vsyncpa [#allocation4 + $0x1], 0 }
   0x8   :  { %12 = vsyncpa [#allocation9], 0 }
   0x9   :  { %14 = vsyncpa [#allocation9 + $0x1], 0 }
   0xa   :  { %15 = vsyncpa [#allocation5], 0 }
   0xb   :  { %17 = vsyncpa [#allocation5 + $0x1], 0  ;;  %s5806_s12 = smov 0   ;;  %s5808_s13 = smov 0  }
   0xc   :  { %s5810_s14 = smov 0   ;;  %s5812_s15 = smov 0  }
   0xd   :  { %s5814_s16 = smov 0   ;;  %s5816_s17 = smov 0  }
   0xe   :  { %s5818_s18 = smov 0   ;;  %s5820_s19 = smov 0  }
   0xf   :  { %s5822_s20 = smov 0   ;;  %s5824_s21 = smov 0  }
  0x10   :  { %s5826_s22 = smov 0  }
  0x11 LB: > { %10600 = sst [smem:[#allocation15_spill]] %s5736_s13  ;;  %s5074_s23 = sadd.s32 4294967295, %s5772_s22   ;;  %s5772_s22 = sphi %s5826_s22, %s23_s22   ;;  %s5768_s21 = sphi %s5824_s21, %s11432_s21   ;;  %s5764_s20 = sphi %s5822_s20, %s11431_s20   ;;  %s5760_s19 = sphi %s5820_s19, %s11430_s19   ;;  %s5756_s18 = sphi %s5818_s18, %s11429_s18   ;;  %s5752_s17 = sphi %s5816_s17, %s11428_s17   ;;  %s5748_s16 = sphi %s5814_s16, %s11427_s16   ;;  %s5744_s15 = sphi %s5812_s15, %s11426_s15   ;;  %s5740_s14 = sphi %s5810_s14, %s11425_s14   ;;  %s5736_s13 = sphi %s5808_s13, %s11424_s13   ;;  %s5732_s12 = sphi %s5806_s12, %s11423_s12  }
  0x12   : > { %10601 = sst [smem:[#allocation16_spill]] %s5740_s14  ;;  %s5075_s24 = sadd.s32 4294967294, %s5772_s22  }
  0x13   : > { %10602 = sst [smem:[#allocation17_spill]] %s5744_s15  ;;  %p81_p0 = scmp.ne.s32.totalorder %s5752_s17, %s5748_s16 }
  0x14   : > { %10603 = sst [smem:[#allocation18_spill]] %s5748_s16  ;;  %p82_p1 = scmp.eq.s32.totalorder %s5772_s22, 0 }
  0x15   : > { %10604 = sst [smem:[#allocation19_spill]] %s5752_s17  ;;  %p87_p2 = scmp.ne.s32.totalorder %s5748_s16, %s5744_s15 }
  0x16   : > { %10605 = sst [smem:[#allocation20_spill]] %s5756_s18  ;;  %p5867_p3 = scmp.eq.s32.totalorder %s5074_s23, 0 }
  0x17   : > { %10606 = sst [smem:[#allocation21_spill]] %s5760_s19  ;;  %p5875_p4 = por %p82_p1, %p81_p0 }
  0x18   : > { %10607 = sst [smem:[#allocation22_spill]] %s5764_s20  ;;  %p113_p5 = scmp.ne.s32.totalorder %s5740_s14, %s5736_s13 }
  0x19   : > { %10608 = sst [smem:[#allocation23_spill]] %s5768_s21  ;;  %p5886_p6 = por %p5867_p3, %p87_p2 }
  0x1a   : > { %10609 = sst [smem:[#allocation24_spill]] %s5772_s22  ;;  %p119_p7 = scmp.ne.s32.totalorder %s5736_s13, %s5732_s12 }
  0x1b   : > { %s10610_s26 = scalar_select %p5867_p3, 1, 0 }
  0x1c   : > { %s10611_s28 = scalar_select %p5875_p4, 1, 0 }
  0x1d   : > { %s10612_s29 = scalar_select %p5886_p6, 1, 0 }
  0x1e   : > { %p115_p8 = por %p113_p5, %p82_p1  ;;  %p147_p9 = scmp.eq.s32.totalorder %s5074_s23, 3 }
  0x1f   : > { %p5893_p10 = por %p119_p7, %p5867_p3  ;;  %p153_p11 = scmp.eq.s32.totalorder %s5075_s24, 3 }
  0x20   : > { %p5900_p12 = por %p147_p9, %p81_p0  ;;  %p5076_p13 = scmp.ge.s32.totalorder %s5772_s22, 1 }
  0x21   : > { %s10613_s30 = scalar_select %p5893_p10, 1, 0 }
  0x22   : > { %s10614_s4 = scalar_select %p5900_p12, 1, 0 }
  0x23   : > { %p5908_p4 = por %p153_p11, %p87_p2  ;;  %p160_p6 = scmp.lt.s32.totalorder %s5772_s22, 5 }
  0x24   : > { %10615 = sst [smem:[#allocation25_spill]] %s10614_s4  ;;  %p5446_p5 = scmp.lt.s32.totalorder %s5772_s22, 4 }
  0x25   : > { %s10616_s5 = scalar_select %p5908_p4, 1, 0 }
  0x26   : > { %p5913_p1 = pnand %p5076_p13, %p160_p6  ;;  %p10619_p10 = scmp.ne.s32.totalorder %s10611_s28, 0 }
  0x27   : > { %10617 = sst [smem:[#allocation26_spill]] %s10616_s5  ;;  %p5926_p9 = pnand %p5446_p5, %p115_p8 }
  0x28   : > { %s10618_s6 = scalar_select %p5913_p1, 1, 0 }
  0x29   : > { %p5430_p7 = pneg %p5913_p1  ;;  %p5922_p0 = pnand %p5446_p5, %p10619_p10 }
  0x2a   : > { %s10622_s0 = sld [smem:[#allocation209_spill]] }
  0x2b   : > { %p5431_p2 = pnand %p5430_p7, %p5867_p3 }
  0x2d   : > { %p5570_p11 = pneg %p5431_p2 }
  0x30   : > { %s5568_s11 = scalar_lea.hbm %s10622_s0, 48  ;;  %s5573_s27 = scalar_lea.hbm %s10622_s0, 64 }
  0x31   : > { %p5569_p6 = scmp.ne.s32.totalorder %s10622_s0, %s5568_s11  ;;  %p5574_p8 = scmp.lt.u32.totalorder %s5573_s27, %s5568_s11 }
  0x32   : > { %p5575_p5 = scmp.lt.u32.totalorder %s5568_s11, %s10622_s0 }
  0x33   : > { %p5571_p13 = pnand %p5570_p11, %p5569_p6 }
  0x34   : > { %p5576_p7 = por %p5575_p5, %p5574_p8 }
  0x35   : > { %p5572_p10 = pneg %p5571_p13 }
  0x37   : > { %p5577_p4 = pnand %p5576_p7, %p5572_p10 }
  0x39   : > { %5580 = shalt.err (!%p5577_p4)
}
  0x3a   : > { %s5774_s9 = smov [#allocation3]   ;;  %s35_s27 = sadd.s32 1, %s5764_s20 }
  0x3b   : > { %5433 = dma.hbm_to_smem (!%p5431_p2), %s10622_s0, 48, %s5774_s9, [#allocation6]  }
  0x3c   : > { %s42_s12 = sadd.s32 1, %s5768_s21  ;;  %p36_p6 = scmp.ge.s32.totalorder %s35_s27, 2 }
  0x3d   : > { %s182_s25 = sand.u32 1, %s5752_s17   ;;  %s5080_s28 = sshll.u32 %s5764_s20, 1 }
  0x3e   : > { %s5079_s5 = sshll.u32 %s182_s25, 6  ;;  %s11434_s12 = smov (!%p36_p6, %s42_s12), %s5768_s21 }
  0x3f   : > { %s5950_s11 = scalar_select %p36_p6, 0, %s35_s27  }
  0x40   : > { %p44_p4 = scmp.ge.s32.totalorder %s11434_s12, 2  ;;  %s5419_s9 = smul.u32 24, %s5768_s21 }
  0x41   : > { %10623 = sst [smem:[#allocation27_spill]] %s5950_s11  ;;  %s70_s15 = ssub.s32 %s5764_s20, %s5950_s11 }
  0x42   : > { %s98_s23 = sadd.s32 1, %s5950_s11  ;;  %s11436_s12 = smov (%p44_p4, %s11434_s12), 0 }
  0x43   : > { %s102_s24 = ssub.s32 %s35_s27, %s98_s23  ;;  %10624 = sst [smem:[#allocation28_spill]] %s11436_s12 }
  0x44   : > { %s186_s10 = scalar_lea.vmem [#allocation7], %s5079_s5  ;;  %s67_s22 = ssub.s32 %s5768_s21, %s11436_s12 }
  0x45   : > { %s198_s0 = sshll.u32 %s186_s10, 4  ;;  %s71_s3 = sor.u32 %s70_s15, %s67_s22  ;;  %s5962_s0 = int_to_ptr.vmem [resolvable:$true] %s198_s0 }
  0x46   : > { %s103_s4 = sor.u32 %s102_s24, %s67_s22  ;;  %p72_p2 = scmp.eq.s32.totalorder %s71_s3, 0 }
  0x47   : > { %p104_p11 = scmp.eq.s32.totalorder %s103_s4, 0  ;;  %s5964_s11 = sadd.s32 %s5419_s9, %s5080_s28 }
  0x48   : > { %s10625_s18 = sadd.s32 1, %s5752_s17  ;;  %s10627_s23 = sadd.s32 1, %s5740_s14 }
  0x49   : > { %s5969_s27 = scalar_select %p72_p2, %s5752_s17, %s10625_s18  }
  0x4a   : > { %s5974_s20 = scalar_select %p104_p11, %s5740_s14, %s10627_s23  }
  0x4b   : > { %10626 = sst [smem:[#allocation29_spill]] %s5969_s27  ;;  %s5081_s5 = sshll.u32 %s5964_s11, 7 }
  0x4c   : > { %10628 = sst [smem:[#allocation30_spill]] %s5974_s20  ;;  %s10629_s1 = sld [smem:[#allocation210_spill]] }
  0x4d   : > { %s5984_s3 = scalar_lea.sflag [#allocation4], %s182_s25  ;;  %p5583_p10 = pneg %p5922_p0 }
  0x52   : > { %s5982_s21 = scalar_lea.hbm %s10629_s1, %s5081_s5  ;;  %s5586_s12 = scalar_lea.hbm %s10629_s1, 6144 }
  0x53   : > { %s5581_s22 = scalar_lea.hbm %s5982_s21, 1024  ;;  %p5587_p7 = scmp.lt.u32.totalorder %s5982_s21, %s10629_s1 }
  0x54   : > { %p5582_p13 = scmp.ne.s32.totalorder %s5982_s21, %s5581_s22  ;;  %p5588_p6 = scmp.lt.u32.totalorder %s5586_s12, %s5581_s22 }
  0x55   : > { %p5590_p2 = scmp.lt.u32.totalorder %s5581_s22, %s5982_s21 }
  0x56   : > { %p5584_p8 = pnand %p5583_p10, %p5582_p13  ;;  %p5589_p4 = por %p5588_p6, %p5587_p7 }
  0x58   : > { %p5585_p5 = pneg %p5584_p8  ;;  %p5591_p11 = por %p5590_p2, %p5589_p4 }
  0x5a   : > { %p5592_p12 = pnand %p5591_p11, %p5585_p5 }
  0x5c   : > { %5595 = shalt.err (!%p5592_p12)
}
  0x5d   : > { %s5596_s25 = scalar_lea.vmem %s5962_s0, 1024  ;;  %s5775_s28 = smov [#allocation7]  }
  0x5e   : > { %p5597_p13 = scmp.ne.s32.totalorder %s5962_s0, %s5596_s25  ;;  %s5601_s9 = sshll.u32 %s5775_s28, 4  ;;  %s5602_s9 = int_to_ptr.vmem [resolvable:$false] %s5601_s9 }
  0x5f   : > { %s5603_s23 = scalar_lea.vmem %s5602_s9, 2048  ;;  %p5604_p1 = scmp.lt.s32.totalorder %s5962_s0, %s5602_s9 }
  0x60   : > { %p5599_p8 = pnand %p5597_p13, %p5583_p10  ;;  %p5605_p7 = scmp.lt.s32.totalorder %s5603_s23, %s5596_s25 }
  0x62   : > { %p5600_p3 = pneg %p5599_p8  ;;  %p5606_p6 = por %p5605_p7, %p5604_p1 }
  0x64   : > { %p5607_p4 = pnand %p5606_p6, %p5600_p3 }
  0x66   : > { %5610 = shalt.err (!%p5607_p4)
}
  0x67   : > { %s5776_s10 = smov 768   ;;  %s5777_s22 = smov 256  }
  0x68   : > { %s5778_s18 = smov 16   ;;  %s208_s4 = sand.u32 1, %s5740_s14  }
  0x69   : > { %5437 = dma.hbm_to_vmem [thread:$0]  (!%p5922_p0), %s5982_s21, 1024, %s5962_s0, %s5984_s3, %s5776_s10, %s5777_s22, %s5778_s18  }
  0x6a   : > { %s10630_s2 = sld [smem:[#allocation211_spill]]  ;;  %s5082_s25 = sshll.u32 %s208_s4, 6 }
  0x6b   : > { %s212_s9 = scalar_lea.vmem [#allocation8], %s5082_s25  ;;  %s6025_s7 = scalar_lea.sflag [#allocation9], %s208_s4 }
  0x6c   : > { %s225_s23 = sshll.u32 %s212_s9, 4  ;;  %p5613_p12 = pneg %p5926_p9  ;;  %s6023_s23 = int_to_ptr.vmem [resolvable:$true] %s225_s23 }
  0x70   : > { %s4989_s24 = scalar_lea.hbm %s10630_s2, %s5081_s5  ;;  %s5616_s11 = scalar_lea.hbm %s10630_s2, 6144 }
  0x71   : > { %s6021_s28 = scalar_lea.hbm %s4989_s24, 256  ;;  %s5641_s1 = scalar_lea.hbm %s4989_s24, 1280 }
  0x72   : > { %p5612_p3 = scmp.ne.s32.totalorder %s6021_s28, %s5641_s1  ;;  %p5617_p10 = scmp.lt.u32.totalorder %s6021_s28, %s10630_s2 }
  0x73   : > { %p5618_p5 = scmp.lt.u32.totalorder %s5616_s11, %s5641_s1  ;;  %p5620_p11 = scmp.lt.u32.totalorder %s5641_s1, %s6021_s28 }
  0x74   : > { %p5614_p1 = pnand %p5613_p12, %p5612_p3 }
  0x75   : > { %p5619_p2 = por %p5618_p5, %p5617_p10 }
  0x76   : > { %p5615_p0 = pneg %p5614_p1 }
  0x77   : > { %p5621_p13 = por %p5620_p11, %p5619_p2 }
  0x79   : > { %p5622_p8 = pnand %p5621_p13, %p5615_p0 }
  0x7b   : > { %5625 = shalt.err (!%p5622_p8)
}
  0x7c   : > { %s5626_s4 = scalar_lea.vmem %s6023_s23, 1024  ;;  %s5779_s12 = smov [#allocation8]  }
  0x7d   : > { %p5627_p7 = scmp.ne.s32.totalorder %s6023_s23, %s5626_s4  ;;  %s5631_s15 = sshll.u32 %s5779_s12, 4  ;;  %s5632_s15 = int_to_ptr.vmem [resolvable:$false] %s5631_s15 }
  0x7e   : > { %s5633_s24 = scalar_lea.vmem %s5632_s15, 2048  ;;  %p5634_p3 = scmp.lt.s32.totalorder %s6023_s23, %s5632_s15 }
  0x7f   : > { %p5629_p6 = pnand %p5627_p7, %p5613_p12  ;;  %p5635_p1 = scmp.lt.s32.totalorder %s5633_s24, %s5626_s4 }
  0x81   : > { %p5630_p4 = pneg %p5629_p6  ;;  %p5636_p10 = por %p5635_p1, %p5634_p3 }
  0x83   : > { %p5637_p5 = pnand %p5636_p10, %p5630_p4 }
  0x85   : > { %5640 = shalt.err (!%p5637_p5)
}
  0x86   : > { %5440 = dma.hbm_to_vmem [thread:$0]  (!%p5926_p9), %s6021_s28, 1024, %s6023_s23, %s6025_s7, %s5776_s10, %s5777_s22, %s5778_s18  }
  0x87   : > { %p10631_p12 = scmp.ne.s32.totalorder %s10618_s6, 0 }
  0x89   : > { %237 = sbr.rel (%p10631_p12) target bundleno = 1588 (0x634), region = 32 }
  0x90   : > { %p10632_p0 = scmp.ne.s32.totalorder %s10610_s26, 0 }
  0x92   : > { %5715 = dma.done.wait (%p10632_p0), [#allocation6], 48  }
  0x93   : > { %5717 = vsyncadd (%p10632_p0), [#allocation6], 4294967248  ;;  %s6062_s1 = sand.u32 1, %s5748_s16   ;;  %p10633_p9 = scmp.ne.s32.totalorder %s10612_s29, 0 }
  0x94   : > { %s10575_s8 = sshll.u32 %s6062_s1, 6  ;;  %s244_s25 = scalar_lea.sflag [#allocation4], %s6062_s1 }
  0x95   : > { %s6068_s10 = scalar_lea.vmem [#allocation7], %s10575_s8 }
  0x96   : > { %5719 = dma.done.wait (%p10633_p9), %s244_s25, 1024  }
  0x97   : > { %5721 = vsyncadd (%p10633_p9), %s244_s25, 4294966272  ;;  %s252_s26 = sand.u32 1, %s5736_s13   ;;  %p10635_p2 = scmp.ne.s32.totalorder %s10613_s30, 0 }
  0x98   : > { %s5088_s6 = sshll.u32 %s252_s26, 6  ;;  %s253_s22 = scalar_lea.sflag [#allocation9], %s252_s26 }
  0x99   : > { %s6075_s18 = scalar_lea.vmem [#allocation8], %s5088_s6 }
  0x9a   : > { %10634 = sst [smem:[#allocation31_spill]] %s6075_s18 }
  0x9b   : > { %5723 = dma.done.wait (%p10635_p2), %s253_s22, 1024  }
  0x9c   : > { %5725 = vsyncadd (%p10635_p2), %s253_s22, 4294966272 }
  0x9d   : > { %261 = sfence }
  0x9e   : > { %s5126_s28 = sld [smem:[#allocation3 + $0x25]]  ;;  %s5090_s9 = sld [smem:[#allocation3 + $0x1]]  ;;  %v6082_v0 = vld [vmem:[%s6068_s10] sm:$0xff]  ;;  %v6085_v1 = vld [vmem:[%s6068_s10 + $0x8] sm:$0xff]  ;;  %v6150_v50 = vld [vmem:[%s6068_s10 + $0x18] sm:$0xff]  ;;  %vm612_vm0 = vcmask 1031168  }
  0x9f   : > { %s5162_s23 = sld [smem:[#allocation3 + $0x49]]  ;;  %s5198_s29 = sld [smem:[#allocation3 + $0x6d]]  ;;  %v6153_v52 = vld [vmem:[%s6068_s10 + $0x10] sm:$0xff]  ;;  %vm709_vm1 = vcmask 1014784  }
  0xa0   : > { %s5780_s30 = smov 126   ;;  %s5234_s7 = sld [smem:[#allocation3 + $0x91]] }
  0xa1   : > { %s5270_s0 = sld [smem:[#allocation3 + $0xb5]]  ;;  %s5306_s21 = sld [smem:[#allocation3 + $0xd9]] }
  0xa2   : > { %s5342_s11 = sld [smem:[#allocation3 + $0xfd]]  ;;  %s5091_s5 = sld [smem:[#allocation3 + $0x2]] }
  0xa3   : > { %s5127_s3 = sld [smem:[#allocation3 + $0x26]]  ;;  %s5163_s4 = sld [smem:[#allocation3 + $0x4a]] }
  0xa4   : > { %v616_v2 = vstv %s5126_s28  ;;  %v603_v4 = vstv %s5090_s9  ;;  %s5199_s12 = sld [smem:[#allocation3 + $0x6e]]  ;;  %s5781_s15 = smov 124  }
  0xa5   : > { %v617_v3 = vmul.f32 %v616_v2, %v6082_v0  ;;  %v604_v5 = vmul.f32 %v603_v4, %v6082_v0  ;;  %v618_v6 = vmul.f32 %v616_v2, %v6085_v1  ;;  %v605_v7 = vmul.f32 %v603_v4, %v6085_v1  ;;  %s5235_s24 = sld [smem:[#allocation3 + $0x92]]  ;;  %s5271_s25 = sld [smem:[#allocation3 + $0xb6]] }
  0xa6   : > { %v628_v8 = vstv %s5162_s23  ;;  %v640_v11 = vstv %s5198_s29  ;;  %v652_v14 = vstv %s5234_s7  ;;  %s5307_s26 = sld [smem:[#allocation3 + $0xda]]  ;;  %s5343_s6 = sld [smem:[#allocation3 + $0xfe]] }
  0xa7   : > { %621 = vrot.lane.b32.xlu1 %v617_v3, %s5780_s30  ;;  %608 = vrot.lane.b32.xlu0 %v604_v5, %s5780_s30  ;;  %v630_v9 = vmul.f32 %v628_v8, %v6085_v1  ;;  %v629_v10 = vmul.f32 %v628_v8, %v6082_v0  ;;  %v642_v12 = vmul.f32 %v640_v11, %v6085_v1  ;;  %v664_v17 = vstv %s5270_s0  ;;  %s5099_s22 = sld [smem:[#allocation3 + $0xa]]  ;;  %s5135_s28 = sld [smem:[#allocation3 + $0x2e]] }
  0xa8   : > { %v641_v13 = vmul.f32 %v640_v11, %v6082_v0  ;;  %v654_v15 = vmul.f32 %v652_v14, %v6085_v1  ;;  %v653_v16 = vmul.f32 %v652_v14, %v6082_v0  ;;  %v666_v18 = vmul.f32 %v664_v17, %v6085_v1  ;;  %s5171_s9 = sld [smem:[#allocation3 + $0x52]]  ;;  %s5207_s23 = sld [smem:[#allocation3 + $0x76]] }
  0xa9   : > { %v665_v19 = vmul.f32 %v664_v17, %v6082_v0  ;;  %v676_v20 = vstv %s5306_s21  ;;  %v688_v23 = vstv %s5342_s11  ;;  %v700_v26 = vstv %s5091_s5  ;;  %s5243_s29 = sld [smem:[#allocation3 + $0x9a]]  ;;  %s5279_s7 = sld [smem:[#allocation3 + $0xbe]] }
  0xaa   : > { %v678_v21 = vmul.f32 %v676_v20, %v6085_v1  ;;  %v677_v22 = vmul.f32 %v676_v20, %v6082_v0  ;;  %v690_v24 = vmul.f32 %v688_v23, %v6085_v1  ;;  %v689_v25 = vmul.f32 %v688_v23, %v6082_v0  ;;  %s5315_s0 = sld [smem:[#allocation3 + $0xe2]]  ;;  %s5351_s21 = sld [smem:[#allocation3 + $0x106]] }
  0xab   : > { %623 = vrot.lane.b32.xlu1 %v618_v6, %s5780_s30  ;;  %610 = vrot.lane.b32.xlu0 %v605_v7, %s5780_s30  ;;  %v702_v27 = vmul.f32 %v700_v26, %v6085_v1  ;;  %v701_v28 = vmul.f32 %v700_v26, %v6082_v0  ;;  %v713_v29 = vstv %s5127_s3  ;;  %v725_v32 = vstv %s5163_s4  ;;  %s5100_s11 = sld [smem:[#allocation3 + $0xb]]  ;;  %s5136_s5 = sld [smem:[#allocation3 + $0x2f]] }
  0xac   : > { %v715_v30 = vmul.f32 %v713_v29, %v6085_v1  ;;  %v714_v31 = vmul.f32 %v713_v29, %v6082_v0  ;;  %v727_v33 = vmul.f32 %v725_v32, %v6085_v1  ;;  %v726_v34 = vmul.f32 %v725_v32, %v6082_v0  ;;  %s5172_s3 = sld [smem:[#allocation3 + $0x53]]  ;;  %s5208_s4 = sld [smem:[#allocation3 + $0x77]] }
  0xad   : > { %v737_v35 = vstv %s5199_s12  ;;  %v749_v38 = vstv %s5235_s24  ;;  %v761_v41 = vstv %s5271_s25  ;;  %v773_v44 = vstv %s5307_s26  ;;  %s5244_s12 = sld [smem:[#allocation3 + $0x9b]]  ;;  %s5280_s24 = sld [smem:[#allocation3 + $0xbf]] }
  0xae   : > { %v739_v36 = vmul.f32 %v737_v35, %v6085_v1  ;;  %v738_v37 = vmul.f32 %v737_v35, %v6082_v0  ;;  %v751_v39 = vmul.f32 %v749_v38, %v6085_v1  ;;  %v750_v40 = vmul.f32 %v749_v38, %v6082_v0  ;;  %s5316_s25 = sld [smem:[#allocation3 + $0xe3]]  ;;  %s5352_s26 = sld [smem:[#allocation3 + $0x107]] }
  0xaf   : > { %635 = vrot.lane.b32.xlu1 %v630_v9, %s5780_s30  ;;  %633 = vrot.lane.b32.xlu0 %v629_v10, %s5780_s30  ;;  %v763_v42 = vmul.f32 %v761_v41, %v6085_v1  ;;  %v762_v43 = vmul.f32 %v761_v41, %v6082_v0  ;;  %v775_v45 = vmul.f32 %v773_v44, %v6085_v1  ;;  %v785_v47 = vstv %s5343_s6  ;;  %s5108_s6 = sld [smem:[#allocation3 + $0x13]]  ;;  %v6226_v41 = vld [vmem:[%s6068_s10 + $0x28] sm:$0xff]  ;;  %s9961_s8 = sld [smem:[#allocation3 + $0x84]] }
  0xb0   : > { %v774_v46 = vmul.f32 %v773_v44, %v6082_v0  ;;  %v787_v48 = vmul.f32 %v785_v47, %v6085_v1  ;;  %v786_v49 = vmul.f32 %v785_v47, %v6082_v0  ;;  %v824_v51 = vstv %s5099_s22  ;;  %s5144_s22 = sld [smem:[#allocation3 + $0x37]]  ;;  %v6231_v44 = vld [vmem:[%s6068_s10 + $0x20] sm:$0xff]  ;;  %s9969_s2 = sld [smem:[#allocation3 + $0xba]] }
  0xb1   : > { %v826_v53 = vmul.f32 %v6150_v50, %v824_v51  ;;  %v825_v54 = vmul.f32 %v6153_v52, %v824_v51  ;;  %v836_v55 = vstv %s5135_s28  ;;  %v848_v58 = vstv %s5171_s9  ;;  %s5180_s28 = sld [smem:[#allocation3 + $0x5b]]  ;;  %s5216_s9 = sld [smem:[#allocation3 + $0x7f]] }
  0xb2   : > { %v838_v56 = vmul.f32 %v6150_v50, %v836_v55  ;;  %v837_v57 = vmul.f32 %v6153_v52, %v836_v55  ;;  %v850_v59 = vmul.f32 %v6150_v50, %v848_v58  ;;  %v849_v60 = vmul.f32 %v6153_v52, %v848_v58  ;;  %s9980_s27 = sld [smem:[#allocation3 + $0x69]]  ;;  %s10003_s17 = sld [smem:[#allocation3 + $0xc3]] }
  0xb3   : > { %647 = vrot.lane.b32.xlu1 %v642_v12, %s5780_s30  ;;  %645 = vrot.lane.b32.xlu0 %v641_v13, %s5780_s30  ;;  %v860_v61 = vstv %s5207_s23  ;;  %v872_v1 = vstv %s5243_s29  ;;  %s5252_s23 = sld [smem:[#allocation3 + $0xa3]]  ;;  %s289_s29 = sld [smem:[#allocation3]] }
  0xb4   : > { %v862_v62 = vmul.f32 %v6150_v50, %v860_v61  ;;  %v861_v63 = vmul.f32 %v6153_v52, %v860_v61  ;;  %v874_v2 = vmul.f32 %v6150_v50, %v872_v1  ;;  %v873_v3 = vmul.f32 %v6153_v52, %v872_v1  ;;  %s10027_s16 = sld [smem:[#allocation3 + $0x8d]]  ;;  %s10064_s20 = sld [smem:[#allocation3 + $0xcc]] }
  0xb5   : > { %v884_v4 = vstv %s5279_s7  ;;  %v896_v7 = vstv %s5315_s0  ;;  %v908_v10 = vstv %s5351_s21  ;;  %v920_v13 = vstv %s5100_s11  ;;  %s6255_s7 = sld [smem:[#allocation3 + $0xc7]]  ;;  %s6261_s0 = sld [smem:[#allocation3 + $0x24]] }
  0xb6   : > { %v886_v5 = vmul.f32 %v6150_v50, %v884_v4  ;;  %v885_v6 = vmul.f32 %v6153_v52, %v884_v4  ;;  %v898_v8 = vmul.f32 %v6150_v50, %v896_v7  ;;  %v897_v9 = vmul.f32 %v6153_v52, %v896_v7  ;;  %s6265_s21 = sld [smem:[#allocation3 + $0x9]]  ;;  %s6269_s11 = sld [smem:[#allocation3 + $0xeb]] }
  0xb7   : > { %659 = vrot.lane.b32.xlu1 %v654_v15, %s5780_s30  ;;  %657 = vrot.lane.b32.xlu0 %v653_v16, %s5780_s30  ;;  %v910_v11 = vmul.f32 %v6150_v50, %v908_v10  ;;  %v909_v12 = vmul.f32 %v6153_v52, %v908_v10  ;;  %v922_v14 = vmul.f32 %v6150_v50, %v920_v13  ;;  %v932_v16 = vstv %s5136_s5  ;;  %s6273_s5 = sld [smem:[#allocation3 + $0x48]]  ;;  %s10069_s14 = sld [smem:[#allocation3 + $0xb1]] }
  0xb8   : > { %v921_v15 = vmul.f32 %v6153_v52, %v920_v13  ;;  %v934_v17 = vmul.f32 %v6150_v50, %v932_v16  ;;  %s10087_s13 = sld [smem:[#allocation3 + $0xde]]  ;;  %s10095_s19 = sld [smem:[#allocation3 + $0xd5]] }
  0xb9   : > { %v1091_v1 = vstv %s5252_s23  ;;  %v587_v4 = vstv %s289_s29  ;;  %s6344_s23 = sld [smem:[#allocation3 + $0x5c]]  ;;  %s6348_s29 = sld [smem:[#allocation3 + $0xd8]] }
  0xbb   : > { %671 = vrot.lane.b32.xlu1 %v666_v18, %s5780_s30  ;;  %669 = vrot.lane.b32.xlu0 %v665_v19, %s5780_s30  ;;  %v933_v18 = vmul.f32 %v6153_v52, %v932_v16  ;;  %v944_v19 = vstv %s5172_s3  ;;  %s6279_s3 = sld [smem:[#allocation3 + $0x2d]]  ;;  %v1103_v7 = vstv %s6255_s7 }
  0xbc   : > { %v946_v20 = vmul.f32 %v6150_v50, %v944_v19  ;;  %v1105_v13 = vmul.f32 %v6226_v41, %v1103_v7  ;;  %v1115_v16 = vstv %s6269_s11  ;;  %s6360_s7 = sld [smem:[#allocation3 + $0xbd]]  ;;  %s6381_s11 = sld [smem:[#allocation3 + $0xe1]] }
  0xbf   : > { %683 = vrot.lane.b32.xlu1 %v678_v21, %s5780_s30  ;;  %681 = vrot.lane.b32.xlu0 %v677_v22, %s5780_s30  ;;  %v945_v21 = vmul.f32 %v6153_v52, %v944_v19  ;;  %v956_v22 = vstv %s5208_s4  ;;  %s6284_s4 = sld [smem:[#allocation3 + $0x10f]] }
  0xc0   : > { %v958_v23 = vmul.f32 %v6150_v50, %v956_v22 }
  0xc3   : > { %695 = vrot.lane.b32.xlu1 %v690_v24, %s5780_s30  ;;  %693 = vrot.lane.b32.xlu0 %v689_v25, %s5780_s30  ;;  %v957_v24 = vmul.f32 %v6153_v52, %v956_v22  ;;  %v968_v25 = vstv %s5244_s12  ;;  %s6289_s12 = sld [smem:[#allocation3 + $0x6c]] }
  0xc4   : > { %v970_v26 = vmul.f32 %v6150_v50, %v968_v25 }
  0xc7   : > { %707 = vrot.lane.b32.xlu1 %v702_v27, %s5781_s15  ;;  %705 = vrot.lane.b32.xlu0 %v701_v28, %s5781_s15  ;;  %v969_v27 = vmul.f32 %v6153_v52, %v968_v25  ;;  %v980_v28 = vstv %s5280_s24  ;;  %s6299_s24 = sld [smem:[#allocation3 + $0x51]]  ;;  %v1117_v25 = vmul.f32 %v6226_v41, %v1115_v16 }
  0xc8   : > { %v982_v29 = vmul.f32 %v6150_v50, %v980_v28 }
  0xcb   : > { %720 = vrot.lane.b32.xlu1 %v715_v30, %s5781_s15  ;;  %718 = vrot.lane.b32.xlu0 %v714_v31, %s5781_s15  ;;  %v981_v30 = vmul.f32 %v6153_v52, %v980_v28  ;;  %v992_v31 = vstv %s5316_s25  ;;  %s6304_s25 = sld [smem:[#allocation3 + $0x14]]  ;;  %v1116_v28 = vmul.f32 %v6231_v44, %v1115_v16 }
  0xcc   : > { %v993_v35 = vmul.f32 %v6153_v52, %v992_v31 }
  0xcf   : > { %732 = vrot.lane.b32.xlu1 %v727_v33, %s5781_s15  ;;  %730 = vrot.lane.b32.xlu0 %v726_v34, %s5781_s15  ;;  %v994_v34 = vmul.f32 %v6150_v50, %v992_v31 }
  0xd3   : > { %744 = vrot.lane.b32.xlu1 %v739_v36, %s5781_s15  ;;  %742 = vrot.lane.b32.xlu0 %v738_v37, %s5781_s15  ;;  %v1004_v36 = vstv %s5352_s26  ;;  %s6308_s26 = sld [smem:[#allocation3 + $0x90]] }
  0xd7   : > { %756 = vrot.lane.b32.xlu1 %v751_v39, %s5781_s15  ;;  %754 = vrot.lane.b32.xlu0 %v750_v40, %s5781_s15  ;;  %v1006_v39 = vmul.f32 %v6150_v50, %v1004_v36  ;;  %v1005_v40 = vmul.f32 %v6153_v52, %v1004_v36 }
  0xdb   : > { %768 = vrot.lane.b32.xlu1 %v763_v42, %s5781_s15  ;;  %766 = vrot.lane.b32.xlu0 %v762_v43, %s5781_s15  ;;  %v1043_v42 = vstv %s5108_s6  ;;  %s6318_s6 = sld [smem:[#allocation3 + $0x75]] }
  0xdc   : > { %v1044_v47 = vmul.f32 %v6231_v44, %v1043_v42 }
  0xdf   : > { %780 = vrot.lane.b32.xlu1 %v775_v45, %s5781_s15  ;;  %778 = vrot.lane.b32.xlu0 %v774_v46, %s5781_s15  ;;  %v1045_v46 = vmul.f32 %v6226_v41, %v1043_v42 }
  0xe3   : > { %792 = vrot.lane.b32.xlu1 %v787_v48, %s5781_s15  ;;  %790 = vrot.lane.b32.xlu0 %v786_v49, %s5781_s15  ;;  %v1055_v48 = vstv %s5144_s22  ;;  %s6323_s22 = sld [smem:[#allocation3 + $0x38]] }
  0xe4   : > { %v1057_v51 = vmul.f32 %v6226_v41, %v1055_v48 }
  0xe7   : > { %831 = vrot.lane.b32.xlu1 %v826_v53, %s5780_s30  ;;  %829 = vrot.lane.b32.xlu0 %v825_v54, %s5780_s30  ;;  %v1056_v53 = vmul.f32 %v6231_v44, %v1055_v48  ;;  %v1067_v54 = vstv %s5180_s28  ;;  %s6326_s28 = sld [smem:[#allocation3 + $0xb4]] }
  0xe8   : > { %v1068_v58 = vmul.f32 %v6231_v44, %v1067_v54 }
  0xeb   : > { %843 = vrot.lane.b32.xlu1 %v838_v56, %s5780_s30  ;;  %841 = vrot.lane.b32.xlu0 %v837_v57, %s5780_s30  ;;  %v1069_v57 = vmul.f32 %v6226_v41, %v1067_v54 }
  0xef   : > { %855 = vrot.lane.b32.xlu1 %v850_v59, %s5780_s30  ;;  %853 = vrot.lane.b32.xlu0 %v849_v60, %s5780_s30  ;;  %v1079_v59 = vstv %s5216_s9  ;;  %s6339_s9 = sld [smem:[#allocation3 + $0x99]] }
  0xf3   : > { %867 = vrot.lane.b32.xlu1 %v862_v62, %s5780_s30  ;;  %865 = vrot.lane.b32.xlu0 %v861_v63, %s5780_s30  ;;  %v1081_v62 = vmul.f32 %v6226_v41, %v1079_v59  ;;  %v1080_v63 = vmul.f32 %v6231_v44, %v1079_v59 }
  0xf5   : > { %v812_v16 = vstv %s6339_s9  ;;  %s5297_s9 = sld [smem:[#allocation3 + $0xd0]] }
  0xf7   : > { %879 = vrot.lane.b32.xlu1 %v874_v2, %s5780_s30  ;;  %877 = vrot.lane.b32.xlu0 %v873_v3, %s5780_s30 }
  0xfb   : > { %891 = vrot.lane.b32.xlu1 %v886_v5, %s5780_s30  ;;  %889 = vrot.lane.b32.xlu0 %v885_v6, %s5780_s30  ;;  %v1093_v5 = vmul.f32 %v6226_v41, %v1091_v1  ;;  %v1092_v6 = vmul.f32 %v6231_v44, %v1091_v1 }
  0xff   : > { %903 = vrot.lane.b32.xlu1 %v898_v8, %s5780_s30  ;;  %901 = vrot.lane.b32.xlu0 %v897_v9, %s5780_s30  ;;  %v588_v9 = vmul.f32 %v587_v4, %v6082_v0 }
 0x103   : > { %915 = vrot.lane.b32.xlu1 %v910_v11, %s5780_s30  ;;  %913 = vrot.lane.b32.xlu0 %v909_v12, %s5780_s30  ;;  %v589_v11 = vstv %s6261_s0  ;;  %s6365_s0 = sld [smem:[#allocation3 + $0x80]] }
 0x107   : > { %927 = vrot.lane.b32.xlu1 %v922_v14, %s5781_s15  ;;  %925 = vrot.lane.b32.xlu0 %v921_v15, %s5781_s15  ;;  %v800_v14 = vstv %s6265_s21  ;;  %v1104_v15 = vmul.f32 %v6231_v44, %v1103_v7  ;;  %s6369_s21 = sld [smem:[#allocation3 + $0xfc]] }
 0x108   : > { %v801_v22 = vmul.f32 %v6153_v52, %v800_v14 }
 0x10b   : > { %939 = vrot.lane.b32.xlu1 %v934_v17, %s5781_s15  ;;  %937 = vrot.lane.b32.xlu0 %v933_v18, %s5781_s15  ;;  %v590_v18 = vmul.f32 %v589_v11, %v6082_v0 }
 0x10f   : > { %951 = vrot.lane.b32.xlu1 %v946_v20, %s5781_s15  ;;  %949 = vrot.lane.b32.xlu0 %v945_v21, %s5781_s15  ;;  %v591_v20 = vstv %s6273_s5  ;;  %s6386_s5 = sld [smem:[#allocation3 + $0xa4]] }
 0x113   : > { %963 = vrot.lane.b32.xlu1 %v958_v23, %s5781_s15  ;;  %961 = vrot.lane.b32.xlu0 %v957_v24, %s5781_s15 }
 0x117   : > { %975 = vrot.lane.b32.xlu1 %v970_v26, %s5781_s15  ;;  %973 = vrot.lane.b32.xlu0 %v969_v27, %s5781_s15  ;;  %v803_v26 = vstv %s6279_s3  ;;  %s6400_s3 = sld [smem:[#allocation3 + $0x105]] }
 0x118   : > { %v804_v36 = vmul.f32 %v6153_v52, %v803_v26 }
 0x119   : > { %v6211_v32 = vpop.permute.xlu1 %621  ;;  %v6213_v33 = vpop.permute.xlu0 %608 }
 0x11b   : > { %987 = vrot.lane.b32.xlu1 %v982_v29, %s5781_s15  ;;  %985 = vrot.lane.b32.xlu0 %v981_v30, %s5781_s15  ;;  %v1127_v29 = vstv %s6284_s4  ;;  %v592_v30 = vmul.f32 %v591_v20, %v6082_v0  ;;  %s6405_s4 = sld [smem:[#allocation3 + $0xc8]] }
 0x11d   : > { %v6219_v37 = vpop.permute.xlu1 %623  ;;  %v611_v38 = vpop.permute.xlu0 %610 }
 0x11e   : > { %v613_v12 = vsel %vm612_vm0, %v6213_v33, %v611_v38  ;;  %v625_v23 = vsel %vm612_vm0, %v6211_v32, %v6219_v37  ;;  %v593_v33 = vstv %s6289_s12  ;;  %s6422_s12 = sld [smem:[#allocation3 + $0xec]] }
 0x11f   : > { %999 = vrot.lane.b32.xlu1 %v994_v34, %s5781_s15  ;;  %997 = vrot.lane.b32.xlu0 %v993_v35, %s5781_s15  ;;  %v615_v19 = vadd.f32 %v613_v12, %v588_v9  ;;  %v627_v32 = vadd.f32 %v625_v23, %v590_v18 }
 0x121   : > { %v6228_v43 = vpop.permute.xlu1 %635  ;;  %v6233_v45 = vpop.permute.xlu0 %633 }
 0x122   : > { %v637_v37 = vsel %vm612_vm0, %v6233_v45, %v6228_v43  ;;  %v594_v43 = vmul.f32 %v593_v33, %v6082_v0  ;;  %v601_v33 = vstv %s6369_s21  ;;  %s5190_s21 = sld [smem:[#allocation3 + $0x65]] }
 0x123   : > { %1011 = vrot.lane.b32.xlu1 %v1006_v39, %s5781_s15  ;;  %1009 = vrot.lane.b32.xlu0 %v1005_v40, %s5781_s15  ;;  %v1129_v39 = vmul.f32 %v6226_v41, %v1127_v29  ;;  %v806_v40 = vstv %s6299_s24  ;;  %v639_v48 = vadd.f32 %v637_v37, %v592_v30  ;;  %s5361_s24 = sld [smem:[#allocation3 + $0x110]] }
 0x125   : > { %v6239_v49 = vpop.permute.xlu1 %647  ;;  %v6241_v50 = vpop.permute.xlu0 %645 }
 0x127   : > { %1050 = vrot.lane.b32.xlu1 %v1045_v46, %s5780_s30  ;;  %1048 = vrot.lane.b32.xlu0 %v1044_v47, %s5780_s30  ;;  %v1128_v46 = vmul.f32 %v6231_v44, %v1127_v29  ;;  %v1139_v47 = vstv %s6304_s25  ;;  %s5117_s25 = sld [smem:[#allocation3 + $0x1c]] }
 0x128   : > { %v1140_v4 = vmul.f32 %v6231_v44, %v1139_v47 }
 0x129   : > { %v6247_v55 = vpop.permute.xlu1 %659  ;;  %v6249_v56 = vpop.permute.xlu0 %657 }
 0x12b   : > { %1062 = vrot.lane.b32.xlu1 %v1057_v51, %s5780_s30  ;;  %1060 = vrot.lane.b32.xlu0 %v1056_v53, %s5780_s30  ;;  %v595_v51 = vstv %s6308_s26  ;;  %s5153_s26 = sld [smem:[#allocation3 + $0x40]] }
 0x12c   : > { %v596_v7 = vmul.f32 %v595_v51, %v6082_v0 }
 0x12d   : > { %v6257_v60 = vpop.permute.xlu1 %671  ;;  %v6259_v61 = vpop.permute.xlu0 %669 }
 0x12f   : > { %1074 = vrot.lane.b32.xlu1 %v1069_v57, %s5780_s30  ;;  %1072 = vrot.lane.b32.xlu0 %v1068_v58, %s5780_s30  ;;  %v807_v57 = vmul.f32 %v6153_v52, %v806_v40  ;;  %v649_v58 = vsel %vm612_vm0, %v6241_v50, %v6239_v49 }
 0x130   : > { %v651_v50 = vadd.f32 %v649_v58, %v594_v43  ;;  %v1187_v43 = vstv %s6386_s5  ;;  %s5262_s5 = sld [smem:[#allocation3 + $0xad]] }
 0x131   : > { %v6271_v2 = vpop.permute.xlu1 %683  ;;  %v6275_v3 = vpop.permute.xlu0 %681 }
 0x133   : > { %1086 = vrot.lane.b32.xlu1 %v1081_v62, %s5780_s30  ;;  %1084 = vrot.lane.b32.xlu0 %v1080_v63, %s5780_s30  ;;  %v1141_v62 = vmul.f32 %v6226_v41, %v1139_v47  ;;  %v809_v63 = vstv %s6318_s6  ;;  %s5189_s6 = sld [smem:[#allocation3 + $0x64]] }
 0x134   : > { %v810_v12 = vmul.f32 %v6153_v52, %v809_v63 }
 0x135   : > { %v6286_v8 = vpop.permute.xlu1 %695  ;;  %v6291_v10 = vpop.permute.xlu0 %693 }
 0x137   : > { %1098 = vrot.lane.b32.xlu1 %v1093_v5, %s5780_s30  ;;  %1096 = vrot.lane.b32.xlu0 %v1092_v6, %s5780_s30  ;;  %v1151_v5 = vstv %s6323_s22  ;;  %v597_v6 = vstv %s6326_s28  ;;  %s5225_s22 = sld [smem:[#allocation3 + $0x88]]  ;;  %s5261_s28 = sld [smem:[#allocation3 + $0xac]] }
 0x138   : > { %v1152_v18 = vmul.f32 %v6231_v44, %v1151_v5 }
 0x139   : > { %v708_v17 = vpop.permute.xlu1 %707  ;;  %v706_v21 = vpop.permute.xlu0 %705 }
 0x13a   : > { %v710_v24 = vsel %vm709_vm1, %v706_v21, %v708_v17  ;;  %v599_v21 = vstv %s6348_s29  ;;  %s5369_s29 = sld [smem:[#allocation3 + $0x118]] }
 0x13b   : > { %1110 = vrot.lane.b32.xlu1 %v1105_v13, %s5780_s30  ;;  %v712_v27 = vadd.f32 %v710_v24, %v615_v19  ;;  %1108 = vrot.lane.b32.xlu0 %v1104_v15, %s5780_s30  ;;  %v661_v13 = vsel %vm612_vm0, %v6249_v56, %v6247_v55  ;;  %v1153_v15 = vmul.f32 %v6226_v41, %v1151_v5  ;;  %v1163_v19 = vstv %s6344_s23  ;;  %s5333_s23 = sld [smem:[#allocation3 + $0xf4]] }
 0x13c   : > { %v598_v55 = vmul.f32 %v597_v6, %v6082_v0  ;;  %v663_v20 = vadd.f32 %v661_v13, %v596_v7  ;;  %v813_v24 = vmul.f32 %v6153_v52, %v812_v16  ;;  %v1164_v30 = vmul.f32 %v6231_v44, %v1163_v19 }
 0x13d   : > { %v721_v31 = vpop.permute.xlu1 %720  ;;  %v719_v34 = vpop.permute.xlu0 %718  ;;  %v6329_v35 = vadd.f32 %v801_v22, %v712_v27  ;;  %v1165_v27 = vmul.f32 %v6226_v41, %v1163_v19 }
 0x13e   : > { %v722_v38 = vsel %vm709_vm1, %v719_v34, %v721_v31  ;;  %v1175_v31 = vstv %s6365_s0  ;;  %s5154_s0 = sld [smem:[#allocation3 + $0x41]] }
 0x13f   : > { %1122 = vrot.lane.b32.xlu1 %v1117_v25, %s5780_s30  ;;  %v724_v42 = vadd.f32 %v722_v38, %v627_v32  ;;  %1120 = vrot.lane.b32.xlu0 %v1116_v28, %s5780_s30  ;;  %v673_v25 = vsel %vm612_vm0, %v6259_v61, %v6257_v60  ;;  %v815_v28 = vstv %s6360_s7  ;;  %v600_v60 = vmul.f32 %v599_v21, %v6082_v0  ;;  %s5118_s7 = sld [smem:[#allocation3 + $0x1d]] }
 0x140   : > { %v675_v32 = vadd.f32 %v673_v25, %v598_v55  ;;  %v816_v37 = vmul.f32 %v6153_v52, %v815_v28  ;;  %v685_v38 = vsel %vm612_vm0, %v6275_v3, %v6271_v2  ;;  %v1177_v40 = vmul.f32 %v6226_v41, %v1175_v31 }
 0x141   : > { %v733_v45 = vpop.permute.xlu1 %732  ;;  %v731_v53 = vpop.permute.xlu0 %730  ;;  %v6350_v54 = vadd.f32 %v804_v36, %v724_v42  ;;  %v818_v42 = vstv %s6381_s11  ;;  %v1176_v47 = vmul.f32 %v6231_v44, %v1175_v31  ;;  %v602_v2 = vmul.f32 %v601_v33, %v6082_v0  ;;  %s5226_s11 = sld [smem:[#allocation3 + $0x89]] }
 0x142   : > { %v734_v59 = vsel %vm709_vm1, %v731_v53, %v733_v45  ;;  %v819_v53 = vmul.f32 %v6153_v52, %v818_v42  ;;  %v1188_v0 = vmul.f32 %v6231_v44, %v1187_v43  ;;  %v1262_v21 = vstv %s5117_s25  ;;  %s5129_s25 = sld [smem:[#allocation3 + $0x28]] }
 0x143   : > { %1134 = vrot.lane.b32.xlu1 %v1129_v39, %s5780_s30  ;;  %v736_v1 = vadd.f32 %v734_v59, %v639_v48  ;;  %1132 = vrot.lane.b32.xlu0 %v1128_v46, %s5780_s30  ;;  %v687_v48 = vadd.f32 %v685_v38, %v600_v60  ;;  %v1189_v59 = vmul.f32 %v6226_v41, %v1187_v43  ;;  %v1286_v60 = vstv %s5189_s6  ;;  %s5201_s6 = sld [smem:[#allocation3 + $0x70]] }
 0x145   : > { %v745_v49 = vpop.permute.xlu1 %744  ;;  %v743_v9 = vpop.permute.xlu0 %742  ;;  %v6371_v11 = vadd.f32 %v807_v57, %v736_v1  ;;  %v697_v57 = vsel %vm612_vm0, %v6291_v10, %v6286_v8  ;;  %v1199_v1 = vstv %s6405_s4  ;;  %s5334_s4 = sld [smem:[#allocation3 + $0xf5]] }
 0x146   : > { %v746_v14 = vsel %vm709_vm1, %v743_v9, %v745_v49  ;;  %v699_v5 = vadd.f32 %v697_v57, %v602_v2  ;;  %v1200_v9 = vmul.f32 %v6231_v44, %v1199_v1  ;;  %v1322_v2 = vstv %s5297_s9  ;;  %s5309_s9 = sld [smem:[#allocation3 + $0xdc]] }
 0x147   : > { %1146 = vrot.lane.b32.xlu1 %v1141_v62, %s5781_s15  ;;  %v748_v17 = vadd.f32 %v746_v14, %v651_v50  ;;  %1144 = vrot.lane.b32.xlu0 %v1140_v4, %s5781_s15  ;;  %v821_v62 = vstv %s6400_s3  ;;  %v1201_v50 = vmul.f32 %v6226_v41, %v1199_v1  ;;  %s5298_s3 = sld [smem:[#allocation3 + $0xd1]] }
 0x148   : > { %v822_v8 = vmul.f32 %v6153_v52, %v821_v62 }
 0x149   : > { %v757_v56 = vpop.permute.xlu1 %756  ;;  %v755_v22 = vpop.permute.xlu0 %754  ;;  %v6390_v23 = vadd.f32 %v810_v12, %v748_v17  ;;  %v1211_v12 = vstv %s6422_s12  ;;  %v1223_v17 = vstv %s5361_s24  ;;  %s5370_s12 = sld [smem:[#allocation3 + $0x119]]  ;;  %s5093_s24 = sld [smem:[#allocation3 + $0x4]] }
 0x14a   : > { %v758_v26 = vsel %vm709_vm1, %v755_v22, %v757_v56  ;;  %v1213_v52 = vmul.f32 %v6226_v41, %v1211_v12  ;;  %v1212_v16 = vmul.f32 %v6231_v44, %v1211_v12  ;;  %v1225_v55 = vmul.f32 %v6226_v41, %v1223_v17 }
 0x14b   : > { %1158 = vrot.lane.b32.xlu1 %v1153_v15, %s5781_s15  ;;  %v760_v29 = vadd.f32 %v758_v26, %v663_v20  ;;  %1156 = vrot.lane.b32.xlu0 %v1152_v18, %s5781_s15  ;;  %v1224_v56 = vmul.f32 %v6231_v44, %v1223_v17  ;;  %v6466_v20 = vld [vmem:[%s6068_s10 + $0x38] sm:$0xff] }
 0x14c   : > { %v1264_v26 = vmul.f32 %v6466_v20, %v1262_v21  ;;  %v1288_v33 = vmul.f32 %v6466_v20, %v1286_v60  ;;  %v1324_v57 = vmul.f32 %v6466_v20, %v1322_v2 }
 0x14d   : > { %v769_v61 = vpop.permute.xlu1 %768  ;;  %v767_v34 = vpop.permute.xlu0 %766  ;;  %v6409_v36 = vadd.f32 %v813_v24, %v760_v29  ;;  %v6471_v24 = vld [vmem:[%s6068_s10 + $0x30] sm:$0xff] }
 0x14e   : > { %v770_v39 = vsel %vm709_vm1, %v767_v34, %v769_v61  ;;  %v1263_v41 = vmul.f32 %v6471_v24, %v1262_v21  ;;  %v1287_v34 = vmul.f32 %v6471_v24, %v1286_v60  ;;  %v1394_v60 = vstv %s5226_s11  ;;  %s6737_s11 = sld [smem:[#allocation3 + $0x7e]] }
 0x14f   : > { %1170 = vrot.lane.b32.xlu1 %v1165_v27, %s5781_s15  ;;  %v772_v46 = vadd.f32 %v770_v39, %v675_v32  ;;  %1168 = vrot.lane.b32.xlu0 %v1164_v30, %s5781_s15  ;;  %v1274_v27 = vstv %s5153_s26  ;;  %s5165_s26 = sld [smem:[#allocation3 + $0x4c]] }
 0x150   : > { %v1276_v30 = vmul.f32 %v6466_v20, %v1274_v27  ;;  %v1275_v31 = vmul.f32 %v6471_v24, %v1274_v27 }
 0x151   : > { %v781_v45 = vpop.permute.xlu1 %780  ;;  %v779_v3 = vpop.permute.xlu0 %778  ;;  %v6425_v51 = vadd.f32 %v816_v37, %v772_v46  ;;  %v1298_v37 = vstv %s5225_s22  ;;  %v1310_v46 = vstv %s5261_s28  ;;  %s5237_s22 = sld [smem:[#allocation3 + $0x94]]  ;;  %s5273_s28 = sld [smem:[#allocation3 + $0xb8]] }
 0x152   : > { %v782_v58 = vsel %vm709_vm1, %v779_v3, %v781_v45  ;;  %v1299_v42 = vmul.f32 %v6471_v24, %v1298_v37  ;;  %v1312_v45 = vmul.f32 %v6466_v20, %v1310_v46 }
 0x153   : > { %1182 = vrot.lane.b32.xlu1 %v1177_v40, %s5781_s15  ;;  %v784_v63 = vadd.f32 %v782_v58, %v687_v48  ;;  %1180 = vrot.lane.b32.xlu0 %v1176_v47, %s5781_s15  ;;  %v1300_v40 = vmul.f32 %v6466_v20, %v1298_v37  ;;  %v1311_v48 = vmul.f32 %v6471_v24, %v1310_v46 }
 0x154   : > { %v1323_v58 = vmul.f32 %v6471_v24, %v1322_v2  ;;  %v1396_v37 = vmul.f32 %v6466_v20, %v1394_v60 }
 0x155   : > { %v793_v4 = vpop.permute.xlu1 %792  ;;  %v791_v6 = vpop.permute.xlu0 %790  ;;  %v6438_v49 = vadd.f32 %v819_v53, %v784_v63 }
 0x156   : > { %v794_v10 = vsel %vm709_vm1, %v791_v6, %v793_v4  ;;  %v1346_v4 = vstv %s5369_s29  ;;  %s5094_s29 = sld [smem:[#allocation3 + $0x5]] }
 0x157   : > { %10636 = vst [vmem:[#allocation32_spill] sm:$0xff] %v6438_v49  ;;  %1194 = vrot.lane.b32.xlu1 %v1189_v59, %s5781_s15  ;;  %v796_v7 = vadd.f32 %v794_v10, %v699_v5  ;;  %1192 = vrot.lane.b32.xlu0 %v1188_v0, %s5781_s15  ;;  %v1334_v59 = vstv %s5333_s23  ;;  %v1347_v10 = vmul.f32 %v6471_v24, %v1346_v4  ;;  %v1605_v49 = vstv %s5237_s22  ;;  %s5345_s23 = sld [smem:[#allocation3 + $0x100]]  ;;  %s6772_s22 = sld [smem:[#allocation3 + $0x87]] }
 0x158   : > { %v1336_v0 = vmul.f32 %v6466_v20, %v1334_v59  ;;  %v1335_v1 = vmul.f32 %v6471_v24, %v1334_v59 }
 0x159   : > { %v6447_v13 = vpop.permute.xlu1 %831  ;;  %v6449_v14 = vpop.permute.xlu0 %829  ;;  %v6451_v15 = vadd.f32 %v822_v8, %v796_v7  ;;  %v1348_v8 = vmul.f32 %v6466_v20, %v1346_v4  ;;  %v1430_v4 = vstv %s5334_s4  ;;  %s6749_s4 = sld [smem:[#allocation3 + $0xea]] }
 0x15b   : > { %10637 = vst [vmem:[#allocation33_spill] sm:$0xff] %v6451_v15  ;;  %1206 = vrot.lane.b32.xlu1 %v1201_v50, %s5781_s15  ;;  %1204 = vrot.lane.b32.xlu0 %v1200_v9, %s5781_s15  ;;  %v1358_v50 = vstv %s5118_s7  ;;  %s6729_s7 = sld [smem:[#allocation3 + $0x12]] }
 0x15c   : > { %v1360_v12 = vmul.f32 %v6466_v20, %v1358_v50 }
 0x15d   : > { %v6457_v18 = vpop.permute.xlu1 %843  ;;  %v6459_v19 = vpop.permute.xlu0 %841 }
 0x15f   : > { %1218 = vrot.lane.b32.xlu1 %v1213_v52, %s5781_s15  ;;  %1216 = vrot.lane.b32.xlu0 %v1212_v16, %s5781_s15  ;;  %v1359_v52 = vmul.f32 %v6471_v24, %v1358_v50  ;;  %v1370_v16 = vstv %s5154_s0  ;;  %v1432_v50 = vmul.f32 %v6466_v20, %v1430_v4  ;;  %s6731_s0 = sld [smem:[#allocation3 + $0x36]] }
 0x160   : > { %v1371_v21 = vmul.f32 %v6471_v24, %v1370_v16 }
 0x161   : > { %v6468_v22 = vpop.permute.xlu1 %855  ;;  %v6473_v25 = vpop.permute.xlu0 %853 }
 0x163   : > { %1230 = vrot.lane.b32.xlu1 %v1225_v55, %s5781_s15  ;;  %1228 = vrot.lane.b32.xlu0 %v1224_v56, %s5781_s15  ;;  %v1372_v56 = vmul.f32 %v6466_v20, %v1370_v16 }
 0x165   : > { %v6479_v28 = vpop.permute.xlu1 %867  ;;  %v6481_v29 = vpop.permute.xlu0 %865 }
 0x167   : > { %1269 = vrot.lane.b32.xlu1 %v1264_v26, %s5780_s30  ;;  %1267 = vrot.lane.b32.xlu0 %v1263_v41, %s5780_s30  ;;  %v1382_v26 = vstv %s5190_s21  ;;  %s6735_s21 = sld [smem:[#allocation3 + $0x5a]] }
 0x169   : > { %v6487_v61 = vpop.permute.xlu1 %879  ;;  %v6489_v32 = vpop.permute.xlu0 %877 }
 0x16b   : > { %1281 = vrot.lane.b32.xlu1 %v1276_v30, %s5780_s30  ;;  %1279 = vrot.lane.b32.xlu0 %v1275_v31, %s5780_s30  ;;  %v1384_v30 = vmul.f32 %v6466_v20, %v1382_v26  ;;  %v1383_v31 = vmul.f32 %v6471_v24, %v1382_v26 }
 0x16d   : > { %v6495_v38 = vpop.permute.xlu1 %891  ;;  %v6497_v39 = vpop.permute.xlu0 %889 }
 0x16f   : > { %1293 = vrot.lane.b32.xlu1 %v1288_v33, %s5780_s30  ;;  %1291 = vrot.lane.b32.xlu0 %v1287_v34, %s5780_s30 }
 0x171   : > { %v6503_v47 = vpop.permute.xlu1 %903  ;;  %v6505_v43 = vpop.permute.xlu0 %901 }
 0x173   : > { %1305 = vrot.lane.b32.xlu1 %v1300_v40, %s5780_s30  ;;  %1303 = vrot.lane.b32.xlu0 %v1299_v42, %s5780_s30  ;;  %v1395_v40 = vmul.f32 %v6471_v24, %v1394_v60  ;;  %v1406_v42 = vstv %s5262_s5  ;;  %s6741_s5 = sld [smem:[#allocation3 + $0xa2]] }
 0x174   : > { %v1407_v2 = vmul.f32 %v6471_v24, %v1406_v42 }
 0x175   : > { %v6511_v3 = vpop.permute.xlu1 %915  ;;  %v6513_v53 = vpop.permute.xlu0 %913 }
 0x176   : > { %10638 = vst [vmem:[#allocation34_spill] sm:$0xff] %v6511_v3  ;;  %10639 = vst [vmem:[#allocation35_spill] sm:$0xff] %v6513_v53  ;;  %v1037_v53 = vstv %s6749_s4  ;;  %s5102_s4 = sld [smem:[#allocation3 + $0xd]] }
 0x177   : > { %1317 = vrot.lane.b32.xlu1 %v1312_v45, %s5780_s30  ;;  %1315 = vrot.lane.b32.xlu0 %v1311_v48, %s5780_s30  ;;  %v1408_v48 = vmul.f32 %v6466_v20, %v1406_v42 }
 0x179   : > { %v6519_v62 = vpop.permute.xlu1 %927  ;;  %v6521_v63 = vpop.permute.xlu0 %925 }
 0x17b   : > { %1329 = vrot.lane.b32.xlu1 %v1324_v57, %s5780_s30  ;;  %1327 = vrot.lane.b32.xlu0 %v1323_v58, %s5780_s30  ;;  %v1418_v57 = vstv %s5298_s3  ;;  %s6743_s3 = sld [smem:[#allocation3 + $0xc6]] }
 0x17d   : > { %v6527_v5 = vpop.permute.xlu1 %939  ;;  %v6529_v6 = vpop.permute.xlu0 %937 }
 0x17f   : > { %1341 = vrot.lane.b32.xlu1 %v1336_v0, %s5780_s30  ;;  %1339 = vrot.lane.b32.xlu0 %v1335_v1, %s5780_s30  ;;  %v1420_v0 = vmul.f32 %v6466_v20, %v1418_v57  ;;  %v1419_v1 = vmul.f32 %v6471_v24, %v1418_v57  ;;  %v6619_v57 = vld [vmem:[%s6075_s18] sm:$0x3] }
 0x181   : > { %v6535_v7 = vpop.permute.xlu1 %951  ;;  %v6537_v9 = vpop.permute.xlu0 %949 }
 0x183   : > { %1353 = vrot.lane.b32.xlu1 %v1348_v8, %s5780_s30  ;;  %1351 = vrot.lane.b32.xlu0 %v1347_v10, %s5780_s30 }
 0x185   : > { %v6543_v17 = vpop.permute.xlu1 %963  ;;  %v6545_v55 = vpop.permute.xlu0 %961 }
 0x187   : > { %1365 = vrot.lane.b32.xlu1 %v1360_v12, %s5781_s15  ;;  %1363 = vrot.lane.b32.xlu0 %v1359_v52, %s5781_s15  ;;  %v1431_v12 = vmul.f32 %v6471_v24, %v1430_v4  ;;  %v1442_v52 = vstv %s5370_s12  ;;  %s6753_s12 = sld [smem:[#allocation3 + $0x29]] }
 0x188   : > { %v1443_v26 = vmul.f32 %v6471_v24, %v1442_v52 }
 0x189   : > { %v6551_v41 = vpop.permute.xlu1 %975  ;;  %v6553_v27 = vpop.permute.xlu0 %973 }
 0x18b   : > { %1377 = vrot.lane.b32.xlu1 %v1372_v56, %s5781_s15  ;;  %1375 = vrot.lane.b32.xlu0 %v1371_v21, %s5781_s15  ;;  %v1444_v21 = vmul.f32 %v6466_v20, %v1442_v52 }
 0x18d   : > { %v6559_v33 = vpop.permute.xlu1 %987  ;;  %v6561_v34 = vpop.permute.xlu0 %985 }
 0x18e   : > { %10640 = vst [vmem:[#allocation36_spill] sm:$0xff] %v6559_v33  ;;  %10641 = vst [vmem:[#allocation37_spill] sm:$0xff] %v6561_v34  ;;  %v1022_v33 = vstv %s6731_s0  ;;  %s6920_s0 = sld [smem:[#allocation3 + $0x95]] }
 0x18f   : > { %1389 = vrot.lane.b32.xlu1 %v1384_v30, %s5781_s15  ;;  %1387 = vrot.lane.b32.xlu0 %v1383_v31, %s5781_s15  ;;  %v6600_v30 = vld [vmem:[%s6068_s10 + $0x8] sm:$0xfc]  ;;  %v1513_v31 = vstv %s5093_s24  ;;  %s6755_s24 = sld [smem:[#allocation3 + $0x10e]] }
 0x190   : > { %v1515_v42 = vmul.f32 %v1513_v31, %v6600_v30  ;;  %v1525_v4 = vmul.f32 %v1513_v31, %v6619_v57 }
 0x191   : > { %v6567_v46 = vpop.permute.xlu1 %999  ;;  %v6569_v45 = vpop.permute.xlu0 %997 }
 0x192   : > { %10642 = vst [vmem:[#allocation38_spill] sm:$0xff] %v6567_v46  ;;  %10643 = vst [vmem:[#allocation39_spill] sm:$0xff] %v6569_v45 }
 0x193   : > { %1401 = vrot.lane.b32.xlu1 %v1396_v37, %s5781_s15  ;;  %1399 = vrot.lane.b32.xlu0 %v1395_v40, %s5781_s15  ;;  %v6605_v37 = vld [vmem:[%s6068_s10] sm:$0xfc] }
 0x194   : > { %v1514_v20 = vmul.f32 %v1513_v31, %v6605_v37 }
 0x195   : > { %v6575_v58 = vpop.permute.xlu1 %1011  ;;  %v6577_v59 = vpop.permute.xlu0 %1009  ;;  %v1040_v3 = vstv %s6755_s24  ;;  %s5174_s24 = sld [smem:[#allocation3 + $0x55]] }
 0x196   : > { %10644 = vst [vmem:[#allocation40_spill] sm:$0xff] %v6575_v58  ;;  %10645 = vst [vmem:[#allocation41_spill] sm:$0xff] %v6577_v59  ;;  %v1559_v58 = vstv %s5165_s26  ;;  %s6761_s26 = sld [smem:[#allocation3 + $0x3f]] }
 0x197   : > { %1413 = vrot.lane.b32.xlu1 %v1408_v48, %s5781_s15  ;;  %1411 = vrot.lane.b32.xlu0 %v1407_v2, %s5781_s15  ;;  %v6614_v48 = vld [vmem:[%s6075_s18 + $0x8] sm:$0x3] }
 0x199   : > { %v6583_v8 = vpop.permute.xlu1 %1050  ;;  %v6585_v10 = vpop.permute.xlu0 %1048 }
 0x19b   : > { %1425 = vrot.lane.b32.xlu1 %v1420_v0, %s5781_s15  ;;  %1423 = vrot.lane.b32.xlu0 %v1419_v1, %s5781_s15  ;;  %v1526_v1 = vmul.f32 %v1513_v31, %v6614_v48 }
 0x19d   : > { %v6591_v16 = vpop.permute.xlu1 %1062  ;;  %v6593_v56 = vpop.permute.xlu0 %1060 }
 0x19f   : > { %1437 = vrot.lane.b32.xlu1 %v1432_v50, %s5781_s15  ;;  %1435 = vrot.lane.b32.xlu0 %v1431_v12, %s5781_s15  ;;  %v1536_v50 = vstv %s5129_s25  ;;  %s6759_s25 = sld [smem:[#allocation3 + $0x1b]] }
 0x1a0   : > { %v1549_v31 = vmul.f32 %v1536_v50, %v6614_v48 }
 0x1a1   : > { %v6602_v60 = vpop.permute.xlu1 %1074  ;;  %v6607_v40 = vpop.permute.xlu0 %1072 }
 0x1a3   : > { %1449 = vrot.lane.b32.xlu1 %v1444_v21, %s5781_s15  ;;  %1447 = vrot.lane.b32.xlu0 %v1443_v26, %s5781_s15  ;;  %v1538_v21 = vmul.f32 %v1536_v50, %v6600_v30  ;;  %v1537_v26 = vmul.f32 %v1536_v50, %v6605_v37 }
 0x1a5   : > { %v6616_v2 = vpop.permute.xlu1 %1086  ;;  %v6621_v0 = vpop.permute.xlu0 %1084 }
 0x1a6   : > { %10646 = vst [vmem:[#allocation42_spill] sm:$0xff] %v6616_v2  ;;  %10647 = vst [vmem:[#allocation43_spill] sm:$0xff] %v6621_v0  ;;  %v1031_v0 = vstv %s6741_s5  ;;  %s7026_s5 = sld [smem:[#allocation3 + $0xdd]] }
 0x1a7   : > { %1520 = vrot.lane.b32.xlu1 %v1515_v42, %s5780_s30  ;;  %1518 = vrot.lane.b32.xlu0 %v1514_v20, %s5780_s30  ;;  %v1548_v20 = vmul.f32 %v1536_v50, %v6619_v57  ;;  %v1572_v50 = vmul.f32 %v1559_v58, %v6614_v48 }
 0x1a9   : > { %v6627_v12 = vpop.permute.xlu1 %1098  ;;  %v6629_v52 = vpop.permute.xlu0 %1096 }
 0x1aa   : > { %10648 = vst [vmem:[#allocation44_spill] sm:$0xff] %v6627_v12  ;;  %10649 = vst [vmem:[#allocation45_spill] sm:$0xff] %v6629_v52  ;;  %v1628_v12 = vstv %s5273_s28  ;;  %s6775_s28 = sld [smem:[#allocation3 + $0xab]] }
 0x1ab   : > { %1531 = vrot.lane.b32.xlu1 %v1526_v1, %s5780_s30  ;;  %1529 = vrot.lane.b32.xlu0 %v1525_v4, %s5780_s30  ;;  %v1561_v4 = vmul.f32 %v1559_v58, %v6600_v30 }
 0x1ad   : > { %v6635_v42 = vpop.permute.xlu1 %1110  ;;  %v6637_v59 = vpop.permute.xlu0 %1108 }
 0x1ae   : > { %10650 = vst [vmem:[#allocation46_spill] sm:$0xff] %v6635_v42  ;;  %10651 = vst [vmem:[#allocation47_spill] sm:$0xff] %v6637_v59 }
 0x1af   : > { %1543 = vrot.lane.b32.xlu1 %v1538_v21, %s5780_s30  ;;  %1541 = vrot.lane.b32.xlu0 %v1537_v26, %s5780_s30  ;;  %v1560_v21 = vmul.f32 %v1559_v58, %v6605_v37  ;;  %v1571_v26 = vmul.f32 %v1559_v58, %v6619_v57 }
 0x1b1   : > { %v6643_v1 = vpop.permute.xlu1 %1122  ;;  %v6645_v15 = vpop.permute.xlu0 %1120 }
 0x1b2   : > { %10652 = vst [vmem:[#allocation48_spill] sm:$0xff] %v6643_v1  ;;  %10653 = vst [vmem:[#allocation49_spill] sm:$0xff] %v6645_v15  ;;  %v1582_v15 = vstv %s5201_s6  ;;  %s6765_s6 = sld [smem:[#allocation3 + $0x63]] }
 0x1b3   : > { %1554 = vrot.lane.b32.xlu1 %v1549_v31, %s5780_s30  ;;  %1552 = vrot.lane.b32.xlu0 %v1548_v20, %s5780_s30  ;;  %v1584_v20 = vmul.f32 %v1582_v15, %v6600_v30  ;;  %v1595_v58 = vmul.f32 %v1582_v15, %v6614_v48 }
 0x1b5   : > { %v6651_v59 = vpop.permute.xlu1 %1134  ;;  %v6653_v42 = vpop.permute.xlu0 %1132 }
 0x1b6   : > { %10654 = vst [vmem:[#allocation50_spill] sm:$0xff] %v6651_v59  ;;  %10655 = vst [vmem:[#allocation51_spill] sm:$0xff] %v6653_v42 }
 0x1b7   : > { %1566 = vrot.lane.b32.xlu1 %v1561_v4, %s5780_s30  ;;  %1564 = vrot.lane.b32.xlu0 %v1560_v21, %s5780_s30  ;;  %v1583_v4 = vmul.f32 %v1582_v15, %v6605_v37  ;;  %v1594_v21 = vmul.f32 %v1582_v15, %v6619_v57  ;;  %v1618_v15 = vmul.f32 %v1605_v49, %v6614_v48 }
 0x1b9   : > { %v6659_v31 = vpop.permute.xlu1 %1146  ;;  %v6661_v1 = vpop.permute.xlu0 %1144 }
 0x1bb   : > { %1577 = vrot.lane.b32.xlu1 %v1572_v50, %s5780_s30  ;;  %1575 = vrot.lane.b32.xlu0 %v1571_v26, %s5780_s30  ;;  %v1607_v26 = vmul.f32 %v1605_v49, %v6600_v30 }
 0x1bd   : > { %v6667_v42 = vpop.permute.xlu1 %1158  ;;  %v6669_v59 = vpop.permute.xlu0 %1156 }
 0x1bf   : > { %1589 = vrot.lane.b32.xlu1 %v1584_v20, %s5780_s30  ;;  %1587 = vrot.lane.b32.xlu0 %v1583_v4, %s5780_s30  ;;  %v1606_v20 = vmul.f32 %v1605_v49, %v6605_v37  ;;  %v1617_v4 = vmul.f32 %v1605_v49, %v6619_v57  ;;  %v1641_v49 = vmul.f32 %v1628_v12, %v6614_v48 }
 0x1c1   : > { %v6675_v50 = vpop.permute.xlu1 %1170  ;;  %v6677_v45 = vpop.permute.xlu0 %1168 }
 0x1c2   : > { %10656 = vst [vmem:[#allocation52_spill] sm:$0xff] %v6675_v50  ;;  %10657 = vst [vmem:[#allocation53_spill] sm:$0xff] %v6677_v45  ;;  %v6792_v50 = vmul.f32 %v6231_v44, %v1022_v33  ;;  %v929_v33 = vsel %vm709_vm1, %v6521_v63, %v6519_v62  ;;  %v845_v62 = vsel %vm612_vm0, %v6459_v19, %v6457_v18  ;;  %v5547_v63 = vld [vmem:[%s6068_s10 + $0x20] sm:$0xff] }
 0x1c3   : > { %1600 = vrot.lane.b32.xlu1 %v1595_v58, %s5780_s30  ;;  %1598 = vrot.lane.b32.xlu0 %v1594_v21, %s5780_s30  ;;  %v1630_v21 = vmul.f32 %v1628_v12, %v6600_v30  ;;  %v941_v18 = vsel %vm709_vm1, %v6529_v6, %v6527_v5  ;;  %v6843_v19 = vmul.f32 %v5547_v63, %v1040_v3 }
 0x1c4   : > { %v1052_v6 = vsel %vm612_vm0, %v6585_v10, %v6583_v8  ;;  %v953_v10 = vsel %vm709_vm1, %v6537_v9, %v6535_v7  ;;  %v893_v7 = vsel %vm612_vm0, %v6497_v39, %v6495_v38 }
 0x1c5   : > { %v6683_v46 = vpop.permute.xlu1 %1182  ;;  %v6685_v52 = vpop.permute.xlu0 %1180 }
 0x1c6   : > { %10658 = vst [vmem:[#allocation54_spill] sm:$0xff] %v6683_v46  ;;  %10659 = vst [vmem:[#allocation55_spill] sm:$0xff] %v6685_v52 }
 0x1c7   : > { %1612 = vrot.lane.b32.xlu1 %v1607_v26, %s5780_s30  ;;  %1610 = vrot.lane.b32.xlu0 %v1606_v20, %s5780_s30  ;;  %v1629_v26 = vmul.f32 %v1628_v12, %v6605_v37  ;;  %v1640_v20 = vmul.f32 %v1628_v12, %v6619_v57 }
 0x1c9   : > { %v6691_v58 = vpop.permute.xlu1 %1194  ;;  %v6693_v34 = vpop.permute.xlu0 %1192 }
 0x1ca   : > { %10660 = vst [vmem:[#allocation56_spill] sm:$0xff] %v6691_v58  ;;  %10661 = vst [vmem:[#allocation57_spill] sm:$0xff] %v6693_v34  ;;  %v1651_v34 = vstv %s5309_s9  ;;  %s6785_s9 = sld [smem:[#allocation3 + $0xcf]] }
 0x1cb   : > { %1623 = vrot.lane.b32.xlu1 %v1618_v15, %s5780_s30  ;;  %1621 = vrot.lane.b32.xlu0 %v1617_v4, %s5780_s30  ;;  %v1653_v4 = vmul.f32 %v1651_v34, %v6600_v30  ;;  %v1664_v12 = vmul.f32 %v1651_v34, %v6614_v48 }
 0x1cd   : > { %v6699_v52 = vpop.permute.xlu1 %1206  ;;  %v6701_v46 = vpop.permute.xlu0 %1204 }
 0x1ce   : > { %10662 = vst [vmem:[#allocation58_spill] sm:$0xff] %v6699_v52  ;;  %10663 = vst [vmem:[#allocation59_spill] sm:$0xff] %v6701_v46 }
 0x1cf   : > { %1635 = vrot.lane.b32.xlu1 %v1630_v21, %s5780_s30  ;;  %1633 = vrot.lane.b32.xlu0 %v1629_v26, %s5780_s30  ;;  %v1652_v21 = vmul.f32 %v1651_v34, %v6605_v37  ;;  %v1663_v26 = vmul.f32 %v1651_v34, %v6619_v57 }
 0x1d0   : > { %v1253_v5 = vstv %s6785_s9  ;;  %s5103_s9 = sld [smem:[#allocation3 + $0xe]] }
 0x1d1   : > { %v6707_v15 = vpop.permute.xlu1 %1218  ;;  %v6709_v58 = vpop.permute.xlu0 %1216 }
 0x1d2   : > { %10664 = vst [vmem:[#allocation60_spill] sm:$0xff] %v6707_v15  ;;  %10665 = vst [vmem:[#allocation61_spill] sm:$0xff] %v6709_v58  ;;  %v1674_v58 = vstv %s5345_s23  ;;  %s6803_s23 = sld [smem:[#allocation3 + $0x4d]] }
 0x1d3   : > { %1646 = vrot.lane.b32.xlu1 %v1641_v49, %s5780_s30  ;;  %1644 = vrot.lane.b32.xlu0 %v1640_v20, %s5780_s30  ;;  %v1676_v20 = vmul.f32 %v1674_v58, %v6600_v30 }
 0x1d5   : > { %v6715_v46 = vpop.permute.xlu1 %1230  ;;  %v6717_v52 = vpop.permute.xlu0 %1228 }
 0x1d6   : > { %10666 = vst [vmem:[#allocation62_spill] sm:$0xff] %v6715_v46  ;;  %10667 = vst [vmem:[#allocation63_spill] sm:$0xff] %v6717_v52  ;;  %v1697_v52 = vstv %s5094_s29  ;;  %s6834_s29 = sld [smem:[#allocation3 + $0xf3]] }
 0x1d7   : > { %1658 = vrot.lane.b32.xlu1 %v1653_v4, %s5780_s30  ;;  %1656 = vrot.lane.b32.xlu0 %v1652_v21, %s5780_s30  ;;  %v1675_v4 = vmul.f32 %v1674_v58, %v6605_v37 }
 0x1d9   : > { %v6723_v49 = vpop.permute.xlu1 %1269  ;;  %v6725_v15 = vpop.permute.xlu0 %1267 }
 0x1da   : > { %10668 = vst [vmem:[#allocation64_spill] sm:$0xff] %v6723_v49  ;;  %10669 = vst [vmem:[#allocation65_spill] sm:$0xff] %v6725_v15  ;;  %v1241_v15 = vstv %s6761_s26  ;;  %s5246_s26 = sld [smem:[#allocation3 + $0x9d]] }
 0x1db   : > { %1669 = vrot.lane.b32.xlu1 %v1664_v12, %s5780_s30  ;;  %1667 = vrot.lane.b32.xlu0 %v1663_v26, %s5780_s30  ;;  %v1687_v12 = vmul.f32 %v1674_v58, %v6614_v48  ;;  %v1686_v26 = vmul.f32 %v1674_v58, %v6619_v57  ;;  %v1699_v58 = vmul.f32 %v1697_v52, %v6600_v30 }
 0x1dd   : > { %v6739_v34 = vpop.permute.xlu1 %1281  ;;  %v6745_v21 = vpop.permute.xlu0 %1279 }
 0x1de   : > { %10670 = vst [vmem:[#allocation66_spill] sm:$0xff] %v6739_v34  ;;  %10671 = vst [vmem:[#allocation67_spill] sm:$0xff] %v6745_v21  ;;  %v1025_v21 = vstv %s6735_s21  ;;  %v1028_v34 = vstv %s6737_s11  ;;  %s6971_s21 = sld [smem:[#allocation3 + $0xb9]]  ;;  %s6991_s11 = sld [smem:[#allocation3 + $0x117]] }
 0x1df   : > { %1681 = vrot.lane.b32.xlu1 %v1676_v20, %s5780_s30  ;;  %1679 = vrot.lane.b32.xlu0 %v1675_v4, %s5780_s30  ;;  %v1019_v4 = vstv %s6729_s7  ;;  %s6861_s7 = sld [smem:[#allocation3 + $0x71]] }
 0x1e0   : > { %v1020_v45 = vmul.f32 %v6231_v44, %v1019_v4 }
 0x1e1   : > { %v6757_v46 = vpop.permute.xlu1 %1293  ;;  %v6763_v20 = vpop.permute.xlu0 %1291 }
 0x1e2   : > { %10672 = vst [vmem:[#allocation68_spill] sm:$0xff] %v6757_v46  ;;  %10673 = vst [vmem:[#allocation69_spill] sm:$0xff] %v6763_v20  ;;  %v1698_v46 = vmul.f32 %v1697_v52, %v6605_v37 }
 0x1e3   : > { %1692 = vrot.lane.b32.xlu1 %v1687_v12, %s5780_s30  ;;  %1690 = vrot.lane.b32.xlu0 %v1686_v26, %s5780_s30  ;;  %v1034_v12 = vstv %s6743_s3  ;;  %v833_v26 = vsel %vm612_vm0, %v6449_v14, %v6447_v13  ;;  %v1709_v13 = vmul.f32 %v1697_v52, %v6619_v57  ;;  %v1720_v14 = vstv %s6753_s12  ;;  %s5346_s3 = sld [smem:[#allocation3 + $0x101]] }
 0x1e4   : > { %v6815_v4 = vmul.f32 %v6231_v44, %v1034_v12  ;;  %v1247_v12 = vstv %s6772_s22  ;;  %s5138_s12 = sld [smem:[#allocation3 + $0x31]]  ;;  %s5318_s22 = sld [smem:[#allocation3 + $0xe5]] }
 0x1e5   : > { %v6778_v20 = vpop.permute.xlu1 %1305  ;;  %v6783_v2 = vpop.permute.xlu0 %1303 }
 0x1e6   : > { %10674 = vst [vmem:[#allocation70_spill] sm:$0xff] %v6778_v20  ;;  %10675 = vst [vmem:[#allocation71_spill] sm:$0xff] %v6783_v2  ;;  %v1710_v20 = vmul.f32 %v1697_v52, %v6614_v48  ;;  %v6797_v2 = vmul.f32 %v6231_v44, %v1025_v21  ;;  %v6812_v21 = vmul.f32 %v6231_v44, %v1031_v0 }
 0x1e7   : > { %1704 = vrot.lane.b32.xlu1 %v1699_v58, %s5781_s15  ;;  %1702 = vrot.lane.b32.xlu0 %v1698_v46, %s5781_s15  ;;  %v6809_v58 = vmul.f32 %v6231_v44, %v1028_v34  ;;  %v835_v52 = vadd.f32 %v833_v26, %v6329_v35  ;;  %v6829_v0 = vmul.f32 %v5547_v63, %v1037_v53  ;;  %v1244_v34 = vstv %s6765_s6  ;;  %s5282_s6 = sld [smem:[#allocation3 + $0xc1]] }
 0x1e8   : > { %10676 = vst [vmem:[#allocation72_spill] sm:$0xff] %v6797_v2  ;;  %v1238_v2 = vstv %s6759_s25  ;;  %v1722_v44 = vmul.f32 %v1720_v14, %v6600_v30  ;;  %v1250_v26 = vstv %s6775_s28  ;;  %v1743_v63 = vstv %s6803_s23  ;;  %s5210_s25 = sld [smem:[#allocation3 + $0x79]]  ;;  %s5139_s23 = sld [smem:[#allocation3 + $0x32]] }
 0x1e9   : > { %v6817_v46 = vpop.permute.xlu1 %1317  ;;  %v6823_v49 = vpop.permute.xlu0 %1315  ;;  %v931_v35 = vadd.f32 %v929_v33, %v835_v52  ;;  %v1239_v53 = vmul.f32 %v6471_v24, %v1238_v2  ;;  %v847_v33 = vadd.f32 %v845_v62, %v6350_v54  ;;  %v6856_v52 = vmul.f32 %v6471_v24, %v1244_v34  ;;  %s5354_s28 = sld [smem:[#allocation3 + $0x109]] }
 0x1ea   : > { %10677 = vst [vmem:[#allocation73_spill] sm:$0xff] %v6817_v46  ;;  %10678 = vst [vmem:[#allocation74_spill] sm:$0xff] %v6823_v49  ;;  %v1721_v49 = vmul.f32 %v1720_v14, %v6605_v37  ;;  %v6867_v2 = vmul.f32 %v6471_v24, %v1247_v12  ;;  %v6870_v54 = vmul.f32 %v6471_v24, %v1250_v26 }
 0x1eb   : > { %1715 = vrot.lane.b32.xlu1 %v1710_v20, %s5781_s15  ;;  %1713 = vrot.lane.b32.xlu0 %v1709_v13, %s5781_s15  ;;  %v6847_v20 = vmul.f32 %v6471_v24, %v1241_v15  ;;  %v857_v13 = vsel %vm612_vm0, %v6473_v25, %v6468_v22  ;;  %v1733_v22 = vmul.f32 %v1720_v14, %v6614_v48 }
 0x1ec   : > { %v943_v25 = vadd.f32 %v941_v18, %v847_v33  ;;  %v1021_v15 = vadd.f32 %v1020_v45, %v931_v35  ;;  %v1732_v62 = vmul.f32 %v1720_v14, %v6619_v57  ;;  %v859_v8 = vadd.f32 %v857_v13, %v6371_v11  ;;  %v10680_v33 = vld [vmem:[#allocation65_spill] sm:$0xff] }
 0x1ed   : > { %v6849_v46 = vpop.permute.xlu1 %1329  ;;  %v6859_v3 = vpop.permute.xlu0 %1327  ;;  %v1148_v34 = vsel %vm709_vm1, %v6661_v1, %v6659_v31  ;;  %v869_v45 = vsel %vm612_vm0, %v6481_v29, %v6479_v28  ;;  %v881_v11 = vsel %vm612_vm0, %v6489_v32, %v6487_v61  ;;  %v1064_v1 = vsel %vm612_vm0, %v6593_v56, %v6591_v16 }
 0x1ee   : > { %v1054_v9 = vadd.f32 %v1052_v6, %v1021_v15  ;;  %v1256_v31 = vstv %s6834_s29  ;;  %v1745_v28 = vmul.f32 %v1743_v63, %v6600_v30  ;;  %v1744_v29 = vmul.f32 %v1743_v63, %v6605_v37  ;;  %v10684_v15 = vld [vmem:[#allocation52_spill] sm:$0xff]  ;;  %s5175_s29 = sld [smem:[#allocation3 + $0x56]] }
 0x1ef   : > { %1727 = vrot.lane.b32.xlu1 %v1722_v44, %s5781_s15  ;;  %1725 = vrot.lane.b32.xlu0 %v1721_v49, %s5781_s15  ;;  %v6885_v44 = vmul.f32 %v6471_v24, %v1253_v5  ;;  %v955_v61 = vadd.f32 %v953_v10, %v859_v8  ;;  %v965_v32 = vsel %vm709_vm1, %v6545_v55, %v6543_v17 }
 0x1f0   : > { %v1024_v38 = vadd.f32 %v6792_v50, %v943_v25  ;;  %v1150_v39 = vadd.f32 %v1148_v34, %v1054_v9  ;;  %v871_v16 = vadd.f32 %v869_v45, %v6390_v23  ;;  %v883_v56 = vadd.f32 %v881_v11, %v6409_v36  ;;  %v10682_v25 = vld [vmem:[#allocation34_spill] sm:$0xff]  ;;  %v10687_v9 = vld [vmem:[#allocation43_spill] sm:$0xff] }
 0x1f1   : > { %v6887_v12 = vpop.permute.xlu1 %1341  ;;  %v6898_v49 = vpop.permute.xlu0 %1339  ;;  %v895_v14 = vadd.f32 %v893_v7, %v6425_v51  ;;  %v1160_v35 = vsel %vm709_vm1, %v6669_v59, %v6667_v42  ;;  %v905_v17 = vsel %vm612_vm0, %v6505_v43, %v6503_v47  ;;  %v1756_v23 = vmul.f32 %v1743_v63, %v6614_v48  ;;  %v10679_v42 = vld [vmem:[#allocation64_spill] sm:$0xff]  ;;  %v10686_v7 = vld [vmem:[#allocation42_spill] sm:$0xff] }
 0x1f2   : > { %v1066_v55 = vadd.f32 %v1064_v1, %v1024_v38  ;;  %v1766_v36 = vstv %s6861_s7  ;;  %v967_v18 = vadd.f32 %v965_v32, %v871_v16  ;;  %v977_v51 = vsel %vm709_vm1, %v6553_v27, %v6551_v41  ;;  %v10681_v47 = vld [vmem:[#allocation72_spill] sm:$0xff]  ;;  %v10683_v41 = vld [vmem:[#allocation35_spill] sm:$0xff]  ;;  %s5211_s7 = sld [smem:[#allocation3 + $0x7a]] }
 0x1f3   : > { %1738 = vrot.lane.b32.xlu1 %v1733_v22, %s5781_s15  ;;  %1736 = vrot.lane.b32.xlu0 %v1732_v62, %s5781_s15  ;;  %v1076_v59 = vsel %vm612_vm0, %v6607_v40, %v6602_v60  ;;  %v1271_v13 = vsel %vm612_vm0, %v10680_v33, %v10679_v42  ;;  %v1027_v43 = vadd.f32 %v10681_v47, %v955_v61  ;;  %v10685_v60 = vld [vmem:[#allocation53_spill] sm:$0xff]  ;;  %v10690_v38 = vld [vmem:[#allocation36_spill] sm:$0xff] }
 0x1f4   : > { %v1162_v5 = vadd.f32 %v1160_v35, %v1066_v55  ;;  %v1240_v6 = vadd.f32 %v1239_v53, %v1150_v39  ;;  %v1755_v22 = vmul.f32 %v1743_v63, %v6619_v57  ;;  %v917_v27 = vsel %vm612_vm0, %v10683_v41, %v10682_v25  ;;  %v10691_v39 = vld [vmem:[#allocation37_spill] sm:$0xff]  ;;  %v10692_v55 = vld [vmem:[#allocation54_spill] sm:$0xff]  ;;  %v10696_v41 = vld [vmem:[#allocation68_spill] sm:$0xff] }
 0x1f5   : > { %v6918_v26 = vpop.permute.xlu1 %1353  ;;  %v6925_v50 = vpop.permute.xlu0 %1351  ;;  %v1172_v40 = vsel %vm709_vm1, %v10685_v60, %v10684_v15  ;;  %v1768_v8 = vmul.f32 %v1766_v36, %v6600_v30  ;;  %v979_v10 = vadd.f32 %v977_v51, %v883_v56  ;;  %v1078_v34 = vadd.f32 %v1076_v59, %v1027_v43  ;;  %v10697_v15 = vld [vmem:[#allocation69_spill] sm:$0xff] }
 0x1f6   : > { %v1273_v45 = vadd.f32 %v1271_v13, %v1240_v6  ;;  %v1767_v53 = vmul.f32 %v1766_v36, %v6605_v37  ;;  %v1030_v63 = vadd.f32 %v6809_v58, %v967_v18  ;;  %v1088_v1 = vsel %vm612_vm0, %v10687_v9, %v10686_v7  ;;  %v10693_v18 = vld [vmem:[#allocation55_spill] sm:$0xff]  ;;  %v10702_v9 = vld [vmem:[#allocation56_spill] sm:$0xff] }
 0x1f7   : > { %1750 = vrot.lane.b32.xlu1 %v1745_v28, %s5781_s15  ;;  %1748 = vrot.lane.b32.xlu0 %v1744_v29, %s5781_s15  ;;  %v10688_v28 = vld [vmem:[#allocation66_spill] sm:$0xff]  ;;  %v10689_v29 = vld [vmem:[#allocation67_spill] sm:$0xff]  ;;  %v989_v16 = vsel %vm709_vm1, %v10691_v39, %v10690_v38  ;;  %v1174_v56 = vadd.f32 %v1172_v40, %v1078_v34  ;;  %v1243_v35 = vadd.f32 %v6847_v20, %v1162_v5  ;;  %v10694_v5 = vld [vmem:[#allocation44_spill] sm:$0xff] }
 0x1f8   : > { %v1283_v61 = vsel %vm612_vm0, %v10689_v29, %v10688_v28  ;;  %v1184_v51 = vsel %vm709_vm1, %v10693_v18, %v10692_v55  ;;  %v1779_v42 = vmul.f32 %v1766_v36, %v6614_v48  ;;  %v1778_v33 = vmul.f32 %v1766_v36, %v6619_v57  ;;  %v10698_v36 = vld [vmem:[#allocation38_spill] sm:$0xff] }
 0x1f9   : > { %v1366_v62 = vpop.permute.xlu1 %1365  ;;  %v1364_v11 = vpop.permute.xlu0 %1363  ;;  %v1090_v13 = vadd.f32 %v1088_v1, %v1030_v63  ;;  %v1033_v47 = vadd.f32 %v6812_v21, %v979_v10  ;;  %v1285_v43 = vadd.f32 %v1283_v61, %v1243_v35  ;;  %v991_v20 = vadd.f32 %v989_v16, %v895_v14  ;;  %v10701_v63 = vld [vmem:[#allocation33_spill] sm:$0xff]  ;;  %v10705_v16 = vld [vmem:[#allocation47_spill] sm:$0xff] }
 0x1fa   : > { %v1367_v32 = vsel %vm709_vm1, %v1364_v11, %v1366_v62  ;;  %v1295_v60 = vsel %vm612_vm0, %v10697_v15, %v10696_v41  ;;  %v10699_v62 = vld [vmem:[#allocation39_spill] sm:$0xff]  ;;  %v1246_v34 = vadd.f32 %v6856_v52, %v1174_v56  ;;  %v919_v7 = vadd.f32 %v917_v27, %v10701_v63  ;;  %v10703_v1 = vld [vmem:[#allocation57_spill] sm:$0xff]  ;;  %v10706_v27 = vld [vmem:[#allocation70_spill] sm:$0xff] }
 0x1fb   : > { %1761 = vrot.lane.b32.xlu1 %v1756_v23, %s5781_s15  ;;  %v1369_v58 = vadd.f32 %v1367_v32, %v1273_v45  ;;  %1759 = vrot.lane.b32.xlu0 %v1755_v22, %s5781_s15  ;;  %v1789_v23 = vstv %s6920_s0  ;;  %v10695_v22 = vld [vmem:[#allocation45_spill] sm:$0xff]  ;;  %v1001_v21 = vsel %vm709_vm1, %v10699_v62, %v10698_v36  ;;  %v1186_v10 = vadd.f32 %v1184_v51, %v1090_v13  ;;  %v10700_v45 = vld [vmem:[#allocation32_spill] sm:$0xff]  ;;  %v10707_v56 = vld [vmem:[#allocation71_spill] sm:$0xff]  ;;  %s5247_s0 = sld [smem:[#allocation3 + $0x9e]] }
 0x1fc   : > { %v1100_v25 = vsel %vm612_vm0, %v10695_v22, %v10694_v5  ;;  %v907_v11 = vadd.f32 %v905_v17, %v10700_v45  ;;  %v1196_v28 = vsel %vm709_vm1, %v10703_v1, %v10702_v9  ;;  %v1791_v29 = vmul.f32 %v1789_v23, %v6600_v30  ;;  %v10708_v13 = vld [vmem:[#allocation40_spill] sm:$0xff]  ;;  %v10711_v5 = vld [vmem:[#allocation59_spill] sm:$0xff]  ;;  %v10714_v62 = vld [vmem:[#allocation73_spill] sm:$0xff] }
 0x1fd   : > { %v1378_v59 = vpop.permute.xlu1 %1377  ;;  %v1376_v6 = vpop.permute.xlu0 %1375  ;;  %1456 = vst [vmem:[#allocation2] sm:$0xff] %v1369_v58  ;;  %v1102_v61 = vadd.f32 %v1100_v25, %v1033_v47  ;;  %v1297_v32 = vadd.f32 %v1295_v60, %v1246_v34  ;;  %v1790_v38 = vmul.f32 %v1789_v23, %v6605_v37  ;;  %v1307_v35 = vsel %vm612_vm0, %v10707_v56, %v10706_v27  ;;  %v10709_v47 = vld [vmem:[#allocation41_spill] sm:$0xff]  ;;  %v10712_v60 = vld [vmem:[#allocation48_spill] sm:$0xff] }
 0x1fe   : > { %v1379_v40 = vsel %vm709_vm1, %v1376_v6, %v1378_v59  ;;  %v1003_v39 = vadd.f32 %v1001_v21, %v907_v11  ;;  %v1036_v55 = vadd.f32 %v6815_v4, %v991_v20  ;;  %v1249_v51 = vadd.f32 %v6867_v2, %v1186_v10  ;;  %v10710_v6 = vld [vmem:[#allocation58_spill] sm:$0xff]  ;;  %v10717_v63 = vld [vmem:[#allocation61_spill] sm:$0xff] }
 0x1ff   : > { %1773 = vrot.lane.b32.xlu1 %v1768_v8, %s5781_s15  ;;  %v1381_v14 = vadd.f32 %v1379_v40, %v1285_v43  ;;  %1771 = vrot.lane.b32.xlu0 %v1767_v53, %s5781_s15  ;;  %v10704_v53 = vld [vmem:[#allocation46_spill] sm:$0xff]  ;;  %v1198_v18 = vadd.f32 %v1196_v28, %v1102_v61  ;;  %v1013_v43 = vsel %vm709_vm1, %v10709_v47, %v10708_v13  ;;  %v1812_v15 = vstv %s6971_s21  ;;  %v10713_v40 = vld [vmem:[#allocation49_spill] sm:$0xff]  ;;  %s5283_s21 = sld [smem:[#allocation3 + $0xc2]] }
 0x200   : > { %v1112_v17 = vsel %vm612_vm0, %v10705_v16, %v10704_v53  ;;  %v1208_v22 = vsel %vm709_vm1, %v10711_v5, %v10710_v6  ;;  %v1801_v4 = vmul.f32 %v1789_v23, %v6619_v57  ;;  %v1309_v41 = vadd.f32 %v1307_v35, %v1249_v51  ;;  %v10715_v21 = vld [vmem:[#allocation74_spill] sm:$0xff] }
 0x201   : > { %v1390_v8 = vpop.permute.xlu1 %1389  ;;  %v1388_v52 = vpop.permute.xlu0 %1387  ;;  %1460 = vst [vmem:[#allocation2 + $0x8] sm:$0xff] %v1381_v14  ;;  %v1114_v20 = vadd.f32 %v1112_v17, %v1036_v55  ;;  %v1124_v36 = vsel %vm612_vm0, %v10713_v40, %v10712_v60  ;;  %v1319_v10 = vsel %vm612_vm0, %v10715_v21, %v10714_v62  ;;  %v1252_v45 = vadd.f32 %v6870_v54, %v1198_v18  ;;  %v10720_v35 = vld [vmem:[#allocation62_spill] sm:$0xff] }
 0x202   : > { %v1391_v58 = vsel %vm709_vm1, %v1388_v52, %v1390_v8  ;;  %v1257_v1 = vmul.f32 %v6471_v24, %v1256_v31  ;;  %v1259_v28 = vstv %s6991_s11  ;;  %v1814_v54 = vmul.f32 %v1812_v15, %v6600_v30  ;;  %v10719_v52 = vld [vmem:[#allocation51_spill] sm:$0xff]  ;;  %s5319_s11 = sld [smem:[#allocation3 + $0xe6]] }
 0x203   : > { %1784 = vrot.lane.b32.xlu1 %v1779_v42, %s5781_s15  ;;  %v1393_v59 = vadd.f32 %v1391_v58, %v1297_v32  ;;  %1782 = vrot.lane.b32.xlu0 %v1778_v33, %s5781_s15  ;;  %v1802_v42 = vmul.f32 %v1789_v23, %v6614_v48  ;;  %v1039_v33 = vadd.f32 %v6829_v0, %v1003_v39  ;;  %v10716_v0 = vld [vmem:[#allocation60_spill] sm:$0xff]  ;;  %v10718_v32 = vld [vmem:[#allocation50_spill] sm:$0xff]  ;;  %v10721_v58 = vld [vmem:[#allocation63_spill] sm:$0xff]  ;;  %v1858_v62 = vstv %s5346_s3  ;;  %s5111_s3 = sld [smem:[#allocation3 + $0x16]] }
 0x204   : > { %v1015_v23 = vadd.f32 %v1013_v43, %v919_v7  ;;  %v1210_v14 = vadd.f32 %v1208_v22, %v1114_v20  ;;  %v1220_v9 = vsel %vm709_vm1, %v10717_v63, %v10716_v0  ;;  %v1321_v7 = vadd.f32 %v1319_v10, %v1252_v45 }
 0x205   : > { %v1402_v25 = vpop.permute.xlu1 %1401  ;;  %v1400_v2 = vpop.permute.xlu0 %1399  ;;  %1464 = vst [vmem:[#allocation2 + $0x10] sm:$0xff] %v1393_v59  ;;  %v1331_v39 = vsel %vm612_vm0, %v6859_v3, %v6849_v46  ;;  %v1813_v31 = vmul.f32 %v1812_v15, %v6605_v37  ;;  %v1232_v55 = vsel %vm709_vm1, %v10721_v58, %v10720_v35  ;;  %v1260_v51 = vmul.f32 %v6471_v24, %v1259_v28 }
 0x206   : > { %v1403_v34 = vsel %vm709_vm1, %v1400_v2, %v1402_v25  ;;  %v1042_v16 = vadd.f32 %v6843_v19, %v1015_v23  ;;  %v1255_v27 = vadd.f32 %v6885_v44, %v1210_v14  ;;  %v1343_v19 = vsel %vm612_vm0, %v6898_v49, %v6887_v12 }
 0x207   : > { %1796 = vrot.lane.b32.xlu1 %v1791_v29, %s5781_s15  ;;  %v1405_v11 = vadd.f32 %v1403_v34, %v1309_v41  ;;  %1794 = vrot.lane.b32.xlu0 %v1790_v38, %s5781_s15  ;;  %v1126_v29 = vadd.f32 %v1124_v36, %v1039_v33  ;;  %v1136_v38 = vsel %vm612_vm0, %v10719_v52, %v10718_v32  ;;  %v1835_v24 = vstv %s7026_s5  ;;  %s5355_s5 = sld [smem:[#allocation3 + $0x10a]] }
 0x208   : > { %v1138_v3 = vadd.f32 %v1136_v38, %v1042_v16  ;;  %v1333_v18 = vadd.f32 %v1331_v39, %v1255_v27  ;;  %v1825_v13 = vmul.f32 %v1812_v15, %v6614_v48  ;;  %v1824_v47 = vmul.f32 %v1812_v15, %v6619_v57 }
 0x209   : > { %v1414_v8 = vpop.permute.xlu1 %1413  ;;  %v1412_v61 = vpop.permute.xlu0 %1411  ;;  %v1222_v17 = vadd.f32 %v1220_v9, %v1126_v29  ;;  %1468 = vst [vmem:[#allocation2 + $0x18] sm:$0xff] %v1405_v11  ;;  %v1355_v12 = vsel %vm612_vm0, %v6925_v50, %v6918_v26  ;;  %v1836_v2 = vmul.f32 %v1835_v24, %v6605_v37  ;;  %v1848_v26 = vmul.f32 %v1835_v24, %v6614_v48  ;;  %v7110_v29 = vld [vmem:[%s6075_s18 + $0x10] sm:$0x3] }
 0x20a   : > { %v1415_v53 = vsel %vm709_vm1, %v1412_v61, %v1414_v8  ;;  %v1234_v43 = vadd.f32 %v1232_v55, %v1138_v3  ;;  %v1847_v36 = vmul.f32 %v1835_v24, %v6619_v57  ;;  %v1860_v34 = vmul.f32 %v1858_v62, %v6600_v30  ;;  %v7105_v8 = vld [vmem:[%s6075_s18 + $0x18] sm:$0x3] }
 0x20b   : > { %1807 = vrot.lane.b32.xlu1 %v1802_v42, %s5781_s15  ;;  %v1417_v56 = vadd.f32 %v1415_v53, %v1321_v7  ;;  %1805 = vrot.lane.b32.xlu0 %v1801_v4, %s5781_s15  ;;  %v1258_v6 = vadd.f32 %v1257_v1, %v1222_v17  ;;  %v1837_v4 = vmul.f32 %v1835_v24, %v6600_v30  ;;  %v7091_v30 = vld [vmem:[%s6068_s10 + $0x18] sm:$0xfc]  ;;  %v1926_v63 = vstv %s5102_s4  ;;  %s5147_s4 = sld [smem:[#allocation3 + $0x3a]] }
 0x20c   : > { %v1261_v20 = vadd.f32 %v1260_v51, %v1234_v43  ;;  %v1859_v23 = vmul.f32 %v1858_v62, %v6605_v37  ;;  %v1871_v11 = vmul.f32 %v1858_v62, %v6614_v48  ;;  %v1870_v0 = vmul.f32 %v1858_v62, %v6619_v57  ;;  %v7096_v37 = vld [vmem:[%s6068_s10 + $0x10] sm:$0xfc] }
 0x20d   : > { %v1426_v46 = vpop.permute.xlu1 %1425  ;;  %v1424_v59 = vpop.permute.xlu0 %1423  ;;  %1472 = vst [vmem:[#allocation2 + $0x20] sm:$0xff] %v1417_v56  ;;  %v1345_v25 = vadd.f32 %v1343_v19, %v1258_v6  ;;  %v1928_v28 = vmul.f32 %v7091_v30, %v1926_v63  ;;  %v1927_v48 = vmul.f32 %v7096_v37, %v1926_v63  ;;  %v1939_v61 = vmul.f32 %v7105_v8, %v1926_v63 }
 0x20e   : > { %v1427_v44 = vsel %vm709_vm1, %v1424_v59, %v1426_v46  ;;  %v1357_v33 = vadd.f32 %v1355_v12, %v1261_v20  ;;  %v1949_v32 = vstv %s5138_s12  ;;  %v1972_v56 = vstv %s5174_s24  ;;  %s5183_s12 = sld [smem:[#allocation3 + $0x5e]]  ;;  %s5219_s24 = sld [smem:[#allocation3 + $0x82]] }
 0x20f   : > { %1819 = vrot.lane.b32.xlu1 %v1814_v54, %s5781_s15  ;;  %v1429_v5 = vadd.f32 %v1427_v44, %v1333_v18  ;;  %1817 = vrot.lane.b32.xlu0 %v1813_v31, %s5781_s15  ;;  %v1938_v54 = vmul.f32 %v7110_v29, %v1926_v63  ;;  %v1951_v39 = vmul.f32 %v7091_v30, %v1949_v32  ;;  %v1995_v19 = vstv %s5210_s25  ;;  %s5255_s25 = sld [smem:[#allocation3 + $0xa6]] }
 0x210   : > { %v1950_v53 = vmul.f32 %v7096_v37, %v1949_v32  ;;  %v1962_v17 = vmul.f32 %v7105_v8, %v1949_v32  ;;  %v1961_v27 = vmul.f32 %v7110_v29, %v1949_v32  ;;  %v1974_v55 = vmul.f32 %v7091_v30, %v1972_v56 }
 0x211   : > { %v1438_v22 = vpop.permute.xlu1 %1437  ;;  %v1436_v42 = vpop.permute.xlu0 %1435  ;;  %1476 = vst [vmem:[#allocation2 + $0x28] sm:$0xff] %v1429_v5  ;;  %v1973_v46 = vmul.f32 %v7096_v37, %v1972_v56  ;;  %v1985_v51 = vmul.f32 %v7105_v8, %v1972_v56  ;;  %v1984_v59 = vmul.f32 %v7110_v29, %v1972_v56  ;;  %v1996_v43 = vmul.f32 %v7096_v37, %v1995_v19 }
 0x212   : > { %v1439_v49 = vsel %vm709_vm1, %v1436_v42, %v1438_v22  ;;  %v2008_v24 = vmul.f32 %v7105_v8, %v1995_v19  ;;  %v2007_v22 = vmul.f32 %v7110_v29, %v1995_v19 }
 0x213   : > { %1830 = vrot.lane.b32.xlu1 %v1825_v13, %s5781_s15  ;;  %v1441_v41 = vadd.f32 %v1439_v49, %v1345_v25  ;;  %1828 = vrot.lane.b32.xlu0 %v1824_v47, %s5781_s15  ;;  %v1997_v47 = vmul.f32 %v7091_v30, %v1995_v19  ;;  %v2018_v25 = vstv %s5246_s26  ;;  %s5291_s26 = sld [smem:[#allocation3 + $0xca]] }
 0x214   : > { %v2020_v49 = vmul.f32 %v7091_v30, %v2018_v25 }
 0x215   : > { %v1450_v15 = vpop.permute.xlu1 %1449  ;;  %v1448_v60 = vpop.permute.xlu0 %1447  ;;  %1480 = vst [vmem:[#allocation2 + $0x30] sm:$0xff] %v1441_v41 }
 0x216   : > { %v1451_v40 = vsel %vm709_vm1, %v1448_v60, %v1450_v15  ;;  %v2030_v15 = vmul.f32 %v7110_v29, %v2018_v25 }
 0x217   : > { %1842 = vrot.lane.b32.xlu1 %v1837_v4, %s5781_s15  ;;  %v1453_v50 = vadd.f32 %v1451_v40, %v1357_v33  ;;  %1840 = vrot.lane.b32.xlu0 %v1836_v2, %s5781_s15  ;;  %v2019_v4 = vmul.f32 %v7096_v37, %v2018_v25  ;;  %v2031_v2 = vmul.f32 %v7105_v8, %v2018_v25  ;;  %v2041_v33 = vstv %s5282_s6  ;;  %s5327_s6 = sld [smem:[#allocation3 + $0xee]] }
 0x219   : > { %v7074_v21 = vpop.permute.xlu1 %1520  ;;  %v7076_v10 = vpop.permute.xlu0 %1518  ;;  %1484 = vst [vmem:[#allocation2 + $0x38] sm:$0xff] %v1453_v50  ;;  %v2042_v50 = vmul.f32 %v7096_v37, %v2041_v33 }
 0x21b   : > { %1853 = vrot.lane.b32.xlu1 %v1848_v26, %s5781_s15  ;;  %1851 = vrot.lane.b32.xlu0 %v1847_v36, %s5781_s15  ;;  %v2043_v26 = vmul.f32 %v7091_v30, %v2041_v33 }
 0x21d   : > { %v7082_v14 = vpop.permute.xlu1 %1531  ;;  %v7084_v45 = vpop.permute.xlu0 %1529 }
 0x21f   : > { %1865 = vrot.lane.b32.xlu1 %v1860_v34, %s5781_s15  ;;  %1863 = vrot.lane.b32.xlu0 %v1859_v23, %s5781_s15  ;;  %v2054_v34 = vmul.f32 %v7105_v8, %v2041_v33  ;;  %v2053_v23 = vmul.f32 %v7110_v29, %v2041_v33  ;;  %v2133_v33 = vstv %s5139_s23  ;;  %s5184_s23 = sld [smem:[#allocation3 + $0x5f]] }
 0x221   : > { %v7093_v9 = vpop.permute.xlu1 %1543  ;;  %v7098_v1 = vpop.permute.xlu0 %1541 }
 0x223   : > { %1876 = vrot.lane.b32.xlu1 %v1871_v11, %s5781_s15  ;;  %1874 = vrot.lane.b32.xlu0 %v1870_v0, %s5781_s15  ;;  %v2064_v11 = vstv %s5318_s22  ;;  %s5363_s22 = sld [smem:[#allocation3 + $0x112]] }
 0x224   : > { %v2077_v32 = vmul.f32 %v7105_v8, %v2064_v11 }
 0x225   : > { %v7107_v57 = vpop.permute.xlu1 %1554  ;;  %v7112_v7 = vpop.permute.xlu0 %1552 }
 0x227   : > { %1933 = vrot.lane.b32.xlu1 %v1928_v28, %s5780_s30  ;;  %1931 = vrot.lane.b32.xlu0 %v1927_v48, %s5780_s30  ;;  %v2066_v28 = vmul.f32 %v7091_v30, %v2064_v11  ;;  %v2065_v48 = vmul.f32 %v7096_v37, %v2064_v11 }
 0x229   : > { %v7118_v52 = vpop.permute.xlu1 %1566  ;;  %v7120_v38 = vpop.permute.xlu0 %1564 }
 0x22b   : > { %1944 = vrot.lane.b32.xlu1 %v1939_v61, %s5780_s30  ;;  %1942 = vrot.lane.b32.xlu0 %v1938_v54, %s5780_s30 }
 0x22d   : > { %v7126_v31 = vpop.permute.xlu1 %1577  ;;  %v7128_v16 = vpop.permute.xlu0 %1575 }
 0x22f   : > { %1956 = vrot.lane.b32.xlu1 %v1951_v39, %s5780_s30  ;;  %1954 = vrot.lane.b32.xlu0 %v1950_v53, %s5780_s30  ;;  %v2076_v39 = vmul.f32 %v7110_v29, %v2064_v11  ;;  %v2087_v53 = vstv %s5354_s28  ;;  %s5112_s28 = sld [smem:[#allocation3 + $0x17]] }
 0x230   : > { %v2089_v56 = vmul.f32 %v7091_v30, %v2087_v53  ;;  %v2099_v19 = vmul.f32 %v7110_v29, %v2087_v53 }
 0x231   : > { %v7134_v35 = vpop.permute.xlu1 %1589  ;;  %v7136_v58 = vpop.permute.xlu0 %1587 }
 0x233   : > { %1967 = vrot.lane.b32.xlu1 %v1962_v17, %s5780_s30  ;;  %1965 = vrot.lane.b32.xlu0 %v1961_v27, %s5780_s30 }
 0x235   : > { %v7142_v3 = vpop.permute.xlu1 %1600  ;;  %v7144_v18 = vpop.permute.xlu0 %1598 }
 0x237   : > { %1979 = vrot.lane.b32.xlu1 %v1974_v55, %s5780_s30  ;;  %1977 = vrot.lane.b32.xlu0 %v1973_v46, %s5780_s30  ;;  %v2088_v55 = vmul.f32 %v7096_v37, %v2087_v53 }
 0x239   : > { %v7150_v44 = vpop.permute.xlu1 %1612  ;;  %v7152_v13 = vpop.permute.xlu0 %1610 }
 0x23b   : > { %1990 = vrot.lane.b32.xlu1 %v1985_v51, %s5780_s30  ;;  %1988 = vrot.lane.b32.xlu0 %v1984_v59, %s5780_s30  ;;  %v2100_v59 = vmul.f32 %v7105_v8, %v2087_v53 }
 0x23d   : > { %v7158_v6 = vpop.permute.xlu1 %1623  ;;  %v7160_v5 = vpop.permute.xlu0 %1621 }
 0x23f   : > { %2002 = vrot.lane.b32.xlu1 %v1997_v47, %s5780_s30  ;;  %2000 = vrot.lane.b32.xlu0 %v1996_v43, %s5780_s30  ;;  %v2110_v47 = vstv %s5103_s9  ;;  %s5148_s9 = sld [smem:[#allocation3 + $0x3b]] }
 0x240   : > { %v2111_v25 = vmul.f32 %v7096_v37, %v2110_v47 }
 0x241   : > { %v7166_v42 = vpop.permute.xlu1 %1635  ;;  %v7168_v12 = vpop.permute.xlu0 %1633 }
 0x243   : > { %2013 = vrot.lane.b32.xlu1 %v2008_v24, %s5780_s30  ;;  %2011 = vrot.lane.b32.xlu0 %v2007_v22, %s5780_s30  ;;  %v2112_v22 = vmul.f32 %v7091_v30, %v2110_v47 }
 0x245   : > { %v7174_v20 = vpop.permute.xlu1 %1646  ;;  %v7176_v41 = vpop.permute.xlu0 %1644 }
 0x247   : > { %2025 = vrot.lane.b32.xlu1 %v2020_v49, %s5780_s30  ;;  %2023 = vrot.lane.b32.xlu0 %v2019_v4, %s5780_s30 }
 0x249   : > { %v7182_v60 = vpop.permute.xlu1 %1658  ;;  %v7184_v40 = vpop.permute.xlu0 %1656 }
 0x24b   : > { %2036 = vrot.lane.b32.xlu1 %v2031_v2, %s5780_s30  ;;  %2034 = vrot.lane.b32.xlu0 %v2030_v15, %s5780_s30  ;;  %v2123_v2 = vmul.f32 %v7105_v8, %v2110_v47  ;;  %v2122_v15 = vmul.f32 %v7110_v29, %v2110_v47 }
 0x24d   : > { %v7190_v36 = vpop.permute.xlu1 %1669  ;;  %v7192_v62 = vpop.permute.xlu0 %1667 }
 0x24f   : > { %2048 = vrot.lane.b32.xlu1 %v2043_v26, %s5780_s30  ;;  %2046 = vrot.lane.b32.xlu0 %v2042_v50, %s5780_s30 }
 0x251   : > { %v7198_v0 = vpop.permute.xlu1 %1681  ;;  %v7200_v63 = vpop.permute.xlu0 %1679 }
 0x253   : > { %2059 = vrot.lane.b32.xlu1 %v2054_v34, %s5780_s30  ;;  %2057 = vrot.lane.b32.xlu0 %v2053_v23, %s5780_s30  ;;  %v2135_v34 = vmul.f32 %v7091_v30, %v2133_v33  ;;  %v2134_v23 = vmul.f32 %v7096_v37, %v2133_v33 }
 0x255   : > { %v7206_v61 = vpop.permute.xlu1 %1692  ;;  %v7208_v54 = vpop.permute.xlu0 %1690 }
 0x256   : > { %10722 = vst [vmem:[#allocation64_spill] sm:$0xff] %v7206_v61  ;;  %10723 = vst [vmem:[#allocation65_spill] sm:$0xff] %v7208_v54 }
 0x257   : > { %2071 = vrot.lane.b32.xlu1 %v2066_v28, %s5780_s30  ;;  %2069 = vrot.lane.b32.xlu0 %v2065_v48, %s5780_s30  ;;  %v2146_v48 = vmul.f32 %v7105_v8, %v2133_v33 }
 0x259   : > { %v7214_v17 = vpop.permute.xlu1 %1704  ;;  %v7216_v27 = vpop.permute.xlu0 %1702 }
 0x25b   : > { %2082 = vrot.lane.b32.xlu1 %v2077_v32, %s5780_s30  ;;  %2080 = vrot.lane.b32.xlu0 %v2076_v39, %s5780_s30  ;;  %v2145_v32 = vmul.f32 %v7110_v29, %v2133_v33  ;;  %v2156_v39 = vstv %s5175_s29  ;;  %s5220_s29 = sld [smem:[#allocation3 + $0x83]] }
 0x25d   : > { %v7222_v46 = vpop.permute.xlu1 %1715  ;;  %v7224_v51 = vpop.permute.xlu0 %1713 }
 0x25e   : > { %10724 = vst [vmem:[#allocation72_spill] sm:$0xff] %v7222_v46  ;;  %10725 = vst [vmem:[#allocation34_spill] sm:$0xff] %v7224_v51 }
 0x25f   : > { %2094 = vrot.lane.b32.xlu1 %v2089_v56, %s5780_s30  ;;  %2092 = vrot.lane.b32.xlu0 %v2088_v55, %s5780_s30  ;;  %v2158_v55 = vmul.f32 %v7091_v30, %v2156_v39 }
 0x261   : > { %v7230_v43 = vpop.permute.xlu1 %1727  ;;  %v7232_v24 = vpop.permute.xlu0 %1725 }
 0x262   : > { %10726 = vst [vmem:[#allocation35_spill] sm:$0xff] %v7230_v43  ;;  %10727 = vst [vmem:[#allocation52_spill] sm:$0xff] %v7232_v24 }
 0x263   : > { %2105 = vrot.lane.b32.xlu1 %v2100_v59, %s5780_s30  ;;  %2103 = vrot.lane.b32.xlu0 %v2099_v19, %s5780_s30  ;;  %v2157_v59 = vmul.f32 %v7096_v37, %v2156_v39 }
 0x265   : > { %v7238_v49 = vpop.permute.xlu1 %1738  ;;  %v7240_v4 = vpop.permute.xlu0 %1736 }
 0x266   : > { %10728 = vst [vmem:[#allocation53_spill] sm:$0xff] %v7238_v49  ;;  %10729 = vst [vmem:[#allocation42_spill] sm:$0xff] %v7240_v4 }
 0x267   : > { %2117 = vrot.lane.b32.xlu1 %v2112_v22, %s5781_s15  ;;  %2115 = vrot.lane.b32.xlu0 %v2111_v25, %s5781_s15  ;;  %v2169_v22 = vmul.f32 %v7105_v8, %v2156_v39  ;;  %v2168_v25 = vmul.f32 %v7110_v29, %v2156_v39 }
 0x269   : > { %v7246_v26 = vpop.permute.xlu1 %1750  ;;  %v7248_v50 = vpop.permute.xlu0 %1748 }
 0x26a   : > { %10730 = vst [vmem:[#allocation43_spill] sm:$0xff] %v7246_v26  ;;  %10731 = vst [vmem:[#allocation66_spill] sm:$0xff] %v7248_v50 }
 0x26b   : > { %2128 = vrot.lane.b32.xlu1 %v2123_v2, %s5781_s15  ;;  %2126 = vrot.lane.b32.xlu0 %v2122_v15, %s5781_s15  ;;  %v2179_v2 = vstv %s5211_s7  ;;  %s5256_s7 = sld [smem:[#allocation3 + $0xa7]] }
 0x26c   : > { %v2192_v39 = vmul.f32 %v7105_v8, %v2179_v2 }
 0x26d   : > { %v7254_v11 = vpop.permute.xlu1 %1761  ;;  %v7256_v28 = vpop.permute.xlu0 %1759 }
 0x26e   : > { %10732 = vst [vmem:[#allocation67_spill] sm:$0xff] %v7254_v11  ;;  %10733 = vst [vmem:[#allocation36_spill] sm:$0xff] %v7256_v28 }
 0x26f   : > { %2140 = vrot.lane.b32.xlu1 %v2135_v34, %s5781_s15  ;;  %2138 = vrot.lane.b32.xlu0 %v2134_v23, %s5781_s15  ;;  %v2181_v34 = vmul.f32 %v7091_v30, %v2179_v2  ;;  %v2180_v23 = vmul.f32 %v7096_v37, %v2179_v2 }
 0x271   : > { %v7262_v53 = vpop.permute.xlu1 %1773  ;;  %v7264_v56 = vpop.permute.xlu0 %1771 }
 0x272   : > { %10734 = vst [vmem:[#allocation37_spill] sm:$0xff] %v7262_v53  ;;  %10735 = vst [vmem:[#allocation54_spill] sm:$0xff] %v7264_v56 }
 0x273   : > { %2151 = vrot.lane.b32.xlu1 %v2146_v48, %s5781_s15  ;;  %2149 = vrot.lane.b32.xlu0 %v2145_v32, %s5781_s15 }
 0x275   : > { %v7270_v19 = vpop.permute.xlu1 %1784  ;;  %v7272_v47 = vpop.permute.xlu0 %1782 }
 0x276   : > { %10736 = vst [vmem:[#allocation55_spill] sm:$0xff] %v7270_v19  ;;  %10737 = vst [vmem:[#allocation44_spill] sm:$0xff] %v7272_v47 }
 0x277   : > { %2163 = vrot.lane.b32.xlu1 %v2158_v55, %s5781_s15  ;;  %2161 = vrot.lane.b32.xlu0 %v2157_v59, %s5781_s15  ;;  %v2191_v55 = vmul.f32 %v7110_v29, %v2179_v2  ;;  %v2202_v59 = vstv %s5247_s0  ;;  %s5292_s0 = sld [smem:[#allocation3 + $0xcb]] }
 0x278   : > { %v2215_v2 = vmul.f32 %v7105_v8, %v2202_v59 }
 0x279   : > { %v7278_v15 = vpop.permute.xlu1 %1796  ;;  %v7280_v33 = vpop.permute.xlu0 %1794 }
 0x27a   : > { %10738 = vst [vmem:[#allocation45_spill] sm:$0xff] %v7278_v15  ;;  %10739 = vst [vmem:[#allocation68_spill] sm:$0xff] %v7280_v33 }
 0x27b   : > { %2174 = vrot.lane.b32.xlu1 %v2169_v22, %s5781_s15  ;;  %2172 = vrot.lane.b32.xlu0 %v2168_v25, %s5781_s15  ;;  %v2204_v25 = vmul.f32 %v7091_v30, %v2202_v59 }
 0x27d   : > { %v7286_v48 = vpop.permute.xlu1 %1807  ;;  %v7288_v32 = vpop.permute.xlu0 %1805 }
 0x27e   : > { %10740 = vst [vmem:[#allocation69_spill] sm:$0xff] %v7286_v48  ;;  %10741 = vst [vmem:[#allocation38_spill] sm:$0xff] %v7288_v32 }
 0x27f   : > { %2186 = vrot.lane.b32.xlu1 %v2181_v34, %s5781_s15  ;;  %2184 = vrot.lane.b32.xlu0 %v2180_v23, %s5781_s15  ;;  %v2203_v34 = vmul.f32 %v7096_v37, %v2202_v59  ;;  %v2214_v23 = vmul.f32 %v7110_v29, %v2202_v59 }
 0x281   : > { %v7294_v22 = vpop.permute.xlu1 %1819  ;;  %v7296_v33 = vpop.permute.xlu0 %1817 }
 0x282   : > { %10742 = vst [vmem:[#allocation39_spill] sm:$0xff] %v7294_v22  ;;  %10743 = vst [vmem:[#allocation32_spill] sm:$0xff] %v7296_v33  ;;  %v2225_v33 = vstv %s5283_s21  ;;  %s5328_s21 = sld [smem:[#allocation3 + $0xef]] }
 0x283   : > { %2197 = vrot.lane.b32.xlu1 %v2192_v39, %s5781_s15  ;;  %2195 = vrot.lane.b32.xlu0 %v2191_v55, %s5781_s15  ;;  %v2227_v55 = vmul.f32 %v7091_v30, %v2225_v33  ;;  %v2238_v59 = vmul.f32 %v7105_v8, %v2225_v33 }
 0x285   : > { %v7302_v32 = vpop.permute.xlu1 %1830  ;;  %v7304_v48 = vpop.permute.xlu0 %1828 }
 0x286   : > { %10744 = vst [vmem:[#allocation33_spill] sm:$0xff] %v7302_v32  ;;  %10745 = vst [vmem:[#allocation56_spill] sm:$0xff] %v7304_v48 }
 0x287   : > { %2209 = vrot.lane.b32.xlu1 %v2204_v25, %s5781_s15  ;;  %2207 = vrot.lane.b32.xlu0 %v2203_v34, %s5781_s15  ;;  %v2226_v25 = vmul.f32 %v7096_v37, %v2225_v33  ;;  %v2237_v34 = vmul.f32 %v7110_v29, %v2225_v33 }
 0x289   : > { %v7310_v39 = vpop.permute.xlu1 %1842  ;;  %v7312_v22 = vpop.permute.xlu0 %1840 }
 0x28a   : > { %10746 = vst [vmem:[#allocation57_spill] sm:$0xff] %v7310_v39  ;;  %10747 = vst [vmem:[#allocation46_spill] sm:$0xff] %v7312_v22  ;;  %v2248_v22 = vstv %s5319_s11  ;;  %s5364_s11 = sld [smem:[#allocation3 + $0x113]] }
 0x28b   : > { %2220 = vrot.lane.b32.xlu1 %v2215_v2, %s5781_s15  ;;  %2218 = vrot.lane.b32.xlu0 %v2214_v23, %s5781_s15  ;;  %v2250_v23 = vmul.f32 %v7091_v30, %v2248_v22  ;;  %v2261_v33 = vmul.f32 %v7105_v8, %v2248_v22 }
 0x28d   : > { %v7318_v48 = vpop.permute.xlu1 %1853  ;;  %v7320_v32 = vpop.permute.xlu0 %1851 }
 0x28e   : > { %10748 = vst [vmem:[#allocation47_spill] sm:$0xff] %v7318_v48  ;;  %10749 = vst [vmem:[#allocation70_spill] sm:$0xff] %v7320_v32 }
 0x28f   : > { %2232 = vrot.lane.b32.xlu1 %v2227_v55, %s5781_s15  ;;  %2230 = vrot.lane.b32.xlu0 %v2226_v25, %s5781_s15  ;;  %v2249_v55 = vmul.f32 %v7096_v37, %v2248_v22  ;;  %v2260_v25 = vmul.f32 %v7110_v29, %v2248_v22 }
 0x291   : > { %v7326_v2 = vpop.permute.xlu1 %1865  ;;  %v7328_v39 = vpop.permute.xlu0 %1863 }
 0x292   : > { %10750 = vst [vmem:[#allocation71_spill] sm:$0xff] %v7326_v2  ;;  %10751 = vst [vmem:[#allocation40_spill] sm:$0xff] %v7328_v39 }
 0x293   : > { %2243 = vrot.lane.b32.xlu1 %v2238_v59, %s5781_s15  ;;  %2241 = vrot.lane.b32.xlu0 %v2237_v34, %s5781_s15  ;;  %v2271_v59 = vstv %s5355_s5  ;;  %s5120_s5 = sld [smem:[#allocation3 + $0x1f]] }
 0x294   : > { %v2284_v22 = vmul.f32 %v7105_v8, %v2271_v59 }
 0x295   : > { %v7334_v32 = vpop.permute.xlu1 %1876  ;;  %v7336_v48 = vpop.permute.xlu0 %1874 }
 0x296   : > { %10752 = vst [vmem:[#allocation41_spill] sm:$0xff] %v7334_v32  ;;  %10753 = vst [vmem:[#allocation58_spill] sm:$0xff] %v7336_v48  ;;  %v2273_v48 = vmul.f32 %v7091_v30, %v2271_v59  ;;  %v2339_v30 = vstv %s5111_s3  ;;  %s5156_s3 = sld [smem:[#allocation3 + $0x43]] }
 0x297   : > { %2255 = vrot.lane.b32.xlu1 %v2250_v23, %s5781_s15  ;;  %2253 = vrot.lane.b32.xlu0 %v2249_v55, %s5781_s15  ;;  %v2272_v23 = vmul.f32 %v7096_v37, %v2271_v59  ;;  %v7364_v37 = vld [vmem:[%s6068_s10 + $0x20] sm:$0xfc] }
 0x298   : > { %v2340_v8 = vmul.f32 %v7364_v37, %v2339_v30 }
 0x299   : > { %v7342_v39 = vpop.permute.xlu1 %1933  ;;  %v7344_v34 = vpop.permute.xlu0 %1931 }
 0x29a   : > { %10754 = vst [vmem:[#allocation59_spill] sm:$0xff] %v7342_v39  ;;  %10755 = vst [vmem:[#allocation48_spill] sm:$0xff] %v7344_v34  ;;  %v7359_v34 = vld [vmem:[%s6068_s10 + $0x28] sm:$0xfc] }
 0x29b   : > { %2266 = vrot.lane.b32.xlu1 %v2261_v33, %s5781_s15  ;;  %2264 = vrot.lane.b32.xlu0 %v2260_v25, %s5781_s15  ;;  %v2283_v33 = vmul.f32 %v7110_v29, %v2271_v59  ;;  %v7378_v59 = vld [vmem:[%s6075_s18 + $0x20] sm:$0x3] }
 0x29d   : > { %v7350_v32 = vpop.permute.xlu1 %1944  ;;  %v7352_v55 = vpop.permute.xlu0 %1942 }
 0x29e   : > { %10756 = vst [vmem:[#allocation49_spill] sm:$0xff] %v7350_v32  ;;  %10757 = vst [vmem:[#allocation73_spill] sm:$0xff] %v7352_v55 }
 0x29f   : > { %2278 = vrot.lane.b32.xlu1 %v2273_v48, %s5781_s15  ;;  %2276 = vrot.lane.b32.xlu0 %v2272_v23, %s5781_s15  ;;  %v2341_v48 = vmul.f32 %v7359_v34, %v2339_v30  ;;  %v7373_v23 = vld [vmem:[%s6075_s18 + $0x28] sm:$0x3] }
 0x2a1   : > { %v7361_v25 = vpop.permute.xlu1 %1956  ;;  %v7366_v32 = vpop.permute.xlu0 %1954 }
 0x2a2   : > { %10758 = vst [vmem:[#allocation74_spill] sm:$0xff] %v7361_v25  ;;  %10759 = vst [vmem:[#allocation60_spill] sm:$0xff] %v7366_v32  ;;  %v2352_v32 = vmul.f32 %v7373_v23, %v2339_v30  ;;  %v2362_v25 = vstv %s5147_s4  ;;  %s5192_s4 = sld [smem:[#allocation3 + $0x67]] }
 0x2a3   : > { %2289 = vrot.lane.b32.xlu1 %v2284_v22, %s5781_s15  ;;  %2287 = vrot.lane.b32.xlu0 %v2283_v33, %s5781_s15  ;;  %v2351_v22 = vmul.f32 %v7378_v59, %v2339_v30  ;;  %v2375_v30 = vmul.f32 %v7373_v23, %v2362_v25 }
 0x2a5   : > { %v7375_v29 = vpop.permute.xlu1 %1967  ;;  %v7380_v55 = vpop.permute.xlu0 %1965 }
 0x2a6   : > { %10760 = vst [vmem:[#allocation61_spill] sm:$0xff] %v7375_v29  ;;  %10761 = vst [vmem:[#allocation50_spill] sm:$0xff] %v7380_v55  ;;  %v2364_v29 = vmul.f32 %v7359_v34, %v2362_v25 }
 0x2a7   : > { %2346 = vrot.lane.b32.xlu1 %v2341_v48, %s5780_s30  ;;  %2344 = vrot.lane.b32.xlu0 %v2340_v8, %s5780_s30  ;;  %v2363_v48 = vmul.f32 %v7364_v37, %v2362_v25  ;;  %v2374_v8 = vmul.f32 %v7378_v59, %v2362_v25 }
 0x2a9   : > { %v7386_v33 = vpop.permute.xlu1 %1979  ;;  %v7388_v39 = vpop.permute.xlu0 %1977 }
 0x2aa   : > { %10762 = vst [vmem:[#allocation51_spill] sm:$0xff] %v7386_v33  ;;  %10763 = vst [vmem:[#allocation62_spill] sm:$0xff] %v7388_v39  ;;  %v2385_v39 = vstv %s5183_s12  ;;  %s5228_s12 = sld [smem:[#allocation3 + $0x8b]] }
 0x2ab   : > { %2357 = vrot.lane.b32.xlu1 %v2352_v32, %s5780_s30  ;;  %2355 = vrot.lane.b32.xlu0 %v2351_v22, %s5780_s30  ;;  %v2387_v22 = vmul.f32 %v7359_v34, %v2385_v39  ;;  %v2398_v25 = vmul.f32 %v7373_v23, %v2385_v39 }
 0x2ad   : > { %v7394_v55 = vpop.permute.xlu1 %1990  ;;  %v7396_v2 = vpop.permute.xlu0 %1988 }
 0x2ae   : > { %10764 = vst [vmem:[#allocation63_spill] sm:$0xff] %v7394_v55  ;;  %10765 = vst [vmem:[#allocation75_spill] sm:$0xff] %v7396_v2 }
 0x2af   : > { %2369 = vrot.lane.b32.xlu1 %v2364_v29, %s5780_s30  ;;  %2367 = vrot.lane.b32.xlu0 %v2363_v48, %s5780_s30  ;;  %v2386_v29 = vmul.f32 %v7364_v37, %v2385_v39  ;;  %v2397_v48 = vmul.f32 %v7378_v59, %v2385_v39 }
 0x2b1   : > { %v7402_v32 = vpop.permute.xlu1 %2002  ;;  %v7404_v33 = vpop.permute.xlu0 %2000 }
 0x2b2   : > { %10766 = vst [vmem:[#allocation76_spill] sm:$0xff] %v7402_v32  ;;  %10767 = vst [vmem:[#allocation77_spill] sm:$0xff] %v7404_v33  ;;  %v2408_v33 = vstv %s5219_s24  ;;  %s5264_s24 = sld [smem:[#allocation3 + $0xaf]] }
 0x2b3   : > { %2380 = vrot.lane.b32.xlu1 %v2375_v30, %s5780_s30  ;;  %2378 = vrot.lane.b32.xlu0 %v2374_v8, %s5780_s30  ;;  %v2410_v8 = vmul.f32 %v7359_v34, %v2408_v33  ;;  %v2421_v39 = vmul.f32 %v7373_v23, %v2408_v33 }
 0x2b5   : > { %v7410_v2 = vpop.permute.xlu1 %2013  ;;  %v7412_v55 = vpop.permute.xlu0 %2011 }
 0x2b6   : > { %10768 = vst [vmem:[#allocation78_spill] sm:$0xff] %v7410_v2  ;;  %10769 = vst [vmem:[#allocation79_spill] sm:$0xff] %v7412_v55 }
 0x2b7   : > { %2392 = vrot.lane.b32.xlu1 %v2387_v22, %s5780_s30  ;;  %2390 = vrot.lane.b32.xlu0 %v2386_v29, %s5780_s30  ;;  %v2409_v22 = vmul.f32 %v7364_v37, %v2408_v33  ;;  %v2420_v29 = vmul.f32 %v7378_v59, %v2408_v33 }
 0x2b9   : > { %v7418_v30 = vpop.permute.xlu1 %2025  ;;  %v7420_v32 = vpop.permute.xlu0 %2023 }
 0x2ba   : > { %10770 = vst [vmem:[#allocation80_spill] sm:$0xff] %v7418_v30  ;;  %10771 = vst [vmem:[#allocation81_spill] sm:$0xff] %v7420_v32  ;;  %v2431_v32 = vstv %s5255_s25  ;;  %s5300_s25 = sld [smem:[#allocation3 + $0xd3]] }
 0x2bb   : > { %2403 = vrot.lane.b32.xlu1 %v2398_v25, %s5780_s30  ;;  %2401 = vrot.lane.b32.xlu0 %v2397_v48, %s5780_s30  ;;  %v2433_v48 = vmul.f32 %v7359_v34, %v2431_v32  ;;  %v2444_v33 = vmul.f32 %v7373_v23, %v2431_v32 }
 0x2bd   : > { %v7426_v55 = vpop.permute.xlu1 %2036  ;;  %v7428_v2 = vpop.permute.xlu0 %2034 }
 0x2be   : > { %10772 = vst [vmem:[#allocation82_spill] sm:$0xff] %v7426_v55  ;;  %10773 = vst [vmem:[#allocation83_spill] sm:$0xff] %v7428_v2 }
 0x2bf   : > { %2415 = vrot.lane.b32.xlu1 %v2410_v8, %s5780_s30  ;;  %2413 = vrot.lane.b32.xlu0 %v2409_v22, %s5780_s30  ;;  %v2432_v8 = vmul.f32 %v7364_v37, %v2431_v32  ;;  %v2443_v22 = vmul.f32 %v7378_v59, %v2431_v32 }
 0x2c1   : > { %v7434_v25 = vpop.permute.xlu1 %2048  ;;  %v7436_v30 = vpop.permute.xlu0 %2046 }
 0x2c2   : > { %10774 = vst [vmem:[#allocation84_spill] sm:$0xff] %v7434_v25  ;;  %10775 = vst [vmem:[#allocation85_spill] sm:$0xff] %v7436_v30  ;;  %v2454_v30 = vstv %s5291_s26  ;;  %s5336_s26 = sld [smem:[#allocation3 + $0xf7]] }
 0x2c3   : > { %2426 = vrot.lane.b32.xlu1 %v2421_v39, %s5780_s30  ;;  %2424 = vrot.lane.b32.xlu0 %v2420_v29, %s5780_s30  ;;  %v2456_v29 = vmul.f32 %v7359_v34, %v2454_v30  ;;  %v2467_v32 = vmul.f32 %v7373_v23, %v2454_v30 }
 0x2c5   : > { %v7442_v2 = vpop.permute.xlu1 %2059  ;;  %v7444_v55 = vpop.permute.xlu0 %2057 }
 0x2c6   : > { %10776 = vst [vmem:[#allocation86_spill] sm:$0xff] %v7442_v2  ;;  %10777 = vst [vmem:[#allocation87_spill] sm:$0xff] %v7444_v55 }
 0x2c7   : > { %2438 = vrot.lane.b32.xlu1 %v2433_v48, %s5780_s30  ;;  %2436 = vrot.lane.b32.xlu0 %v2432_v8, %s5780_s30  ;;  %v2455_v48 = vmul.f32 %v7364_v37, %v2454_v30  ;;  %v2466_v8 = vmul.f32 %v7378_v59, %v2454_v30 }
 0x2c9   : > { %v7450_v39 = vpop.permute.xlu1 %2071  ;;  %v7452_v25 = vpop.permute.xlu0 %2069 }
 0x2ca   : > { %10778 = vst [vmem:[#allocation88_spill] sm:$0xff] %v7450_v39  ;;  %10779 = vst [vmem:[#allocation89_spill] sm:$0xff] %v7452_v25  ;;  %v2477_v25 = vstv %s5327_s6  ;;  %s5372_s6 = sld [smem:[#allocation3 + $0x11b]] }
 0x2cb   : > { %2449 = vrot.lane.b32.xlu1 %v2444_v33, %s5780_s30  ;;  %2447 = vrot.lane.b32.xlu0 %v2443_v22, %s5780_s30  ;;  %v2479_v22 = vmul.f32 %v7359_v34, %v2477_v25  ;;  %v2490_v30 = vmul.f32 %v7373_v23, %v2477_v25 }
 0x2cd   : > { %v7458_v55 = vpop.permute.xlu1 %2082  ;;  %v7460_v2 = vpop.permute.xlu0 %2080 }
 0x2ce   : > { %10780 = vst [vmem:[#allocation90_spill] sm:$0xff] %v7458_v55  ;;  %10781 = vst [vmem:[#allocation91_spill] sm:$0xff] %v7460_v2 }
 0x2cf   : > { %2461 = vrot.lane.b32.xlu1 %v2456_v29, %s5780_s30  ;;  %2459 = vrot.lane.b32.xlu0 %v2455_v48, %s5780_s30  ;;  %v2478_v29 = vmul.f32 %v7364_v37, %v2477_v25  ;;  %v2489_v48 = vmul.f32 %v7378_v59, %v2477_v25 }
 0x2d1   : > { %v7466_v33 = vpop.permute.xlu1 %2094  ;;  %v7468_v39 = vpop.permute.xlu0 %2092 }
 0x2d2   : > { %10782 = vst [vmem:[#allocation92_spill] sm:$0xff] %v7466_v33  ;;  %10783 = vst [vmem:[#allocation93_spill] sm:$0xff] %v7468_v39  ;;  %v2500_v39 = vstv %s5363_s22  ;;  %s5121_s22 = sld [smem:[#allocation3 + $0x20]] }
 0x2d3   : > { %2472 = vrot.lane.b32.xlu1 %v2467_v32, %s5780_s30  ;;  %2470 = vrot.lane.b32.xlu0 %v2466_v8, %s5780_s30  ;;  %v2502_v8 = vmul.f32 %v7359_v34, %v2500_v39  ;;  %v2513_v25 = vmul.f32 %v7373_v23, %v2500_v39 }
 0x2d5   : > { %v7474_v2 = vpop.permute.xlu1 %2105  ;;  %v7476_v55 = vpop.permute.xlu0 %2103 }
 0x2d6   : > { %10784 = vst [vmem:[#allocation94_spill] sm:$0xff] %v7474_v2  ;;  %10785 = vst [vmem:[#allocation95_spill] sm:$0xff] %v7476_v55 }
 0x2d7   : > { %2484 = vrot.lane.b32.xlu1 %v2479_v22, %s5780_s30  ;;  %2482 = vrot.lane.b32.xlu0 %v2478_v29, %s5780_s30  ;;  %v2501_v22 = vmul.f32 %v7364_v37, %v2500_v39  ;;  %v2512_v29 = vmul.f32 %v7378_v59, %v2500_v39 }
 0x2d9   : > { %v7482_v32 = vpop.permute.xlu1 %2117  ;;  %v7484_v33 = vpop.permute.xlu0 %2115 }
 0x2da   : > { %10786 = vst [vmem:[#allocation96_spill] sm:$0xff] %v7482_v32  ;;  %10787 = vst [vmem:[#allocation97_spill] sm:$0xff] %v7484_v33  ;;  %v2523_v33 = vstv %s5112_s28  ;;  %s5157_s28 = sld [smem:[#allocation3 + $0x44]] }
 0x2db   : > { %2495 = vrot.lane.b32.xlu1 %v2490_v30, %s5780_s30  ;;  %2493 = vrot.lane.b32.xlu0 %v2489_v48, %s5780_s30  ;;  %v2525_v48 = vmul.f32 %v7359_v34, %v2523_v33  ;;  %v2536_v39 = vmul.f32 %v7373_v23, %v2523_v33 }
 0x2dd   : > { %v7490_v55 = vpop.permute.xlu1 %2128  ;;  %v7492_v2 = vpop.permute.xlu0 %2126 }
 0x2de   : > { %10788 = vst [vmem:[#allocation98_spill] sm:$0xff] %v7490_v55  ;;  %10789 = vst [vmem:[#allocation99_spill] sm:$0xff] %v7492_v2 }
 0x2df   : > { %2507 = vrot.lane.b32.xlu1 %v2502_v8, %s5780_s30  ;;  %2505 = vrot.lane.b32.xlu0 %v2501_v22, %s5780_s30  ;;  %v2524_v8 = vmul.f32 %v7364_v37, %v2523_v33  ;;  %v2535_v22 = vmul.f32 %v7378_v59, %v2523_v33 }
 0x2e1   : > { %v7498_v30 = vpop.permute.xlu1 %2140  ;;  %v7500_v32 = vpop.permute.xlu0 %2138 }
 0x2e2   : > { %10790 = vst [vmem:[#allocation100_spill] sm:$0xff] %v7498_v30  ;;  %10791 = vst [vmem:[#allocation101_spill] sm:$0xff] %v7500_v32  ;;  %v2546_v32 = vstv %s5148_s9  ;;  %s5193_s9 = sld [smem:[#allocation3 + $0x68]] }
 0x2e3   : > { %2518 = vrot.lane.b32.xlu1 %v2513_v25, %s5780_s30  ;;  %2516 = vrot.lane.b32.xlu0 %v2512_v29, %s5780_s30  ;;  %v2548_v29 = vmul.f32 %v7359_v34, %v2546_v32  ;;  %v2559_v33 = vmul.f32 %v7373_v23, %v2546_v32 }
 0x2e5   : > { %v7506_v2 = vpop.permute.xlu1 %2151  ;;  %v7508_v55 = vpop.permute.xlu0 %2149 }
 0x2e6   : > { %10792 = vst [vmem:[#allocation102_spill] sm:$0xff] %v7506_v2  ;;  %10793 = vst [vmem:[#allocation103_spill] sm:$0xff] %v7508_v55 }
 0x2e7   : > { %2530 = vrot.lane.b32.xlu1 %v2525_v48, %s5781_s15  ;;  %2528 = vrot.lane.b32.xlu0 %v2524_v8, %s5781_s15  ;;  %v2547_v48 = vmul.f32 %v7364_v37, %v2546_v32  ;;  %v2558_v8 = vmul.f32 %v7378_v59, %v2546_v32 }
 0x2e9   : > { %v7514_v25 = vpop.permute.xlu1 %2163  ;;  %v7516_v30 = vpop.permute.xlu0 %2161 }
 0x2ea   : > { %10794 = vst [vmem:[#allocation104_spill] sm:$0xff] %v7514_v25  ;;  %10795 = vst [vmem:[#allocation105_spill] sm:$0xff] %v7516_v30  ;;  %v2569_v30 = vstv %s5184_s23  ;;  %s5229_s23 = sld [smem:[#allocation3 + $0x8c]] }
 0x2eb   : > { %2541 = vrot.lane.b32.xlu1 %v2536_v39, %s5781_s15  ;;  %2539 = vrot.lane.b32.xlu0 %v2535_v22, %s5781_s15  ;;  %v2571_v22 = vmul.f32 %v7359_v34, %v2569_v30  ;;  %v2582_v32 = vmul.f32 %v7373_v23, %v2569_v30 }
 0x2ed   : > { %v7522_v55 = vpop.permute.xlu1 %2174  ;;  %v7524_v2 = vpop.permute.xlu0 %2172 }
 0x2ee   : > { %10796 = vst [vmem:[#allocation106_spill] sm:$0xff] %v7522_v55  ;;  %10797 = vst [vmem:[#allocation107_spill] sm:$0xff] %v7524_v2 }
 0x2ef   : > { %2553 = vrot.lane.b32.xlu1 %v2548_v29, %s5781_s15  ;;  %2551 = vrot.lane.b32.xlu0 %v2547_v48, %s5781_s15  ;;  %v2570_v29 = vmul.f32 %v7364_v37, %v2569_v30  ;;  %v2581_v48 = vmul.f32 %v7378_v59, %v2569_v30 }
 0x2f1   : > { %v7530_v39 = vpop.permute.xlu1 %2186  ;;  %v7532_v25 = vpop.permute.xlu0 %2184 }
 0x2f2   : > { %10798 = vst [vmem:[#allocation108_spill] sm:$0xff] %v7530_v39  ;;  %10799 = vst [vmem:[#allocation109_spill] sm:$0xff] %v7532_v25  ;;  %v2592_v25 = vstv %s5220_s29  ;;  %s5265_s29 = sld [smem:[#allocation3 + $0xb0]] }
 0x2f3   : > { %2564 = vrot.lane.b32.xlu1 %v2559_v33, %s5781_s15  ;;  %2562 = vrot.lane.b32.xlu0 %v2558_v8, %s5781_s15  ;;  %v2594_v8 = vmul.f32 %v7359_v34, %v2592_v25  ;;  %v2605_v30 = vmul.f32 %v7373_v23, %v2592_v25 }
 0x2f5   : > { %v7538_v2 = vpop.permute.xlu1 %2197  ;;  %v7540_v55 = vpop.permute.xlu0 %2195 }
 0x2f6   : > { %10800 = vst [vmem:[#allocation110_spill] sm:$0xff] %v7538_v2  ;;  %10801 = vst [vmem:[#allocation111_spill] sm:$0xff] %v7540_v55 }
 0x2f7   : > { %2576 = vrot.lane.b32.xlu1 %v2571_v22, %s5781_s15  ;;  %2574 = vrot.lane.b32.xlu0 %v2570_v29, %s5781_s15  ;;  %v2593_v22 = vmul.f32 %v7364_v37, %v2592_v25  ;;  %v2604_v29 = vmul.f32 %v7378_v59, %v2592_v25 }
 0x2f9   : > { %v7546_v33 = vpop.permute.xlu1 %2209  ;;  %v7548_v39 = vpop.permute.xlu0 %2207 }
 0x2fa   : > { %10802 = vst [vmem:[#allocation112_spill] sm:$0xff] %v7546_v33  ;;  %10803 = vst [vmem:[#allocation113_spill] sm:$0xff] %v7548_v39  ;;  %v2615_v39 = vstv %s5256_s7  ;;  %s5301_s7 = sld [smem:[#allocation3 + $0xd4]] }
 0x2fb   : > { %2587 = vrot.lane.b32.xlu1 %v2582_v32, %s5781_s15  ;;  %2585 = vrot.lane.b32.xlu0 %v2581_v48, %s5781_s15  ;;  %v2617_v48 = vmul.f32 %v7359_v34, %v2615_v39  ;;  %v2628_v25 = vmul.f32 %v7373_v23, %v2615_v39 }
 0x2fd   : > { %v7554_v55 = vpop.permute.xlu1 %2220  ;;  %v7556_v2 = vpop.permute.xlu0 %2218 }
 0x2fe   : > { %10804 = vst [vmem:[#allocation114_spill] sm:$0xff] %v7554_v55  ;;  %10805 = vst [vmem:[#allocation115_spill] sm:$0xff] %v7556_v2 }
 0x2ff   : > { %2599 = vrot.lane.b32.xlu1 %v2594_v8, %s5781_s15  ;;  %2597 = vrot.lane.b32.xlu0 %v2593_v22, %s5781_s15  ;;  %v2616_v8 = vmul.f32 %v7364_v37, %v2615_v39  ;;  %v2627_v22 = vmul.f32 %v7378_v59, %v2615_v39 }
 0x301   : > { %v7562_v32 = vpop.permute.xlu1 %2232  ;;  %v7564_v33 = vpop.permute.xlu0 %2230 }
 0x302   : > { %10806 = vst [vmem:[#allocation116_spill] sm:$0xff] %v7562_v32  ;;  %10807 = vst [vmem:[#allocation117_spill] sm:$0xff] %v7564_v33  ;;  %v2638_v33 = vstv %s5292_s0  ;;  %s5337_s0 = sld [smem:[#allocation3 + $0xf8]] }
 0x303   : > { %2610 = vrot.lane.b32.xlu1 %v2605_v30, %s5781_s15  ;;  %2608 = vrot.lane.b32.xlu0 %v2604_v29, %s5781_s15  ;;  %v2640_v29 = vmul.f32 %v7359_v34, %v2638_v33  ;;  %v2651_v39 = vmul.f32 %v7373_v23, %v2638_v33 }
 0x305   : > { %v7570_v2 = vpop.permute.xlu1 %2243  ;;  %v7572_v55 = vpop.permute.xlu0 %2241 }
 0x306   : > { %10808 = vst [vmem:[#allocation118_spill] sm:$0xff] %v7570_v2  ;;  %10809 = vst [vmem:[#allocation119_spill] sm:$0xff] %v7572_v55 }
 0x307   : > { %2622 = vrot.lane.b32.xlu1 %v2617_v48, %s5781_s15  ;;  %2620 = vrot.lane.b32.xlu0 %v2616_v8, %s5781_s15  ;;  %v2639_v48 = vmul.f32 %v7364_v37, %v2638_v33  ;;  %v2650_v8 = vmul.f32 %v7378_v59, %v2638_v33 }
 0x309   : > { %v7578_v30 = vpop.permute.xlu1 %2255  ;;  %v7580_v32 = vpop.permute.xlu0 %2253 }
 0x30a   : > { %10810 = vst [vmem:[#allocation120_spill] sm:$0xff] %v7578_v30  ;;  %10811 = vst [vmem:[#allocation121_spill] sm:$0xff] %v7580_v32  ;;  %v2661_v32 = vstv %s5328_s21  ;;  %s7850_s21 = sld [smem:[#allocation3 + $0x3]] }
 0x30b   : > { %2633 = vrot.lane.b32.xlu1 %v2628_v25, %s5781_s15  ;;  %2631 = vrot.lane.b32.xlu0 %v2627_v22, %s5781_s15  ;;  %v2663_v22 = vmul.f32 %v7359_v34, %v2661_v32  ;;  %v2674_v33 = vmul.f32 %v7373_v23, %v2661_v32 }
 0x30d   : > { %v7586_v55 = vpop.permute.xlu1 %2266  ;;  %v7588_v2 = vpop.permute.xlu0 %2264 }
 0x30e   : > { %10812 = vst [vmem:[#allocation122_spill] sm:$0xff] %v7586_v55  ;;  %10813 = vst [vmem:[#allocation123_spill] sm:$0xff] %v7588_v2 }
 0x30f   : > { %2645 = vrot.lane.b32.xlu1 %v2640_v29, %s5781_s15  ;;  %2643 = vrot.lane.b32.xlu0 %v2639_v48, %s5781_s15  ;;  %v2662_v29 = vmul.f32 %v7364_v37, %v2661_v32  ;;  %v2673_v48 = vmul.f32 %v7378_v59, %v2661_v32 }
 0x311   : > { %v7594_v25 = vpop.permute.xlu1 %2278  ;;  %v7596_v30 = vpop.permute.xlu0 %2276 }
 0x312   : > { %10814 = vst [vmem:[#allocation124_spill] sm:$0xff] %v7594_v25  ;;  %10815 = vst [vmem:[#allocation125_spill] sm:$0xff] %v7596_v30  ;;  %v7627_v25 = vld [vmem:[%s6068_s10 + $0x38] sm:$0xfc] }
 0x313   : > { %2656 = vrot.lane.b32.xlu1 %v2651_v39, %s5781_s15  ;;  %2654 = vrot.lane.b32.xlu0 %v2650_v8, %s5781_s15  ;;  %v2684_v39 = vstv %s5364_s11  ;;  %s7854_s11 = sld [smem:[#allocation3 + $0x27]] }
 0x314   : > { %v2697_v32 = vmul.f32 %v7373_v23, %v2684_v39 }
 0x315   : > { %v7602_v2 = vpop.permute.xlu1 %2289  ;;  %v7604_v55 = vpop.permute.xlu0 %2287 }
 0x316   : > { %10816 = vst [vmem:[#allocation126_spill] sm:$0xff] %v7602_v2  ;;  %10817 = vst [vmem:[#allocation127_spill] sm:$0xff] %v7604_v55  ;;  %v2686_v55 = vmul.f32 %v7359_v34, %v2684_v39  ;;  %v2752_v34 = vstv %s5120_s5  ;;  %s7858_s5 = sld [smem:[#allocation3 + $0x4b]] }
 0x317   : > { %2668 = vrot.lane.b32.xlu1 %v2663_v22, %s5781_s15  ;;  %2666 = vrot.lane.b32.xlu0 %v2662_v29, %s5781_s15  ;;  %v2685_v22 = vmul.f32 %v7364_v37, %v2684_v39  ;;  %v7632_v37 = vld [vmem:[%s6068_s10 + $0x30] sm:$0xfc] }
 0x318   : > { %v2753_v23 = vmul.f32 %v7632_v37, %v2752_v34 }
 0x319   : > { %v7610_v30 = vpop.permute.xlu1 %2346  ;;  %v7612_v8 = vpop.permute.xlu0 %2344 }
 0x31a   : > { %10818 = vst [vmem:[#allocation128_spill] sm:$0xff] %v7610_v30  ;;  %10819 = vst [vmem:[#allocation129_spill] sm:$0xff] %v7612_v8 }
 0x31b   : > { %2679 = vrot.lane.b32.xlu1 %v2674_v33, %s5781_s15  ;;  %2677 = vrot.lane.b32.xlu0 %v2673_v48, %s5781_s15  ;;  %v2696_v33 = vmul.f32 %v7378_v59, %v2684_v39  ;;  %v7646_v39 = vld [vmem:[%s6075_s18 + $0x30] sm:$0x3] }
 0x31d   : > { %v7618_v2 = vpop.permute.xlu1 %2357  ;;  %v7620_v29 = vpop.permute.xlu0 %2355 }
 0x31e   : > { %10820 = vst [vmem:[#allocation130_spill] sm:$0xff] %v7618_v2  ;;  %10821 = vst [vmem:[#allocation131_spill] sm:$0xff] %v7620_v29 }
 0x31f   : > { %2691 = vrot.lane.b32.xlu1 %v2686_v55, %s5781_s15  ;;  %2689 = vrot.lane.b32.xlu0 %v2685_v22, %s5781_s15  ;;  %v2754_v55 = vmul.f32 %v7627_v25, %v2752_v34  ;;  %v7641_v22 = vld [vmem:[%s6075_s18 + $0x38] sm:$0x3] }
 0x321   : > { %v7629_v48 = vpop.permute.xlu1 %2369  ;;  %v7634_v2 = vpop.permute.xlu0 %2367 }
 0x322   : > { %10822 = vst [vmem:[#allocation132_spill] sm:$0xff] %v7629_v48  ;;  %10823 = vst [vmem:[#allocation133_spill] sm:$0xff] %v7634_v2  ;;  %v2765_v2 = vmul.f32 %v7641_v22, %v2752_v34  ;;  %v2775_v48 = vstv %s5156_s3  ;;  %s7862_s3 = sld [smem:[#allocation3 + $0x6f]] }
 0x323   : > { %2702 = vrot.lane.b32.xlu1 %v2697_v32, %s5781_s15  ;;  %2700 = vrot.lane.b32.xlu0 %v2696_v33, %s5781_s15  ;;  %v2764_v32 = vmul.f32 %v7646_v39, %v2752_v34  ;;  %v2788_v34 = vmul.f32 %v7641_v22, %v2775_v48 }
 0x325   : > { %v7643_v59 = vpop.permute.xlu1 %2380  ;;  %v7648_v29 = vpop.permute.xlu0 %2378 }
 0x326   : > { %10824 = vst [vmem:[#allocation134_spill] sm:$0xff] %v7643_v59  ;;  %10825 = vst [vmem:[#allocation135_spill] sm:$0xff] %v7648_v29  ;;  %v2777_v59 = vmul.f32 %v7627_v25, %v2775_v48 }
 0x327   : > { %2759 = vrot.lane.b32.xlu1 %v2754_v55, %s5780_s30  ;;  %2757 = vrot.lane.b32.xlu0 %v2753_v23, %s5780_s30  ;;  %v2776_v55 = vmul.f32 %v7632_v37, %v2775_v48  ;;  %v2787_v23 = vmul.f32 %v7646_v39, %v2775_v48 }
 0x328   : > { %v1498_v47 = vstv %s7862_s3  ;;  %s8081_s3 = sld [smem:[#allocation3 + $0x39]] }
 0x329   : > { %v7654_v33 = vpop.permute.xlu1 %2392  ;;  %v7656_v8 = vpop.permute.xlu0 %2390 }
 0x32a   : > { %10826 = vst [vmem:[#allocation136_spill] sm:$0xff] %v7654_v33  ;;  %10827 = vst [vmem:[#allocation137_spill] sm:$0xff] %v7656_v8  ;;  %v2798_v8 = vstv %s5192_s4  ;;  %s7866_s4 = sld [smem:[#allocation3 + $0x93]] }
 0x32b   : > { %2770 = vrot.lane.b32.xlu1 %v2765_v2, %s5780_s30  ;;  %2768 = vrot.lane.b32.xlu0 %v2764_v32, %s5780_s30  ;;  %v2800_v32 = vmul.f32 %v7627_v25, %v2798_v8  ;;  %v2811_v48 = vmul.f32 %v7641_v22, %v2798_v8 }
 0x32d   : > { %v7662_v29 = vpop.permute.xlu1 %2403  ;;  %v7664_v30 = vpop.permute.xlu0 %2401 }
 0x32e   : > { %10828 = vst [vmem:[#allocation138_spill] sm:$0xff] %v7662_v29  ;;  %10829 = vst [vmem:[#allocation139_spill] sm:$0xff] %v7664_v30 }
 0x32f   : > { %2782 = vrot.lane.b32.xlu1 %v2777_v59, %s5780_s30  ;;  %2780 = vrot.lane.b32.xlu0 %v2776_v55, %s5780_s30  ;;  %v2799_v59 = vmul.f32 %v7632_v37, %v2798_v8  ;;  %v2810_v55 = vmul.f32 %v7646_v39, %v2798_v8 }
 0x330   : > { %v1501_v53 = vstv %s7866_s4  ;;  %s8092_s4 = sld [smem:[#allocation3 + $0x4f]] }
 0x331   : > { %v7670_v2 = vpop.permute.xlu1 %2415  ;;  %v7672_v33 = vpop.permute.xlu0 %2413 }
 0x332   : > { %10830 = vst [vmem:[#allocation140_spill] sm:$0xff] %v7670_v2  ;;  %10831 = vst [vmem:[#allocation141_spill] sm:$0xff] %v7672_v33  ;;  %v2821_v33 = vstv %s5228_s12  ;;  %s7870_s12 = sld [smem:[#allocation3 + $0xb7]] }
 0x333   : > { %2793 = vrot.lane.b32.xlu1 %v2788_v34, %s5780_s30  ;;  %2791 = vrot.lane.b32.xlu0 %v2787_v23, %s5780_s30  ;;  %v2823_v23 = vmul.f32 %v7627_v25, %v2821_v33  ;;  %v2834_v8 = vmul.f32 %v7641_v22, %v2821_v33 }
 0x335   : > { %v7678_v30 = vpop.permute.xlu1 %2426  ;;  %v7680_v29 = vpop.permute.xlu0 %2424 }
 0x336   : > { %10832 = vst [vmem:[#allocation142_spill] sm:$0xff] %v7678_v30  ;;  %10833 = vst [vmem:[#allocation143_spill] sm:$0xff] %v7680_v29 }
 0x337   : > { %2805 = vrot.lane.b32.xlu1 %v2800_v32, %s5780_s30  ;;  %2803 = vrot.lane.b32.xlu0 %v2799_v59, %s5780_s30  ;;  %v2822_v32 = vmul.f32 %v7632_v37, %v2821_v33  ;;  %v2833_v59 = vmul.f32 %v7646_v39, %v2821_v33 }
 0x338   : > { %v1504_v28 = vstv %s7870_s12  ;;  %s8106_s12 = sld [smem:[#allocation3 + $0x5d]] }
 0x339   : > { %v7686_v34 = vpop.permute.xlu1 %2438  ;;  %v7688_v2 = vpop.permute.xlu0 %2436 }
 0x33a   : > { %10834 = vst [vmem:[#allocation144_spill] sm:$0xff] %v7686_v34  ;;  %10835 = vst [vmem:[#allocation145_spill] sm:$0xff] %v7688_v2  ;;  %v2844_v2 = vstv %s5264_s24  ;;  %s7874_s24 = sld [smem:[#allocation3 + $0x11c]] }
 0x33b   : > { %2816 = vrot.lane.b32.xlu1 %v2811_v48, %s5780_s30  ;;  %2814 = vrot.lane.b32.xlu0 %v2810_v55, %s5780_s30  ;;  %v2846_v55 = vmul.f32 %v7627_v25, %v2844_v2  ;;  %v2857_v33 = vmul.f32 %v7641_v22, %v2844_v2 }
 0x33d   : > { %v7694_v29 = vpop.permute.xlu1 %2449  ;;  %v7696_v30 = vpop.permute.xlu0 %2447 }
 0x33e   : > { %10836 = vst [vmem:[#allocation146_spill] sm:$0xff] %v7694_v29  ;;  %10837 = vst [vmem:[#allocation147_spill] sm:$0xff] %v7696_v30 }
 0x33f   : > { %2828 = vrot.lane.b32.xlu1 %v2823_v23, %s5780_s30  ;;  %2826 = vrot.lane.b32.xlu0 %v2822_v32, %s5780_s30  ;;  %v2845_v23 = vmul.f32 %v7632_v37, %v2844_v2  ;;  %v2856_v32 = vmul.f32 %v7646_v39, %v2844_v2 }
 0x341   : > { %v7702_v48 = vpop.permute.xlu1 %2461  ;;  %v7704_v34 = vpop.permute.xlu0 %2459 }
 0x342   : > { %10838 = vst [vmem:[#allocation148_spill] sm:$0xff] %v7702_v48  ;;  %10839 = vst [vmem:[#allocation149_spill] sm:$0xff] %v7704_v34  ;;  %v2867_v34 = vstv %s5300_s25  ;;  %s7876_s25 = sld [smem:[#allocation3 + $0xdb]] }
 0x343   : > { %2839 = vrot.lane.b32.xlu1 %v2834_v8, %s5780_s30  ;;  %2837 = vrot.lane.b32.xlu0 %v2833_v59, %s5780_s30  ;;  %v2869_v59 = vmul.f32 %v7627_v25, %v2867_v34  ;;  %v2880_v2 = vmul.f32 %v7641_v22, %v2867_v34 }
 0x345   : > { %v7710_v30 = vpop.permute.xlu1 %2472  ;;  %v7712_v29 = vpop.permute.xlu0 %2470 }
 0x346   : > { %10840 = vst [vmem:[#allocation150_spill] sm:$0xff] %v7710_v30  ;;  %10841 = vst [vmem:[#allocation151_spill] sm:$0xff] %v7712_v29 }
 0x347   : > { %2851 = vrot.lane.b32.xlu1 %v2846_v55, %s5780_s30  ;;  %2849 = vrot.lane.b32.xlu0 %v2845_v23, %s5780_s30  ;;  %v2868_v55 = vmul.f32 %v7632_v37, %v2867_v34  ;;  %v2879_v23 = vmul.f32 %v7646_v39, %v2867_v34 }
 0x348   : > { %v1507_v26 = vstv %s7876_s25  ;;  %s8175_s25 = sld [smem:[#allocation3 + $0xa5]] }
 0x349   : > { %v7718_v8 = vpop.permute.xlu1 %2484  ;;  %v7720_v48 = vpop.permute.xlu0 %2482 }
 0x34a   : > { %10842 = vst [vmem:[#allocation152_spill] sm:$0xff] %v7718_v8  ;;  %10843 = vst [vmem:[#allocation153_spill] sm:$0xff] %v7720_v48  ;;  %v2890_v48 = vstv %s5336_s26  ;;  %s7880_s26 = sld [smem:[#allocation3 + $0xff]] }
 0x34b   : > { %2862 = vrot.lane.b32.xlu1 %v2857_v33, %s5780_s30  ;;  %2860 = vrot.lane.b32.xlu0 %v2856_v32, %s5780_s30  ;;  %v2892_v32 = vmul.f32 %v7627_v25, %v2890_v48  ;;  %v2903_v34 = vmul.f32 %v7641_v22, %v2890_v48 }
 0x34d   : > { %v7726_v29 = vpop.permute.xlu1 %2495  ;;  %v7728_v30 = vpop.permute.xlu0 %2493 }
 0x34e   : > { %10844 = vst [vmem:[#allocation154_spill] sm:$0xff] %v7726_v29  ;;  %10845 = vst [vmem:[#allocation155_spill] sm:$0xff] %v7728_v30 }
 0x34f   : > { %2874 = vrot.lane.b32.xlu1 %v2869_v59, %s5780_s30  ;;  %2872 = vrot.lane.b32.xlu0 %v2868_v55, %s5780_s30  ;;  %v2891_v59 = vmul.f32 %v7632_v37, %v2890_v48  ;;  %v2902_v55 = vmul.f32 %v7646_v39, %v2890_v48 }
 0x351   : > { %v7734_v33 = vpop.permute.xlu1 %2507  ;;  %v7736_v8 = vpop.permute.xlu0 %2505 }
 0x352   : > { %10846 = vst [vmem:[#allocation156_spill] sm:$0xff] %v7734_v33  ;;  %10847 = vst [vmem:[#allocation157_spill] sm:$0xff] %v7736_v8  ;;  %v2913_v8 = vstv %s5372_s6  ;;  %s7882_s6 = sld [smem:[#allocation3 + $0xc]] }
 0x353   : > { %2885 = vrot.lane.b32.xlu1 %v2880_v2, %s5780_s30  ;;  %2883 = vrot.lane.b32.xlu0 %v2879_v23, %s5780_s30  ;;  %v2915_v23 = vmul.f32 %v7627_v25, %v2913_v8  ;;  %v2926_v48 = vmul.f32 %v7641_v22, %v2913_v8 }
 0x355   : > { %v7742_v30 = vpop.permute.xlu1 %2518  ;;  %v7744_v29 = vpop.permute.xlu0 %2516 }
 0x356   : > { %10848 = vst [vmem:[#allocation158_spill] sm:$0xff] %v7742_v30  ;;  %10849 = vst [vmem:[#allocation159_spill] sm:$0xff] %v7744_v29 }
 0x357   : > { %2897 = vrot.lane.b32.xlu1 %v2892_v32, %s5780_s30  ;;  %2895 = vrot.lane.b32.xlu0 %v2891_v59, %s5780_s30  ;;  %v2914_v32 = vmul.f32 %v7632_v37, %v2913_v8  ;;  %v2925_v59 = vmul.f32 %v7646_v39, %v2913_v8 }
 0x358   : > { %v1886_v24 = vstv %s7882_s6  ;;  %s8218_s6 = sld [smem:[#allocation3 + $0xc9]] }
 0x359   : > { %v7750_v2 = vpop.permute.xlu1 %2530  ;;  %v7752_v33 = vpop.permute.xlu0 %2528 }
 0x35a   : > { %10850 = vst [vmem:[#allocation160_spill] sm:$0xff] %v7750_v2  ;;  %10851 = vst [vmem:[#allocation161_spill] sm:$0xff] %v7752_v33  ;;  %v2936_v33 = vstv %s5121_s22  ;;  %s7887_s22 = sld [smem:[#allocation3 + $0x30]] }
 0x35b   : > { %2908 = vrot.lane.b32.xlu1 %v2903_v34, %s5780_s30  ;;  %2906 = vrot.lane.b32.xlu0 %v2902_v55, %s5780_s30  ;;  %v2938_v55 = vmul.f32 %v7627_v25, %v2936_v33  ;;  %v2949_v8 = vmul.f32 %v7641_v22, %v2936_v33 }
 0x35d   : > { %v7758_v29 = vpop.permute.xlu1 %2541  ;;  %v7760_v30 = vpop.permute.xlu0 %2539 }
 0x35e   : > { %10852 = vst [vmem:[#allocation162_spill] sm:$0xff] %v7758_v29  ;;  %10853 = vst [vmem:[#allocation163_spill] sm:$0xff] %v7760_v30 }
 0x35f   : > { %2920 = vrot.lane.b32.xlu1 %v2915_v23, %s5780_s30  ;;  %2918 = vrot.lane.b32.xlu0 %v2914_v32, %s5780_s30  ;;  %v2937_v23 = vmul.f32 %v7632_v37, %v2936_v33  ;;  %v2948_v32 = vmul.f32 %v7646_v39, %v2936_v33 }
 0x360   : > { %v1891_v51 = vstv %s7887_s22  ;;  %s8231_s22 = sld [smem:[#allocation3 + $0xed]] }
 0x361   : > { %v7766_v34 = vpop.permute.xlu1 %2553  ;;  %v7768_v2 = vpop.permute.xlu0 %2551 }
 0x362   : > { %10854 = vst [vmem:[#allocation164_spill] sm:$0xff] %v7766_v34  ;;  %10855 = vst [vmem:[#allocation165_spill] sm:$0xff] %v7768_v2  ;;  %v2959_v2 = vstv %s5157_s28  ;;  %s7892_s28 = sld [smem:[#allocation3 + $0x54]] }
 0x363   : > { %2931 = vrot.lane.b32.xlu1 %v2926_v48, %s5780_s30  ;;  %2929 = vrot.lane.b32.xlu0 %v2925_v59, %s5780_s30  ;;  %v2961_v59 = vmul.f32 %v7627_v25, %v2959_v2  ;;  %v2972_v33 = vmul.f32 %v7641_v22, %v2959_v2 }
 0x365   : > { %v7774_v30 = vpop.permute.xlu1 %2564  ;;  %v7776_v29 = vpop.permute.xlu0 %2562 }
 0x366   : > { %10856 = vst [vmem:[#allocation166_spill] sm:$0xff] %v7774_v30  ;;  %10857 = vst [vmem:[#allocation167_spill] sm:$0xff] %v7776_v29 }
 0x367   : > { %2943 = vrot.lane.b32.xlu1 %v2938_v55, %s5781_s15  ;;  %2941 = vrot.lane.b32.xlu0 %v2937_v23, %s5781_s15  ;;  %v2960_v55 = vmul.f32 %v7632_v37, %v2959_v2  ;;  %v2971_v23 = vmul.f32 %v7646_v39, %v2959_v2 }
 0x368   : > { %v1896_v54 = vstv %s7892_s28  ;;  %s8257_s28 = sld [smem:[#allocation3 + $0x111]] }
 0x369   : > { %v7782_v48 = vpop.permute.xlu1 %2576  ;;  %v7784_v34 = vpop.permute.xlu0 %2574 }
 0x36a   : > { %10858 = vst [vmem:[#allocation168_spill] sm:$0xff] %v7782_v48  ;;  %10859 = vst [vmem:[#allocation169_spill] sm:$0xff] %v7784_v34  ;;  %v2982_v34 = vstv %s5193_s9  ;;  %s7897_s9 = sld [smem:[#allocation3 + $0x78]] }
 0x36b   : > { %2954 = vrot.lane.b32.xlu1 %v2949_v8, %s5781_s15  ;;  %2952 = vrot.lane.b32.xlu0 %v2948_v32, %s5781_s15  ;;  %v2984_v32 = vmul.f32 %v7627_v25, %v2982_v34  ;;  %v2995_v2 = vmul.f32 %v7641_v22, %v2982_v34 }
 0x36d   : > { %v7790_v29 = vpop.permute.xlu1 %2587  ;;  %v7792_v30 = vpop.permute.xlu0 %2585 }
 0x36e   : > { %10860 = vst [vmem:[#allocation170_spill] sm:$0xff] %v7790_v29  ;;  %10861 = vst [vmem:[#allocation171_spill] sm:$0xff] %v7792_v30 }
 0x36f   : > { %2966 = vrot.lane.b32.xlu1 %v2961_v59, %s5781_s15  ;;  %2964 = vrot.lane.b32.xlu0 %v2960_v55, %s5781_s15  ;;  %v2983_v59 = vmul.f32 %v7632_v37, %v2982_v34  ;;  %v2994_v55 = vmul.f32 %v7646_v39, %v2982_v34 }
 0x371   : > { %v7798_v8 = vpop.permute.xlu1 %2599  ;;  %v7800_v48 = vpop.permute.xlu0 %2597 }
 0x372   : > { %10862 = vst [vmem:[#allocation172_spill] sm:$0xff] %v7798_v8  ;;  %10863 = vst [vmem:[#allocation173_spill] sm:$0xff] %v7800_v48  ;;  %v3005_v48 = vstv %s5229_s23  ;;  %s7908_s23 = sld [smem:[#allocation3 + $0x9c]] }
 0x373   : > { %2977 = vrot.lane.b32.xlu1 %v2972_v33, %s5781_s15  ;;  %2975 = vrot.lane.b32.xlu0 %v2971_v23, %s5781_s15  ;;  %v3007_v23 = vmul.f32 %v7627_v25, %v3005_v48  ;;  %v3018_v34 = vmul.f32 %v7641_v22, %v3005_v48 }
 0x375   : > { %v7806_v30 = vpop.permute.xlu1 %2610  ;;  %v7808_v29 = vpop.permute.xlu0 %2608 }
 0x376   : > { %10864 = vst [vmem:[#allocation174_spill] sm:$0xff] %v7806_v30  ;;  %10865 = vst [vmem:[#allocation175_spill] sm:$0xff] %v7808_v29 }
 0x377   : > { %2989 = vrot.lane.b32.xlu1 %v2984_v32, %s5781_s15  ;;  %2987 = vrot.lane.b32.xlu0 %v2983_v59, %s5781_s15  ;;  %v3006_v32 = vmul.f32 %v7632_v37, %v3005_v48  ;;  %v3017_v59 = vmul.f32 %v7646_v39, %v3005_v48 }
 0x379   : > { %v7814_v33 = vpop.permute.xlu1 %2622  ;;  %v7816_v8 = vpop.permute.xlu0 %2620 }
 0x37a   : > { %10866 = vst [vmem:[#allocation176_spill] sm:$0xff] %v7814_v33  ;;  %10867 = vst [vmem:[#allocation177_spill] sm:$0xff] %v7816_v8  ;;  %v3028_v8 = vstv %s5265_s29  ;;  %s7917_s29 = sld [smem:[#allocation3 + $0xc0]] }
 0x37b   : > { %3000 = vrot.lane.b32.xlu1 %v2995_v2, %s5781_s15  ;;  %2998 = vrot.lane.b32.xlu0 %v2994_v55, %s5781_s15  ;;  %v3030_v55 = vmul.f32 %v7627_v25, %v3028_v8  ;;  %v3041_v48 = vmul.f32 %v7641_v22, %v3028_v8 }
 0x37d   : > { %v7822_v29 = vpop.permute.xlu1 %2633  ;;  %v7824_v30 = vpop.permute.xlu0 %2631 }
 0x37e   : > { %10868 = vst [vmem:[#allocation178_spill] sm:$0xff] %v7822_v29  ;;  %10869 = vst [vmem:[#allocation179_spill] sm:$0xff] %v7824_v30 }
 0x37f   : > { %3012 = vrot.lane.b32.xlu1 %v3007_v23, %s5781_s15  ;;  %3010 = vrot.lane.b32.xlu0 %v3006_v32, %s5781_s15  ;;  %v3029_v23 = vmul.f32 %v7632_v37, %v3028_v8  ;;  %v3040_v32 = vmul.f32 %v7646_v39, %v3028_v8 }
 0x381   : > { %v7830_v2 = vpop.permute.xlu1 %2645  ;;  %v7832_v33 = vpop.permute.xlu0 %2643 }
 0x382   : > { %10870 = vst [vmem:[#allocation180_spill] sm:$0xff] %v7830_v2  ;;  %10871 = vst [vmem:[#allocation181_spill] sm:$0xff] %v7832_v33  ;;  %v3051_v33 = vstv %s5301_s7  ;;  %s7919_s7 = sld [smem:[#allocation3 + $0xe4]] }
 0x383   : > { %3023 = vrot.lane.b32.xlu1 %v3018_v34, %s5781_s15  ;;  %3021 = vrot.lane.b32.xlu0 %v3017_v59, %s5781_s15  ;;  %v3053_v59 = vmul.f32 %v7627_v25, %v3051_v33 }
 0x385   : > { %v7838_v30 = vpop.permute.xlu1 %2656  ;;  %v7840_v29 = vpop.permute.xlu0 %2654 }
 0x386   : > { %10872 = vst [vmem:[#allocation182_spill] sm:$0xff] %v7838_v30  ;;  %10873 = vst [vmem:[#allocation183_spill] sm:$0xff] %v7840_v29  ;;  %v5548_v29 = vld [vmem:[%s6068_s10] sm:$0xfc] }
 0x387   : > { %3035 = vrot.lane.b32.xlu1 %v3030_v55, %s5781_s15  ;;  %3033 = vrot.lane.b32.xlu0 %v3029_v23, %s5781_s15  ;;  %v3052_v55 = vmul.f32 %v7632_v37, %v3051_v33  ;;  %v7933_v50 = vmul.f32 %v5548_v29, %v1498_v47  ;;  %v7942_v49 = vmul.f32 %v5548_v29, %v1501_v53 }
 0x388   : > { %v7950_v43 = vmul.f32 %v5548_v29, %v1504_v28  ;;  %v7957_v46 = vmul.f32 %v5548_v29, %v1507_v26 }
 0x389   : > { %v7846_v34 = vpop.permute.xlu1 %2668  ;;  %v7848_v2 = vpop.permute.xlu0 %2666 }
 0x38a   : > { %10874 = vst [vmem:[#allocation184_spill] sm:$0xff] %v7846_v34  ;;  %10875 = vst [vmem:[#allocation185_spill] sm:$0xff] %v7848_v2  ;;  %v1492_v2 = vstv %s7854_s11  ;;  %v1495_v34 = vstv %s7858_s5  ;;  %s8000_s11 = sld [smem:[#allocation3 + $0x2b]]  ;;  %s8068_s5 = sld [smem:[#allocation3 + $0x15]] }
 0x38b   : > { %3046 = vrot.lane.b32.xlu1 %v3041_v48, %s5781_s15  ;;  %3044 = vrot.lane.b32.xlu0 %v3040_v32, %s5781_s15  ;;  %v3064_v48 = vmul.f32 %v7641_v22, %v3051_v33  ;;  %v3063_v32 = vmul.f32 %v7646_v39, %v3051_v33  ;;  %10884 = vst [vmem:[#allocation194_spill] sm:$0xff] %v7950_v43  ;;  %10886 = vst [vmem:[#allocation196_spill] sm:$0xff] %v7957_v46 }
 0x38d   : > { %v7860_v8 = vpop.permute.xlu1 %2679  ;;  %v7864_v23 = vpop.permute.xlu0 %2677 }
 0x38e   : > { %10876 = vst [vmem:[#allocation186_spill] sm:$0xff] %v7860_v8  ;;  %10877 = vst [vmem:[#allocation187_spill] sm:$0xff] %v7864_v23  ;;  %v3074_v8 = vstv %s5337_s0  ;;  %s7929_s0 = sld [smem:[#allocation3 + $0x7]] }
 0x38f   : > { %3058 = vrot.lane.b32.xlu1 %v3053_v59, %s5781_s15  ;;  %3056 = vrot.lane.b32.xlu0 %v3052_v55, %s5781_s15  ;;  %v1489_v55 = vstv %s7850_s21  ;;  %v3076_v33 = vmul.f32 %v7627_v25, %v3074_v8  ;;  %s7938_s21 = sld [smem:[#allocation3 + $0x108]] }
 0x390   : > { %v7902_v30 = vmul.f32 %v5548_v29, %v1489_v55 }
 0x391   : > { %v7878_v23 = vpop.permute.xlu1 %2691  ;;  %v7884_v59 = vpop.permute.xlu0 %2689 }
 0x392   : > { %10878 = vst [vmem:[#allocation188_spill] sm:$0xff] %v7878_v23  ;;  %10879 = vst [vmem:[#allocation189_spill] sm:$0xff] %v7884_v59  ;;  %v3075_v23 = vmul.f32 %v7632_v37, %v3074_v8 }
 0x393   : > { %3069 = vrot.lane.b32.xlu1 %v3064_v48, %s5781_s15  ;;  %3067 = vrot.lane.b32.xlu0 %v3063_v32, %s5781_s15  ;;  %v5549_v48 = vld [vmem:[%s6075_s18] sm:$0x3]  ;;  %v7912_v32 = vmul.f32 %v5548_v29, %v1492_v2 }
 0x394   : > { %v7905_v15 = vmul.f32 %v5549_v48, %v1489_v55  ;;  %v7914_v56 = vmul.f32 %v5549_v48, %v1492_v2  ;;  %v3087_v55 = vmul.f32 %v7641_v22, %v3074_v8  ;;  %v3097_v2 = vstv %s7874_s24  ;;  %s8133_s24 = sld [smem:[#allocation3 + $0x81]] }
 0x395   : > { %v7899_v59 = vpop.permute.xlu1 %2702  ;;  %v7910_v19 = vpop.permute.xlu0 %2700  ;;  %v7931_v11 = vmul.f32 %v5549_v48, %v1495_v34 }
 0x396   : > { %10880 = vst [vmem:[#allocation190_spill] sm:$0xff] %v7899_v59  ;;  %10881 = vst [vmem:[#allocation191_spill] sm:$0xff] %v7910_v19  ;;  %v7923_v59 = vmul.f32 %v5548_v29, %v1495_v34  ;;  %v3086_v19 = vmul.f32 %v7646_v39, %v3074_v8  ;;  %v1510_v8 = vstv %s7880_s26  ;;  %s8182_s26 = sld [smem:[#allocation3 + $0x73]] }
 0x397   : > { %3081 = vrot.lane.b32.xlu1 %v3076_v33, %s5781_s15  ;;  %3079 = vrot.lane.b32.xlu0 %v3075_v23, %s5781_s15  ;;  %v7935_v33 = vmul.f32 %v5549_v48, %v1498_v47  ;;  %v7944_v23 = vmul.f32 %v5549_v48, %v1501_v53  ;;  %v7952_v47 = vmul.f32 %v5549_v48, %v1504_v28 }
 0x398   : > { %v7959_v53 = vmul.f32 %v5549_v48, %v1507_v26  ;;  %v7964_v43 = vmul.f32 %v5548_v29, %v1510_v8  ;;  %v7966_v28 = vmul.f32 %v5549_v48, %v1510_v8  ;;  %v5551_v26 = vld [vmem:[%s6075_s18 + $0x10] sm:$0x3]  ;;  %v1911_v8 = vstv %s7917_s29  ;;  %s8392_s29 = sld [smem:[#allocation3 + $0x1e]] }
 0x399   : > { %v7940_v4 = vpop.permute.xlu1 %2759  ;;  %v7948_v34 = vpop.permute.xlu0 %2757  ;;  %10885 = vst [vmem:[#allocation195_spill] sm:$0xff] %v7952_v47  ;;  %v5550_v47 = vld [vmem:[%s6068_s10 + $0x10] sm:$0xfc] }
 0x39a   : > { %10882 = vst [vmem:[#allocation192_spill] sm:$0xff] %v7940_v4  ;;  %10883 = vst [vmem:[#allocation193_spill] sm:$0xff] %v7948_v34  ;;  %v3099_v4 = vmul.f32 %v7627_v25, %v3097_v2  ;;  %v3098_v34 = vmul.f32 %v7632_v37, %v3097_v2  ;;  %v1901_v25 = vstv %s7897_s9  ;;  %v7977_v46 = vmul.f32 %v5550_v47, %v1891_v51  ;;  %s8277_s9 = sld [smem:[#allocation3 + $0x97]] }
 0x39b   : > { %3092 = vrot.lane.b32.xlu1 %v3087_v55, %s5781_s15  ;;  %10887 = vst [vmem:[#allocation197_spill] sm:$0xff] %v7959_v53  ;;  %3090 = vrot.lane.b32.xlu0 %v3086_v19, %s5781_s15  ;;  %10888 = vst [vmem:[#allocation198_spill] sm:$0xff] %v7966_v28  ;;  %v7969_v55 = vmul.f32 %v5550_v47, %v1886_v24  ;;  %v7975_v53 = vmul.f32 %v5551_v26, %v1886_v24  ;;  %v1906_v37 = vstv %s7908_s23  ;;  %s8355_s23 = sld [smem:[#allocation3 + $0xbb]] }
 0x39c   : > { %10891 = vst [vmem:[#allocation201_spill] sm:$0xff] %v7977_v46  ;;  %v7979_v19 = vmul.f32 %v5551_v26, %v1891_v51  ;;  %v7984_v48 = vmul.f32 %v5550_v47, %v1896_v54  ;;  %v7990_v28 = vmul.f32 %v5551_v26, %v1896_v54  ;;  %v7992_v24 = vmul.f32 %v5550_v47, %v1901_v25 }
 0x39d   : > { %10889 = vst [vmem:[#allocation199_spill] sm:$0xff] %v7969_v55  ;;  %v7972_v61 = vpop.permute.xlu1 %2770  ;;  %v7982_v29 = vpop.permute.xlu0 %2768  ;;  %v1916_v55 = vstv %s7919_s7  ;;  %v3109_v51 = vmul.f32 %v7646_v39, %v3097_v2  ;;  %v8004_v46 = vmul.f32 %v5550_v47, %v1906_v37  ;;  %v1522_v39 = vsel %vm612_vm0, %v7076_v10, %v7074_v21  ;;  %s8421_s7 = sld [smem:[#allocation3 + $0x42]] }
 0x39e   : > { %10890 = vst [vmem:[#allocation200_spill] sm:$0xff] %v7972_v61  ;;  %10892 = vst [vmem:[#allocation202_spill] sm:$0xff] %v7979_v19  ;;  %v3110_v61 = vmul.f32 %v7641_v22, %v3097_v2  ;;  %v7997_v19 = vld [vmem:[%s6068_s10 + $0x8] sm:$0xf0]  ;;  %v1921_v22 = vstv %s7938_s21  ;;  %v8017_v2 = vmul.f32 %v5550_v47, %v1911_v8  ;;  %v1556_v21 = vsel %vm612_vm0, %v7112_v7, %v7107_v57  ;;  %s8469_s21 = sld [smem:[#allocation3 + $0x66]] }
 0x39f   : > { %10893 = vst [vmem:[#allocation203_spill] sm:$0xff] %v7982_v29  ;;  %10894 = vst [vmem:[#allocation204_spill] sm:$0xff] %v7984_v48  ;;  %3104 = vrot.lane.b32.xlu1 %v3099_v4, %s5781_s15  ;;  %3102 = vrot.lane.b32.xlu0 %v3098_v34, %s5781_s15  ;;  %v3220_v29 = vstv %s7929_s0  ;;  %v8002_v48 = vmul.f32 %v5551_v26, %v1901_v25  ;;  %v8006_v4 = vmul.f32 %v5551_v26, %v1906_v37  ;;  %s8445_s0 = sld [smem:[#allocation3 + $0xdf]] }
 0x3a0   : > { %10895 = vst [vmem:[#allocation205_spill] sm:$0xff] %v7990_v28  ;;  %v8012_v28 = vld [vmem:[%s6068_s10] sm:$0xf0]  ;;  %v8019_v34 = vmul.f32 %v5551_v26, %v1911_v8  ;;  %v8021_v25 = vmul.f32 %v5550_v47, %v1916_v55  ;;  %v1533_v37 = vsel %vm612_vm0, %v7084_v45, %v7082_v14  ;;  %v3222_v10 = vmul.f32 %v3220_v29, %v7997_v19 }
 0x3a1   : > { %10896 = vst [vmem:[#allocation206_spill] sm:$0xff] %v8002_v48  ;;  %v8009_v54 = vpop.permute.xlu1 %2782  ;;  %v8023_v48 = vpop.permute.xlu0 %2780  ;;  %v1568_v8 = vsel %vm612_vm0, %v7120_v38, %v7118_v52  ;;  %v8041_v14 = vmul.f32 %v5550_v47, %v1921_v22  ;;  %v3221_v45 = vmul.f32 %v3220_v29, %v8012_v28  ;;  %v1579_v57 = vsel %vm612_vm0, %v7128_v16, %v7126_v31 }
 0x3a2   : > { %10897 = vst [vmem:[#allocation207_spill] sm:$0xff] %v8009_v54  ;;  %10898 = vst [vmem:[#allocation208_spill] sm:$0xff] %v8023_v48  ;;  %v1545_v54 = vsel %vm612_vm0, %v7098_v1, %v7093_v9  ;;  %v8039_v48 = vmul.f32 %v5551_v26, %v1916_v55  ;;  %v8046_v9 = vld [vmem:[%s6075_s18 + $0x8] sm:$0xf]  ;;  %v1524_v1 = vadd.f32 %v1522_v39, %v7902_v30 }
 0x3a3   : > { %3115 = vrot.lane.b32.xlu1 %v3110_v61, %s5781_s15  ;;  %3113 = vrot.lane.b32.xlu0 %v3109_v51, %s5781_s15  ;;  %v1591_v7 = vsel %vm612_vm0, %v7136_v58, %v7134_v35  ;;  %v8055_v52 = vmul.f32 %v5551_v26, %v1921_v22  ;;  %v8060_v61 = vld [vmem:[%s6075_s18] sm:$0xf]  ;;  %v1535_v47 = vadd.f32 %v1533_v37, %v7905_v15  ;;  %v10902_v26 = vld [vmem:[#allocation34_spill] sm:$0xff] }
 0x3a4   : > { %v1547_v55 = vadd.f32 %v1545_v54, %v7912_v32  ;;  %v1558_v30 = vadd.f32 %v1556_v21, %v7914_v56  ;;  %v1602_v31 = vsel %vm612_vm0, %v7144_v18, %v7142_v3  ;;  %v8073_v35 = vadd.f32 %v1568_v8, %v7923_v59  ;;  %v10906_v54 = vld [vmem:[#allocation197_spill] sm:$0xff]  ;;  %v10907_v21 = vld [vmem:[#allocation35_spill] sm:$0xff] }
 0x3a5   : > { %v8057_v38 = vpop.permute.xlu1 %2793  ;;  %v8070_v16 = vpop.permute.xlu0 %2791  ;;  %v1614_v58 = vsel %vm612_vm0, %v7152_v13, %v7150_v44  ;;  %v1625_v15 = vsel %vm612_vm0, %v7160_v5, %v7158_v6  ;;  %v3233_v3 = vmul.f32 %v3220_v29, %v8046_v9  ;;  %v1581_v18 = vadd.f32 %v1579_v57, %v7931_v11  ;;  %v10910_v57 = vld [vmem:[#allocation42_spill] sm:$0xff] }
 0x3a6   : > { %v8087_v56 = vadd.f32 %v1591_v7, %v7933_v50  ;;  %v3232_v59 = vmul.f32 %v3220_v29, %v8060_v61  ;;  %v3243_v44 = vstv %s8000_s11  ;;  %v8095_v13 = vadd.f32 %v1602_v31, %v7935_v33  ;;  %s8490_s11 = sld [smem:[#allocation3 + $0x8a]] }
 0x3a7   : > { %3227 = vrot.lane.b32.xlu1 %v3222_v10, %s5780_s30  ;;  %3225 = vrot.lane.b32.xlu0 %v3221_v45, %s5780_s30  ;;  %v1637_v6 = vsel %vm612_vm0, %v7168_v12, %v7166_v42  ;;  %v1648_v5 = vsel %vm612_vm0, %v7176_v41, %v7174_v20  ;;  %v1660_v50 = vsel %vm612_vm0, %v7184_v40, %v7182_v60  ;;  %v10899_v60 = vld [vmem:[#allocation64_spill] sm:$0xff]  ;;  %v10900_v40 = vld [vmem:[#allocation65_spill] sm:$0xff] }
 0x3a8   : > { %v8111_v32 = vadd.f32 %v1614_v58, %v7942_v49  ;;  %v8114_v33 = vadd.f32 %v1625_v15, %v7944_v23  ;;  %v1671_v42 = vsel %vm612_vm0, %v7192_v62, %v7190_v36  ;;  %v1706_v12 = vsel %vm709_vm1, %v7216_v27, %v7214_v17  ;;  %v10901_v23 = vld [vmem:[#allocation72_spill] sm:$0xff]  ;;  %v10903_v62 = vld [vmem:[#allocation194_spill] sm:$0xff]  ;;  %v10904_v27 = vld [vmem:[#allocation195_spill] sm:$0xff] }
 0x3a9   : > { %v8108_v11 = vpop.permute.xlu1 %2805  ;;  %v8122_v20 = vpop.permute.xlu0 %2803  ;;  %v1683_v41 = vsel %vm612_vm0, %v7200_v63, %v7198_v0  ;;  %v1694_v49 = vsel %vm612_vm0, %v10900_v40, %v10899_v60  ;;  %v1717_v29 = vsel %vm709_vm1, %v10902_v26, %v10901_v23  ;;  %v3245_v36 = vmul.f32 %v3243_v44, %v7997_v19  ;;  %v10905_v63 = vld [vmem:[#allocation196_spill] sm:$0xff]  ;;  %v10909_v45 = vld [vmem:[#allocation53_spill] sm:$0xff]  ;;  %v10911_v15 = vld [vmem:[#allocation198_spill] sm:$0xff] }
 0x3aa   : > { %v8138_v17 = vadd.f32 %v1637_v6, %v10903_v62  ;;  %v8141_v0 = vadd.f32 %v1648_v5, %v10904_v27  ;;  %v8144_v51 = vadd.f32 %v1660_v50, %v10905_v63  ;;  %v3244_v22 = vmul.f32 %v3243_v44, %v8012_v28  ;;  %v10908_v10 = vld [vmem:[#allocation52_spill] sm:$0xff]  ;;  %v10913_v5 = vld [vmem:[#allocation43_spill] sm:$0xff]  ;;  %v10914_v50 = vld [vmem:[#allocation66_spill] sm:$0xff] }
 0x3ab   : > { %3238 = vrot.lane.b32.xlu1 %v3233_v3, %s5780_s30  ;;  %3236 = vrot.lane.b32.xlu0 %v3232_v59, %s5780_s30  ;;  %v8149_v39 = vadd.f32 %v1671_v42, %v10906_v54  ;;  %v1708_v37 = vadd.f32 %v1706_v12, %v1524_v1  ;;  %v1729_v8 = vsel %vm709_vm1, %v10908_v10, %v10907_v21  ;;  %v2299_v1 = vstv %s8068_s5  ;;  %v10915_v12 = vld [vmem:[#allocation67_spill] sm:$0xff]  ;;  %v10916_v60 = vld [vmem:[#allocation36_spill] sm:$0xff]  ;;  %v10919_v21 = vld [vmem:[#allocation37_spill] sm:$0xff]  ;;  %s8532_s5 = sld [smem:[#allocation3 + $0x103]] }
 0x3ac   : > { %v1740_v7 = vsel %vm709_vm1, %v10910_v57, %v10909_v45  ;;  %v8160_v58 = vadd.f32 %v1683_v41, %v7964_v43  ;;  %v8163_v3 = vadd.f32 %v1694_v49, %v10911_v15  ;;  %v1719_v59 = vadd.f32 %v1717_v29, %v1535_v47  ;;  %v10917_v29 = vld [vmem:[#allocation199_spill] sm:$0xff]  ;;  %v8188_v27 = vld [vmem:[%s6068_s10 + $0x20] sm:$0xfc]  ;;  %v10920_v10 = vld [vmem:[#allocation54_spill] sm:$0xff] }
 0x3ad   : > { %v8157_v31 = vpop.permute.xlu1 %2816  ;;  %v8166_v6 = vpop.permute.xlu0 %2814  ;;  %v1752_v42 = vsel %vm709_vm1, %v10914_v50, %v10913_v5  ;;  %v1763_v40 = vsel %vm709_vm1, %v10916_v60, %v10915_v12  ;;  %v2304_v43 = vstv %s8081_s3  ;;  %v3256_v47 = vmul.f32 %v3243_v44, %v8046_v9  ;;  %v10922_v45 = vld [vmem:[#allocation44_spill] sm:$0xff]  ;;  %s8557_s3 = sld [smem:[#allocation3 + $0xae]] }
 0x3ae   : > { %10912 = vst [vmem:[#allocation64_spill] sm:$0xff] %v8166_v6  ;;  %v1731_v41 = vadd.f32 %v1729_v8, %v1547_v55  ;;  %v1742_v49 = vadd.f32 %v1740_v7, %v1558_v30  ;;  %v3255_v23 = vmul.f32 %v3243_v44, %v8060_v61  ;;  %v3266_v26 = vstv %s8092_s4  ;;  %v10921_v8 = vld [vmem:[#allocation55_spill] sm:$0xff]  ;;  %s8599_s4 = sld [smem:[#allocation3 + $0x8]] }
 0x3af   : > { %3250 = vrot.lane.b32.xlu1 %v3245_v36, %s5780_s30  ;;  %3248 = vrot.lane.b32.xlu0 %v3244_v22, %s5780_s30  ;;  %v8185_v62 = vadd.f32 %v10917_v29, %v1708_v37  ;;  %v8191_v63 = vmul.f32 %v8188_v27, %v2299_v1  ;;  %v8194_v36 = vld [vmem:[%s6075_s18 + $0x20] sm:$0x3]  ;;  %v2309_v30 = vstv %s8106_s12  ;;  %v1754_v44 = vadd.f32 %v1752_v42, %v8073_v35  ;;  %v10925_v42 = vld [vmem:[#allocation202_spill] sm:$0xff]  ;;  %s8637_s12 = sld [smem:[#allocation3 + $0xd2]] }
 0x3b0   : > { %v8197_v55 = vmul.f32 %v8194_v36, %v2299_v1  ;;  %v1765_v54 = vadd.f32 %v1763_v40, %v1581_v18  ;;  %v1775_v37 = vsel %vm709_vm1, %v10920_v10, %v10919_v21  ;;  %v1786_v57 = vsel %vm709_vm1, %v10922_v45, %v10921_v8  ;;  %v10924_v18 = vld [vmem:[#allocation201_spill] sm:$0xff]  ;;  %v10929_v21 = vld [vmem:[#allocation204_spill] sm:$0xff] }
 0x3b1   : > { %v8200_v22 = vpop.permute.xlu1 %2828  ;;  %v8209_v7 = vpop.permute.xlu0 %2826  ;;  %v8212_v15 = vadd.f32 %v7975_v53, %v1719_v59  ;;  %v8215_v1 = vmul.f32 %v8188_v27, %v2304_v43  ;;  %v2314_v5 = vstv %s8133_s24  ;;  %v3268_v35 = vmul.f32 %v3266_v26, %v7997_v19  ;;  %v10932_v45 = vld [vmem:[#allocation69_spill] sm:$0xff]  ;;  %s8650_s24 = sld [smem:[#allocation3 + $0x2c]] }
 0x3b2   : > { %10918 = vst [vmem:[#allocation65_spill] sm:$0xff] %v8200_v22  ;;  %10923 = vst [vmem:[#allocation72_spill] sm:$0xff] %v8209_v7  ;;  %v8223_v50 = vadd.f32 %v10924_v18, %v1731_v41  ;;  %v8226_v12 = vadd.f32 %v10925_v42, %v1742_v49  ;;  %v8229_v60 = vmul.f32 %v8194_v36, %v2304_v43  ;;  %v10927_v41 = vld [vmem:[#allocation68_spill] sm:$0xff]  ;;  %v10934_v42 = vld [vmem:[#allocation39_spill] sm:$0xff] }
 0x3b3   : > { %3261 = vrot.lane.b32.xlu1 %v3256_v47, %s5780_s30  ;;  %3259 = vrot.lane.b32.xlu0 %v3255_v23, %s5780_s30  ;;  %v3267_v53 = vmul.f32 %v3266_v26, %v8012_v28  ;;  %v1777_v59 = vadd.f32 %v1775_v37, %v8087_v56  ;;  %v1788_v40 = vadd.f32 %v1786_v57, %v8095_v13  ;;  %v10926_v47 = vld [vmem:[#allocation45_spill] sm:$0xff]  ;;  %v10933_v57 = vld [vmem:[#allocation38_spill] sm:$0xff]  ;;  %v10941_v7 = vld [vmem:[#allocation47_spill] sm:$0xff] }
 0x3b4   : > { %v1798_v29 = vsel %vm709_vm1, %v10927_v41, %v10926_v47  ;;  %v8241_v49 = vmul.f32 %v8188_v27, %v2309_v30  ;;  %v8246_v10 = vadd.f32 %v10929_v21, %v1754_v44  ;;  %v10930_v23 = vld [vmem:[#allocation205_spill] sm:$0xff]  ;;  %v8252_v56 = vmul.f32 %v8194_v36, %v2309_v30  ;;  %v10935_v44 = vld [vmem:[#allocation32_spill] sm:$0xff]  ;;  %v10942_v22 = vld [vmem:[#allocation70_spill] sm:$0xff] }
 0x3b5   : > { %v8243_v43 = vpop.permute.xlu1 %2839  ;;  %v8249_v8 = vadd.f32 %v10930_v23, %v1765_v54  ;;  %v8255_v13 = vmul.f32 %v8188_v27, %v2314_v5  ;;  %v8259_v37 = vpop.permute.xlu0 %2837  ;;  %v1809_v18 = vsel %vm709_vm1, %v10933_v57, %v10932_v45  ;;  %v1821_v47 = vsel %vm709_vm1, %v10935_v44, %v10934_v42  ;;  %v10936_v21 = vld [vmem:[#allocation33_spill] sm:$0xff]  ;;  %v10937_v23 = vld [vmem:[#allocation56_spill] sm:$0xff]  ;;  %v10939_v44 = vld [vmem:[#allocation46_spill] sm:$0xff] }
 0x3b6   : > { %10928 = vst [vmem:[#allocation34_spill] sm:$0xff] %v8243_v43  ;;  %10931 = vst [vmem:[#allocation194_spill] sm:$0xff] %v8259_v37  ;;  %v2319_v54 = vstv %s8175_s25  ;;  %v3279_v30 = vmul.f32 %v3266_v26, %v8046_v9  ;;  %v1800_v41 = vadd.f32 %v1798_v29, %v8111_v32  ;;  %v1832_v43 = vsel %vm709_vm1, %v10937_v23, %v10936_v21  ;;  %v10938_v42 = vld [vmem:[#allocation57_spill] sm:$0xff]  ;;  %v10940_v32 = vld [vmem:[#allocation206_spill] sm:$0xff]  ;;  %s8701_s25 = sld [smem:[#allocation3 + $0x50]] }
 0x3b7   : > { %3273 = vrot.lane.b32.xlu1 %v3268_v35, %s5780_s30  ;;  %3271 = vrot.lane.b32.xlu0 %v3267_v53, %s5780_s30  ;;  %v3278_v45 = vmul.f32 %v3266_v26, %v8060_v61  ;;  %v3289_v57 = vstv %s8182_s26  ;;  %v1844_v35 = vsel %vm709_vm1, %v10939_v44, %v10938_v42  ;;  %v8283_v37 = vadd.f32 %v7992_v24, %v1777_v59  ;;  %v10943_v44 = vld [vmem:[#allocation71_spill] sm:$0xff]  ;;  %v10944_v24 = vld [vmem:[#allocation40_spill] sm:$0xff]  ;;  %s8729_s26 = sld [smem:[#allocation3 + $0xf6]] }
 0x3b8   : > { %v8286_v29 = vadd.f32 %v10940_v32, %v1788_v40  ;;  %v8289_v21 = vmul.f32 %v8194_v36, %v2314_v5  ;;  %v1811_v26 = vadd.f32 %v1809_v18, %v8114_v33  ;;  %v1823_v23 = vadd.f32 %v1821_v47, %v8138_v17  ;;  %v10945_v47 = vld [vmem:[#allocation41_spill] sm:$0xff] }
 0x3b9   : > { %v8291_v53 = vpop.permute.xlu1 %2851  ;;  %v1855_v42 = vsel %vm709_vm1, %v10942_v22, %v10941_v7  ;;  %v1867_v59 = vsel %vm709_vm1, %v10944_v24, %v10943_v44  ;;  %v8301_v6 = vpop.permute.xlu0 %2849  ;;  %v1834_v40 = vadd.f32 %v1832_v43, %v8141_v0  ;;  %v8305_v5 = vmul.f32 %v8188_v27, %v2319_v54  ;;  %v10946_v44 = vld [vmem:[#allocation58_spill] sm:$0xff] }
 0x3ba   : > { %v2324_v32 = vstv %s8218_s6  ;;  %v3291_v33 = vmul.f32 %v3289_v57, %v7997_v19  ;;  %v1846_v17 = vadd.f32 %v1844_v35, %v8144_v51  ;;  %v8312_v22 = vadd.f32 %v8004_v46, %v1800_v41  ;;  %s8758_s6 = sld [smem:[#allocation3 + $0x74]] }
 0x3bb   : > { %3284 = vrot.lane.b32.xlu1 %v3279_v30, %s5780_s30  ;;  %v2329_v7 = vstv %s8231_s22  ;;  %3282 = vrot.lane.b32.xlu0 %v3278_v45, %s5780_s30  ;;  %v3290_v18 = vmul.f32 %v3289_v57, %v8012_v28  ;;  %v1857_v0 = vadd.f32 %v1855_v42, %v8149_v39  ;;  %v1869_v43 = vadd.f32 %v1867_v59, %v8160_v58  ;;  %s8807_s22 = sld [smem:[#allocation3 + $0x98]] }
 0x3bc   : > { %v1878_v30 = vsel %vm709_vm1, %v10946_v44, %v10945_v47  ;;  %v8323_v24 = vmul.f32 %v8194_v36, %v2319_v54  ;;  %v1910_v46 = vadd.f32 %v8006_v4, %v1811_v26  ;;  %v8329_v41 = vadd.f32 %v8017_v2, %v1823_v23  ;;  %v10954_v47 = vld [vmem:[#allocation73_spill] sm:$0xff] }
 0x3bd   : > { %v8325_v51 = vpop.permute.xlu1 %2862  ;;  %v8332_v45 = vmul.f32 %v8188_v27, %v2324_v32  ;;  %v2334_v39 = vstv %s8257_s28  ;;  %v8335_v58 = vpop.permute.xlu0 %2860  ;;  %v8338_v35 = vadd.f32 %v8019_v34, %v1834_v40  ;;  %v8341_v54 = vmul.f32 %v8194_v36, %v2324_v32  ;;  %s8827_s28 = sld [smem:[#allocation3 + $0x11a]] }
 0x3be   : > { %10947 = vst [vmem:[#allocation195_spill] sm:$0xff] %v8335_v58  ;;  %v8344_v42 = vmul.f32 %v8188_v27, %v2329_v7  ;;  %v3302_v4 = vmul.f32 %v3289_v57, %v8046_v9  ;;  %v1880_v2 = vadd.f32 %v1878_v30, %v8163_v3  ;;  %v8350_v26 = vadd.f32 %v8021_v25, %v1846_v17  ;;  %v10952_v17 = vld [vmem:[#allocation48_spill] sm:$0xff]  ;;  %v10962_v58 = vld [vmem:[#allocation63_spill] sm:$0xff] }
 0x3bf   : > { %3296 = vrot.lane.b32.xlu1 %v3291_v33, %s5780_s30  ;;  %3294 = vrot.lane.b32.xlu0 %v3290_v18, %s5780_s30  ;;  %v3301_v34 = vmul.f32 %v3289_v57, %v8060_v61  ;;  %v3312_v23 = vstv %s8277_s9  ;;  %v1920_v59 = vadd.f32 %v8039_v48, %v1857_v0  ;;  %v8359_v40 = vadd.f32 %v8041_v14, %v1869_v43  ;;  %v10951_v33 = vld [vmem:[#allocation59_spill] sm:$0xff]  ;;  %v10953_v18 = vld [vmem:[#allocation49_spill] sm:$0xff]  ;;  %v10955_v48 = vld [vmem:[#allocation74_spill] sm:$0xff]  ;;  %s8855_s9 = sld [smem:[#allocation3 + $0xbc]] }
 0x3c0   : > { %v8362_v32 = vmul.f32 %v8194_v36, %v2329_v7  ;;  %v8365_v3 = vmul.f32 %v8188_v27, %v2334_v39  ;;  %v1935_v57 = vsel %vm612_vm0, %v10952_v17, %v10951_v33  ;;  %v1946_v44 = vsel %vm612_vm0, %v10954_v47, %v10953_v18  ;;  %v10956_v0 = vld [vmem:[#allocation60_spill] sm:$0xff]  ;;  %v10957_v43 = vld [vmem:[#allocation61_spill] sm:$0xff]  ;;  %v10958_v7 = vld [vmem:[#allocation50_spill] sm:$0xff] }
 0x3c1   : > { %v8367_v25 = vpop.permute.xlu1 %2874  ;;  %v1958_v14 = vsel %vm612_vm0, %v10956_v0, %v10955_v48  ;;  %v1969_v30 = vsel %vm612_vm0, %v10958_v7, %v10957_v43  ;;  %v8381_v27 = vpop.permute.xlu0 %2872  ;;  %v10963_v33 = vld [vmem:[#allocation75_spill] sm:$0xff]  ;;  %v8390_v18 = vmul.f32 %v8194_v36, %v2334_v39  ;;  %v3314_v47 = vmul.f32 %v3312_v23, %v7997_v19  ;;  %v10965_v48 = vld [vmem:[#allocation76_spill] sm:$0xff]  ;;  %v10966_v0 = vld [vmem:[#allocation77_spill] sm:$0xff] }
 0x3c2   : > { %10948 = vst [vmem:[#allocation196_spill] sm:$0xff] %v8362_v32  ;;  %10949 = vst [vmem:[#allocation197_spill] sm:$0xff] %v8365_v3  ;;  %v10960_v3 = vld [vmem:[#allocation51_spill] sm:$0xff]  ;;  %v10961_v32 = vld [vmem:[#allocation62_spill] sm:$0xff]  ;;  %v1992_v17 = vsel %vm612_vm0, %v10963_v33, %v10962_v58  ;;  %v2004_v43 = vsel %vm612_vm0, %v10966_v0, %v10965_v48  ;;  %v3313_v36 = vmul.f32 %v3312_v23, %v8012_v28 }
 0x3c3   : > { %10950 = vst [vmem:[#allocation35_spill] sm:$0xff] %v8367_v25  ;;  %10959 = vst [vmem:[#allocation52_spill] sm:$0xff] %v8381_v27  ;;  %v1981_v25 = vsel %vm612_vm0, %v10961_v32, %v10960_v3  ;;  %3307 = vrot.lane.b32.xlu1 %v3302_v4, %s5780_s30  ;;  %v10967_v7 = vld [vmem:[#allocation78_spill] sm:$0xff]  ;;  %v10968_v27 = vld [vmem:[#allocation79_spill] sm:$0xff]  ;;  %v1925_v3 = vadd.f32 %v8055_v52, %v1880_v2  ;;  %3305 = vrot.lane.b32.xlu0 %v3301_v34, %s5780_s30 }
 0x3c4   : > { %10964 = vst [vmem:[#allocation53_spill] sm:$0xff] %v8390_v18  ;;  %v2015_v32 = vsel %vm612_vm0, %v10968_v27, %v10967_v7  ;;  %v1937_v39 = vadd.f32 %v1935_v57, %v8185_v62  ;;  %v1948_v58 = vadd.f32 %v1946_v44, %v8212_v15  ;;  %v1960_v4 = vadd.f32 %v1958_v14, %v8223_v50  ;;  %v10970_v52 = vld [vmem:[#allocation80_spill] sm:$0xff]  ;;  %v10971_v2 = vld [vmem:[#allocation81_spill] sm:$0xff]  ;;  %v10972_v0 = vld [vmem:[#allocation82_spill] sm:$0xff] }
 0x3c5   : > { %v1971_v33 = vadd.f32 %v1969_v30, %v8226_v12  ;;  %v8409_v18 = vpop.permute.xlu1 %2885  ;;  %v1983_v48 = vadd.f32 %v1981_v25, %v8246_v10  ;;  %v8413_v27 = vadd.f32 %v1992_v17, %v8249_v8  ;;  %v2027_v34 = vsel %vm612_vm0, %v10971_v2, %v10970_v52  ;;  %v10973_v62 = vld [vmem:[#allocation83_spill] sm:$0xff]  ;;  %v8423_v50 = vpop.permute.xlu0 %2883  ;;  %v10975_v8 = vld [vmem:[#allocation96_spill] sm:$0xff]  ;;  %v10976_v25 = vld [vmem:[#allocation97_spill] sm:$0xff] }
 0x3c6   : > { %10969 = vst [vmem:[#allocation42_spill] sm:$0xff] %v8409_v18  ;;  %v2038_v15 = vsel %vm612_vm0, %v10973_v62, %v10972_v0  ;;  %10974 = vst [vmem:[#allocation198_spill] sm:$0xff] %v8423_v50  ;;  %v8426_v12 = vadd.f32 %v2004_v43, %v8283_v37  ;;  %v8429_v10 = vadd.f32 %v2015_v32, %v8286_v29  ;;  %v10977_v14 = vld [vmem:[#allocation84_spill] sm:$0xff]  ;;  %v10978_v30 = vld [vmem:[#allocation85_spill] sm:$0xff]  ;;  %v3335_v43 = vstv %s8355_s23  ;;  %s8908_s23 = sld [smem:[#allocation3 + $0xe0]] }
 0x3c7   : > { %v2119_v57 = vsel %vm709_vm1, %v10976_v25, %v10975_v8  ;;  %3319 = vrot.lane.b32.xlu1 %v3314_v47, %s5780_s30  ;;  %v3325_v44 = vmul.f32 %v3312_v23, %v8046_v9  ;;  %v2050_v17 = vsel %vm612_vm0, %v10978_v30, %v10977_v14  ;;  %v10979_v7 = vld [vmem:[#allocation86_spill] sm:$0xff]  ;;  %v10980_v52 = vld [vmem:[#allocation87_spill] sm:$0xff]  ;;  %3317 = vrot.lane.b32.xlu0 %v3313_v36, %s5780_s30  ;;  %v10981_v2 = vld [vmem:[#allocation88_spill] sm:$0xff] }
 0x3c8   : > { %v2061_v37 = vsel %vm612_vm0, %v10980_v52, %v10979_v7  ;;  %v3324_v29 = vmul.f32 %v3312_v23, %v8060_v61  ;;  %v8448_v47 = vadd.f32 %v2027_v34, %v8312_v22  ;;  %v8450_v32 = vadd.f32 %v2038_v15, %v1910_v46  ;;  %v10982_v0 = vld [vmem:[#allocation89_spill] sm:$0xff]  ;;  %v10983_v8 = vld [vmem:[#allocation90_spill] sm:$0xff]  ;;  %v10984_v25 = vld [vmem:[#allocation91_spill] sm:$0xff] }
 0x3c9   : > { %v2073_v62 = vsel %vm612_vm0, %v10982_v0, %v10981_v2  ;;  %v2084_v14 = vsel %vm612_vm0, %v10984_v25, %v10983_v8  ;;  %v8458_v36 = vpop.permute.xlu1 %2897  ;;  %v10986_v23 = vld [vmem:[#allocation92_spill] sm:$0xff]  ;;  %v10987_v30 = vld [vmem:[#allocation93_spill] sm:$0xff]  ;;  %v10988_v52 = vld [vmem:[#allocation94_spill] sm:$0xff]  ;;  %v2121_v46 = vadd.f32 %v2119_v57, %v1937_v39  ;;  %v8471_v2 = vpop.permute.xlu0 %2895  ;;  %v8474_v0 = vadd.f32 %v2050_v17, %v8329_v41 }
 0x3ca   : > { %10985 = vst [vmem:[#allocation43_spill] sm:$0xff] %v8458_v36  ;;  %v2096_v7 = vsel %vm612_vm0, %v10987_v30, %v10986_v23  ;;  %v10989_v50 = vld [vmem:[#allocation95_spill] sm:$0xff]  ;;  %v10990_v34 = vld [vmem:[#allocation98_spill] sm:$0xff]  ;;  %10992 = vst [vmem:[#allocation66_spill] sm:$0xff] %v8471_v2  ;;  %v8477_v8 = vadd.f32 %v2061_v37, %v8338_v35  ;;  %v2712_v25 = vstv %s8392_s29  ;;  %v3337_v39 = vmul.f32 %v3335_v43, %v7997_v19  ;;  %s5349_s29 = sld [smem:[#allocation3 + $0x104]] }
 0x3cb   : > { %v2107_v22 = vsel %vm612_vm0, %v10989_v50, %v10988_v52  ;;  %v10991_v15 = vld [vmem:[#allocation99_spill] sm:$0xff]  ;;  %3330 = vrot.lane.b32.xlu1 %v3325_v44, %s5780_s30  ;;  %v8483_v50 = vadd.f32 %v2073_v62, %v8350_v26  ;;  %v8485_v57 = vadd.f32 %v2084_v14, %v1920_v59  ;;  %v10993_v23 = vld [vmem:[#allocation100_spill] sm:$0xff]  ;;  %v10994_v30 = vld [vmem:[#allocation101_spill] sm:$0xff]  ;;  %3328 = vrot.lane.b32.xlu0 %v3324_v29, %s5780_s30 }
 0x3cc   : > { %v2130_v18 = vsel %vm709_vm1, %v10991_v15, %v10990_v34  ;;  %v2142_v41 = vsel %vm709_vm1, %v10994_v30, %v10993_v23  ;;  %v3336_v35 = vmul.f32 %v3335_v43, %v8012_v28  ;;  %v8495_v44 = vadd.f32 %v2096_v7, %v8359_v40  ;;  %v10997_v37 = vld [vmem:[#allocation102_spill] sm:$0xff]  ;;  %v10998_v59 = vld [vmem:[#allocation103_spill] sm:$0xff]  ;;  %v11000_v52 = vld [vmem:[#allocation104_spill] sm:$0xff] }
 0x3cd   : > { %v8497_v17 = vadd.f32 %v2107_v22, %v1925_v3  ;;  %v2132_v26 = vadd.f32 %v2130_v18, %v1948_v58  ;;  %v2153_v62 = vsel %vm709_vm1, %v10998_v59, %v10997_v37  ;;  %v8502_v14 = vpop.permute.xlu1 %2908  ;;  %v11001_v34 = vld [vmem:[#allocation105_spill] sm:$0xff]  ;;  %v2301_v29 = vadd.f32 %v8191_v63, %v2121_v46  ;;  %v8509_v23 = vld [vmem:[%s6068_s10 + $0x30] sm:$0xfc]  ;;  %v8513_v7 = vpop.permute.xlu0 %2906  ;;  %v11004_v22 = vld [vmem:[#allocation107_spill] sm:$0xff] }
 0x3ce   : > { %10995 = vst [vmem:[#allocation67_spill] sm:$0xff] %v8495_v44  ;;  %10999 = vst [vmem:[#allocation199_spill] sm:$0xff] %v8502_v14  ;;  %v2165_v15 = vsel %vm709_vm1, %v11001_v34, %v11000_v52  ;;  %v2713_v40 = vmul.f32 %v8509_v23, %v2712_v25  ;;  %v2717_v3 = vstv %s8421_s7  ;;  %v2144_v18 = vadd.f32 %v2142_v41, %v1960_v4  ;;  %v11003_v58 = vld [vmem:[#allocation106_spill] sm:$0xff]  ;;  %v11005_v37 = vld [vmem:[#allocation128_spill] sm:$0xff]  ;;  %s5105_s7 = sld [smem:[#allocation3 + $0x10]] }
 0x3cf   : > { %10996 = vst [vmem:[#allocation36_spill] sm:$0xff] %v8497_v17  ;;  %11002 = vst [vmem:[#allocation37_spill] sm:$0xff] %v8513_v7  ;;  %v2176_v30 = vsel %vm709_vm1, %v11004_v22, %v11003_v58  ;;  %v11006_v59 = vld [vmem:[#allocation129_spill] sm:$0xff]  ;;  %3342 = vrot.lane.b32.xlu1 %v3337_v39, %s5780_s30  ;;  %v3348_v63 = vmul.f32 %v3335_v43, %v8046_v9  ;;  %v2155_v46 = vadd.f32 %v2153_v62, %v1971_v33  ;;  %v8524_v52 = vld [vmem:[%s6075_s18 + $0x30] sm:$0x3] }
 0x3d0   : > { %v2348_v14 = vsel %vm612_vm0, %v11006_v59, %v11005_v37  ;;  %v8527_v34 = vmul.f32 %v8524_v52, %v2712_v25  ;;  %3340 = vrot.lane.b32.xlu0 %v3336_v35, %s5780_s30  ;;  %v3347_v4 = vmul.f32 %v3335_v43, %v8060_v61  ;;  %v3358_v41 = vstv %s8445_s0  ;;  %v11007_v39 = vld [vmem:[#allocation160_spill] sm:$0xff]  ;;  %v11008_v37 = vld [vmem:[#allocation161_spill] sm:$0xff]  ;;  %s5141_s0 = sld [smem:[#allocation3 + $0x34]] }
 0x3d1   : > { %v2167_v58 = vadd.f32 %v2165_v15, %v1983_v48  ;;  %v2303_v22 = vadd.f32 %v8197_v55, %v2132_v26  ;;  %v2532_v59 = vsel %vm709_vm1, %v11008_v37, %v11007_v39  ;;  %v8539_v33 = vmul.f32 %v8509_v23, %v2717_v3  ;;  %v8541_v25 = vpop.permute.xlu1 %2920  ;;  %v11010_v62 = vld [vmem:[#allocation108_spill] sm:$0xff]  ;;  %v11011_v43 = vld [vmem:[#allocation109_spill] sm:$0xff]  ;;  %v8548_v15 = vpop.permute.xlu0 %2918  ;;  %v11013_v55 = vld [vmem:[#allocation130_spill] sm:$0xff] }
 0x3d2   : > { %11009 = vst [vmem:[#allocation54_spill] sm:$0xff] %v8541_v25  ;;  %v2178_v35 = vadd.f32 %v2176_v30, %v8413_v27  ;;  %v2188_v7 = vsel %vm709_vm1, %v11011_v43, %v11010_v62  ;;  %v2350_v2 = vadd.f32 %v2348_v14, %v2301_v29  ;;  %v2722_v48 = vstv %s8469_s21  ;;  %11012 = vst [vmem:[#allocation55_spill] sm:$0xff] %v8548_v15  ;;  %v11014_v26 = vld [vmem:[#allocation131_spill] sm:$0xff]  ;;  %s5177_s21 = sld [smem:[#allocation3 + $0x58]] }
 0x3d3   : > { %v2359_v39 = vsel %vm612_vm0, %v11014_v26, %v11013_v55  ;;  %v2306_v37 = vadd.f32 %v8215_v1, %v2144_v18  ;;  %v8555_v36 = vmul.f32 %v8524_v52, %v2717_v3  ;;  %3353 = vrot.lane.b32.xlu1 %v3348_v63, %s5780_s30  ;;  %v3360_v27 = vmul.f32 %v3358_v41, %v7997_v19  ;;  %v11015_v3 = vld [vmem:[#allocation162_spill] sm:$0xff]  ;;  %v11016_v18 = vld [vmem:[#allocation163_spill] sm:$0xff] }
 0x3d4   : > { %v2308_v14 = vadd.f32 %v8229_v60, %v2155_v46  ;;  %v2534_v29 = vadd.f32 %v2532_v59, %v2350_v2  ;;  %v2727_v30 = vstv %s8490_s11  ;;  %3351 = vrot.lane.b32.xlu0 %v3347_v4, %s5780_s30  ;;  %v3359_v62 = vmul.f32 %v3358_v41, %v8012_v28  ;;  %v11018_v60 = vld [vmem:[#allocation110_spill] sm:$0xff]  ;;  %v11019_v2 = vld [vmem:[#allocation111_spill] sm:$0xff]  ;;  %v11022_v59 = vld [vmem:[#allocation133_spill] sm:$0xff]  ;;  %s5213_s11 = sld [smem:[#allocation3 + $0x7c]] }
 0x3d5   : > { %v2190_v43 = vadd.f32 %v2188_v7, %v8426_v12  ;;  %v8567_v1 = vadd.f32 %v8241_v49, %v2167_v58  ;;  %v2543_v55 = vsel %vm709_vm1, %v11016_v18, %v11015_v3  ;;  %v8573_v63 = vmul.f32 %v8509_v23, %v2722_v48  ;;  %v8575_v26 = vpop.permute.xlu1 %2931  ;;  %v8586_v7 = vpop.permute.xlu0 %2929  ;;  %v11021_v58 = vld [vmem:[#allocation132_spill] sm:$0xff] }
 0x3d6   : > { %11017 = vst [vmem:[#allocation44_spill] sm:$0xff] %v8575_v26  ;;  %v2199_v46 = vsel %vm709_vm1, %v11019_v2, %v11018_v60  ;;  %v2361_v4 = vadd.f32 %v2359_v39, %v2303_v22  ;;  %v8581_v12 = vadd.f32 %v8252_v56, %v2178_v35  ;;  %v8584_v49 = vmul.f32 %v8524_v52, %v2722_v48  ;;  %v11023_v18 = vld [vmem:[#allocation192_spill] sm:$0xff]  ;;  %v11024_v26 = vld [vmem:[#allocation193_spill] sm:$0xff] }
 0x3d7   : > { %11020 = vst [vmem:[#allocation201_spill] sm:$0xff] %v8586_v7  ;;  %v2371_v3 = vsel %vm612_vm0, %v11022_v59, %v11021_v58  ;;  %v2761_v15 = vsel %vm612_vm0, %v11024_v26, %v11023_v18  ;;  %v8595_v25 = vmul.f32 %v8509_v23, %v2727_v30  ;;  %3365 = vrot.lane.b32.xlu1 %v3360_v27, %s5780_s30  ;;  %v3381_v39 = vstv %s8532_s5  ;;  %v11025_v2 = vld [vmem:[#allocation164_spill] sm:$0xff]  ;;  %v11026_v58 = vld [vmem:[#allocation165_spill] sm:$0xff]  ;;  %v11030_v18 = vld [vmem:[#allocation135_spill] sm:$0xff]  ;;  %s5249_s5 = sld [smem:[#allocation3 + $0xa0]] }
 0x3d8   : > { %v3371_v56 = vmul.f32 %v3358_v41, %v8046_v9  ;;  %v2545_v22 = vadd.f32 %v2543_v55, %v2361_v4  ;;  %v2714_v35 = vadd.f32 %v2713_v40, %v2534_v29  ;;  %3363 = vrot.lane.b32.xlu0 %v3359_v62, %s5780_s30  ;;  %v3370_v48 = vmul.f32 %v3358_v41, %v8060_v61  ;;  %v11027_v4 = vld [vmem:[#allocation112_spill] sm:$0xff]  ;;  %v11028_v40 = vld [vmem:[#allocation113_spill] sm:$0xff]  ;;  %v11029_v41 = vld [vmem:[#allocation134_spill] sm:$0xff] }
 0x3d9   : > { %v2201_v60 = vadd.f32 %v2199_v46, %v8429_v10  ;;  %v8606_v26 = vadd.f32 %v8255_v13, %v2190_v43  ;;  %v2555_v27 = vsel %vm709_vm1, %v11026_v58, %v11025_v2  ;;  %v8612_v59 = vmul.f32 %v8524_v52, %v2727_v30  ;;  %v2944_v55 = vpop.permute.xlu1 %2943  ;;  %v2942_v13 = vpop.permute.xlu0 %2941  ;;  %v11031_v43 = vld [vmem:[#allocation200_spill] sm:$0xff]  ;;  %v11032_v7 = vld [vmem:[#allocation203_spill] sm:$0xff] }
 0x3da   : > { %v2211_v29 = vsel %vm709_vm1, %v11028_v40, %v11027_v4  ;;  %v2373_v62 = vadd.f32 %v2371_v3, %v2306_v37  ;;  %v2382_v10 = vsel %vm612_vm0, %v11030_v18, %v11029_v41  ;;  %v2763_v46 = vadd.f32 %v2761_v15, %v2714_v35  ;;  %v11033_v4 = vld [vmem:[#allocation114_spill] sm:$0xff]  ;;  %v11034_v40 = vld [vmem:[#allocation115_spill] sm:$0xff] }
 0x3db   : > { %v2772_v17 = vsel %vm612_vm0, %v11032_v7, %v11031_v43  ;;  %v2732_v2 = vstv %s8557_s3  ;;  %v2945_v30 = vsel %vm709_vm1, %v2942_v13, %v2944_v55  ;;  %3376 = vrot.lane.b32.xlu1 %v3371_v56, %s5780_s30  ;;  %v3383_v58 = vmul.f32 %v3381_v39, %v7997_v19  ;;  %v11035_v41 = vld [vmem:[#allocation166_spill] sm:$0xff]  ;;  %v11036_v56 = vld [vmem:[#allocation167_spill] sm:$0xff]  ;;  %v11040_v43 = vld [vmem:[#allocation208_spill] sm:$0xff]  ;;  %s5285_s3 = sld [smem:[#allocation3 + $0xc4]] }
 0x3dc   : > { %v2557_v44 = vadd.f32 %v2555_v27, %v2373_v62  ;;  %v2716_v37 = vadd.f32 %v8527_v34, %v2545_v22  ;;  %v2947_v3 = vadd.f32 %v2945_v30, %v2763_v46  ;;  %3374 = vrot.lane.b32.xlu0 %v3370_v48, %s5780_s30  ;;  %v3382_v15 = vmul.f32 %v3381_v39, %v8012_v28  ;;  %v11037_v22 = vld [vmem:[#allocation136_spill] sm:$0xff]  ;;  %v11038_v27 = vld [vmem:[#allocation137_spill] sm:$0xff]  ;;  %v11039_v13 = vld [vmem:[#allocation207_spill] sm:$0xff] }
 0x3dd   : > { %v2213_v35 = vadd.f32 %v2211_v29, %v8448_v47  ;;  %v2222_v7 = vsel %vm709_vm1, %v11034_v40, %v11033_v4  ;;  %v2384_v55 = vadd.f32 %v2382_v10, %v2308_v14  ;;  %v2566_v18 = vsel %vm709_vm1, %v11036_v56, %v11035_v41  ;;  %v2955_v34 = vpop.permute.xlu1 %2954  ;;  %v2953_v47 = vpop.permute.xlu0 %2952  ;;  %v3120_v10 = vld [vmem:[#allocation2] sm:$0x3f] }
 0x3de   : > { %v2394_v48 = vsel %vm612_vm0, %v11038_v27, %v11037_v22  ;;  %v2774_v62 = vadd.f32 %v2772_v17, %v2716_v37  ;;  %v3122_v46 = vrot.slane %v2947_v3, 2  ;;  %v3394_v29 = vmul.f32 %v3381_v39, %v8046_v9 }
 0x3df   : > { %v2784_v14 = vsel %vm612_vm0, %v11040_v43, %v11039_v13  ;;  %v2956_v30 = vsel %vm709_vm1, %v2953_v47, %v2955_v34  ;;  %3388 = vrot.lane.b32.xlu1 %v3383_v58, %s5780_s30  ;;  %v3393_v4 = vmul.f32 %v3381_v39, %v8060_v61  ;;  %v3404_v40 = vstv %s8599_s4  ;;  %v11041_v34 = vld [vmem:[#allocation168_spill] sm:$0xff]  ;;  %v11042_v58 = vld [vmem:[#allocation169_spill] sm:$0xff]  ;;  %s5321_s4 = sld [smem:[#allocation3 + $0xe8]] }
 0x3e0   : > { %v2568_v17 = vadd.f32 %v2566_v18, %v2384_v55  ;;  %v2719_v37 = vadd.f32 %v8539_v33, %v2557_v44  ;;  %v3124_v3 = vadd.f32 %v3122_v46, %v3120_v10  ;;  %v2958_v41 = vadd.f32 %v2956_v30, %v2774_v62  ;;  %3386 = vrot.lane.b32.xlu0 %v3382_v15, %s5780_s30  ;;  %v3126_v55 = vld [vmem:[#allocation2 + $0x6] sm:$0x3]  ;;  %v11043_v18 = vld [vmem:[#allocation138_spill] sm:$0xff]  ;;  %v11044_v15 = vld [vmem:[#allocation139_spill] sm:$0xff] }
 0x3e1   : > { %v8655_v56 = vadd.f32 %v8289_v21, %v2201_v60  ;;  %v8658_v22 = vadd.f32 %v8305_v5, %v2213_v35  ;;  %v2578_v39 = vsel %vm709_vm1, %v11042_v58, %v11041_v34  ;;  %v8666_v27 = vmul.f32 %v8509_v23, %v2732_v2  ;;  %v2967_v44 = vpop.permute.xlu1 %2966  ;;  %v2965_v35 = vpop.permute.xlu0 %2964  ;;  %v11047_v10 = vld [vmem:[#allocation170_spill] sm:$0xff] }
 0x3e2   : > { %v2396_v33 = vadd.f32 %v2394_v48, %v8567_v1  ;;  %v2405_v21 = vsel %vm612_vm0, %v11044_v15, %v11043_v18  ;;  %v2786_v60 = vadd.f32 %v2784_v14, %v2719_v37  ;;  %3125 = vst [vmem:[#allocation2] sm:$0x3f] %v3124_v3  ;;  %v3127_v5 = vadd.f32 %v3126_v55, %v2958_v41  ;;  %v3129_v55 = vld [vmem:[#allocation2 + $0x8] sm:$0x3f] }
 0x3e3   : > { %v2224_v62 = vadd.f32 %v2222_v7, %v8450_v32  ;;  %v2795_v46 = vsel %vm612_vm0, %v8070_v16, %v8057_v38  ;;  %v2968_v47 = vsel %vm709_vm1, %v2965_v35, %v2967_v44  ;;  %3399 = vrot.lane.b32.xlu1 %v3394_v29, %s5780_s30  ;;  %v3406_v1 = vmul.f32 %v3404_v40, %v7997_v19  ;;  %v11045_v32 = vld [vmem:[#allocation116_spill] sm:$0xff]  ;;  %v11046_v7 = vld [vmem:[#allocation117_spill] sm:$0xff]  ;;  %v11048_v29 = vld [vmem:[#allocation171_spill] sm:$0xff] }
 0x3e4   : > { %v2580_v48 = vadd.f32 %v2578_v39, %v2396_v33  ;;  %v2721_v13 = vadd.f32 %v8555_v36, %v2568_v17  ;;  %3128 = vst [vmem:[#allocation2 + $0x6] sm:$0x3] %v3127_v5  ;;  %v2970_v43 = vadd.f32 %v2968_v47, %v2786_v60  ;;  %3397 = vrot.lane.b32.xlu0 %v3393_v4, %s5780_s30  ;;  %v2737_v37 = vstv %s8637_s12  ;;  %v11049_v36 = vld [vmem:[#allocation140_spill] sm:$0xff]  ;;  %v11050_v17 = vld [vmem:[#allocation141_spill] sm:$0xff]  ;;  %s5357_s12 = sld [smem:[#allocation3 + $0x10c]] }
 0x3e5   : > { %v3405_v14 = vmul.f32 %v3404_v40, %v8012_v28  ;;  %v2234_v38 = vsel %vm709_vm1, %v11046_v7, %v11045_v32  ;;  %v2407_v16 = vadd.f32 %v2405_v21, %v8581_v12  ;;  %v2589_v30 = vsel %vm709_vm1, %v11048_v29, %v11047_v10  ;;  %v2978_v3 = vpop.permute.xlu1 %2977  ;;  %v2976_v58 = vpop.permute.xlu0 %2975  ;;  %v11051_v35 = vld [vmem:[#allocation172_spill] sm:$0xff] }
 0x3e6   : > { %v2417_v41 = vsel %vm612_vm0, %v11050_v17, %v11049_v36  ;;  %v2797_v4 = vadd.f32 %v2795_v46, %v2721_v13  ;;  %v3131_v34 = vrot.slane %v2970_v43, 2  ;;  %v3417_v39 = vmul.f32 %v3404_v40, %v8046_v9  ;;  %v11052_v46 = vld [vmem:[#allocation173_spill] sm:$0xff]  ;;  %v11053_v13 = vld [vmem:[#allocation142_spill] sm:$0xff]  ;;  %v11054_v43 = vld [vmem:[#allocation143_spill] sm:$0xff] }
 0x3e7   : > { %v2807_v12 = vsel %vm612_vm0, %v8122_v20, %v8108_v11  ;;  %v2979_v44 = vsel %vm709_vm1, %v2976_v58, %v2978_v3  ;;  %3411 = vrot.lane.b32.xlu1 %v3406_v1, %s5781_s15  ;;  %v3416_v33 = vmul.f32 %v3404_v40, %v8060_v61  ;;  %v3427_v18 = vstv %s8650_s24  ;;  %v3135_v1 = vld [vmem:[#allocation2 + $0xe] sm:$0x3]  ;;  %v11055_v32 = vld [vmem:[#allocation64_spill] sm:$0xff]  ;;  %v11057_v3 = vld [vmem:[#allocation119_spill] sm:$0xff]  ;;  %s5106_s24 = sld [smem:[#allocation3 + $0x11]] }
 0x3e8   : > { %v2591_v15 = vadd.f32 %v2589_v30, %v2407_v16  ;;  %v2724_v21 = vadd.f32 %v8573_v63, %v2580_v48  ;;  %v3133_v60 = vadd.f32 %v3131_v34, %v3129_v55  ;;  %v2981_v5 = vadd.f32 %v2979_v44, %v2797_v4  ;;  %3409 = vrot.lane.b32.xlu0 %v3405_v14, %s5781_s15  ;;  %v11056_v30 = vld [vmem:[#allocation118_spill] sm:$0xff]  ;;  %v11059_v34 = vld [vmem:[#allocation175_spill] sm:$0xff] }
 0x3e9   : > { %v2236_v11 = vadd.f32 %v2234_v38, %v8474_v0  ;;  %v8707_v20 = vadd.f32 %v8323_v24, %v2224_v62  ;;  %v2601_v40 = vsel %vm709_vm1, %v11052_v46, %v11051_v35  ;;  %v8715_v47 = vmul.f32 %v8524_v52, %v2732_v2  ;;  %v2990_v63 = vpop.permute.xlu1 %2989  ;;  %v2988_v62 = vpop.permute.xlu0 %2987  ;;  %v11058_v4 = vld [vmem:[#allocation174_spill] sm:$0xff] }
 0x3ea   : > { %v2419_v48 = vadd.f32 %v2417_v41, %v8606_v26  ;;  %v2428_v14 = vsel %vm612_vm0, %v11054_v43, %v11053_v13  ;;  %v2809_v0 = vadd.f32 %v2807_v12, %v2724_v21  ;;  %3134 = vst [vmem:[#allocation2 + $0x8] sm:$0x3f] %v3133_v60  ;;  %v3136_v24 = vadd.f32 %v3135_v1, %v2981_v5  ;;  %v11061_v12 = vld [vmem:[#allocation145_spill] sm:$0xff]  ;;  %v11063_v5 = vld [vmem:[#allocation72_spill] sm:$0xff] }
 0x3eb   : > { %v2818_v7 = vsel %vm612_vm0, %v11055_v32, %v8157_v31  ;;  %v8727_v2 = vmul.f32 %v8509_v23, %v2737_v37  ;;  %v2991_v26 = vsel %vm709_vm1, %v2988_v62, %v2990_v63  ;;  %3422 = vrot.lane.b32.xlu1 %v3417_v39, %s5781_s15  ;;  %v3429_v38 = vmul.f32 %v3427_v18, %v7997_v19  ;;  %v11060_v39 = vld [vmem:[#allocation144_spill] sm:$0xff]  ;;  %v11062_v60 = vld [vmem:[#allocation65_spill] sm:$0xff] }
 0x3ec   : > { %v2603_v16 = vadd.f32 %v2601_v40, %v2419_v48  ;;  %v2726_v10 = vadd.f32 %v8584_v49, %v2591_v15  ;;  %3137 = vst [vmem:[#allocation2 + $0xe] sm:$0x3] %v3136_v24  ;;  %v2993_v29 = vadd.f32 %v2991_v26, %v2809_v0  ;;  %3420 = vrot.lane.b32.xlu0 %v3416_v33, %s5781_s15  ;;  %v3450_v46 = vstv %s8701_s25  ;;  %v11064_v43 = vld [vmem:[#allocation120_spill] sm:$0xff]  ;;  %v11067_v62 = vld [vmem:[#allocation177_spill] sm:$0xff]  ;;  %s5142_s25 = sld [smem:[#allocation3 + $0x35]] }
 0x3ed   : > { %v3428_v31 = vmul.f32 %v3427_v18, %v8012_v28  ;;  %v2245_v36 = vsel %vm709_vm1, %v11057_v3, %v11056_v30  ;;  %v2430_v17 = vadd.f32 %v2428_v14, %v8655_v56  ;;  %v8742_v41 = vadd.f32 %v8332_v45, %v2236_v11  ;;  %v3001_v58 = vpop.permute.xlu1 %3000  ;;  %v2999_v15 = vpop.permute.xlu0 %2998  ;;  %v3138_v56 = vld [vmem:[#allocation2 + $0x10] sm:$0x3f]  ;;  %v11065_v14 = vld [vmem:[#allocation121_spill] sm:$0xff]  ;;  %v11066_v24 = vld [vmem:[#allocation176_spill] sm:$0xff] }
 0x3ee   : > { %v2612_v49 = vsel %vm709_vm1, %v11059_v34, %v11058_v4  ;;  %v2440_v55 = vsel %vm612_vm0, %v11061_v12, %v11060_v39  ;;  %v2820_v44 = vadd.f32 %v2818_v7, %v2726_v10  ;;  %v3140_v33 = vrot.slane %v2993_v29, 2  ;;  %v11070_v30 = vld [vmem:[#allocation34_spill] sm:$0xff] }
 0x3ef   : > { %v3440_v21 = vmul.f32 %v3427_v18, %v8046_v9  ;;  %v2830_v45 = vsel %vm612_vm0, %v11063_v5, %v11062_v60  ;;  %v3002_v11 = vsel %vm709_vm1, %v2999_v15, %v3001_v58  ;;  %3434 = vrot.lane.b32.xlu1 %v3429_v38, %s5781_s15  ;;  %v3439_v35 = vmul.f32 %v3427_v18, %v8060_v61  ;;  %v11068_v38 = vld [vmem:[#allocation146_spill] sm:$0xff]  ;;  %v11076_v5 = vld [vmem:[#allocation148_spill] sm:$0xff] }
 0x3f0   : > { %v2614_v40 = vadd.f32 %v2612_v49, %v2430_v17  ;;  %v2729_v1 = vadd.f32 %v8595_v25, %v2603_v16  ;;  %v3142_v63 = vadd.f32 %v3140_v33, %v3138_v56  ;;  %v3004_v48 = vadd.f32 %v3002_v11, %v2820_v44  ;;  %3432 = vrot.lane.b32.xlu0 %v3428_v31, %s5781_s15  ;;  %v3144_v25 = vld [vmem:[#allocation2 + $0x16] sm:$0x3]  ;;  %v11069_v16 = vld [vmem:[#allocation147_spill] sm:$0xff] }
 0x3f1   : > { %v2247_v13 = vadd.f32 %v2245_v36, %v8477_v8  ;;  %v2257_v0 = vsel %vm709_vm1, %v11065_v14, %v11064_v43  ;;  %v2624_v18 = vsel %vm709_vm1, %v11067_v62, %v11066_v24  ;;  %v8772_v32 = vmul.f32 %v8524_v52, %v2737_v37  ;;  %v3013_v7 = vpop.permute.xlu1 %3012  ;;  %v3011_v31 = vpop.permute.xlu0 %3010  ;;  %v11071_v3 = vld [vmem:[#allocation194_spill] sm:$0xff] }
 0x3f2   : > { %v2442_v26 = vadd.f32 %v2440_v55, %v8658_v22  ;;  %v2451_v8 = vsel %vm612_vm0, %v11069_v16, %v11068_v38  ;;  %v2832_v10 = vadd.f32 %v2830_v45, %v2729_v1  ;;  %3143 = vst [vmem:[#allocation2 + $0x10] sm:$0x3f] %v3142_v63  ;;  %v3145_v29 = vadd.f32 %v3144_v25, %v3004_v48  ;;  %v11072_v12 = vld [vmem:[#allocation122_spill] sm:$0xff]  ;;  %v11073_v55 = vld [vmem:[#allocation123_spill] sm:$0xff]  ;;  %v11077_v45 = vld [vmem:[#allocation149_spill] sm:$0xff] }
 0x3f3   : > { %v2841_v36 = vsel %vm612_vm0, %v11071_v3, %v11070_v30  ;;  %v2742_v17 = vstv %s8729_s26  ;;  %v3014_v37 = vsel %vm709_vm1, %v3011_v31, %v3013_v7  ;;  %3445 = vrot.lane.b32.xlu1 %v3440_v21, %s5781_s15  ;;  %v3452_v4 = vmul.f32 %v3450_v46, %v7997_v19  ;;  %v11074_v15 = vld [vmem:[#allocation178_spill] sm:$0xff]  ;;  %v11075_v21 = vld [vmem:[#allocation179_spill] sm:$0xff]  ;;  %v11079_v25 = vld [vmem:[#allocation181_spill] sm:$0xff]  ;;  %s5178_s26 = sld [smem:[#allocation3 + $0x59]] }
 0x3f4   : > { %v2626_v22 = vadd.f32 %v2624_v18, %v2442_v26  ;;  %v2731_v34 = vadd.f32 %v8612_v59, %v2614_v40  ;;  %3146 = vst [vmem:[#allocation2 + $0x16] sm:$0x3] %v3145_v29  ;;  %v3016_v49 = vadd.f32 %v3014_v37, %v2832_v10  ;;  %3443 = vrot.lane.b32.xlu0 %v3439_v35, %s5781_s15  ;;  %v3147_v63 = vld [vmem:[#allocation2 + $0x18] sm:$0x3f]  ;;  %v3473_v43 = vstv %s8758_s6  ;;  %v3153_v26 = vld [vmem:[#allocation2 + $0x1e] sm:$0x3] }
 0x3f5   : > { %v3451_v58 = vmul.f32 %v3450_v46, %v8012_v28  ;;  %v2259_v39 = vadd.f32 %v2257_v0, %v8483_v50  ;;  %v2268_v44 = vsel %vm709_vm1, %v11073_v55, %v11072_v12  ;;  %v2453_v33 = vadd.f32 %v2451_v8, %v8707_v20  ;;  %v3024_v59 = vpop.permute.xlu1 %3023  ;;  %v3022_v40 = vpop.permute.xlu0 %3021  ;;  %v11081_v8 = vld [vmem:[#allocation151_spill] sm:$0xff]  ;;  %v11087_v55 = vld [vmem:[#allocation152_spill] sm:$0xff]  ;;  %s5214_s6 = sld [smem:[#allocation3 + $0x7d]] }
 0x3f6   : > { %v2635_v60 = vsel %vm709_vm1, %v11075_v21, %v11074_v15  ;;  %v2463_v56 = vsel %vm612_vm0, %v11077_v45, %v11076_v5  ;;  %v2843_v11 = vadd.f32 %v2841_v36, %v2731_v34  ;;  %v3149_v35 = vrot.slane %v3016_v49, 2  ;;  %v11082_v31 = vld [vmem:[#allocation195_spill] sm:$0xff]  ;;  %v11084_v34 = vld [vmem:[#allocation125_spill] sm:$0xff]  ;;  %v11090_v5 = vld [vmem:[#allocation52_spill] sm:$0xff] }
 0x3f7   : > { %v3463_v50 = vmul.f32 %v3450_v46, %v8046_v9  ;;  %v2853_v1 = vsel %vm612_vm0, %v8301_v6, %v8291_v53  ;;  %v3025_v20 = vsel %vm709_vm1, %v3022_v40, %v3024_v59  ;;  %3457 = vrot.lane.b32.xlu1 %v3452_v4, %s5781_s15  ;;  %v3462_v48 = vmul.f32 %v3450_v46, %v8060_v61  ;;  %v11078_v53 = vld [vmem:[#allocation180_spill] sm:$0xff]  ;;  %v11089_v59 = vld [vmem:[#allocation35_spill] sm:$0xff] }
 0x3f8   : > { %v2637_v14 = vadd.f32 %v2635_v60, %v2453_v33  ;;  %v2734_v0 = vadd.f32 %v8666_v27, %v2626_v22  ;;  %v3151_v24 = vadd.f32 %v3149_v35, %v3147_v63  ;;  %v3027_v62 = vadd.f32 %v3025_v20, %v2843_v11  ;;  %3455 = vrot.lane.b32.xlu0 %v3451_v58, %s5781_s15  ;;  %v11080_v27 = vld [vmem:[#allocation150_spill] sm:$0xff]  ;;  %v11083_v22 = vld [vmem:[#allocation124_spill] sm:$0xff]  ;;  %v11091_v63 = vld [vmem:[#allocation67_spill] sm:$0xff] }
 0x3f9   : > { %v2328_v18 = vadd.f32 %v8341_v54, %v2247_v13  ;;  %v2331_v6 = vadd.f32 %v8344_v42, %v2259_v39  ;;  %v2647_v7 = vsel %vm709_vm1, %v11079_v25, %v11078_v53  ;;  %v8817_v46 = vmul.f32 %v8509_v23, %v2742_v17  ;;  %v3036_v38 = vpop.permute.xlu1 %3035  ;;  %v3034_v13 = vpop.permute.xlu0 %3033  ;;  %v11085_v58 = vld [vmem:[#allocation182_spill] sm:$0xff]  ;;  %v11086_v39 = vld [vmem:[#allocation183_spill] sm:$0xff]  ;;  %v3162_v53 = vld [vmem:[#allocation2 + $0x26] sm:$0x3] }
 0x3fa   : > { %v2465_v16 = vadd.f32 %v2463_v56, %v8742_v41  ;;  %v2474_v10 = vsel %vm612_vm0, %v11081_v8, %v11080_v27  ;;  %v2855_v29 = vadd.f32 %v2853_v1, %v2734_v0  ;;  %3152 = vst [vmem:[#allocation2 + $0x18] sm:$0x3f] %v3151_v24  ;;  %v3154_v54 = vadd.f32 %v3153_v26, %v3027_v62  ;;  %v3156_v56 = vld [vmem:[#allocation2 + $0x20] sm:$0x3f]  ;;  %v11096_v62 = vld [vmem:[#allocation185_spill] sm:$0xff]  ;;  %v11098_v26 = vld [vmem:[#allocation155_spill] sm:$0xff] }
 0x3fb   : > { %v2270_v42 = vadd.f32 %v2268_v44, %v8485_v57  ;;  %v2864_v30 = vsel %vm612_vm0, %v11082_v31, %v8325_v51  ;;  %v3037_v3 = vsel %vm709_vm1, %v3034_v13, %v3036_v38  ;;  %3468 = vrot.lane.b32.xlu1 %v3463_v50, %s5781_s15  ;;  %v3475_v41 = vmul.f32 %v3473_v43, %v7997_v19  ;;  %v11088_v44 = vld [vmem:[#allocation153_spill] sm:$0xff]  ;;  %v11094_v24 = vld [vmem:[#allocation196_spill] sm:$0xff] }
 0x3fc   : > { %v2649_v36 = vadd.f32 %v2647_v7, %v2465_v16  ;;  %v2736_v37 = vadd.f32 %v8715_v47, %v2637_v14  ;;  %3155 = vst [vmem:[#allocation2 + $0x1e] sm:$0x3] %v3154_v54  ;;  %v3039_v4 = vadd.f32 %v3037_v3, %v2855_v29  ;;  %3466 = vrot.lane.b32.xlu0 %v3462_v48, %s5781_s15  ;;  %v3496_v35 = vstv %s8807_s22  ;;  %v11092_v48 = vld [vmem:[#allocation126_spill] sm:$0xff]  ;;  %v11093_v14 = vld [vmem:[#allocation127_spill] sm:$0xff]  ;;  %v8877_v31 = vld [vmem:[%s6068_s10 + $0x8] sm:$0xf0] }
 0x3fd   : > { %v3474_v57 = vmul.f32 %v3473_v43, %v8012_v28  ;;  %v2280_v51 = vsel %vm709_vm1, %v11084_v34, %v11083_v22  ;;  %v2476_v49 = vadd.f32 %v2474_v10, %v2328_v18  ;;  %v2658_v12 = vsel %vm709_vm1, %v11086_v39, %v11085_v58  ;;  %v3047_v47 = vpop.permute.xlu1 %3046  ;;  %v3045_v21 = vpop.permute.xlu0 %3044  ;;  %v11097_v7 = vld [vmem:[#allocation154_spill] sm:$0xff]  ;;  %v11102_v34 = vld [vmem:[#allocation197_spill] sm:$0xff]  ;;  %v11104_v58 = vld [vmem:[#allocation187_spill] sm:$0xff]  ;;  %s5250_s22 = sld [smem:[#allocation3 + $0xa1]] }
 0x3fe   : > { %v8842_v19 = vmul.f32 %v8524_v52, %v2742_v17  ;;  %v2486_v33 = vsel %vm612_vm0, %v11088_v44, %v11087_v55  ;;  %v2866_v15 = vadd.f32 %v2864_v30, %v2736_v37  ;;  %v3158_v28 = vrot.slane %v3039_v4, 2  ;;  %v11099_v10 = vld [vmem:[#allocation42_spill] sm:$0xff]  ;;  %v11101_v4 = vld [vmem:[#allocation36_spill] sm:$0xff] }
 0x3ff   : > { %v3486_v60 = vmul.f32 %v3473_v43, %v8046_v9  ;;  %v2876_v45 = vsel %vm612_vm0, %v11090_v5, %v11089_v59  ;;  %v3048_v11 = vsel %vm709_vm1, %v3045_v21, %v3047_v47  ;;  %3480 = vrot.lane.b32.xlu1 %v3475_v41, %s5781_s15  ;;  %v3485_v17 = vmul.f32 %v3473_v43, %v8060_v61  ;;  %v11095_v43 = vld [vmem:[#allocation184_spill] sm:$0xff]  ;;  %v11100_v29 = vld [vmem:[#allocation198_spill] sm:$0xff]  ;;  %v11106_v47 = vld [vmem:[#allocation157_spill] sm:$0xff] }
 0x400   : > { %v2660_v40 = vadd.f32 %v2658_v12, %v2476_v49  ;;  %v2739_v50 = vadd.f32 %v8727_v2, %v2649_v36  ;;  %v3160_v1 = vadd.f32 %v3158_v28, %v3156_v56  ;;  %v3050_v9 = vadd.f32 %v3048_v11, %v2866_v15  ;;  %3478 = vrot.lane.b32.xlu0 %v3474_v57, %s5781_s15  ;;  %v8883_v36 = vld [vmem:[%s6068_s10] sm:$0xf0]  ;;  %v11103_v49 = vld [vmem:[#allocation186_spill] sm:$0xff]  ;;  %v8895_v28 = vld [vmem:[%s6075_s18 + $0x8] sm:$0xf] }
 0x401   : > { %v2282_v20 = vadd.f32 %v2280_v51, %v11091_v63  ;;  %v2291_v0 = vsel %vm709_vm1, %v11093_v14, %v11092_v48  ;;  %v2333_v61 = vadd.f32 %v11094_v24, %v2270_v42  ;;  %v2670_v18 = vsel %vm709_vm1, %v11096_v62, %v11095_v43  ;;  %v3059_v2 = vpop.permute.xlu1 %3058  ;;  %v3057_v8 = vpop.permute.xlu0 %3056  ;;  %v11105_v12 = vld [vmem:[#allocation156_spill] sm:$0xff]  ;;  %v11108_v59 = vld [vmem:[#allocation66_spill] sm:$0xff]  ;;  %v11110_v48 = vld [vmem:[#allocation189_spill] sm:$0xff] }
 0x402   : > { %v2488_v25 = vadd.f32 %v2486_v33, %v2331_v6  ;;  %v2497_v38 = vsel %vm612_vm0, %v11098_v26, %v11097_v7  ;;  %v2878_v16 = vadd.f32 %v2876_v45, %v2739_v50  ;;  %3161 = vst [vmem:[#allocation2 + $0x20] sm:$0x3f] %v3160_v1  ;;  %v3163_v27 = vadd.f32 %v3162_v53, %v3050_v9  ;;  %v3165_v45 = vld [vmem:[#allocation2 + $0x28] sm:$0x3f]  ;;  %v8904_v11 = vld [vmem:[%s6075_s18] sm:$0xf] }
 0x403   : > { %v2887_v54 = vsel %vm612_vm0, %v11100_v29, %v11099_v10  ;;  %v2747_v13 = vstv %s8827_s28  ;;  %v3060_v42 = vsel %vm709_vm1, %v3057_v8, %v3059_v2  ;;  %3491 = vrot.lane.b32.xlu1 %v3486_v60, %s5781_s15  ;;  %v3498_v6 = vmul.f32 %v8877_v31, %v3496_v35  ;;  %v11107_v60 = vld [vmem:[#allocation43_spill] sm:$0xff]  ;;  %v3171_v24 = vld [vmem:[#allocation2 + $0x2e] sm:$0x3]  ;;  %s5286_s28 = sld [smem:[#allocation3 + $0xc5]] }
 0x404   : > { %v2672_v30 = vadd.f32 %v2670_v18, %v2488_v25  ;;  %v2741_v3 = vadd.f32 %v8772_v32, %v2660_v40  ;;  %3164 = vst [vmem:[#allocation2 + $0x26] sm:$0x3] %v3163_v27  ;;  %v3062_v41 = vadd.f32 %v3060_v42, %v2878_v16  ;;  %3489 = vrot.lane.b32.xlu0 %v3485_v17, %s5781_s15  ;;  %v3519_v40 = vstv %s8855_s9  ;;  %v11113_v25 = vld [vmem:[#allocation159_spill] sm:$0xff]  ;;  %v11116_v42 = vld [vmem:[#allocation190_spill] sm:$0xff]  ;;  %s5322_s9 = sld [smem:[#allocation3 + $0xe9]] }
 0x405   : > { %v3497_v37 = vmul.f32 %v8883_v36, %v3496_v35  ;;  %v2293_v57 = vadd.f32 %v2291_v0, %v11101_v4  ;;  %v2499_v22 = vadd.f32 %v2497_v38, %v2333_v61  ;;  %v2336_v51 = vadd.f32 %v11102_v34, %v2282_v20  ;;  %v3070_v32 = vpop.permute.xlu1 %3069  ;;  %v3068_v15 = vpop.permute.xlu0 %3067  ;;  %v11109_v20 = vld [vmem:[#allocation188_spill] sm:$0xff]  ;;  %v11114_v26 = vld [vmem:[#allocation199_spill] sm:$0xff]  ;;  %v11115_v38 = vld [vmem:[#allocation37_spill] sm:$0xff] }
 0x406   : > { %v2681_v39 = vsel %vm709_vm1, %v11104_v58, %v11103_v49  ;;  %v2509_v55 = vsel %vm612_vm0, %v11106_v47, %v11105_v12  ;;  %v2889_v44 = vadd.f32 %v2887_v54, %v2741_v3  ;;  %v3167_v33 = vrot.slane %v3062_v41, 2  ;;  %v11118_v34 = vld [vmem:[#allocation54_spill] sm:$0xff] }
 0x407   : > { %v3509_v21 = vmul.f32 %v8895_v28, %v3496_v35  ;;  %v2899_v5 = vsel %vm612_vm0, %v11108_v59, %v11107_v60  ;;  %v3071_v56 = vsel %vm709_vm1, %v3068_v15, %v3070_v32  ;;  %3503 = vrot.lane.b32.xlu1 %v3498_v6, %s5781_s15  ;;  %v3508_v17 = vmul.f32 %v8904_v11, %v3496_v35  ;;  %v11111_v35 = vld [vmem:[#allocation53_spill] sm:$0xff]  ;;  %v11117_v6 = vld [vmem:[#allocation191_spill] sm:$0xff]  ;;  %v3174_v58 = vld [vmem:[#allocation2 + $0x30] sm:$0x3f] }
 0x408   : > { %v2683_v50 = vadd.f32 %v2681_v39, %v2499_v22  ;;  %v2744_v1 = vadd.f32 %v8817_v46, %v2672_v30  ;;  %v3169_v9 = vadd.f32 %v3167_v33, %v3165_v45  ;;  %v3073_v63 = vadd.f32 %v3071_v56, %v2889_v44  ;;  %3501 = vrot.lane.b32.xlu0 %v3497_v37, %s5781_s15  ;;  %v11112_v46 = vld [vmem:[#allocation158_spill] sm:$0xff]  ;;  %v11120_v59 = vld [vmem:[#allocation44_spill] sm:$0xff] }
 0x409   : > { %v2693_v14 = vsel %vm709_vm1, %v11110_v48, %v11109_v20  ;;  %v2748_v0 = vmul.f32 %v8509_v23, %v2747_v13  ;;  %v3082_v61 = vpop.permute.xlu1 %3081  ;;  %v2511_v43 = vadd.f32 %v2509_v55, %v2336_v51  ;;  %v2338_v62 = vadd.f32 %v11111_v35, %v2293_v57  ;;  %v3080_v2 = vpop.permute.xlu0 %3079  ;;  %v11119_v51 = vld [vmem:[#allocation55_spill] sm:$0xff]  ;;  %v3180_v44 = vld [vmem:[#allocation2 + $0x36] sm:$0x3] }
 0x40a   : > { %v2901_v18 = vadd.f32 %v2899_v5, %v2744_v1  ;;  %3170 = vst [vmem:[#allocation2 + $0x28] sm:$0x3f] %v3169_v9  ;;  %v3172_v53 = vadd.f32 %v3171_v24, %v3073_v63  ;;  %v2520_v7 = vsel %vm612_vm0, %v11113_v25, %v11112_v46  ;;  %v2910_v16 = vsel %vm612_vm0, %v11115_v38, %v11114_v26  ;;  %v11121_v5 = vld [vmem:[#allocation201_spill] sm:$0xff] }
 0x40b   : > { %v3083_v27 = vsel %vm709_vm1, %v3080_v2, %v3082_v61  ;;  %3514 = vrot.lane.b32.xlu1 %v3509_v21, %s5781_s15  ;;  %v3521_v23 = vmul.f32 %v8877_v31, %v3519_v40  ;;  %v2695_v8 = vadd.f32 %v2693_v14, %v2511_v43  ;;  %v2746_v10 = vadd.f32 %v8842_v19, %v2683_v50  ;;  %v3183_v14 = vld [vmem:[#allocation2 + $0x38] sm:$0x3f] }
 0x40c   : > { %3173 = vst [vmem:[#allocation2 + $0x2e] sm:$0x3] %v3172_v53  ;;  %v3085_v29 = vadd.f32 %v3083_v27, %v2901_v18  ;;  %3512 = vrot.lane.b32.xlu0 %v3508_v17, %s5781_s15  ;;  %v3520_v54 = vmul.f32 %v8883_v36, %v3519_v40  ;;  %v2704_v30 = vsel %vm709_vm1, %v11117_v6, %v11116_v42  ;;  %v3542_v12 = vstv %s8908_s23  ;;  %v3189_v18 = vld [vmem:[#allocation2 + $0x3e] sm:$0x3]  ;;  %v8991_v42 = vld [vmem:[%s6075_s18 + $0x10] sm:$0xf] }
 0x40d   : > { %v2750_v3 = vmul.f32 %v8524_v52, %v2747_v13  ;;  %v3093_v41 = vpop.permute.xlu1 %3092  ;;  %v2522_v37 = vadd.f32 %v2520_v7, %v2338_v62  ;;  %v2912_v4 = vadd.f32 %v2910_v16, %v2746_v10  ;;  %v3091_v22 = vpop.permute.xlu0 %3090  ;;  %v3532_v19 = vmul.f32 %v8895_v28, %v3519_v40  ;;  %s5358_s23 = sld [smem:[#allocation3 + $0x10d]] }
 0x40e   : > { %v3176_v57 = vrot.slane %v3085_v29, 2  ;;  %v2922_v49 = vsel %vm612_vm0, %v11119_v51, %v11118_v34  ;;  %v3094_v39 = vsel %vm709_vm1, %v3091_v22, %v3093_v41  ;;  %v3531_v32 = vmul.f32 %v8904_v11, %v3519_v40 }
 0x40f   : > { %3526 = vrot.lane.b32.xlu1 %v3521_v23, %s5781_s15  ;;  %v2706_v52 = vadd.f32 %v2704_v30, %v2522_v37  ;;  %v2749_v13 = vadd.f32 %v2748_v0, %v2695_v8  ;;  %v3096_v55 = vadd.f32 %v3094_v39, %v2912_v4  ;;  %v2933_v45 = vsel %vm612_vm0, %v11121_v5, %v11120_v59 }
 0x410   : > { %v3178_v47 = vadd.f32 %v3176_v57, %v3174_v58  ;;  %3524 = vrot.lane.b32.xlu0 %v3520_v54, %s5781_s15  ;;  %v3544_v17 = vmul.f32 %v8877_v31, %v3542_v12  ;;  %v3543_v1 = vmul.f32 %v8883_v36, %v3542_v12  ;;  %v3555_v24 = vmul.f32 %v8895_v28, %v3542_v12  ;;  %v8986_v54 = vld [vmem:[%s6075_s18 + $0x18] sm:$0xf] }
 0x411   : > { %v3105_v33 = vpop.permute.xlu1 %3104  ;;  %v2924_v15 = vadd.f32 %v2922_v49, %v2749_v13  ;;  %v3181_v21 = vadd.f32 %v3180_v44, %v3096_v55  ;;  %v3103_v60 = vpop.permute.xlu0 %3102  ;;  %v2751_v40 = vadd.f32 %v2750_v3, %v2706_v52  ;;  %v3554_v35 = vmul.f32 %v8904_v11, %v3542_v12 }
 0x412   : > { %3179 = vst [vmem:[#allocation2 + $0x30] sm:$0x3f] %v3178_v47  ;;  %v3106_v56 = vsel %vm709_vm1, %v3103_v60, %v3105_v33  ;;  %v3565_v62 = vstv %s5349_s29  ;;  %v3632_v23 = vstv %s5105_s7  ;;  %v3655_v41 = vstv %s5141_s0  ;;  %s5114_s29 = sld [smem:[#allocation3 + $0x19]]  ;;  %s5150_s7 = sld [smem:[#allocation3 + $0x3d]] }
 0x413   : > { %3537 = vrot.lane.b32.xlu1 %v3532_v19, %s5781_s15  ;;  %3182 = vst [vmem:[#allocation2 + $0x36] sm:$0x3] %v3181_v21  ;;  %v3108_v50 = vadd.f32 %v3106_v56, %v2924_v15  ;;  %v2935_v63 = vadd.f32 %v2933_v45, %v2751_v40  ;;  %v3567_v25 = vmul.f32 %v8877_v31, %v3565_v62  ;;  %v8972_v31 = vld [vmem:[%s6068_s10 + $0x18] sm:$0xf0]  ;;  %v3678_v58 = vstv %s5177_s21  ;;  %s5186_s0 = sld [smem:[#allocation3 + $0x61]]  ;;  %s5222_s21 = sld [smem:[#allocation3 + $0x85]] }
 0x414   : > { %3535 = vrot.lane.b32.xlu0 %v3531_v32, %s5781_s15  ;;  %v3566_v7 = vmul.f32 %v8883_v36, %v3565_v62  ;;  %v3578_v16 = vmul.f32 %v8895_v28, %v3565_v62  ;;  %v3577_v27 = vmul.f32 %v8904_v11, %v3565_v62  ;;  %v8977_v36 = vld [vmem:[%s6068_s10 + $0x10] sm:$0xf0]  ;;  %v3634_v29 = vmul.f32 %v8972_v31, %v3632_v23 }
 0x415   : > { %v3116_v9 = vpop.permute.xlu1 %3115  ;;  %v3185_v20 = vrot.slane %v3108_v50, 2  ;;  %v3114_v48 = vpop.permute.xlu0 %3113  ;;  %v3633_v28 = vmul.f32 %v8977_v36, %v3632_v23  ;;  %v3645_v30 = vmul.f32 %v8986_v54, %v3632_v23  ;;  %v3644_v3 = vmul.f32 %v8991_v42, %v3632_v23 }
 0x416   : > { %v3117_v0 = vsel %vm709_vm1, %v3114_v48, %v3116_v9  ;;  %v3657_v57 = vmul.f32 %v8972_v31, %v3655_v41  ;;  %v3656_v22 = vmul.f32 %v8977_v36, %v3655_v41  ;;  %v3668_v51 = vmul.f32 %v8986_v54, %v3655_v41 }
 0x417   : > { %3549 = vrot.lane.b32.xlu1 %v3544_v17, %s5781_s15  ;;  %v3187_v61 = vadd.f32 %v3185_v20, %v3183_v14  ;;  %v3119_v43 = vadd.f32 %v3117_v0, %v2935_v63  ;;  %v3667_v49 = vmul.f32 %v8991_v42, %v3655_v41  ;;  %v3680_v12 = vmul.f32 %v8972_v31, %v3678_v58 }
 0x418   : > { %3547 = vrot.lane.b32.xlu0 %v3543_v1, %s5781_s15  ;;  %v3679_v52 = vmul.f32 %v8977_v36, %v3678_v58  ;;  %v3691_v55 = vmul.f32 %v8986_v54, %v3678_v58  ;;  %v3690_v44 = vmul.f32 %v8991_v42, %v3678_v58  ;;  %v3701_v33 = vstv %s5213_s11  ;;  %s5258_s11 = sld [smem:[#allocation3 + $0xa9]] }
 0x419   : > { %v8955_v53 = vpop.permute.xlu1 %3227  ;;  %3188 = vst [vmem:[#allocation2 + $0x38] sm:$0x3f] %v3187_v61  ;;  %v3190_v2 = vadd.f32 %v3189_v18, %v3119_v43  ;;  %v8957_v46 = vpop.permute.xlu0 %3225  ;;  %v3703_v60 = vmul.f32 %v8972_v31, %v3701_v33  ;;  %v3702_v59 = vmul.f32 %v8977_v36, %v3701_v33  ;;  %v3714_v56 = vmul.f32 %v8986_v54, %v3701_v33 }
 0x41a   : > { %11122 = vst [vmem:[#allocation202_spill] sm:$0xff] %v8955_v53  ;;  %11123 = vst [vmem:[#allocation45_spill] sm:$0xff] %v8957_v46  ;;  %v3713_v17 = vmul.f32 %v8991_v42, %v3701_v33  ;;  %v3724_v40 = vstv %s5249_s5  ;;  %s5294_s5 = sld [smem:[#allocation3 + $0xcd]] }
 0x41b   : > { %3560 = vrot.lane.b32.xlu1 %v3555_v24, %s5781_s15  ;;  %3191 = vst [vmem:[#allocation2 + $0x3e] sm:$0x3] %v3190_v2  ;;  %v3726_v9 = vmul.f32 %v8972_v31, %v3724_v40  ;;  %v3725_v63 = vmul.f32 %v8977_v36, %v3724_v40  ;;  %v3737_v14 = vmul.f32 %v8986_v54, %v3724_v40  ;;  %v3747_v24 = vstv %s5285_s3  ;;  %s5330_s3 = sld [smem:[#allocation3 + $0xf1]] }
 0x41c   : > { %3558 = vrot.lane.b32.xlu0 %v3554_v35, %s5781_s15  ;;  %v3736_v0 = vmul.f32 %v8991_v42, %v3724_v40  ;;  %v3749_v35 = vmul.f32 %v8972_v31, %v3747_v24  ;;  %v3748_v62 = vmul.f32 %v8977_v36, %v3747_v24 }
 0x41d   : > { %v8963_v26 = vpop.permute.xlu1 %3238  ;;  %v8965_v38 = vpop.permute.xlu0 %3236 }
 0x41f   : > { %3572 = vrot.lane.b32.xlu1 %v3567_v25, %s5781_s15  ;;  %v3760_v25 = vmul.f32 %v8986_v54, %v3747_v24 }
 0x420   : > { %3570 = vrot.lane.b32.xlu0 %v3566_v7, %s5781_s15  ;;  %v3759_v7 = vmul.f32 %v8991_v42, %v3747_v24  ;;  %v3839_v24 = vstv %s5142_s25  ;;  %s5187_s25 = sld [smem:[#allocation3 + $0x62]] }
 0x421   : > { %v8974_v8 = vpop.permute.xlu1 %3250  ;;  %v8979_v10 = vpop.permute.xlu0 %3248 }
 0x422   : > { %11124 = vst [vmem:[#allocation68_spill] sm:$0xff] %v8974_v8  ;;  %11125 = vst [vmem:[#allocation204_spill] sm:$0xff] %v8979_v10 }
 0x423   : > { %3583 = vrot.lane.b32.xlu1 %v3578_v16, %s5781_s15  ;;  %v3770_v16 = vstv %s5321_s4  ;;  %s5366_s4 = sld [smem:[#allocation3 + $0x115]] }
 0x424   : > { %3581 = vrot.lane.b32.xlu0 %v3577_v27, %s5781_s15  ;;  %v3783_v41 = vmul.f32 %v8986_v54, %v3770_v16 }
 0x425   : > { %v8988_v11 = vpop.permute.xlu1 %3261  ;;  %v8993_v6 = vpop.permute.xlu0 %3259 }
 0x427   : > { %3639 = vrot.lane.b32.xlu1 %v3634_v29, %s5780_s30  ;;  %v3772_v29 = vmul.f32 %v8972_v31, %v3770_v16 }
 0x428   : > { %3637 = vrot.lane.b32.xlu0 %v3633_v28, %s5780_s30  ;;  %v3771_v28 = vmul.f32 %v8977_v36, %v3770_v16 }
 0x429   : > { %v8999_v37 = vpop.permute.xlu1 %3273  ;;  %v9001_v4 = vpop.permute.xlu0 %3271 }
 0x42a   : > { %11126 = vst [vmem:[#allocation205_spill] sm:$0xff] %v8999_v37  ;;  %11127 = vst [vmem:[#allocation69_spill] sm:$0xff] %v9001_v4 }
 0x42b   : > { %3650 = vrot.lane.b32.xlu1 %v3645_v30, %s5780_s30 }
 0x42c   : > { %3648 = vrot.lane.b32.xlu0 %v3644_v3, %s5780_s30 }
 0x42d   : > { %v9007_v19 = vpop.permute.xlu1 %3284  ;;  %v9009_v34 = vpop.permute.xlu0 %3282 }
 0x42f   : > { %3662 = vrot.lane.b32.xlu1 %v3657_v57, %s5780_s30  ;;  %v3782_v57 = vmul.f32 %v8991_v42, %v3770_v16 }
 0x430   : > { %3660 = vrot.lane.b32.xlu0 %v3656_v22, %s5780_s30  ;;  %v3793_v22 = vstv %s5357_s12  ;;  %s5115_s12 = sld [smem:[#allocation3 + $0x1a]] }
 0x431   : > { %v9015_v39 = vpop.permute.xlu1 %3296  ;;  %v9017_v32 = vpop.permute.xlu0 %3294  ;;  %v3795_v58 = vmul.f32 %v8972_v31, %v3793_v22  ;;  %v3805_v33 = vmul.f32 %v8991_v42, %v3793_v22 }
 0x432   : > { %11128 = vst [vmem:[#allocation38_spill] sm:$0xff] %v9015_v39  ;;  %11129 = vst [vmem:[#allocation39_spill] sm:$0xff] %v9017_v32 }
 0x433   : > { %3673 = vrot.lane.b32.xlu1 %v3668_v51, %s5780_s30 }
 0x434   : > { %3671 = vrot.lane.b32.xlu0 %v3667_v49, %s5780_s30 }
 0x435   : > { %v9023_v13 = vpop.permute.xlu1 %3307  ;;  %v9025_v47 = vpop.permute.xlu0 %3305 }
 0x437   : > { %3685 = vrot.lane.b32.xlu1 %v3680_v12, %s5780_s30  ;;  %v3794_v12 = vmul.f32 %v8977_v36, %v3793_v22 }
 0x438   : > { %3683 = vrot.lane.b32.xlu0 %v3679_v52, %s5780_s30 }
 0x439   : > { %v9031_v15 = vpop.permute.xlu1 %3319  ;;  %v9033_v21 = vpop.permute.xlu0 %3317 }
 0x43a   : > { %11130 = vst [vmem:[#allocation32_spill] sm:$0xff] %v9031_v15  ;;  %11131 = vst [vmem:[#allocation33_spill] sm:$0xff] %v9033_v21 }
 0x43b   : > { %3696 = vrot.lane.b32.xlu1 %v3691_v55, %s5780_s30 }
 0x43c   : > { %3694 = vrot.lane.b32.xlu0 %v3690_v44, %s5780_s30  ;;  %v3806_v44 = vmul.f32 %v8986_v54, %v3793_v22 }
 0x43d   : > { %v9039_v5 = vpop.permute.xlu1 %3330  ;;  %v9041_v45 = vpop.permute.xlu0 %3328 }
 0x43e   : > { %11132 = vst [vmem:[#allocation56_spill] sm:$0xff] %v9039_v5  ;;  %11133 = vst [vmem:[#allocation57_spill] sm:$0xff] %v9041_v45 }
 0x43f   : > { %3708 = vrot.lane.b32.xlu1 %v3703_v60, %s5780_s30  ;;  %v3816_v60 = vstv %s5106_s24  ;;  %s5151_s24 = sld [smem:[#allocation3 + $0x3e]] }
 0x440   : > { %3706 = vrot.lane.b32.xlu0 %v3702_v59, %s5780_s30  ;;  %v3817_v40 = vmul.f32 %v8977_v36, %v3816_v60 }
 0x441   : > { %v9047_v50 = vpop.permute.xlu1 %3342 }
 0x442   : > { %11134 = vst [vmem:[#allocation46_spill] sm:$0xff] %v9047_v50  ;;  %v9049_v1 = vpop.permute.xlu0 %3340 }
 0x443   : > { %11135 = vst [vmem:[#allocation206_spill] sm:$0xff] %v9049_v1  ;;  %3719 = vrot.lane.b32.xlu1 %v3714_v56, %s5780_s30 }
 0x444   : > { %3717 = vrot.lane.b32.xlu0 %v3713_v17, %s5780_s30  ;;  %v3818_v17 = vmul.f32 %v8972_v31, %v3816_v60 }
 0x445   : > { %v9055_v20 = vpop.permute.xlu1 %3353 }
 0x446   : > { %11136 = vst [vmem:[#allocation47_spill] sm:$0xff] %v9055_v20  ;;  %v9057_v48 = vpop.permute.xlu0 %3351 }
 0x447   : > { %11137 = vst [vmem:[#allocation70_spill] sm:$0xff] %v9057_v48  ;;  %3731 = vrot.lane.b32.xlu1 %v3726_v9, %s5780_s30 }
 0x448   : > { %3729 = vrot.lane.b32.xlu0 %v3725_v63, %s5780_s30 }
 0x449   : > { %v9063_v61 = vpop.permute.xlu1 %3365 }
 0x44a   : > { %11138 = vst [vmem:[#allocation71_spill] sm:$0xff] %v9063_v61  ;;  %v9065_v43 = vpop.permute.xlu0 %3363 }
 0x44b   : > { %11139 = vst [vmem:[#allocation40_spill] sm:$0xff] %v9065_v43  ;;  %3742 = vrot.lane.b32.xlu1 %v3737_v14, %s5780_s30  ;;  %v3829_v14 = vmul.f32 %v8986_v54, %v3816_v60  ;;  %v9240_v43 = vld [vmem:[%s6068_s10 + $0x28] sm:$0xf0] }
 0x44c   : > { %3740 = vrot.lane.b32.xlu0 %v3736_v0, %s5780_s30  ;;  %v3828_v0 = vmul.f32 %v8991_v42, %v3816_v60 }
 0x44d   : > { %v9071_v18 = vpop.permute.xlu1 %3376 }
 0x44e   : > { %11140 = vst [vmem:[#allocation41_spill] sm:$0xff] %v9071_v18  ;;  %v9073_v2 = vpop.permute.xlu0 %3374 }
 0x44f   : > { %11141 = vst [vmem:[#allocation58_spill] sm:$0xff] %v9073_v2  ;;  %3754 = vrot.lane.b32.xlu1 %v3749_v35, %s5780_s30 }
 0x450   : > { %3752 = vrot.lane.b32.xlu0 %v3748_v62, %s5780_s30 }
 0x451   : > { %v9079_v27 = vpop.permute.xlu1 %3388 }
 0x452   : > { %11142 = vst [vmem:[#allocation59_spill] sm:$0xff] %v9079_v27  ;;  %v9081_v23 = vpop.permute.xlu0 %3386 }
 0x453   : > { %11143 = vst [vmem:[#allocation48_spill] sm:$0xff] %v9081_v23  ;;  %3765 = vrot.lane.b32.xlu1 %v3760_v25, %s5780_s30  ;;  %v3841_v25 = vmul.f32 %v8972_v31, %v3839_v24 }
 0x454   : > { %3763 = vrot.lane.b32.xlu0 %v3759_v7, %s5780_s30  ;;  %v3840_v7 = vmul.f32 %v8977_v36, %v3839_v24 }
 0x455   : > { %v9087_v30 = vpop.permute.xlu1 %3399 }
 0x456   : > { %v9089_v3 = vpop.permute.xlu0 %3397 }
 0x457   : > { %3777 = vrot.lane.b32.xlu1 %v3772_v29, %s5780_s30 }
 0x458   : > { %3775 = vrot.lane.b32.xlu0 %v3771_v28, %s5780_s30  ;;  %v3852_v28 = vmul.f32 %v8986_v54, %v3839_v24 }
 0x459   : > { %v9095_v51 = vpop.permute.xlu1 %3411 }
 0x45a   : > { %11144 = vst [vmem:[#allocation49_spill] sm:$0xff] %v9095_v51  ;;  %v9097_v49 = vpop.permute.xlu0 %3409 }
 0x45b   : > { %11145 = vst [vmem:[#allocation73_spill] sm:$0xff] %v9097_v49  ;;  %3788 = vrot.lane.b32.xlu1 %v3783_v41, %s5780_s30  ;;  %v3851_v41 = vmul.f32 %v8991_v42, %v3839_v24 }
 0x45c   : > { %3786 = vrot.lane.b32.xlu0 %v3782_v57, %s5780_s30  ;;  %v3862_v57 = vstv %s5178_s26  ;;  %s5223_s26 = sld [smem:[#allocation3 + $0x86]] }
 0x45d   : > { %v9103_v52 = vpop.permute.xlu1 %3422 }
 0x45e   : > { %v9105_v55 = vpop.permute.xlu0 %3420 }
 0x45f   : > { %3800 = vrot.lane.b32.xlu1 %v3795_v58, %s5780_s30 }
 0x460   : > { %3798 = vrot.lane.b32.xlu0 %v3794_v12, %s5780_s30  ;;  %v3864_v12 = vmul.f32 %v8972_v31, %v3862_v57 }
 0x461   : > { %v9111_v59 = vpop.permute.xlu1 %3434 }
 0x462   : > { %11146 = vst [vmem:[#allocation74_spill] sm:$0xff] %v9111_v59  ;;  %v9113_v56 = vpop.permute.xlu0 %3432 }
 0x463   : > { %11147 = vst [vmem:[#allocation60_spill] sm:$0xff] %v9113_v56  ;;  %3811 = vrot.lane.b32.xlu1 %v3806_v44, %s5780_s30  ;;  %v3863_v44 = vmul.f32 %v8977_v36, %v3862_v57 }
 0x464   : > { %3809 = vrot.lane.b32.xlu0 %v3805_v33, %s5780_s30 }
 0x465   : > { %v9119_v9 = vpop.permute.xlu1 %3445 }
 0x466   : > { %v9121_v63 = vpop.permute.xlu0 %3443 }
 0x467   : > { %3823 = vrot.lane.b32.xlu1 %v3818_v17, %s5781_s15  ;;  %v3875_v17 = vmul.f32 %v8986_v54, %v3862_v57 }
 0x468   : > { %3821 = vrot.lane.b32.xlu0 %v3817_v40, %s5781_s15  ;;  %v3874_v40 = vmul.f32 %v8991_v42, %v3862_v57 }
 0x469   : > { %v9127_v35 = vpop.permute.xlu1 %3457 }
 0x46a   : > { %11148 = vst [vmem:[#allocation61_spill] sm:$0xff] %v9127_v35  ;;  %v9129_v62 = vpop.permute.xlu0 %3455 }
 0x46b   : > { %11149 = vst [vmem:[#allocation50_spill] sm:$0xff] %v9129_v62  ;;  %3834 = vrot.lane.b32.xlu1 %v3829_v14, %s5781_s15  ;;  %v3885_v14 = vstv %s5214_s6  ;;  %s5259_s6 = sld [smem:[#allocation3 + $0xaa]] }
 0x46c   : > { %3832 = vrot.lane.b32.xlu0 %v3828_v0, %s5781_s15  ;;  %v3898_v57 = vmul.f32 %v8986_v54, %v3885_v14 }
 0x46d   : > { %v9135_v16 = vpop.permute.xlu1 %3468 }
 0x46e   : > { %v9137_v29 = vpop.permute.xlu0 %3466 }
 0x46f   : > { %3846 = vrot.lane.b32.xlu1 %v3841_v25, %s5781_s15  ;;  %v3887_v25 = vmul.f32 %v8972_v31, %v3885_v14 }
 0x470   : > { %3844 = vrot.lane.b32.xlu0 %v3840_v7, %s5781_s15  ;;  %v3886_v7 = vmul.f32 %v8977_v36, %v3885_v14 }
 0x471   : > { %v9143_v22 = vpop.permute.xlu1 %3480 }
 0x472   : > { %11150 = vst [vmem:[#allocation51_spill] sm:$0xff] %v9143_v22  ;;  %v9145_v58 = vpop.permute.xlu0 %3478 }
 0x473   : > { %11151 = vst [vmem:[#allocation62_spill] sm:$0xff] %v9145_v58  ;;  %3857 = vrot.lane.b32.xlu1 %v3852_v28, %s5781_s15 }
 0x474   : > { %3855 = vrot.lane.b32.xlu0 %v3851_v41, %s5781_s15 }
 0x475   : > { %v9151_v33 = vpop.permute.xlu1 %3491 }
 0x476   : > { %v9153_v60 = vpop.permute.xlu0 %3489 }
 0x477   : > { %3869 = vrot.lane.b32.xlu1 %v3864_v12, %s5781_s15  ;;  %v3897_v12 = vmul.f32 %v8991_v42, %v3885_v14 }
 0x478   : > { %3867 = vrot.lane.b32.xlu0 %v3863_v44, %s5781_s15  ;;  %v3908_v44 = vstv %s5250_s22  ;;  %s5295_s22 = sld [smem:[#allocation3 + $0xce]] }
 0x479   : > { %v9159_v0 = vpop.permute.xlu1 %3503  ;;  %v3921_v14 = vmul.f32 %v8986_v54, %v3908_v44 }
 0x47a   : > { %11152 = vst [vmem:[#allocation63_spill] sm:$0xff] %v9159_v0  ;;  %v9161_v24 = vpop.permute.xlu0 %3501 }
 0x47b   : > { %11153 = vst [vmem:[#allocation75_spill] sm:$0xff] %v9161_v24  ;;  %3880 = vrot.lane.b32.xlu1 %v3875_v17, %s5781_s15 }
 0x47c   : > { %3878 = vrot.lane.b32.xlu0 %v3874_v40, %s5781_s15  ;;  %v3910_v40 = vmul.f32 %v8972_v31, %v3908_v44 }
 0x47d   : > { %v9167_v28 = vpop.permute.xlu1 %3514 }
 0x47e   : > { %11154 = vst [vmem:[#allocation76_spill] sm:$0xff] %v9167_v28  ;;  %v9169_v41 = vpop.permute.xlu0 %3512 }
 0x47f   : > { %11155 = vst [vmem:[#allocation77_spill] sm:$0xff] %v9169_v41  ;;  %3892 = vrot.lane.b32.xlu1 %v3887_v25, %s5781_s15  ;;  %v3909_v25 = vmul.f32 %v8977_v36, %v3908_v44 }
 0x480   : > { %3890 = vrot.lane.b32.xlu0 %v3886_v7, %s5781_s15  ;;  %v3920_v7 = vmul.f32 %v8991_v42, %v3908_v44 }
 0x481   : > { %v9175_v17 = vpop.permute.xlu1 %3526 }
 0x482   : > { %11156 = vst [vmem:[#allocation78_spill] sm:$0xff] %v9175_v17  ;;  %v9177_v2 = vpop.permute.xlu0 %3524 }
 0x483   : > { %11157 = vst [vmem:[#allocation79_spill] sm:$0xff] %v9177_v2  ;;  %3903 = vrot.lane.b32.xlu1 %v3898_v57, %s5781_s15  ;;  %v3931_v2 = vstv %s5286_s28  ;;  %s5331_s28 = sld [smem:[#allocation3 + $0xf2]] }
 0x484   : > { %3901 = vrot.lane.b32.xlu0 %v3897_v12, %s5781_s15  ;;  %v3933_v12 = vmul.f32 %v8972_v31, %v3931_v2  ;;  %v3944_v44 = vmul.f32 %v8986_v54, %v3931_v2 }
 0x485   : > { %v9183_v18 = vpop.permute.xlu1 %3537 }
 0x486   : > { %11158 = vst [vmem:[#allocation80_spill] sm:$0xff] %v9183_v18  ;;  %v9185_v23 = vpop.permute.xlu0 %3535 }
 0x487   : > { %11159 = vst [vmem:[#allocation81_spill] sm:$0xff] %v9185_v23  ;;  %3915 = vrot.lane.b32.xlu1 %v3910_v40, %s5781_s15  ;;  %v3932_v40 = vmul.f32 %v8977_v36, %v3931_v2  ;;  %v9527_v23 = vld [vmem:[%s6075_s18 + $0x30] sm:$0xf] }
 0x488   : > { %3913 = vrot.lane.b32.xlu0 %v3909_v25, %s5781_s15  ;;  %v3943_v25 = vmul.f32 %v8991_v42, %v3931_v2 }
 0x489   : > { %v9191_v57 = vpop.permute.xlu1 %3549 }
 0x48a   : > { %11160 = vst [vmem:[#allocation82_spill] sm:$0xff] %v9191_v57  ;;  %v9193_v17 = vpop.permute.xlu0 %3547 }
 0x48b   : > { %11161 = vst [vmem:[#allocation83_spill] sm:$0xff] %v9193_v17  ;;  %3926 = vrot.lane.b32.xlu1 %v3921_v14, %s5781_s15  ;;  %v3954_v17 = vstv %s5322_s9  ;;  %s5367_s9 = sld [smem:[#allocation3 + $0x116]] }
 0x48c   : > { %3924 = vrot.lane.b32.xlu0 %v3920_v7, %s5781_s15  ;;  %v3956_v7 = vmul.f32 %v8972_v31, %v3954_v17  ;;  %v3967_v2 = vmul.f32 %v8986_v54, %v3954_v17 }
 0x48d   : > { %v9199_v27 = vpop.permute.xlu1 %3560 }
 0x48e   : > { %11162 = vst [vmem:[#allocation96_spill] sm:$0xff] %v9199_v27  ;;  %v9201_v24 = vpop.permute.xlu0 %3558 }
 0x48f   : > { %11163 = vst [vmem:[#allocation97_spill] sm:$0xff] %v9201_v24  ;;  %3938 = vrot.lane.b32.xlu1 %v3933_v12, %s5781_s15  ;;  %v3955_v12 = vmul.f32 %v8977_v36, %v3954_v17 }
 0x490   : > { %3936 = vrot.lane.b32.xlu0 %v3932_v40, %s5781_s15  ;;  %v3966_v40 = vmul.f32 %v8991_v42, %v3954_v17 }
 0x491   : > { %v9207_v14 = vpop.permute.xlu1 %3572 }
 0x492   : > { %11164 = vst [vmem:[#allocation84_spill] sm:$0xff] %v9207_v14  ;;  %v9209_v57 = vpop.permute.xlu0 %3570 }
 0x493   : > { %11165 = vst [vmem:[#allocation85_spill] sm:$0xff] %v9209_v57  ;;  %3949 = vrot.lane.b32.xlu1 %v3944_v44, %s5781_s15  ;;  %v3977_v44 = vstv %s5358_s23  ;;  %s5123_s23 = sld [smem:[#allocation3 + $0x22]] }
 0x494   : > { %3947 = vrot.lane.b32.xlu0 %v3943_v25, %s5781_s15  ;;  %v3979_v14 = vmul.f32 %v8972_v31, %v3977_v44  ;;  %v3990_v17 = vmul.f32 %v8986_v54, %v3977_v44  ;;  %v4044_v31 = vstv %s5114_s29  ;;  %s5159_s29 = sld [smem:[#allocation3 + $0x46]] }
 0x495   : > { %v9215_v24 = vpop.permute.xlu1 %3583 }
 0x496   : > { %v9217_v27 = vpop.permute.xlu0 %3581 }
 0x497   : > { %3961 = vrot.lane.b32.xlu1 %v3956_v7, %s5781_s15  ;;  %v3978_v7 = vmul.f32 %v8977_v36, %v3977_v44  ;;  %v9245_v36 = vld [vmem:[%s6068_s10 + $0x20] sm:$0xf0] }
 0x498   : > { %3959 = vrot.lane.b32.xlu0 %v3955_v12, %s5781_s15  ;;  %v4045_v54 = vmul.f32 %v9245_v36, %v4044_v31 }
 0x499   : > { %v9223_v57 = vpop.permute.xlu1 %3639 }
 0x49a   : > { %11166 = vst [vmem:[#allocation86_spill] sm:$0xff] %v9223_v57  ;;  %v9225_v25 = vpop.permute.xlu0 %3637 }
 0x49b   : > { %11167 = vst [vmem:[#allocation87_spill] sm:$0xff] %v9225_v25  ;;  %3972 = vrot.lane.b32.xlu1 %v3967_v2, %s5781_s15  ;;  %v3989_v2 = vmul.f32 %v8991_v42, %v3977_v44  ;;  %v9259_v44 = vld [vmem:[%s6075_s18 + $0x20] sm:$0xf] }
 0x49c   : > { %3970 = vrot.lane.b32.xlu0 %v3966_v40, %s5781_s15 }
 0x49d   : > { %v9231_v0 = vpop.permute.xlu1 %3650 }
 0x49e   : > { %v9233_v12 = vpop.permute.xlu0 %3648 }
 0x49f   : > { %3984 = vrot.lane.b32.xlu1 %v3979_v14, %s5781_s15  ;;  %v4046_v14 = vmul.f32 %v9240_v43, %v4044_v31 }
 0x4a0   : > { %3982 = vrot.lane.b32.xlu0 %v3978_v7, %s5781_s15  ;;  %v9254_v7 = vld [vmem:[%s6075_s18 + $0x28] sm:$0xf] }
 0x4a1   : > { %v9242_v40 = vpop.permute.xlu1 %3662 }
 0x4a2   : > { %11168 = vst [vmem:[#allocation88_spill] sm:$0xff] %v9242_v40  ;;  %v9247_v61 = vpop.permute.xlu0 %3660  ;;  %v4067_v40 = vstv %s5150_s7  ;;  %s5195_s7 = sld [smem:[#allocation3 + $0x6a]] }
 0x4a3   : > { %11169 = vst [vmem:[#allocation89_spill] sm:$0xff] %v9247_v61  ;;  %3995 = vrot.lane.b32.xlu1 %v3990_v17, %s5781_s15  ;;  %v4057_v61 = vmul.f32 %v9254_v7, %v4044_v31  ;;  %v4056_v17 = vmul.f32 %v9259_v44, %v4044_v31  ;;  %v4069_v58 = vmul.f32 %v9240_v43, %v4067_v40 }
 0x4a4   : > { %3993 = vrot.lane.b32.xlu0 %v3989_v2, %s5781_s15  ;;  %v4080_v31 = vmul.f32 %v9254_v7, %v4067_v40 }
 0x4a5   : > { %v9256_v42 = vpop.permute.xlu1 %3673 }
 0x4a6   : > { %v9261_v1 = vpop.permute.xlu0 %3671 }
 0x4a7   : > { %4051 = vrot.lane.b32.xlu1 %v4046_v14, %s5780_s30  ;;  %v4068_v14 = vmul.f32 %v9245_v36, %v4067_v40 }
 0x4a8   : > { %4049 = vrot.lane.b32.xlu0 %v4045_v54, %s5780_s30  ;;  %v4079_v54 = vmul.f32 %v9259_v44, %v4067_v40 }
 0x4a9   : > { %v9267_v2 = vpop.permute.xlu1 %3685 }
 0x4aa   : > { %11170 = vst [vmem:[#allocation90_spill] sm:$0xff] %v9267_v2  ;;  %v9269_v50 = vpop.permute.xlu0 %3683 }
 0x4ab   : > { %11171 = vst [vmem:[#allocation91_spill] sm:$0xff] %v9269_v50  ;;  %4062 = vrot.lane.b32.xlu1 %v4057_v61, %s5780_s30  ;;  %v4090_v50 = vstv %s5186_s0  ;;  %s5231_s0 = sld [smem:[#allocation3 + $0x8e]] }
 0x4ac   : > { %4060 = vrot.lane.b32.xlu0 %v4056_v17, %s5780_s30  ;;  %v4092_v17 = vmul.f32 %v9240_v43, %v4090_v50  ;;  %v4103_v40 = vmul.f32 %v9254_v7, %v4090_v50 }
 0x4ad   : > { %v9275_v22 = vpop.permute.xlu1 %3696 }
 0x4ae   : > { %v9277_v62 = vpop.permute.xlu0 %3694 }
 0x4af   : > { %4074 = vrot.lane.b32.xlu1 %v4069_v58, %s5780_s30  ;;  %v4091_v58 = vmul.f32 %v9245_v36, %v4090_v50 }
 0x4b0   : > { %4072 = vrot.lane.b32.xlu0 %v4068_v14, %s5780_s30  ;;  %v4102_v14 = vmul.f32 %v9259_v44, %v4090_v50 }
 0x4b1   : > { %v9283_v61 = vpop.permute.xlu1 %3708 }
 0x4b2   : > { %11172 = vst [vmem:[#allocation92_spill] sm:$0xff] %v9283_v61  ;;  %v9285_v2 = vpop.permute.xlu0 %3706 }
 0x4b3   : > { %11173 = vst [vmem:[#allocation93_spill] sm:$0xff] %v9285_v2  ;;  %4085 = vrot.lane.b32.xlu1 %v4080_v31, %s5780_s30  ;;  %v4113_v2 = vstv %s5222_s21  ;;  %s5267_s21 = sld [smem:[#allocation3 + $0xb2]] }
 0x4b4   : > { %4083 = vrot.lane.b32.xlu0 %v4079_v54, %s5780_s30  ;;  %v4115_v54 = vmul.f32 %v9240_v43, %v4113_v2  ;;  %v4126_v50 = vmul.f32 %v9254_v7, %v4113_v2 }
 0x4b5   : > { %v9291_v35 = vpop.permute.xlu1 %3719 }
 0x4b6   : > { %11174 = vst [vmem:[#allocation94_spill] sm:$0xff] %v9291_v35  ;;  %v9293_v25 = vpop.permute.xlu0 %3717 }
 0x4b7   : > { %11175 = vst [vmem:[#allocation95_spill] sm:$0xff] %v9293_v25  ;;  %4097 = vrot.lane.b32.xlu1 %v4092_v17, %s5780_s30  ;;  %v4114_v17 = vmul.f32 %v9245_v36, %v4113_v2 }
 0x4b8   : > { %4095 = vrot.lane.b32.xlu0 %v4091_v58, %s5780_s30  ;;  %v4125_v58 = vmul.f32 %v9259_v44, %v4113_v2 }
 0x4b9   : > { %v9299_v31 = vpop.permute.xlu1 %3731 }
 0x4ba   : > { %11176 = vst [vmem:[#allocation98_spill] sm:$0xff] %v9299_v31  ;;  %v9301_v61 = vpop.permute.xlu0 %3729 }
 0x4bb   : > { %11177 = vst [vmem:[#allocation99_spill] sm:$0xff] %v9301_v61  ;;  %4108 = vrot.lane.b32.xlu1 %v4103_v40, %s5780_s30  ;;  %v4136_v61 = vstv %s5258_s11  ;;  %s5303_s11 = sld [smem:[#allocation3 + $0xd6]] }
 0x4bc   : > { %4106 = vrot.lane.b32.xlu0 %v4102_v14, %s5780_s30  ;;  %v4138_v14 = vmul.f32 %v9240_v43, %v4136_v61  ;;  %v4149_v2 = vmul.f32 %v9254_v7, %v4136_v61 }
 0x4bd   : > { %v9307_v57 = vpop.permute.xlu1 %3742 }
 0x4be   : > { %11178 = vst [vmem:[#allocation100_spill] sm:$0xff] %v9307_v57  ;;  %v9309_v21 = vpop.permute.xlu0 %3740 }
 0x4bf   : > { %11179 = vst [vmem:[#allocation101_spill] sm:$0xff] %v9309_v21  ;;  %4120 = vrot.lane.b32.xlu1 %v4115_v54, %s5780_s30  ;;  %v4137_v54 = vmul.f32 %v9245_v36, %v4136_v61 }
 0x4c0   : > { %4118 = vrot.lane.b32.xlu0 %v4114_v17, %s5780_s30  ;;  %v4148_v17 = vmul.f32 %v9259_v44, %v4136_v61 }
 0x4c1   : > { %v9315_v40 = vpop.permute.xlu1 %3754 }
 0x4c2   : > { %11180 = vst [vmem:[#allocation102_spill] sm:$0xff] %v9315_v40  ;;  %v9317_v31 = vpop.permute.xlu0 %3752 }
 0x4c3   : > { %11181 = vst [vmem:[#allocation103_spill] sm:$0xff] %v9317_v31  ;;  %4131 = vrot.lane.b32.xlu1 %v4126_v50, %s5780_s30  ;;  %v4159_v31 = vstv %s5294_s5  ;;  %s5339_s5 = sld [smem:[#allocation3 + $0xfa]] }
 0x4c4   : > { %4129 = vrot.lane.b32.xlu0 %v4125_v58, %s5780_s30  ;;  %v4161_v58 = vmul.f32 %v9240_v43, %v4159_v31  ;;  %v4172_v61 = vmul.f32 %v9254_v7, %v4159_v31 }
 0x4c5   : > { %v9323_v15 = vpop.permute.xlu1 %3765 }
 0x4c6   : > { %11182 = vst [vmem:[#allocation104_spill] sm:$0xff] %v9323_v15  ;;  %v9325_v32 = vpop.permute.xlu0 %3763 }
 0x4c7   : > { %11183 = vst [vmem:[#allocation105_spill] sm:$0xff] %v9325_v32  ;;  %4143 = vrot.lane.b32.xlu1 %v4138_v14, %s5780_s30  ;;  %v4160_v14 = vmul.f32 %v9245_v36, %v4159_v31 }
 0x4c8   : > { %4141 = vrot.lane.b32.xlu0 %v4137_v54, %s5780_s30  ;;  %v4171_v54 = vmul.f32 %v9259_v44, %v4159_v31 }
 0x4c9   : > { %v9331_v50 = vpop.permute.xlu1 %3777 }
 0x4ca   : > { %11184 = vst [vmem:[#allocation106_spill] sm:$0xff] %v9331_v50  ;;  %v9333_v40 = vpop.permute.xlu0 %3775 }
 0x4cb   : > { %11185 = vst [vmem:[#allocation107_spill] sm:$0xff] %v9333_v40  ;;  %4154 = vrot.lane.b32.xlu1 %v4149_v2, %s5780_s30  ;;  %v4182_v40 = vstv %s5330_s3  ;;  %s5375_s3 = sld [smem:[#allocation3 + $0x11e]] }
 0x4cc   : > { %4152 = vrot.lane.b32.xlu0 %v4148_v17, %s5780_s30  ;;  %v4184_v17 = vmul.f32 %v9240_v43, %v4182_v40  ;;  %v4195_v31 = vmul.f32 %v9254_v7, %v4182_v40 }
 0x4cd   : > { %v9339_v39 = vpop.permute.xlu1 %3788 }
 0x4ce   : > { %11186 = vst [vmem:[#allocation128_spill] sm:$0xff] %v9339_v39  ;;  %v9341_v4 = vpop.permute.xlu0 %3786 }
 0x4cf   : > { %11187 = vst [vmem:[#allocation129_spill] sm:$0xff] %v9341_v4  ;;  %4166 = vrot.lane.b32.xlu1 %v4161_v58, %s5780_s30  ;;  %v4183_v58 = vmul.f32 %v9245_v36, %v4182_v40 }
 0x4d0   : > { %4164 = vrot.lane.b32.xlu0 %v4160_v14, %s5780_s30  ;;  %v4194_v14 = vmul.f32 %v9259_v44, %v4182_v40 }
 0x4d1   : > { %v9347_v2 = vpop.permute.xlu1 %3800 }
 0x4d2   : > { %11188 = vst [vmem:[#allocation160_spill] sm:$0xff] %v9347_v2  ;;  %v9349_v50 = vpop.permute.xlu0 %3798 }
 0x4d3   : > { %11189 = vst [vmem:[#allocation161_spill] sm:$0xff] %v9349_v50  ;;  %4177 = vrot.lane.b32.xlu1 %v4172_v61, %s5780_s30  ;;  %v4205_v50 = vstv %s5366_s4  ;;  %s5124_s4 = sld [smem:[#allocation3 + $0x23]] }
 0x4d4   : > { %4175 = vrot.lane.b32.xlu0 %v4171_v54, %s5780_s30  ;;  %v4207_v54 = vmul.f32 %v9240_v43, %v4205_v50  ;;  %v4218_v40 = vmul.f32 %v9254_v7, %v4205_v50 }
 0x4d5   : > { %v9355_v4 = vpop.permute.xlu1 %3811 }
 0x4d6   : > { %v9357_v39 = vpop.permute.xlu0 %3809 }
 0x4d7   : > { %4189 = vrot.lane.b32.xlu1 %v4184_v17, %s5780_s30  ;;  %v4206_v17 = vmul.f32 %v9245_v36, %v4205_v50 }
 0x4d8   : > { %4187 = vrot.lane.b32.xlu0 %v4183_v58, %s5780_s30  ;;  %v4217_v58 = vmul.f32 %v9259_v44, %v4205_v50 }
 0x4d9   : > { %v9363_v61 = vpop.permute.xlu1 %3823 }
 0x4da   : > { %11190 = vst [vmem:[#allocation108_spill] sm:$0xff] %v9363_v61  ;;  %v9365_v2 = vpop.permute.xlu0 %3821 }
 0x4db   : > { %11191 = vst [vmem:[#allocation109_spill] sm:$0xff] %v9365_v2  ;;  %4200 = vrot.lane.b32.xlu1 %v4195_v31, %s5780_s30  ;;  %v4228_v2 = vstv %s5115_s12  ;;  %s5160_s12 = sld [smem:[#allocation3 + $0x47]] }
 0x4dc   : > { %4198 = vrot.lane.b32.xlu0 %v4194_v14, %s5780_s30  ;;  %v4230_v14 = vmul.f32 %v9240_v43, %v4228_v2  ;;  %v4241_v50 = vmul.f32 %v9254_v7, %v4228_v2 }
 0x4dd   : > { %v9371_v37 = vpop.permute.xlu1 %3834 }
 0x4de   : > { %v9373_v56 = vpop.permute.xlu0 %3832 }
 0x4df   : > { %4212 = vrot.lane.b32.xlu1 %v4207_v54, %s5780_s30  ;;  %v4229_v54 = vmul.f32 %v9245_v36, %v4228_v2 }
 0x4e0   : > { %4210 = vrot.lane.b32.xlu0 %v4206_v17, %s5780_s30  ;;  %v4240_v17 = vmul.f32 %v9259_v44, %v4228_v2 }
 0x4e1   : > { %v9379_v31 = vpop.permute.xlu1 %3846 }
 0x4e2   : > { %11192 = vst [vmem:[#allocation130_spill] sm:$0xff] %v9379_v31  ;;  %v9381_v61 = vpop.permute.xlu0 %3844 }
 0x4e3   : > { %11193 = vst [vmem:[#allocation131_spill] sm:$0xff] %v9381_v61  ;;  %4223 = vrot.lane.b32.xlu1 %v4218_v40, %s5780_s30  ;;  %v4251_v61 = vstv %s5151_s24  ;;  %s5196_s24 = sld [smem:[#allocation3 + $0x6b]] }
 0x4e4   : > { %4221 = vrot.lane.b32.xlu0 %v4217_v58, %s5780_s30  ;;  %v4253_v58 = vmul.f32 %v9240_v43, %v4251_v61  ;;  %v4264_v2 = vmul.f32 %v9254_v7, %v4251_v61 }
 0x4e5   : > { %v9387_v59 = vpop.permute.xlu1 %3857 }
 0x4e6   : > { %v9389_v10 = vpop.permute.xlu0 %3855 }
 0x4e7   : > { %4235 = vrot.lane.b32.xlu1 %v4230_v14, %s5781_s15  ;;  %v4252_v14 = vmul.f32 %v9245_v36, %v4251_v61 }
 0x4e8   : > { %4233 = vrot.lane.b32.xlu0 %v4229_v54, %s5781_s15  ;;  %v4263_v54 = vmul.f32 %v9259_v44, %v4251_v61 }
 0x4e9   : > { %v9395_v40 = vpop.permute.xlu1 %3869 }
 0x4ea   : > { %11194 = vst [vmem:[#allocation162_spill] sm:$0xff] %v9395_v40  ;;  %v9397_v31 = vpop.permute.xlu0 %3867 }
 0x4eb   : > { %11195 = vst [vmem:[#allocation163_spill] sm:$0xff] %v9397_v31  ;;  %4246 = vrot.lane.b32.xlu1 %v4241_v50, %s5781_s15  ;;  %v4274_v31 = vstv %s5187_s25  ;;  %s5232_s25 = sld [smem:[#allocation3 + $0x8f]] }
 0x4ec   : > { %4244 = vrot.lane.b32.xlu0 %v4240_v17, %s5781_s15  ;;  %v4276_v17 = vmul.f32 %v9240_v43, %v4274_v31  ;;  %v4287_v61 = vmul.f32 %v9254_v7, %v4274_v31 }
 0x4ed   : > { %v9403_v8 = vpop.permute.xlu1 %3880 }
 0x4ee   : > { %v9405_v49 = vpop.permute.xlu0 %3878 }
 0x4ef   : > { %11196 = vst [vmem:[#allocation110_spill] sm:$0xff] %v9405_v49  ;;  %4258 = vrot.lane.b32.xlu1 %v4253_v58, %s5781_s15  ;;  %v4275_v58 = vmul.f32 %v9245_v36, %v4274_v31  ;;  %v9744_v49 = vld [vmem:[%s6075_s18] sm:$0xf] }
 0x4f0   : > { %4256 = vrot.lane.b32.xlu0 %v4252_v14, %s5781_s15  ;;  %v4286_v14 = vmul.f32 %v9259_v44, %v4274_v31 }
 0x4f1   : > { %v9411_v50 = vpop.permute.xlu1 %3892 }
 0x4f2   : > { %11197 = vst [vmem:[#allocation111_spill] sm:$0xff] %v9411_v50  ;;  %v9413_v40 = vpop.permute.xlu0 %3890 }
 0x4f3   : > { %11198 = vst [vmem:[#allocation132_spill] sm:$0xff] %v9413_v40  ;;  %4269 = vrot.lane.b32.xlu1 %v4264_v2, %s5781_s15  ;;  %v4297_v40 = vstv %s5223_s26  ;;  %s5304_s26 = sld [smem:[#allocation3 + $0xd7]] }
 0x4f4   : > { %4267 = vrot.lane.b32.xlu0 %v4263_v54, %s5781_s15  ;;  %v4299_v54 = vmul.f32 %v9240_v43, %v4297_v40  ;;  %v4310_v31 = vmul.f32 %v9254_v7, %v4297_v40 }
 0x4f5   : > { %v9419_v51 = vpop.permute.xlu1 %3903 }
 0x4f6   : > { %11199 = vst [vmem:[#allocation133_spill] sm:$0xff] %v9419_v51  ;;  %v9421_v46 = vpop.permute.xlu0 %3901 }
 0x4f7   : > { %11200 = vst [vmem:[#allocation192_spill] sm:$0xff] %v9421_v46  ;;  %4281 = vrot.lane.b32.xlu1 %v4276_v17, %s5781_s15  ;;  %v4298_v17 = vmul.f32 %v9245_v36, %v4297_v40 }
 0x4f8   : > { %4279 = vrot.lane.b32.xlu0 %v4275_v58, %s5781_s15  ;;  %v4309_v58 = vmul.f32 %v9259_v44, %v4297_v40 }
 0x4f9   : > { %v9427_v2 = vpop.permute.xlu1 %3915 }
 0x4fa   : > { %11201 = vst [vmem:[#allocation193_spill] sm:$0xff] %v9427_v2  ;;  %v9429_v50 = vpop.permute.xlu0 %3913 }
 0x4fb   : > { %11202 = vst [vmem:[#allocation164_spill] sm:$0xff] %v9429_v50  ;;  %4292 = vrot.lane.b32.xlu1 %v4287_v61, %s5781_s15  ;;  %v4320_v50 = vstv %s5259_s6  ;;  %s5340_s6 = sld [smem:[#allocation3 + $0xfb]] }
 0x4fc   : > { %4290 = vrot.lane.b32.xlu0 %v4286_v14, %s5781_s15  ;;  %v4322_v14 = vmul.f32 %v9240_v43, %v4320_v50  ;;  %v4333_v40 = vmul.f32 %v9254_v7, %v4320_v50 }
 0x4fd   : > { %v9435_v53 = vpop.permute.xlu1 %3926 }
 0x4fe   : > { %11203 = vst [vmem:[#allocation165_spill] sm:$0xff] %v9435_v53  ;;  %v9437_v32 = vpop.permute.xlu0 %3924 }
 0x4ff   : > { %11204 = vst [vmem:[#allocation112_spill] sm:$0xff] %v9437_v32  ;;  %4304 = vrot.lane.b32.xlu1 %v4299_v54, %s5781_s15  ;;  %v4321_v54 = vmul.f32 %v9245_v36, %v4320_v50 }
 0x500   : > { %4302 = vrot.lane.b32.xlu0 %v4298_v17, %s5781_s15  ;;  %v4332_v17 = vmul.f32 %v9259_v44, %v4320_v50 }
 0x501   : > { %v9443_v61 = vpop.permute.xlu1 %3938 }
 0x502   : > { %11205 = vst [vmem:[#allocation113_spill] sm:$0xff] %v9443_v61  ;;  %v9445_v2 = vpop.permute.xlu0 %3936 }
 0x503   : > { %11206 = vst [vmem:[#allocation134_spill] sm:$0xff] %v9445_v2  ;;  %4315 = vrot.lane.b32.xlu1 %v4310_v31, %s5781_s15  ;;  %v4343_v2 = vstv %s5295_s22  ;;  %s5376_s22 = sld [smem:[#allocation3 + $0x11f]] }
 0x504   : > { %4313 = vrot.lane.b32.xlu0 %v4309_v58, %s5781_s15  ;;  %v4345_v58 = vmul.f32 %v9240_v43, %v4343_v2  ;;  %v4356_v50 = vmul.f32 %v9254_v7, %v4343_v2 }
 0x505   : > { %v9451_v15 = vpop.permute.xlu1 %3949 }
 0x506   : > { %11207 = vst [vmem:[#allocation135_spill] sm:$0xff] %v9451_v15  ;;  %v9453_v32 = vpop.permute.xlu0 %3947 }
 0x507   : > { %11208 = vst [vmem:[#allocation200_spill] sm:$0xff] %v9453_v32  ;;  %4327 = vrot.lane.b32.xlu1 %v4322_v14, %s5781_s15  ;;  %v4344_v14 = vmul.f32 %v9245_v36, %v4343_v2 }
 0x508   : > { %4325 = vrot.lane.b32.xlu0 %v4321_v54, %s5781_s15  ;;  %v4355_v54 = vmul.f32 %v9259_v44, %v4343_v2 }
 0x509   : > { %v9459_v31 = vpop.permute.xlu1 %3961 }
 0x50a   : > { %11209 = vst [vmem:[#allocation203_spill] sm:$0xff] %v9459_v31  ;;  %v9461_v61 = vpop.permute.xlu0 %3959 }
 0x50b   : > { %11210 = vst [vmem:[#allocation114_spill] sm:$0xff] %v9461_v61  ;;  %4338 = vrot.lane.b32.xlu1 %v4333_v40, %s5781_s15  ;;  %v4366_v61 = vstv %s5331_s28  ;;  %s9712_s28 = sld [smem:[#allocation3 + $0x102]] }
 0x50c   : > { %4336 = vrot.lane.b32.xlu0 %v4332_v17, %s5781_s15  ;;  %v4368_v17 = vmul.f32 %v9240_v43, %v4366_v61  ;;  %v4379_v2 = vmul.f32 %v9254_v7, %v4366_v61 }
 0x50d   : > { %v9467_v32 = vpop.permute.xlu1 %3972 }
 0x50e   : > { %11211 = vst [vmem:[#allocation115_spill] sm:$0xff] %v9467_v32  ;;  %v9469_v15 = vpop.permute.xlu0 %3970 }
 0x50f   : > { %11212 = vst [vmem:[#allocation166_spill] sm:$0xff] %v9469_v15  ;;  %4350 = vrot.lane.b32.xlu1 %v4345_v58, %s5781_s15  ;;  %v4367_v58 = vmul.f32 %v9245_v36, %v4366_v61 }
 0x510   : > { %4348 = vrot.lane.b32.xlu0 %v4344_v14, %s5781_s15  ;;  %v4378_v14 = vmul.f32 %v9259_v44, %v4366_v61 }
 0x511   : > { %v9475_v40 = vpop.permute.xlu1 %3984 }
 0x512   : > { %11213 = vst [vmem:[#allocation167_spill] sm:$0xff] %v9475_v40  ;;  %v9477_v31 = vpop.permute.xlu0 %3982 }
 0x513   : > { %11214 = vst [vmem:[#allocation136_spill] sm:$0xff] %v9477_v31  ;;  %4361 = vrot.lane.b32.xlu1 %v4356_v50, %s5781_s15  ;;  %v4389_v50 = vstv %s5367_s9  ;;  %s9714_s9 = sld [smem:[#allocation3 + $0x6]] }
 0x514   : > { %4359 = vrot.lane.b32.xlu0 %v4355_v54, %s5781_s15  ;;  %v4391_v40 = vmul.f32 %v9240_v43, %v4389_v50  ;;  %v4402_v61 = vmul.f32 %v9254_v7, %v4389_v50  ;;  %v4456_v43 = vstv %s5123_s23  ;;  %s9727_s23 = sld [smem:[#allocation3 + $0x10b]] }
 0x515   : > { %v9483_v15 = vpop.permute.xlu1 %3995 }
 0x516   : > { %v9485_v32 = vpop.permute.xlu0 %3993 }
 0x517   : > { %4373 = vrot.lane.b32.xlu1 %v4368_v17, %s5781_s15  ;;  %v4390_v17 = vmul.f32 %v9245_v36, %v4389_v50  ;;  %v9513_v36 = vld [vmem:[%s6068_s10 + $0x30] sm:$0xf0] }
 0x518   : > { %4371 = vrot.lane.b32.xlu0 %v4367_v58, %s5781_s15  ;;  %v4457_v7 = vmul.f32 %v9513_v36, %v4456_v43 }
 0x519   : > { %v9491_v31 = vpop.permute.xlu1 %4051 }
 0x51a   : > { %11215 = vst [vmem:[#allocation137_spill] sm:$0xff] %v9491_v31  ;;  %v9493_v54 = vpop.permute.xlu0 %4049 }
 0x51b   : > { %11216 = vst [vmem:[#allocation207_spill] sm:$0xff] %v9493_v54  ;;  %4384 = vrot.lane.b32.xlu1 %v4379_v2, %s5781_s15  ;;  %v4401_v2 = vmul.f32 %v9259_v44, %v4389_v50  ;;  %v9508_v54 = vld [vmem:[%s6068_s10 + $0x38] sm:$0xf0] }
 0x51c   : > { %4382 = vrot.lane.b32.xlu0 %v4378_v14, %s5781_s15 }
 0x51d   : > { %v9499_v53 = vpop.permute.xlu1 %4062 }
 0x51e   : > { %v9501_v58 = vpop.permute.xlu0 %4060 }
 0x51f   : > { %4396 = vrot.lane.b32.xlu1 %v4391_v40, %s5781_s15  ;;  %v4458_v40 = vmul.f32 %v9508_v54, %v4456_v43 }
 0x520   : > { %4394 = vrot.lane.b32.xlu0 %v4390_v17, %s5781_s15  ;;  %v9522_v17 = vld [vmem:[%s6075_s18 + $0x38] sm:$0xf] }
 0x521   : > { %v9510_v14 = vpop.permute.xlu1 %4074 }
 0x522   : > { %11217 = vst [vmem:[#allocation208_spill] sm:$0xff] %v9510_v14  ;;  %v9515_v31 = vpop.permute.xlu0 %4072  ;;  %v4479_v14 = vstv %s5159_s29  ;;  %s9738_s29 = sld [smem:[#allocation3 + $0x2a]] }
 0x523   : > { %11218 = vst [vmem:[#allocation168_spill] sm:$0xff] %v9515_v31  ;;  %4407 = vrot.lane.b32.xlu1 %v4402_v61, %s5781_s15  ;;  %v4469_v31 = vmul.f32 %v9522_v17, %v4456_v43  ;;  %v4468_v61 = vmul.f32 %v9527_v23, %v4456_v43  ;;  %v4481_v57 = vmul.f32 %v9508_v54, %v4479_v14 }
 0x524   : > { %4405 = vrot.lane.b32.xlu0 %v4401_v2, %s5781_s15  ;;  %v4492_v43 = vmul.f32 %v9522_v17, %v4479_v14 }
 0x525   : > { %v9524_v50 = vpop.permute.xlu1 %4085 }
 0x526   : > { %v9529_v18 = vpop.permute.xlu0 %4083 }
 0x527   : > { %4463 = vrot.lane.b32.xlu1 %v4458_v40, %s5780_s30  ;;  %v4480_v40 = vmul.f32 %v9513_v36, %v4479_v14 }
 0x528   : > { %4461 = vrot.lane.b32.xlu0 %v4457_v7, %s5780_s30  ;;  %v4491_v7 = vmul.f32 %v9527_v23, %v4479_v14 }
 0x529   : > { %v9535_v2 = vpop.permute.xlu1 %4097 }
 0x52a   : > { %11219 = vst [vmem:[#allocation169_spill] sm:$0xff] %v9535_v2  ;;  %v9537_v21 = vpop.permute.xlu0 %4095 }
 0x52b   : > { %11220 = vst [vmem:[#allocation138_spill] sm:$0xff] %v9537_v21  ;;  %4474 = vrot.lane.b32.xlu1 %v4469_v31, %s5780_s30  ;;  %v4502_v21 = vstv %s5195_s7  ;;  %s9741_s7 = sld [smem:[#allocation3 + $0xf]] }
 0x52c   : > { %4472 = vrot.lane.b32.xlu0 %v4468_v61, %s5780_s30  ;;  %v4504_v61 = vmul.f32 %v9508_v54, %v4502_v21  ;;  %v4515_v14 = vmul.f32 %v9522_v17, %v4502_v21 }
 0x52d   : > { %v9543_v48 = vpop.permute.xlu1 %4108 }
 0x52e   : > { %11221 = vst [vmem:[#allocation139_spill] sm:$0xff] %v9543_v48  ;;  %v9545_v20 = vpop.permute.xlu0 %4106 }
 0x52f   : > { %11222 = vst [vmem:[#allocation116_spill] sm:$0xff] %v9545_v20  ;;  %4486 = vrot.lane.b32.xlu1 %v4481_v57, %s5780_s30  ;;  %v4503_v57 = vmul.f32 %v9513_v36, %v4502_v21 }
 0x530   : > { %4484 = vrot.lane.b32.xlu0 %v4480_v40, %s5780_s30  ;;  %v4514_v40 = vmul.f32 %v9527_v23, %v4502_v21 }
 0x531   : > { %v9551_v31 = vpop.permute.xlu1 %4120 }
 0x532   : > { %11223 = vst [vmem:[#allocation117_spill] sm:$0xff] %v9551_v31  ;;  %v9553_v2 = vpop.permute.xlu0 %4118 }
 0x533   : > { %11224 = vst [vmem:[#allocation170_spill] sm:$0xff] %v9553_v2  ;;  %4497 = vrot.lane.b32.xlu1 %v4492_v43, %s5780_s30  ;;  %v4525_v2 = vstv %s5231_s0  ;;  %s9768_s0 = sld [smem:[#allocation3 + $0x4e]] }
 0x534   : > { %4495 = vrot.lane.b32.xlu0 %v4491_v7, %s5780_s30  ;;  %v4527_v7 = vmul.f32 %v9508_v54, %v4525_v2  ;;  %v4538_v21 = vmul.f32 %v9522_v17, %v4525_v2 }
 0x535   : > { %v9559_v46 = vpop.permute.xlu1 %4131 }
 0x536   : > { %11225 = vst [vmem:[#allocation171_spill] sm:$0xff] %v9559_v46  ;;  %v9561_v51 = vpop.permute.xlu0 %4129 }
 0x537   : > { %11226 = vst [vmem:[#allocation140_spill] sm:$0xff] %v9561_v51  ;;  %4509 = vrot.lane.b32.xlu1 %v4504_v61, %s5780_s30  ;;  %v4526_v61 = vmul.f32 %v9513_v36, %v4525_v2 }
 0x538   : > { %4507 = vrot.lane.b32.xlu0 %v4503_v57, %s5780_s30  ;;  %v4537_v57 = vmul.f32 %v9527_v23, %v4525_v2 }
 0x539   : > { %v9567_v43 = vpop.permute.xlu1 %4143 }
 0x53a   : > { %11227 = vst [vmem:[#allocation141_spill] sm:$0xff] %v9567_v43  ;;  %v9569_v31 = vpop.permute.xlu0 %4141 }
 0x53b   : > { %11228 = vst [vmem:[#allocation172_spill] sm:$0xff] %v9569_v31  ;;  %4520 = vrot.lane.b32.xlu1 %v4515_v14, %s5780_s30  ;;  %v4548_v31 = vstv %s5267_s21  ;;  %s9773_s21 = sld [smem:[#allocation3 + $0x33]] }
 0x53c   : > { %4518 = vrot.lane.b32.xlu0 %v4514_v40, %s5780_s30  ;;  %v4550_v40 = vmul.f32 %v9508_v54, %v4548_v31  ;;  %v4561_v2 = vmul.f32 %v9522_v17, %v4548_v31 }
 0x53d   : > { %v9575_v51 = vpop.permute.xlu1 %4154 }
 0x53e   : > { %11229 = vst [vmem:[#allocation173_spill] sm:$0xff] %v9575_v51  ;;  %v9577_v46 = vpop.permute.xlu0 %4152 }
 0x53f   : > { %11230 = vst [vmem:[#allocation142_spill] sm:$0xff] %v9577_v46  ;;  %4532 = vrot.lane.b32.xlu1 %v4527_v7, %s5780_s30  ;;  %v4549_v7 = vmul.f32 %v9513_v36, %v4548_v31 }
 0x540   : > { %4530 = vrot.lane.b32.xlu0 %v4526_v61, %s5780_s30  ;;  %v4560_v61 = vmul.f32 %v9527_v23, %v4548_v31 }
 0x541   : > { %v9583_v14 = vpop.permute.xlu1 %4166 }
 0x542   : > { %11231 = vst [vmem:[#allocation143_spill] sm:$0xff] %v9583_v14  ;;  %v9585_v43 = vpop.permute.xlu0 %4164 }
 0x543   : > { %11232 = vst [vmem:[#allocation64_spill] sm:$0xff] %v9585_v43  ;;  %4543 = vrot.lane.b32.xlu1 %v4538_v21, %s5780_s30  ;;  %v4571_v43 = vstv %s5303_s11  ;;  %s9779_s11 = sld [smem:[#allocation3 + $0x114]] }
 0x544   : > { %4541 = vrot.lane.b32.xlu0 %v4537_v57, %s5780_s30  ;;  %v4573_v57 = vmul.f32 %v9508_v54, %v4571_v43  ;;  %v4584_v31 = vmul.f32 %v9522_v17, %v4571_v43 }
 0x545   : > { %v9591_v46 = vpop.permute.xlu1 %4177 }
 0x546   : > { %11233 = vst [vmem:[#allocation118_spill] sm:$0xff] %v9591_v46  ;;  %v9593_v51 = vpop.permute.xlu0 %4175 }
 0x547   : > { %11234 = vst [vmem:[#allocation119_spill] sm:$0xff] %v9593_v51  ;;  %4555 = vrot.lane.b32.xlu1 %v4550_v40, %s5780_s30  ;;  %v4572_v40 = vmul.f32 %v9513_v36, %v4571_v43 }
 0x548   : > { %4553 = vrot.lane.b32.xlu0 %v4549_v7, %s5780_s30 }
 0x549   : > { %v9599_v21 = vpop.permute.xlu1 %4189 }
 0x54a   : > { %11235 = vst [vmem:[#allocation174_spill] sm:$0xff] %v9599_v21  ;;  %v9601_v14 = vpop.permute.xlu0 %4187 }
 0x54b   : > { %11236 = vst [vmem:[#allocation175_spill] sm:$0xff] %v9601_v14  ;;  %4566 = vrot.lane.b32.xlu1 %v4561_v2, %s5780_s30  ;;  %v4583_v14 = vmul.f32 %v9527_v23, %v4571_v43  ;;  %v4594_v2 = vstv %s5339_s5  ;;  %s9798_s5 = sld [smem:[#allocation3 + $0x18]] }
 0x54c   : > { %4564 = vrot.lane.b32.xlu0 %v4560_v61, %s5780_s30  ;;  %v4596_v61 = vmul.f32 %v9508_v54, %v4594_v2  ;;  %v4607_v28 = vmul.f32 %v9522_v17, %v4594_v2 }
 0x54d   : > { %v9607_v51 = vpop.permute.xlu1 %4200 }
 0x54e   : > { %11237 = vst [vmem:[#allocation144_spill] sm:$0xff] %v9607_v51  ;;  %v9609_v7 = vpop.permute.xlu0 %4198 }
 0x54f   : > { %11238 = vst [vmem:[#allocation145_spill] sm:$0xff] %v9609_v7  ;;  %4578 = vrot.lane.b32.xlu1 %v4573_v57, %s5780_s30  ;;  %v4595_v7 = vmul.f32 %v9513_v36, %v4594_v2  ;;  %v4617_v57 = vstv %s5375_s3  ;;  %s9809_s3 = sld [smem:[#allocation3 + $0x72]] }
 0x550   : > { %4576 = vrot.lane.b32.xlu0 %v4572_v40, %s5780_s30  ;;  %v4619_v43 = vmul.f32 %v9508_v54, %v4617_v57  ;;  %v4630_v20 = vmul.f32 %v9522_v17, %v4617_v57 }
 0x551   : > { %v9615_v21 = vpop.permute.xlu1 %4212 }
 0x552   : > { %11239 = vst [vmem:[#allocation65_spill] sm:$0xff] %v9615_v21  ;;  %v9617_v46 = vpop.permute.xlu0 %4210 }
 0x553   : > { %11240 = vst [vmem:[#allocation72_spill] sm:$0xff] %v9617_v46  ;;  %4589 = vrot.lane.b32.xlu1 %v4584_v31, %s5780_s30  ;;  %v4618_v31 = vmul.f32 %v9513_v36, %v4617_v57 }
 0x554   : > { %4587 = vrot.lane.b32.xlu0 %v4583_v14, %s5780_s30 }
 0x555   : > { %v4224_v51 = vpop.permute.xlu1 %4223 }
 0x556   : > { %v4222_v41 = vpop.permute.xlu0 %4221 }
 0x557   : > { %v9624_v40 = vsel %vm612_vm0, %v4222_v41, %v4224_v51  ;;  %4601 = vrot.lane.b32.xlu1 %v4596_v61, %s5780_s30  ;;  %v4606_v51 = vmul.f32 %v9527_v23, %v4594_v2 }
 0x558   : > { %4599 = vrot.lane.b32.xlu0 %v4595_v7, %s5780_s30 }
 0x559   : > { %v4236_v46 = vpop.permute.xlu1 %4235 }
 0x55a   : > { %v4234_v21 = vpop.permute.xlu0 %4233 }
 0x55b   : > { %v9631_v14 = vsel %vm709_vm1, %v4234_v21, %v4236_v46  ;;  %4624 = vrot.lane.b32.xlu1 %v4619_v43, %s5780_s30  ;;  %v4629_v46 = vmul.f32 %v9527_v23, %v4617_v57  ;;  %v9644_v21 = vstv %s5124_s4  ;;  %s9828_s4 = sld [smem:[#allocation3 + $0x57]] }
 0x55c   : > { %11241 = vst [vmem:[#allocation120_spill] sm:$0xff] %v9631_v14  ;;  %4622 = vrot.lane.b32.xlu0 %v4618_v31, %s5780_s30 }
 0x55d   : > { %v4247_v41 = vpop.permute.xlu1 %4246 }
 0x55e   : > { %v4245_v61 = vpop.permute.xlu0 %4244 }
 0x55f   : > { %v9638_v7 = vsel %vm709_vm1, %v4245_v61, %v4247_v41  ;;  %4612 = vrot.lane.b32.xlu1 %v4607_v28, %s5780_s30  ;;  %v4642_v41 = vmul.f32 %v9508_v54, %v9644_v21  ;;  %v4641_v28 = vmul.f32 %v9513_v36, %v9644_v21 }
 0x560   : > { %4610 = vrot.lane.b32.xlu0 %v4606_v51, %s5780_s30  ;;  %v9655_v51 = vstv %s5160_s12  ;;  %s9836_s12 = sld [smem:[#allocation3 + $0x3c]] }
 0x561   : > { %v4259_v43 = vpop.permute.xlu1 %4258 }
 0x562   : > { %v4257_v31 = vpop.permute.xlu0 %4256 }
 0x563   : > { %v9647_v2 = vsel %vm709_vm1, %v4257_v31, %v4259_v43  ;;  %4635 = vrot.lane.b32.xlu1 %v4630_v20, %s5780_s30  ;;  %v4665_v20 = vmul.f32 %v9508_v54, %v9655_v51  ;;  %v9666_v43 = vstv %s5196_s24  ;;  %s9861_s24 = sld [smem:[#allocation3 + $0x21]] }
 0x564   : > { %11242 = vst [vmem:[#allocation121_spill] sm:$0xff] %v9647_v2  ;;  %4633 = vrot.lane.b32.xlu0 %v4629_v46, %s5780_s30  ;;  %v4664_v46 = vmul.f32 %v9513_v36, %v9655_v51  ;;  %s5268_s30 = sld [smem:[#allocation3 + $0xb3]] }
 0x565   : > { %v4270_v57 = vpop.permute.xlu1 %4269 }
 0x566   : > { %v4268_v61 = vpop.permute.xlu0 %4267 }
 0x567   : > { %v9658_v14 = vsel %vm709_vm1, %v4268_v61, %v4270_v57  ;;  %4647 = vrot.lane.b32.xlu1 %v4642_v41, %s5781_s15  ;;  %v4688_v41 = vmul.f32 %v9508_v54, %v9666_v43  ;;  %v9677_v57 = vstv %s5232_s25  ;;  %s9886_s25 = sld [smem:[#allocation3 + $0x7b]] }
 0x568   : > { %11243 = vst [vmem:[#allocation176_spill] sm:$0xff] %v9658_v14  ;;  %4645 = vrot.lane.b32.xlu0 %v4641_v28, %s5781_s15  ;;  %v4687_v28 = vmul.f32 %v9513_v36, %v9666_v43 }
 0x569   : > { %v4282_v31 = vpop.permute.xlu1 %4281 }
 0x56a   : > { %v4280_v2 = vpop.permute.xlu0 %4279 }
 0x56b   : > { %v9669_v48 = vsel %vm709_vm1, %v4280_v2, %v4282_v31  ;;  %4670 = vrot.lane.b32.xlu1 %v4665_v20, %s5781_s15  ;;  %v4711_v2 = vmul.f32 %v9508_v54, %v9677_v57  ;;  %v4710_v20 = vmul.f32 %v9513_v36, %v9677_v57 }
 0x56c   : > { %11244 = vst [vmem:[#allocation177_spill] sm:$0xff] %v9669_v48  ;;  %4668 = vrot.lane.b32.xlu0 %v4664_v46, %s5781_s15  ;;  %v9688_v46 = vstv %s5268_s30  ;;  %s9892_s30 = sld [smem:[#allocation3 + $0x60]] }
 0x56d   : > { %v4293_v61 = vpop.permute.xlu1 %4292 }
 0x56e   : > { %v4291_v25 = vpop.permute.xlu0 %4290 }
 0x56f   : > { %v9680_v35 = vsel %vm709_vm1, %v4291_v25, %v4293_v61  ;;  %4693 = vrot.lane.b32.xlu1 %v4688_v41, %s5781_s15  ;;  %v4734_v25 = vmul.f32 %v9508_v54, %v9688_v46  ;;  %v4733_v41 = vmul.f32 %v9513_v36, %v9688_v46 }
 0x570   : > { %11245 = vst [vmem:[#allocation146_spill] sm:$0xff] %v9680_v35  ;;  %4691 = vrot.lane.b32.xlu0 %v4687_v28, %s5781_s15  ;;  %v9699_v28 = vstv %s5304_s26  ;;  %s9913_s26 = sld [smem:[#allocation3 + $0x96]] }
 0x571   : > { %v4305_v31 = vpop.permute.xlu1 %4304 }
 0x572   : > { %v4303_v48 = vpop.permute.xlu0 %4302 }
 0x573   : > { %v9691_v45 = vsel %vm709_vm1, %v4303_v48, %v4305_v31  ;;  %4716 = vrot.lane.b32.xlu1 %v4711_v2, %s5781_s15  ;;  %v4757_v48 = vmul.f32 %v9508_v54, %v9699_v28  ;;  %v4756_v2 = vmul.f32 %v9513_v36, %v9699_v28 }
 0x574   : > { %11246 = vst [vmem:[#allocation147_spill] sm:$0xff] %v9691_v45  ;;  %4714 = vrot.lane.b32.xlu0 %v4710_v20, %s5781_s15  ;;  %v9710_v20 = vstv %s5340_s6  ;;  %s9927_s6 = sld [smem:[#allocation3 + $0x45]] }
 0x575   : > { %v4316_v61 = vpop.permute.xlu1 %4315 }
 0x576   : > { %v4314_v35 = vpop.permute.xlu0 %4313 }
 0x577   : > { %v9702_v5 = vsel %vm709_vm1, %v4314_v35, %v4316_v61  ;;  %4739 = vrot.lane.b32.xlu1 %v4734_v25, %s5781_s15  ;;  %v4780_v25 = vmul.f32 %v9508_v54, %v9710_v20  ;;  %v9725_v61 = vstv %s5376_s22  ;;  %s9948_s22 = sld [smem:[#allocation3 + $0x9f]] }
 0x578   : > { %11247 = vst [vmem:[#allocation34_spill] sm:$0xff] %v9702_v5  ;;  %4737 = vrot.lane.b32.xlu0 %v4733_v41, %s5781_s15  ;;  %v4779_v41 = vmul.f32 %v9513_v36, %v9710_v20 }
 0x579   : > { %v4328_v31 = vpop.permute.xlu1 %4327 }
 0x57a   : > { %v4326_v45 = vpop.permute.xlu0 %4325 }
 0x57b   : > { %v9717_v35 = vsel %vm709_vm1, %v4326_v45, %v4328_v31  ;;  %4762 = vrot.lane.b32.xlu1 %v4757_v48, %s5781_s15  ;;  %v4803_v48 = vmul.f32 %v9508_v54, %v9725_v61  ;;  %v10574_v31 = vstv %s9712_s28  ;;  %v3401_v54 = vsel %vm612_vm0, %v9089_v3, %v9087_v30 }
 0x57c   : > { %11248 = vst [vmem:[#allocation194_spill] sm:$0xff] %v9717_v35  ;;  %4760 = vrot.lane.b32.xlu0 %v4756_v2, %s5781_s15  ;;  %v4802_v2 = vmul.f32 %v9513_v36, %v9725_v61  ;;  %v3240_v30 = vsel %vm612_vm0, %v8965_v38, %v8963_v26  ;;  %v3585_v3 = vsel %vm709_vm1, %v9217_v27, %v9215_v24  ;;  %v3627_v26 = vstv %s9727_s23 }
 0x57d   : > { %v4339_v5 = vpop.permute.xlu1 %4338  ;;  %v4676_v27 = vmul.f32 %v9522_v17, %v9655_v51 }
 0x57e   : > { %v4337_v14 = vpop.permute.xlu0 %4336 }
 0x57f   : > { %v9730_v45 = vsel %vm709_vm1, %v4337_v14, %v4339_v5  ;;  %4785 = vrot.lane.b32.xlu1 %v4780_v25, %s5781_s15  ;;  %v3219_v5 = vmul.f32 %v9744_v49, %v10574_v31  ;;  %v3196_v25 = vstv %s9714_s9  ;;  %v4652_v31 = vmul.f32 %v9527_v23, %v9644_v21 }
 0x580   : > { %11249 = vst [vmem:[#allocation122_spill] sm:$0xff] %v9730_v45  ;;  %4783 = vrot.lane.b32.xlu0 %v4779_v41, %s5781_s15  ;;  %v4653_v41 = vmul.f32 %v9522_v17, %v9644_v21  ;;  %v3198_v45 = vmul.f32 %v9744_v49, %v3196_v25  ;;  %v3424_v21 = vsel %vm709_vm1, %v9105_v55, %v9103_v52 }
 0x581   : > { %v4351_v35 = vpop.permute.xlu1 %4350  ;;  %v4675_v55 = vmul.f32 %v9527_v23, %v9655_v51  ;;  %v3813_v51 = vsel %vm612_vm0, %v9357_v39, %v9355_v4  ;;  %v3652_v4 = vsel %vm612_vm0, %v9233_v12, %v9231_v0  ;;  %v3597_v39 = vstv %s9773_s21  ;;  %s4920_s21 = scalar_lea.sflag [#allocation5], %s6062_s1 }
 0x582   : > { %v4349_v14 = vpop.permute.xlu0 %4348  ;;  %v3242_v24 = vadd.f32 %v3240_v30, %v3198_v45  ;;  %v3836_v12 = vsel %vm709_vm1, %v9373_v56, %v9371_v37  ;;  %v4721_v37 = vmul.f32 %v9527_v23, %v9677_v57 }
 0x583   : > { %v9754_v36 = vsel %vm709_vm1, %v4349_v14, %v4351_v35  ;;  %4808 = vrot.lane.b32.xlu1 %v4803_v48, %s5781_s15  ;;  %v3403_v48 = vadd.f32 %v3401_v54, %v3219_v5  ;;  %v9788_v14 = vld [vmem:[%s6075_s18 + $0x10] sm:$0xf]  ;;  %v3199_v54 = vstv %s9738_s29 }
 0x584   : > { %4806 = vrot.lane.b32.xlu0 %v4802_v2, %s5781_s15  ;;  %v3630_v52 = vmul.f32 %v9788_v14, %v3627_v26  ;;  %v3201_v45 = vmul.f32 %v9744_v49, %v3199_v54  ;;  %v3426_v30 = vadd.f32 %v3424_v21, %v3242_v24  ;;  %v4699_v21 = vmul.f32 %v9522_v17, %v9666_v43 }
 0x585   : > { %v4362_v35 = vpop.permute.xlu1 %4361  ;;  %v3587_v5 = vadd.f32 %v3585_v3, %v3403_v48 }
 0x586   : > { %v4360_v2 = vpop.permute.xlu0 %4359 }
 0x587   : > { %v9782_v38 = vsel %vm709_vm1, %v4360_v2, %v4362_v35  ;;  %4658 = vrot.lane.b32.xlu1 %v4653_v41, %s5781_s15  ;;  %v3592_v35 = vstv %s9741_s7  ;;  %v3631_v24 = vadd.f32 %v3630_v52, %v3587_v5  ;;  %s11417_s7 = sld [smem:[#allocation212_spill]] }
 0x588   : > { %4656 = vrot.lane.b32.xlu0 %v4652_v31, %s5781_s15  ;;  %v3595_v3 = vmul.f32 %v9788_v14, %v3592_v35  ;;  %v3263_v31 = vsel %vm612_vm0, %v8993_v6, %v8988_v11  ;;  %v4698_v11 = vmul.f32 %v9527_v23, %v9666_v43  ;;  %v3202_v6 = vstv %s9768_s0 }
 0x589   : > { %v4374_v41 = vpop.permute.xlu1 %4373  ;;  %v3265_v52 = vadd.f32 %v3263_v31, %v3201_v45  ;;  %v3447_v43 = vsel %vm709_vm1, %v9121_v63, %v9119_v9  ;;  %v3204_v56 = vmul.f32 %v9744_v49, %v3202_v6 }
 0x58a   : > { %v4372_v48 = vpop.permute.xlu0 %4371 }
 0x58b   : > { %v9815_v2 = vsel %vm709_vm1, %v4372_v48, %v4374_v41  ;;  %4681 = vrot.lane.b32.xlu1 %v4676_v27, %s5781_s15  ;;  %v3997_v27 = vsel %vm709_vm1, %v9485_v32, %v9483_v15  ;;  %v3815_v41 = vadd.f32 %v3813_v51, %v3631_v24  ;;  %v10579_v48 = vstv %s9779_s11 }
 0x58c   : > { %4679 = vrot.lane.b32.xlu0 %v4675_v55, %s5781_s15  ;;  %v3596_v55 = vadd.f32 %v3595_v3, %v3426_v30  ;;  %v4722_v15 = vmul.f32 %v9522_v17, %v9677_v57  ;;  %v4042_v45 = vmul.f32 %v9259_v44, %v10579_v48  ;;  %v3600_v30 = vmul.f32 %v9788_v14, %v3597_v39 }
 0x58d   : > { %v4385_v5 = vpop.permute.xlu1 %4384  ;;  %v3999_v63 = vadd.f32 %v3997_v27, %v3815_v41  ;;  %v10595_v3 = vstv %s9798_s5  ;;  %v3286_v51 = vsel %vm612_vm0, %v9009_v34, %v9007_v19  ;;  %v4744_v34 = vmul.f32 %v9527_v23, %v9688_v46 }
 0x58e   : > { %v4383_v0 = vpop.permute.xlu0 %4382  ;;  %v3654_v9 = vadd.f32 %v3652_v4, %v3596_v55  ;;  %v4007_v57 = vmul.f32 %v9259_v44, %v10595_v3  ;;  %v3205_v4 = vstv %s9809_s3  ;;  %v3288_v44 = vadd.f32 %v3286_v51, %v3204_v56 }
 0x58f   : > { %v9843_v32 = vsel %vm709_vm1, %v4383_v0, %v4385_v5  ;;  %4704 = vrot.lane.b32.xlu1 %v4699_v21, %s5781_s15  ;;  %v3449_v21 = vadd.f32 %v3447_v43, %v3265_v52  ;;  %v4745_v5 = vmul.f32 %v9522_v17, %v9688_v46  ;;  %v3207_v55 = vmul.f32 %v9744_v49, %v3205_v4 }
 0x590   : > { %11250 = vst [vmem:[#allocation123_spill] sm:$0xff] %v9843_v32  ;;  %4702 = vrot.lane.b32.xlu0 %v4698_v11, %s5781_s15  ;;  %v3838_v24 = vadd.f32 %v3836_v12, %v3654_v9  ;;  %v4043_v19 = vadd.f32 %v4042_v45, %v3999_v63  ;;  %v3675_v52 = vsel %vm612_vm0, %v9261_v1, %v9256_v42  ;;  %v3602_v43 = vstv %s9828_s4 }
 0x591   : > { %v4397_v31 = vpop.permute.xlu1 %4396  ;;  %v4064_v41 = vsel %vm612_vm0, %v9501_v58, %v9499_v53  ;;  %v3601_v12 = vadd.f32 %v3600_v30, %v3449_v21  ;;  %v10594_v9 = vstv %s9836_s12  ;;  %v3470_v1 = vsel %vm709_vm1, %v9137_v29, %v9135_v16  ;;  %v9919_v29 = vld [vmem:[%s6075_s18 + $0x20] sm:$0xf]  ;;  %s10097_s18 = sld [smem:[#allocation3 + $0xe7]] }
 0x592   : > { %v4395_v11 = vpop.permute.xlu0 %4394  ;;  %v4227_v46 = vadd.f32 %v9624_v40, %v4043_v19  ;;  %v3859_v53 = vsel %vm709_vm1, %v9389_v10, %v9387_v59  ;;  %v4768_v58 = vmul.f32 %v9522_v17, %v9699_v28  ;;  %v4767_v16 = vmul.f32 %v9527_v23, %v9699_v28 }
 0x593   : > { %v9871_v27 = vsel %vm709_vm1, %v4395_v11, %v4397_v31  ;;  %4727 = vrot.lane.b32.xlu1 %v4722_v15, %s5781_s15  ;;  %v4008_v15 = vadd.f32 %v4007_v57, %v3838_v24  ;;  %v3677_v45 = vadd.f32 %v3675_v52, %v3601_v12  ;;  %v3309_v10 = vsel %vm612_vm0, %v9025_v47, %v9023_v13 }
 0x594   : > { %4725 = vrot.lane.b32.xlu0 %v4721_v37, %s5781_s15  ;;  %v3605_v59 = vmul.f32 %v9788_v14, %v3602_v43  ;;  %v4012_v56 = vmul.f32 %v9919_v29, %v10594_v9  ;;  %v10586_v31 = vstv %s9861_s24  ;;  %v3472_v28 = vadd.f32 %v3470_v1, %v3288_v44  ;;  %v11304_v9 = vld [vmem:[#allocation50_spill] sm:$0xff] }
 0x595   : > { %v4408_v0 = vpop.permute.xlu1 %4407  ;;  %v4066_v40 = vadd.f32 %v4064_v41, %v4008_v15  ;;  %v3861_v51 = vadd.f32 %v3859_v53, %v3677_v45  ;;  %v4419_v21 = vmul.f32 %v9527_v23, %v10586_v31  ;;  %v4791_v24 = vmul.f32 %v9522_v17, %v9710_v20 }
 0x596   : > { %v4406_v63 = vpop.permute.xlu0 %4405  ;;  %v4790_v57 = vmul.f32 %v9527_v23, %v9710_v20  ;;  %v3311_v11 = vadd.f32 %v3309_v10, %v3207_v55  ;;  %v4087_v19 = vsel %vm612_vm0, %v9529_v18, %v9524_v50  ;;  %v3606_v44 = vadd.f32 %v3605_v59, %v3472_v28  ;;  %v11254_v10 = vld [vmem:[#allocation56_spill] sm:$0xff]  ;;  %v11255_v59 = vld [vmem:[#allocation57_spill] sm:$0xff]  ;;  %v11256_v28 = vld [vmem:[#allocation94_spill] sm:$0xff] }
 0x597   : > { %v4409_v42 = vsel %vm709_vm1, %v4406_v63, %v4408_v0  ;;  %4750 = vrot.lane.b32.xlu1 %v4745_v5, %s5781_s15  ;;  %v4250_v13 = vadd.f32 %v9638_v7, %v4066_v40  ;;  %v3698_v7 = vsel %vm612_vm0, %v9277_v62, %v9275_v22  ;;  %v3607_v5 = vstv %s9886_s25  ;;  %v11252_v22 = vld [vmem:[#allocation110_spill] sm:$0xff] }
 0x598   : > { %v9905_v37 = vadd.f32 %v4409_v42, %v4227_v46  ;;  %4748 = vrot.lane.b32.xlu0 %v4744_v34, %s5781_s15  ;;  %v4013_v52 = vadd.f32 %v4012_v56, %v3861_v51  ;;  %v10592_v41 = vstv %s9892_s30  ;;  %v3493_v62 = vsel %vm709_vm1, %v9153_v60, %v9151_v33  ;;  %v11257_v51 = vld [vmem:[#allocation95_spill] sm:$0xff] }
 0x599   : > { %v9924_v30 = vpop.permute.xlu1 %4463  ;;  %v4420_v0 = vadd.f32 %v4419_v21, %v4250_v13  ;;  %v3882_v18 = vsel %vm709_vm1, %v11252_v22, %v9403_v8  ;;  %v4814_v55 = vmul.f32 %v9522_v17, %v9725_v61  ;;  %v3700_v12 = vadd.f32 %v3698_v7, %v3606_v44  ;;  %v11258_v21 = vld [vmem:[#allocation139_spill] sm:$0xff] }
 0x59a   : > { %11251 = vst [vmem:[#allocation178_spill] sm:$0xff] %v9905_v37  ;;  %v9930_v47 = vpop.permute.xlu0 %4461  ;;  %v4089_v15 = vadd.f32 %v4087_v19, %v4013_v52  ;;  %v4813_v8 = vmul.f32 %v9527_v23, %v9725_v61  ;;  %v3208_v33 = vstv %s9913_s26  ;;  %v3610_v60 = vmul.f32 %v9788_v14, %v3607_v5 }
 0x59b   : > { %4773 = vrot.lane.b32.xlu1 %v4768_v58, %s5781_s15  ;;  %v4017_v17 = vmul.f32 %v9919_v29, %v10592_v41  ;;  %v10585_v1 = vstv %s9927_s6  ;;  %v3495_v53 = vadd.f32 %v3493_v62, %v3311_v11  ;;  %v3884_v42 = vadd.f32 %v3882_v18, %v3700_v12  ;;  %v11253_v58 = vld [vmem:[#allocation176_spill] sm:$0xff]  ;;  %v11261_v62 = vld [vmem:[#allocation77_spill] sm:$0xff]  ;;  %v11302_v41 = vld [vmem:[#allocation87_spill] sm:$0xff] }
 0x59c   : > { %4771 = vrot.lane.b32.xlu0 %v4767_v16, %s5781_s15  ;;  %v4273_v45 = vadd.f32 %v11253_v58, %v4089_v15  ;;  %v4424_v40 = vmul.f32 %v9527_v23, %v10585_v1  ;;  %v3210_v16 = vmul.f32 %v9744_v49, %v3208_v33  ;;  %v3332_v56 = vsel %vm612_vm0, %v11255_v59, %v11254_v10  ;;  %v11262_v18 = vld [vmem:[#allocation133_spill] sm:$0xff]  ;;  %v11264_v59 = vld [vmem:[#allocation146_spill] sm:$0xff] }
 0x59d   : > { %v4475_v34 = vpop.permute.xlu1 %4474  ;;  %v3721_v13 = vsel %vm612_vm0, %v11257_v51, %v11256_v28  ;;  %v3611_v7 = vadd.f32 %v3610_v60, %v3495_v53  ;;  %v3612_v19 = vstv %s9948_s22  ;;  %v10591_v60 = vstv %s9961_s8  ;;  %v5564_v1 = vld [vmem:[%s6068_s10 + $0x10] sm:$0xf0] }
 0x59e   : > { %v4473_v20 = vpop.permute.xlu0 %4472  ;;  %v4425_v44 = vadd.f32 %v4424_v40, %v4273_v45  ;;  %v3211_v53 = vstv %s9969_s2  ;;  %v4022_v58 = vmul.f32 %v9919_v29, %v10591_v60  ;;  %v10584_v40 = vstv %s9980_s27  ;;  %v11301_v60 = vld [vmem:[#allocation86_spill] sm:$0xff]  ;;  %s10212_s2 = sld [smem:[#allocation3 + $0xf0]] }
 0x59f   : > { %v4476_v50 = vsel %vm612_vm0, %v4473_v20, %v4475_v34  ;;  %4796 = vrot.lane.b32.xlu1 %v4791_v24, %s5781_s15  ;;  %v11259_v24 = vld [vmem:[#allocation116_spill] sm:$0xff]  ;;  %v4018_v34 = vadd.f32 %v4017_v17, %v3884_v42  ;;  %v3723_v15 = vadd.f32 %v3721_v13, %v3611_v7  ;;  %v3615_v42 = vmul.f32 %v9788_v14, %v3612_v19  ;;  %v11268_v7 = vld [vmem:[#allocation101_spill] sm:$0xff] }
 0x5a0   : > { %v9963_v46 = vadd.f32 %v4476_v50, %v4420_v0  ;;  %4794 = vrot.lane.b32.xlu0 %v4790_v57, %s5781_s15  ;;  %v4110_v57 = vsel %vm612_vm0, %v11259_v24, %v11258_v21  ;;  %v3334_v0 = vadd.f32 %v3332_v56, %v3210_v16  ;;  %v11260_v20 = vld [vmem:[#allocation76_spill] sm:$0xff]  ;;  %v4429_v51 = vmul.f32 %v9527_v23, %v10584_v40  ;;  %v11265_v21 = vld [vmem:[#allocation47_spill] sm:$0xff]  ;;  %v11266_v24 = vld [vmem:[#allocation70_spill] sm:$0xff] }
 0x5a1   : > { %v9977_v63 = vpop.permute.xlu1 %4486  ;;  %v3516_v22 = vsel %vm709_vm1, %v11261_v62, %v11260_v20  ;;  %v11263_v50 = vld [vmem:[#allocation192_spill] sm:$0xff]  ;;  %v3213_v13 = vmul.f32 %v9744_v49, %v3211_v53  ;;  %v3608_v31 = vmul.f32 %v5564_v1, %v3607_v5  ;;  %v11298_v5 = vld [vmem:[#allocation39_spill] sm:$0xff] }
 0x5a2   : > { %v9983_v61 = vpop.permute.xlu0 %4484  ;;  %v3518_v16 = vadd.f32 %v3516_v22, %v3334_v0  ;;  %v3617_v22 = vstv %s10003_s17  ;;  %s10344_s17 = sld [smem:[#allocation3 + $0xf9]] }
 0x5a3   : > { %4819 = vrot.lane.b32.xlu1 %v4814_v55, %s5781_s15  ;;  %v3905_v55 = vsel %vm709_vm1, %v11263_v50, %v11262_v18 }
 0x5a4   : > { %4817 = vrot.lane.b32.xlu0 %v4813_v8, %s5781_s15  ;;  %v4112_v8 = vadd.f32 %v4110_v57, %v4018_v34  ;;  %s10013_s15 = sld [smem:[#allocation3 + $0xa8]]  ;;  %v3907_v10 = vadd.f32 %v3905_v55, %v3723_v15  ;;  %v3355_v57 = vsel %vm612_vm0, %v11266_v24, %v11265_v21  ;;  %v3616_v62 = vadd.f32 %v3615_v42, %v3518_v16  ;;  %v11271_v15 = vld [vmem:[#allocation80_spill] sm:$0xff]  ;;  %v11273_v21 = vld [vmem:[#allocation165_spill] sm:$0xff] }
 0x5a5   : > { %v4498_v11 = vpop.permute.xlu1 %4497  ;;  %v11274_v24 = vld [vmem:[#allocation112_spill] sm:$0xff] }
 0x5a6   : > { %v4496_v52 = vpop.permute.xlu0 %4495  ;;  %v4296_v56 = vadd.f32 %v11264_v59, %v4112_v8  ;;  %v4023_v18 = vadd.f32 %v4022_v58, %v3907_v10  ;;  %v11272_v8 = vld [vmem:[#allocation81_spill] sm:$0xff]  ;;  %v3620_v58 = vmul.f32 %v9788_v14, %v3617_v22 }
 0x5a7   : > { %v4499_v12 = vsel %vm612_vm0, %v4496_v52, %v4498_v11  ;;  %v11267_v11 = vld [vmem:[#allocation100_spill] sm:$0xff]  ;;  %v3539_v59 = vsel %vm709_vm1, %v11272_v8, %v11271_v15  ;;  %v11278_v15 = vld [vmem:[#allocation173_spill] sm:$0xff]  ;;  %v11279_v8 = vld [vmem:[#allocation142_spill] sm:$0xff] }
 0x5a8   : > { %v10015_v17 = vadd.f32 %v4499_v12, %v4425_v44  ;;  %v3744_v34 = vsel %vm612_vm0, %v11268_v7, %v11267_v11  ;;  %v11269_v44 = vld [vmem:[#allocation171_spill] sm:$0xff]  ;;  %v11270_v52 = vld [vmem:[#allocation140_spill] sm:$0xff]  ;;  %v4430_v50 = vadd.f32 %v4429_v51, %v4296_v56  ;;  %v3357_v12 = vadd.f32 %v3355_v57, %v3213_v13 }
 0x5a9   : > { %v10024_v45 = vpop.permute.xlu1 %4509  ;;  %v4133_v0 = vsel %vm612_vm0, %v11270_v52, %v11269_v44  ;;  %v3928_v11 = vsel %vm709_vm1, %v11274_v24, %v11273_v21  ;;  %v3746_v44 = vadd.f32 %v3744_v34, %v3616_v62  ;;  %v10583_v51 = vstv %s10027_s16  ;;  %v11275_v34 = vld [vmem:[#allocation34_spill] sm:$0xff] }
 0x5aa   : > { %v10030_v28 = vpop.permute.xlu0 %4507  ;;  %v4135_v52 = vadd.f32 %v4133_v0, %v4023_v18  ;;  %v10590_v42 = vstv %s10013_s15  ;;  %v3541_v13 = vadd.f32 %v3539_v59, %v3357_v12  ;;  %v4434_v62 = vmul.f32 %v9527_v23, %v10583_v51  ;;  %v11276_v18 = vld [vmem:[#allocation104_spill] sm:$0xff] }
 0x5ab   : > { %v4027_v10 = vmul.f32 %v9919_v29, %v10590_v42  ;;  %v3930_v57 = vadd.f32 %v3928_v11, %v3746_v44  ;;  %v4156_v21 = vsel %vm612_vm0, %v11279_v8, %v11278_v15  ;;  %v11280_v44 = vld [vmem:[#allocation135_spill] sm:$0xff] }
 0x5ac   : > { %v4319_v0 = vadd.f32 %v11275_v34, %v4135_v52  ;;  %v3621_v12 = vadd.f32 %v3620_v58, %v3541_v13  ;;  %v11281_v52 = vld [vmem:[#allocation200_spill] sm:$0xff]  ;;  %v10588_v58 = vstv %s10064_s20 }
 0x5ad   : > { %v4521_v20 = vpop.permute.xlu1 %4520  ;;  %v4028_v59 = vadd.f32 %v4027_v10, %v3930_v57  ;;  %v3951_v34 = vsel %vm709_vm1, %v11281_v52, %v11280_v44  ;;  %v10582_v10 = vstv %s10069_s14 }
 0x5ae   : > { %v4519_v55 = vpop.permute.xlu0 %4518  ;;  %v4435_v11 = vadd.f32 %v4434_v62, %v4319_v0  ;;  %v4032_v0 = vmul.f32 %v9919_v29, %v10588_v58  ;;  %v11282_v62 = vld [vmem:[#allocation122_spill] sm:$0xff]  ;;  %v4439_v8 = vmul.f32 %v9527_v23, %v10582_v10 }
 0x5af   : > { %v4522_v7 = vsel %vm612_vm0, %v4519_v55, %v4521_v20 }
 0x5b0   : > { %v10056_v16 = vadd.f32 %v4522_v7, %v4430_v50  ;;  %v11277_v50 = vld [vmem:[#allocation105_spill] sm:$0xff] }
 0x5b1   : > { %v10066_v56 = vpop.permute.xlu1 %4532  ;;  %v3767_v55 = vsel %vm612_vm0, %v11277_v50, %v11276_v18  ;;  %v4158_v50 = vadd.f32 %v4156_v21, %v4028_v59  ;;  %v11283_v21 = vld [vmem:[#allocation118_spill] sm:$0xff] }
 0x5b2   : > { %v10072_v20 = vpop.permute.xlu0 %4530  ;;  %v3769_v18 = vadd.f32 %v3767_v55, %v3621_v12 }
 0x5b3   : > { %v4342_v55 = vadd.f32 %v11282_v62, %v4158_v50  ;;  %v11286_v50 = vld [vmem:[#allocation45_spill] sm:$0xff] }
 0x5b4   : > { %v3953_v57 = vadd.f32 %v3951_v34, %v3769_v18  ;;  %v11285_v18 = vld [vmem:[#allocation202_spill] sm:$0xff] }
 0x5b5   : > { %v4544_v24 = vpop.permute.xlu1 %4543  ;;  %v4440_v52 = vadd.f32 %v4439_v8, %v4342_v55  ;;  %v3229_v62 = vsel %vm612_vm0, %v11286_v50, %v11285_v18  ;;  %v11288_v8 = vld [vmem:[#allocation49_spill] sm:$0xff]  ;;  %v11291_v50 = vld [vmem:[#allocation204_spill] sm:$0xff] }
 0x5b6   : > { %v4542_v7 = vpop.permute.xlu0 %4541  ;;  %v4033_v44 = vadd.f32 %v4032_v0, %v3953_v57  ;;  %v11289_v18 = vld [vmem:[#allocation73_spill] sm:$0xff] }
 0x5b7   : > { %v4545_v48 = vsel %vm612_vm0, %v4542_v7, %v4544_v24  ;;  %v11284_v24 = vld [vmem:[#allocation119_spill] sm:$0xff] }
 0x5b8   : > { %v10089_v15 = vadd.f32 %v4545_v48, %v4435_v11  ;;  %v4179_v12 = vsel %vm612_vm0, %v11284_v24, %v11283_v21  ;;  %v5563_v11 = vld [vmem:[%s6068_s10] sm:$0xf0] }
 0x5b9   : > { %v10092_v13 = vpop.permute.xlu1 %4555  ;;  %v3197_v7 = vmul.f32 %v5563_v11, %v3196_v25  ;;  %v3200_v10 = vmul.f32 %v5563_v11, %v3199_v54  ;;  %v3203_v51 = vmul.f32 %v5563_v11, %v3202_v6  ;;  %v3206_v24 = vmul.f32 %v5563_v11, %v3205_v4 }
 0x5ba   : > { %v10103_v48 = vpop.permute.xlu0 %4553  ;;  %v10589_v25 = vstv %s10087_s13  ;;  %v4181_v57 = vadd.f32 %v4179_v12, %v4033_v44  ;;  %v3209_v55 = vmul.f32 %v5563_v11, %v3208_v33  ;;  %v3212_v54 = vmul.f32 %v5563_v11, %v3211_v53 }
 0x5bb   : > { %v3413_v6 = vsel %vm709_vm1, %v11289_v18, %v11288_v8  ;;  %v10587_v4 = vstv %s10095_s19  ;;  %v10593_v12 = vstv %s10097_s18  ;;  %v3215_v8 = vmul.f32 %v5563_v11, %v10589_v25 }
 0x5bc   : > { %v4365_v44 = vadd.f32 %v9782_v38, %v4181_v57  ;;  %v4444_v53 = vmul.f32 %v9527_v23, %v10587_v4  ;;  %v11292_v18 = vstv %s9712_s28  ;;  %v3598_v38 = vmul.f32 %v5564_v1, %v3597_v39  ;;  %v11293_v23 = vld [vmem:[#allocation74_spill] sm:$0xff]  ;;  %v11294_v4 = vld [vmem:[#allocation60_spill] sm:$0xff]  ;;  %v11296_v39 = vld [vmem:[#allocation69_spill] sm:$0xff] }
 0x5bd   : > { %v4567_v59 = vpop.permute.xlu1 %4566  ;;  %v3218_v40 = vmul.f32 %v5563_v11, %v11292_v18  ;;  %v3603_v57 = vmul.f32 %v5564_v1, %v3602_v43  ;;  %v3436_v58 = vsel %vm709_vm1, %v11294_v4, %v11293_v23  ;;  %v10171_v11 = vmul.f32 %v5564_v1, %v10593_v12  ;;  %v11297_v18 = vld [vmem:[#allocation38_spill] sm:$0xff]  ;;  %v11299_v23 = vld [vmem:[#allocation32_spill] sm:$0xff] }
 0x5be   : > { %v4565_v34 = vpop.permute.xlu0 %4564  ;;  %v3298_v25 = vsel %vm612_vm0, %v11298_v5, %v11297_v18  ;;  %v4445_v42 = vadd.f32 %v4444_v53, %v4365_v44  ;;  %v3641_v12 = vsel %vm612_vm0, %v11302_v41, %v11301_v60  ;;  %v11308_v41 = vld [vmem:[#allocation108_spill] sm:$0xff]  ;;  %v11309_v60 = vld [vmem:[#allocation109_spill] sm:$0xff] }
 0x5bf   : > { %v4568_v21 = vsel %vm612_vm0, %v4565_v34, %v4567_v59  ;;  %v3231_v34 = vadd.f32 %v3229_v62, %v3197_v7  ;;  %v3593_v7 = vmul.f32 %v5564_v1, %v3592_v35  ;;  %v3300_v3 = vadd.f32 %v3298_v25, %v3206_v24  ;;  %v11314_v24 = vld [vmem:[#allocation63_spill] sm:$0xff] }
 0x5c0   : > { %v10125_v0 = vadd.f32 %v4568_v21, %v4440_v52  ;;  %v11290_v52 = vld [vmem:[#allocation68_spill] sm:$0xff]  ;;  %v11315_v25 = vld [vmem:[#allocation75_spill] sm:$0xff] }
 0x5c1   : > { %v10134_v59 = vpop.permute.xlu1 %4578  ;;  %v3252_v21 = vsel %vm612_vm0, %v11291_v50, %v11290_v52  ;;  %v3415_v62 = vadd.f32 %v3413_v6, %v3231_v34  ;;  %v3613_v52 = vmul.f32 %v5564_v1, %v3612_v19  ;;  %v10167_v50 = vmul.f32 %v5564_v1, %v3617_v22  ;;  %v11295_v34 = vld [vmem:[#allocation205_spill] sm:$0xff] }
 0x5c2   : > { %11287 = vst [vmem:[#allocation179_spill] sm:$0xff] %v10125_v0  ;;  %v10139_v33 = vpop.permute.xlu0 %4576  ;;  %v3254_v6 = vadd.f32 %v3252_v21, %v3200_v10  ;;  %v3275_v43 = vsel %vm612_vm0, %v11296_v39, %v11295_v34  ;;  %v11300_v19 = vld [vmem:[#allocation33_spill] sm:$0xff]  ;;  %v10187_v10 = vmul.f32 %v5564_v1, %v3627_v26  ;;  %v3825_v26 = vsel %vm709_vm1, %v11309_v60, %v11308_v41  ;;  %v11318_v41 = vld [vmem:[#allocation88_spill] sm:$0xff]  ;;  %v11364_v0 = vld [vmem:[#allocation107_spill] sm:$0xff] }
 0x5c3   : > { %v3321_v22 = vsel %vm612_vm0, %v11300_v19, %v11299_v23  ;;  %v11303_v39 = vld [vmem:[#allocation61_spill] sm:$0xff]  ;;  %v3594_v44 = vadd.f32 %v3593_v7, %v3415_v62  ;;  %v3277_v5 = vadd.f32 %v3275_v43, %v3203_v51  ;;  %v11306_v23 = vld [vmem:[#allocation51_spill] sm:$0xff]  ;;  %v11307_v19 = vld [vmem:[#allocation62_spill] sm:$0xff]  ;;  %v3505_v62 = vsel %vm709_vm1, %v11315_v25, %v11314_v24 }
 0x5c4   : > { %v3438_v34 = vadd.f32 %v3436_v58, %v3254_v6  ;;  %v3459_v18 = vsel %vm709_vm1, %v11304_v9, %v11303_v39  ;;  %v3482_v37 = vsel %vm709_vm1, %v11307_v19, %v11306_v23  ;;  %v11310_v58 = vld [vmem:[#allocation46_spill] sm:$0xff]  ;;  %v11313_v7 = vld [vmem:[#allocation40_spill] sm:$0xff]  ;;  %v11319_v60 = vld [vmem:[#allocation89_spill] sm:$0xff] }
 0x5c5   : > { %v4590_v35 = vpop.permute.xlu1 %4589  ;;  %v3643_v6 = vadd.f32 %v3641_v12, %v3594_v44  ;;  %v11317_v39 = vld [vmem:[#allocation48_spill] sm:$0xff]  ;;  %v3461_v19 = vadd.f32 %v3459_v18, %v3277_v5  ;;  %v11320_v44 = vstv %s9798_s5  ;;  %s5782_s5 = smov [#allocation10]  }
 0x5c6   : > { %v4588_v4 = vpop.permute.xlu0 %4587  ;;  %v10223_v12 = vld [vmem:[%s6068_s10 + $0x20] sm:$0xf0]  ;;  %s5646_s3 = sshll.u32 %s5782_s5, 4  ;;  %s5647_s3 = int_to_ptr.vmem [resolvable:$false] %s5646_s3 }
 0x5c7   : > { %v4591_v21 = vsel %vm612_vm0, %v4588_v4, %v4590_v35  ;;  %v11311_v35 = vld [vmem:[#allocation206_spill] sm:$0xff]  ;;  %v3323_v4 = vadd.f32 %v3321_v22, %v3209_v55  ;;  %v4005_v24 = vmul.f32 %v10223_v12, %v11320_v44  ;;  %s5648_s4 = scalar_lea.vmem %s5647_s3, 2048 }
 0x5c8   : > { %v10193_v53 = vadd.f32 %v4591_v21, %v4445_v42  ;;  %v3344_v9 = vsel %vm612_vm0, %v11311_v35, %v11310_v58  ;;  %v11312_v42 = vld [vmem:[#allocation71_spill] sm:$0xff]  ;;  %v3664_v58 = vsel %vm612_vm0, %v11319_v60, %v11318_v41  ;;  %v3484_v35 = vadd.f32 %v3482_v37, %v3300_v3  ;;  %v11323_v3 = vld [vmem:[#allocation78_spill] sm:$0xff] }
 0x5c9   : > { %v10201_v1 = vpop.permute.xlu1 %4601  ;;  %v3367_v51 = vsel %vm612_vm0, %v11313_v7, %v11312_v42  ;;  %v11316_v21 = vld [vmem:[#allocation59_spill] sm:$0xff]  ;;  %v3599_v42 = vadd.f32 %v3598_v38, %v3438_v34  ;;  %v3827_v7 = vadd.f32 %v3825_v26, %v3643_v6  ;;  %v3346_v55 = vadd.f32 %v3344_v9, %v3212_v54 }
 0x5ca   : > { %11305 = vst [vmem:[#allocation148_spill] sm:$0xff] %v10193_v53  ;;  %v10214_v43 = vpop.permute.xlu0 %4599  ;;  %v3390_v23 = vsel %vm612_vm0, %v11317_v39, %v11316_v21  ;;  %v3369_v22 = vadd.f32 %v3367_v51, %v3215_v8  ;;  %v3507_v25 = vadd.f32 %v3505_v62, %v3323_v4  ;;  %v11321_v21 = vld [vmem:[#allocation130_spill] sm:$0xff]  ;;  %v11322_v39 = vld [vmem:[#allocation131_spill] sm:$0xff]  ;;  %v11325_v26 = vstv %s9836_s12  ;;  %v11328_v4 = vld [vmem:[#allocation137_spill] sm:$0xff] }
 0x5cb   : > { %v3848_v18 = vsel %vm709_vm1, %v11322_v39, %v11321_v21  ;;  %v10233_v41 = vadd.f32 %v3390_v23, %v3218_v40  ;;  %v11324_v37 = vld [vmem:[#allocation79_spill] sm:$0xff]  ;;  %v3666_v34 = vadd.f32 %v3664_v58, %v3599_v42  ;;  %v4010_v54 = vmul.f32 %v10223_v12, %v11325_v26  ;;  %v11326_v51 = vld [vmem:[#allocation90_spill] sm:$0xff] }
 0x5cc   : > { %v3528_v38 = vsel %vm709_vm1, %v11324_v37, %v11323_v3  ;;  %v3604_v9 = vadd.f32 %v3603_v57, %v3461_v19  ;;  %v11327_v62 = vld [vmem:[#allocation91_spill] sm:$0xff]  ;;  %v11330_v60 = vstv %s9892_s30  ;;  %v3609_v21 = vadd.f32 %v3608_v31, %v3484_v35  ;;  %v11332_v37 = vld [vmem:[#allocation162_spill] sm:$0xff] }
 0x5cd   : > { %v10231_v5 = vpop.permute.xlu1 %4624  ;;  %v3687_v6 = vsel %vm612_vm0, %v11327_v62, %v11326_v51  ;;  %v11329_v40 = vld [vmem:[#allocation207_spill] sm:$0xff]  ;;  %v4015_v44 = vmul.f32 %v10223_v12, %v11330_v60  ;;  %v3850_v58 = vadd.f32 %v3848_v18, %v3666_v34  ;;  %v4006_v42 = vadd.f32 %v4005_v24, %v3827_v7  ;;  %v11336_v31 = vld [vmem:[#allocation82_spill] sm:$0xff] }
 0x5ce   : > { %v10241_v8 = vpop.permute.xlu0 %4622  ;;  %v4053_v23 = vsel %vm612_vm0, %v11329_v40, %v11328_v4  ;;  %v11331_v39 = vstv %s9961_s8  ;;  %v3530_v57 = vadd.f32 %v3528_v38, %v3346_v55  ;;  %v3614_v19 = vadd.f32 %v3613_v52, %v3507_v25  ;;  %v11333_v26 = vld [vmem:[#allocation163_spill] sm:$0xff]  ;;  %v11339_v25 = vld [vmem:[#allocation92_spill] sm:$0xff]  ;;  %v11340_v38 = vld [vmem:[#allocation93_spill] sm:$0xff] }
 0x5cf   : > { %v4020_v3 = vmul.f32 %v10223_v12, %v11331_v39  ;;  %v3871_v51 = vsel %vm709_vm1, %v11333_v26, %v11332_v37  ;;  %v11334_v62 = vstv %s10013_s15  ;;  %v11337_v35 = vld [vmem:[#allocation83_spill] sm:$0xff]  ;;  %v3689_v24 = vadd.f32 %v3687_v6, %v3604_v9  ;;  %v11341_v60 = vld [vmem:[#allocation98_spill] sm:$0xff]  ;;  %v11343_v26 = vld [vmem:[#allocation208_spill] sm:$0xff] }
 0x5d0   : > { %v4025_v4 = vmul.f32 %v10223_v12, %v11334_v62  ;;  %v3551_v7 = vsel %vm709_vm1, %v11337_v35, %v11336_v31  ;;  %v4055_v18 = vadd.f32 %v4053_v23, %v4006_v42  ;;  %v3710_v34 = vsel %vm612_vm0, %v11340_v38, %v11339_v25  ;;  %v11342_v39 = vld [vmem:[#allocation99_spill] sm:$0xff]  ;;  %v11344_v62 = vld [vmem:[#allocation168_spill] sm:$0xff]  ;;  %v10285_v35 = vld [vmem:[%s6068_s10 + $0x30] sm:$0xf0]  ;;  %s11416_s10 = sld [smem:[#allocation25_spill]] }
 0x5d1   : > { %v10261_v40 = vpop.permute.xlu1 %4612  ;;  %v3733_v37 = vsel %vm612_vm0, %v11342_v39, %v11341_v60  ;;  %v4076_v53 = vsel %vm612_vm0, %v11344_v62, %v11343_v26  ;;  %v3873_v6 = vadd.f32 %v3871_v51, %v3689_v24  ;;  %v4011_v23 = vadd.f32 %v4010_v54, %v3850_v58  ;;  %v11346_v42 = vld [vmem:[#allocation120_spill] sm:$0xff]  ;;  %v11348_v39 = vld [vmem:[#allocation111_spill] sm:$0xff]  ;;  %v11352_v24 = vld [vmem:[#allocation102_spill] sm:$0xff] }
 0x5d2   : > { %11335 = vst [vmem:[#allocation149_spill] sm:$0xff] %v10261_v40  ;;  %v10267_v52 = vpop.permute.xlu0 %4610  ;;  %v11345_v40 = vstv %s10064_s20  ;;  %v4239_v31 = vadd.f32 %v11346_v42, %v4055_v18  ;;  %v11347_v25 = vstv %s9861_s24  ;;  %v3553_v55 = vadd.f32 %v3551_v7, %v3369_v22  ;;  %v11353_v18 = vld [vmem:[#allocation103_spill] sm:$0xff]  ;;  %s11411_s20 = sld [smem:[#allocation21_spill]] }
 0x5d3   : > { %11338 = vst [vmem:[#allocation180_spill] sm:$0xff] %v10267_v52  ;;  %v10281_v9 = vmul.f32 %v10223_v12, %v11345_v40  ;;  %v4417_v38 = vmul.f32 %v10285_v35, %v11347_v25  ;;  %v3619_v60 = vadd.f32 %v10167_v50, %v3530_v57  ;;  %v11349_v52 = vld [vmem:[#allocation132_spill] sm:$0xff]  ;;  %v11350_v62 = vstv %s10212_s2  ;;  %v11355_v50 = vld [vmem:[#allocation193_spill] sm:$0xff] }
 0x5d4   : > { %v3894_v26 = vsel %vm709_vm1, %v11349_v52, %v11348_v39  ;;  %v10297_v40 = vmul.f32 %v10223_v12, %v11350_v62  ;;  %v3712_v58 = vadd.f32 %v3710_v34, %v3609_v21  ;;  %v3735_v51 = vadd.f32 %v3733_v37, %v3614_v19  ;;  %v11356_v57 = vld [vmem:[#allocation164_spill] sm:$0xff]  ;;  %v11357_v52 = vld [vmem:[#allocation169_spill] sm:$0xff]  ;;  %v11358_v39 = vld [vmem:[#allocation138_spill] sm:$0xff] }
 0x5d5   : > { %v10299_v54 = vpop.permute.xlu1 %4635  ;;  %v3756_v42 = vsel %vm612_vm0, %v11353_v18, %v11352_v24  ;;  %v4078_v25 = vadd.f32 %v4076_v53, %v4011_v23  ;;  %v3917_v7 = vsel %vm709_vm1, %v11356_v57, %v11355_v50  ;;  %v4099_v62 = vsel %vm612_vm0, %v11358_v39, %v11357_v52  ;;  %v11360_v23 = vld [vmem:[#allocation121_spill] sm:$0xff]  ;;  %v11363_v39 = vld [vmem:[#allocation106_spill] sm:$0xff] }
 0x5d6   : > { %11351 = vst [vmem:[#allocation181_spill] sm:$0xff] %v10299_v54  ;;  %v10304_v22 = vpop.permute.xlu0 %4633  ;;  %v4465_v21 = vsel %vm612_vm0, %v9930_v47, %v9924_v30  ;;  %v11359_v19 = vstv %s9927_s6  ;;  %v3896_v37 = vadd.f32 %v3894_v26, %v3712_v58  ;;  %v4016_v53 = vadd.f32 %v4015_v44, %v3873_v6  ;;  %v11362_v54 = vld [vmem:[#allocation85_spill] sm:$0xff]  ;;  %v11366_v26 = vld [vmem:[#allocation134_spill] sm:$0xff]  ;;  %p11418_p13 = scmp.ne.s32.totalorder %s11416_s10, 0 }
 0x5d7   : > { %11354 = vst [vmem:[#allocation150_spill] sm:$0xff] %v10304_v22  ;;  %v4422_v34 = vmul.f32 %v10285_v35, %v11359_v19  ;;  %v4262_v24 = vadd.f32 %v11360_v23, %v4078_v25  ;;  %v4418_v18 = vadd.f32 %v4417_v38, %v4239_v31  ;;  %v11361_v22 = vld [vmem:[#allocation84_spill] sm:$0xff]  ;;  %v3758_v57 = vadd.f32 %v3756_v42, %v3619_v60  ;;  %v11365_v19 = vld [vmem:[#allocation113_spill] sm:$0xff]  ;;  %v11368_v25 = vld [vmem:[#allocation170_spill] sm:$0xff] }
 0x5d8   : > { %v3574_v50 = vsel %vm709_vm1, %v11362_v54, %v11361_v22  ;;  %v3624_v52 = vadd.f32 %v10171_v11, %v3553_v55  ;;  %v3779_v30 = vsel %vm612_vm0, %v11364_v0, %v11363_v39  ;;  %v3919_v32 = vadd.f32 %v3917_v7, %v3735_v51  ;;  %v11367_v58 = vld [vmem:[#allocation117_spill] sm:$0xff]  ;;  %s5415_s8 = sshll.u32 %s11411_s20, 4 }
 0x5d9   : > { %v4648_v47 = vpop.permute.xlu1 %4647  ;;  %v3940_v44 = vsel %vm709_vm1, %v11366_v26, %v11365_v19  ;;  %v4101_v6 = vadd.f32 %v4099_v62, %v4016_v53  ;;  %v4467_v31 = vadd.f32 %v4465_v21, %v4418_v18  ;;  %v4122_v60 = vsel %vm612_vm0, %v11368_v25, %v11367_v58  ;;  %v11370_v42 = vld [vmem:[#allocation177_spill] sm:$0xff]  ;;  %v11377_v25 = vld [vmem:[#allocation160_spill] sm:$0xff] }
 0x5da   : > { %v4646_v38 = vpop.permute.xlu0 %4645  ;;  %v4488_v11 = vsel %vm612_vm0, %v9983_v61, %v9977_v63  ;;  %v11369_v55 = vstv %s9980_s27  ;;  %v4021_v51 = vadd.f32 %v4020_v3, %v3896_v37  ;;  %v4423_v7 = vadd.f32 %v4422_v34, %v4262_v24  ;;  %v11372_v37 = vld [vmem:[#allocation203_spill] sm:$0xff]  ;;  %v11374_v24 = vld [vmem:[#allocation141_spill] sm:$0xff]  ;;  %s11415_s27 = sld [smem:[#allocation20_spill]] }
 0x5db   : > { %v4427_v0 = vmul.f32 %v10285_v35, %v11369_v55  ;;  %v4649_v54 = vsel %vm709_vm1, %v4646_v38, %v4648_v47  ;;  %v4285_v22 = vadd.f32 %v11370_v42, %v4101_v6  ;;  %v3576_v21 = vadd.f32 %v3574_v50, %v10233_v41  ;;  %v11373_v6 = vld [vmem:[#allocation114_spill] sm:$0xff]  ;;  %v11375_v41 = vld [vmem:[#allocation172_spill] sm:$0xff] }
 0x5dc   : > { %v4651_v62 = vadd.f32 %v4649_v54, %v4467_v31  ;;  %v3781_v53 = vadd.f32 %v3779_v30, %v3624_v52  ;;  %v3942_v23 = vadd.f32 %v3940_v44, %v3758_v57  ;;  %v11371_v18 = vstv %s10027_s16  ;;  %v4824_v52 = vld [vmem:[#allocation2] sm:$0xf]  ;;  %s10365_s16 = sld [smem:[#allocation3 + $0x11d]] }
 0x5dd   : > { %v4432_v39 = vmul.f32 %v10285_v35, %v11371_v18  ;;  %v4671_v63 = vpop.permute.xlu1 %4670  ;;  %v4124_v61 = vadd.f32 %v4122_v60, %v4021_v51  ;;  %v4026_v19 = vadd.f32 %v4025_v4, %v3919_v32  ;;  %v4490_v26 = vadd.f32 %v4488_v11, %v4423_v7  ;;  %v11376_v32 = vld [vmem:[#allocation147_spill] sm:$0xff]  ;;  %v11378_v60 = vld [vmem:[#allocation161_spill] sm:$0xff] }
 0x5de   : > { %v4826_v47 = vrot.slane %v4651_v62, 4  ;;  %v4669_v3 = vpop.permute.xlu0 %4668  ;;  %v3963_v34 = vsel %vm709_vm1, %v11373_v6, %v11372_v37  ;;  %v4145_v50 = vsel %vm612_vm0, %v11375_v41, %v11374_v24  ;;  %v4511_v57 = vsel %vm612_vm0, %v10030_v28, %v10024_v45  ;;  %v11381_v62 = vld [vmem:[#allocation136_spill] sm:$0xff] }
 0x5df   : > { %v4672_v30 = vsel %vm709_vm1, %v4669_v3, %v4671_v63  ;;  %v4308_v4 = vadd.f32 %v11376_v32, %v4124_v61  ;;  %v4428_v44 = vadd.f32 %v4427_v0, %v4285_v22  ;;  %v3629_v58 = vadd.f32 %v10187_v10, %v3576_v21  ;;  %v11380_v22 = vld [vmem:[#allocation167_spill] sm:$0xff]  ;;  %v4833_v63 = vld [vmem:[#allocation2 + $0x8] sm:$0xf] }
 0x5e0   : > { %v4828_v31 = vadd.f32 %v4826_v47, %v4824_v52  ;;  %v4674_v38 = vadd.f32 %v4672_v30, %v4490_v26  ;;  %v3802_v11 = vsel %vm612_vm0, %v11378_v60, %v11377_v25  ;;  %v4031_v55 = vadd.f32 %v10281_v9, %v3942_v23  ;;  %v11382_v9 = vld [vmem:[#allocation143_spill] sm:$0xff]  ;;  %v11383_v23 = vld [vmem:[#allocation64_spill] sm:$0xff] }
 0x5e1   : > { %v11379_v54 = vstv %s10069_s14  ;;  %v4694_v45 = vpop.permute.xlu1 %4693  ;;  %v3965_v28 = vadd.f32 %v3963_v34, %v3781_v53  ;;  %v4147_v42 = vadd.f32 %v4145_v50, %v4026_v19  ;;  %v4513_v7 = vadd.f32 %v4511_v57, %v4428_v44  ;;  %v11384_v19 = vld [vmem:[#allocation194_spill] sm:$0xff]  ;;  %s11405_s14 = sshll.u32 %s6062_s1, 6 }
 0x5e2   : > { %v4437_v51 = vmul.f32 %v10285_v35, %v11379_v54  ;;  %4829 = vst [vmem:[#allocation2] sm:$0xf] %v4828_v31  ;;  %v4835_v10 = vrot.slane %v4674_v38, 4  ;;  %v4692_v0 = vpop.permute.xlu0 %4691  ;;  %v3986_v21 = vsel %vm709_vm1, %v11381_v62, %v11380_v22  ;;  %v4168_v18 = vsel %vm612_vm0, %v11383_v23, %v11382_v9  ;;  %v11387_v44 = vld [vmem:[#allocation174_spill] sm:$0xff]  ;;  %v11388_v31 = vld [vmem:[#allocation175_spill] sm:$0xff] }
 0x5e3   : > { %v4534_v53 = vsel %vm612_vm0, %v10072_v20, %v10066_v56  ;;  %v4695_v61 = vsel %vm709_vm1, %v4692_v0, %v4694_v45  ;;  %v4331_v26 = vadd.f32 %v11384_v19, %v4147_v42  ;;  %v4433_v47 = vadd.f32 %v4432_v39, %v4308_v4 }
 0x5e4   : > { %v4837_v3 = vadd.f32 %v4835_v10, %v4833_v63  ;;  %v4697_v37 = vadd.f32 %v4695_v61, %v4513_v7  ;;  %v3804_v6 = vadd.f32 %v3802_v11, %v3629_v58  ;;  %v11385_v34 = vstv %s9779_s11  ;;  %v4842_v58 = vld [vmem:[#allocation2 + $0x10] sm:$0xf] }
 0x5e5   : > { %v4040_v24 = vmul.f32 %v10223_v12, %v11385_v34  ;;  %v11386_v41 = vstv %s10095_s19  ;;  %v4446_v57 = vstv %s10344_s17  ;;  %v4717_v52 = vpop.permute.xlu1 %4716  ;;  %v4170_v30 = vadd.f32 %v4168_v18, %v4031_v55  ;;  %s10452_s19 = scalar_lea.vmem [#allocation10], %s11405_s14 }
 0x5e6   : > { %v4442_v50 = vmul.f32 %v10285_v35, %v11386_v41  ;;  %v4036_v56 = vadd.f32 %v10297_v40, %v3965_v28  ;;  %v4536_v20 = vadd.f32 %v4534_v53, %v4433_v47  ;;  %4838 = vst [vmem:[#allocation2 + $0x8] sm:$0xf] %v4837_v3  ;;  %v4844_v32 = vrot.slane %v4697_v37, 4  ;;  %v4715_v39 = vpop.permute.xlu0 %4714  ;;  %s4937_s9 = sshll.u32 %s10452_s19, 4  ;;  %s10489_s9 = int_to_ptr.vmem [resolvable:$true] %s4937_s9 }
 0x5e7   : > { %v3988_v4 = vadd.f32 %v3986_v21, %v3804_v6  ;;  %v4191_v38 = vsel %vm612_vm0, %v11388_v31, %v11387_v44  ;;  %v4557_v12 = vsel %vm612_vm0, %v10103_v48, %v10092_v13  ;;  %v4718_v25 = vsel %vm709_vm1, %v4715_v39, %v4717_v52  ;;  %v11389_v13 = vld [vmem:[#allocation65_spill] sm:$0xff]  ;;  %v11390_v48 = vld [vmem:[#allocation72_spill] sm:$0xff]  ;;  %s5642_s11 = scalar_lea.vmem %s10489_s9, 1024  ;;  %p5649_p6 = scmp.lt.s32.totalorder %s10489_s9, %s5647_s3 }
 0x5e8   : > { %v4354_v60 = vadd.f32 %v9754_v36, %v4170_v30  ;;  %v4438_v40 = vadd.f32 %v4437_v51, %v4331_v26  ;;  %v4846_v11 = vadd.f32 %v4844_v32, %v4842_v58  ;;  %v4720_v55 = vadd.f32 %v4718_v25, %v4536_v20  ;;  %v4851_v51 = vld [vmem:[#allocation2 + $0x18] sm:$0xf]  ;;  %v11393_v58 = vld [vmem:[#allocation58_spill] sm:$0xff]  ;;  %p5643_p11 = scmp.ne.s32.totalorder %s10489_s9, %s5642_s11  ;;  %p5650_p4 = scmp.lt.s32.totalorder %s5648_s4, %s5642_s11 }
 0x5e9   : > { %v4447_v54 = vmul.f32 %v10285_v35, %v4446_v57  ;;  %v4740_v45 = vpop.permute.xlu1 %4739  ;;  %v4193_v28 = vadd.f32 %v4191_v38, %v4036_v56  ;;  %v4451_v7 = vstv %s10365_s16  ;;  %v4041_v22 = vadd.f32 %v4040_v24, %v3988_v4 }
 0x5ea   : > { %v4559_v42 = vadd.f32 %v4557_v12, %v4438_v40  ;;  %4847 = vst [vmem:[#allocation2 + $0x10] sm:$0xf] %v4846_v11  ;;  %v4853_v10 = vrot.slane %v4720_v55, 4  ;;  %v4738_v0 = vpop.permute.xlu0 %4737  ;;  %v4214_v62 = vsel %vm612_vm0, %v11390_v48, %v11389_v13  ;;  %v4580_v36 = vsel %vm612_vm0, %v10139_v33, %v10134_v59  ;;  %v4860_v33 = vld [vmem:[#allocation2 + $0x20] sm:$0xf]  ;;  %v11392_v12 = vld [vmem:[#allocation41_spill] sm:$0xff]  ;;  %p5644_p8 = pnand %p5643_p11, %p11418_p13  ;;  %p5651_p3 = por %p5650_p4, %p5649_p6 }
 0x5eb   : > { %v4741_v21 = vsel %vm709_vm1, %v4738_v0, %v4740_v45  ;;  %v4377_v9 = vadd.f32 %v9815_v2, %v4193_v28  ;;  %v4443_v23 = vadd.f32 %v4442_v50, %v4354_v60  ;;  %v4216_v61 = vadd.f32 %v4214_v62, %v4041_v22  ;;  %v11394_v11 = vld [vmem:[#allocation96_spill] sm:$0xff]  ;;  %v11395_v55 = vld [vmem:[#allocation97_spill] sm:$0xff] }
 0x5ec   : > { %v4855_v18 = vadd.f32 %v4853_v10, %v4851_v51  ;;  %v4743_v53 = vadd.f32 %v4741_v21, %v4559_v42  ;;  %v4603_v3 = vsel %vm612_vm0, %v10214_v43, %v10201_v1  ;;  %v4452_v59 = vmul.f32 %v10285_v35, %v4451_v7  ;;  %v4869_v43 = vld [vmem:[#allocation2 + $0x28] sm:$0xf]  ;;  %v4887_v10 = vld [vmem:[#allocation2 + $0x38] sm:$0xf]  ;;  %v4830_v51 = vld [vmem:[#allocation2 + $0x4] sm:$0xf]  ;;  %p5645_p7 = pneg %p5644_p8 }
 0x5ed   : > { %v4763_v63 = vpop.permute.xlu1 %4762  ;;  %v4582_v19 = vadd.f32 %v4580_v36, %v4443_v23  ;;  %v4400_v2 = vadd.f32 %v9871_v27, %v4216_v61  ;;  %v4448_v6 = vadd.f32 %v4447_v54, %v4377_v9  ;;  %v4626_v1 = vsel %vm612_vm0, %v10241_v8, %v10231_v5  ;;  %v4878_v5 = vld [vmem:[#allocation2 + $0x30] sm:$0xf] }
 0x5ee   : > { %4856 = vst [vmem:[#allocation2 + $0x18] sm:$0xf] %v4855_v18  ;;  %v4862_v26 = vrot.slane %v4743_v53, 4  ;;  %v4761_v47 = vpop.permute.xlu0 %4760  ;;  %v11391_v39 = vstv %s10087_s13  ;;  %v3378_v25 = vsel %vm612_vm0, %v11393_v58, %v11392_v12  ;;  %v3562_v54 = vsel %vm709_vm1, %v11395_v55, %v11394_v11  ;;  %v11397_v18 = vld [vmem:[#allocation128_spill] sm:$0xff]  ;;  %v11398_v53 = vld [vmem:[#allocation129_spill] sm:$0xff]  ;;  %s11404_s13 = sld [smem:[#allocation31_spill]]  ;;  %p5652_p1 = pnand %p5651_p3, %p5645_p7 }
 0x5ef   : > { %v4764_v37 = vsel %vm709_vm1, %v4761_v47, %v4763_v63  ;;  %v4605_v50 = vadd.f32 %v4603_v3, %v4448_v6  ;;  %v4453_v56 = vadd.f32 %v4452_v59, %v4400_v2  ;;  %v3216_v4 = vmul.f32 %v9744_v49, %v11391_v39  ;;  %v11400_v47 = vld [vmem:[#allocation166_spill] sm:$0xff]  ;;  %v4839_v3 = vld [vmem:[#allocation2 + $0xc] sm:$0xf]  ;;  %v11406_v58 = vld [vmem:[#allocation123_spill] sm:$0xff] }
 0x5f0   : > { %v4864_v34 = vadd.f32 %v4862_v26, %v4860_v33  ;;  %v4766_v24 = vadd.f32 %v4764_v37, %v4582_v19  ;;  %v11396_v13 = vstv %s10097_s18  ;;  %v3790_v63 = vsel %vm612_vm0, %v11398_v53, %v11397_v18  ;;  %s4934_s18 = sadd.s32 %s11415_s27, %s5415_s8 }
 0x5f1   : > { %v4786_v41 = vpop.permute.xlu1 %4785  ;;  %v4628_v44 = vadd.f32 %v4626_v1, %v4453_v56  ;;  %v3380_v49 = vadd.f32 %v3378_v25, %v3216_v4  ;;  %v3625_v48 = vmul.f32 %v9788_v14, %v11396_v13  ;;  %v11399_v14 = vld [vmem:[#allocation115_spill] sm:$0xff]  ;;  %s5416_s28 = sshll.u32 %s4934_s18, 7 }
 0x5f2   : > { %4865 = vst [vmem:[#allocation2 + $0x20] sm:$0xf] %v4864_v34  ;;  %v4871_v52 = vrot.slane %v4766_v24, 4  ;;  %v4784_v30 = vpop.permute.xlu0 %4783  ;;  %v11401_v24 = vstv %s10212_s2  ;;  %s10487_s0 = scalar_lea.hbm %s11417_s7, %s5416_s28 }
 0x5f3   : > { %v4787_v35 = vsel %vm709_vm1, %v4784_v30, %v4786_v41  ;;  %v3564_v22 = vadd.f32 %v3562_v54, %v3380_v49  ;;  %v4037_v41 = vmul.f32 %v9919_v29, %v11401_v24  ;;  %v11409_v49 = vld [vmem:[#allocation180_spill] sm:$0xff] }
 0x5f4   : > { %v4873_v20 = vadd.f32 %v4871_v52, %v4869_v43  ;;  %v4789_v32 = vadd.f32 %v4787_v35, %v4605_v50  ;;  %v11402_v43 = vld [vmem:[#allocation144_spill] sm:$0xff]  ;;  %v11403_v35 = vld [vmem:[#allocation145_spill] sm:$0xff] }
 0x5f5   : > { %v4809_v27 = vpop.permute.xlu1 %4808  ;;  %v3626_v19 = vadd.f32 %v3625_v48, %v3564_v22  ;;  %v4202_v56 = vsel %vm612_vm0, %v11403_v35, %v11402_v43  ;;  %v4875_v48 = vld [vmem:[#allocation2 + $0x2c] sm:$0xf] }
 0x5f6   : > { %4874 = vst [vmem:[#allocation2 + $0x28] sm:$0xf] %v4873_v20  ;;  %v4880_v31 = vrot.slane %v4789_v32, 4  ;;  %v4807_v38 = vpop.permute.xlu0 %4806 }
 0x5f7   : > { %v4810_v8 = vsel %vm709_vm1, %v4807_v38, %v4809_v27  ;;  %v3792_v33 = vadd.f32 %v3790_v63, %v3626_v19 }
 0x5f8   : > { %v4882_v60 = vadd.f32 %v4880_v31, %v4878_v5  ;;  %v4812_v40 = vadd.f32 %v4810_v8, %v4628_v44  ;;  %v5567_v5 = vld [vmem:[%s11404_s13 + $0x30] sm:$0xf] }
 0x5f9   : > { %v4659_v45 = vpop.permute.xlu1 %4658  ;;  %v4449_v8 = vmul.f32 %v5567_v5, %v4446_v57  ;;  %v4454_v22 = vmul.f32 %v5567_v5, %v4451_v7  ;;  %v11410_v57 = vld [vmem:[#allocation148_spill] sm:$0xff] }
 0x5fa   : > { %4883 = vst [vmem:[#allocation2 + $0x30] sm:$0xf] %v4882_v60  ;;  %v4889_v28 = vrot.slane %v4812_v40, 4  ;;  %v4657_v42 = vpop.permute.xlu0 %4656  ;;  %v11407_v60 = vld [vmem:[#allocation179_spill] sm:$0xff] }
 0x5fb   : > { %v4660_v0 = vsel %vm709_vm1, %v4657_v42, %v4659_v45  ;;  %v11408_v45 = vld [vmem:[#allocation149_spill] sm:$0xff] }
 0x5fc   : > { %v4891_v62 = vadd.f32 %v4889_v28, %v4887_v10  ;;  %v4662_v36 = vadd.f32 %v4660_v0, %v9963_v46  ;;  %v3974_v46 = vsel %vm709_vm1, %v11400_v47, %v11399_v14  ;;  %v4614_v28 = vsel %vm612_vm0, %v11409_v49, %v11408_v45 }
 0x5fd   : > { %v4682_v21 = vpop.permute.xlu1 %4681  ;;  %v3976_v34 = vadd.f32 %v3974_v46, %v3792_v33 }
 0x5fe   : > { %4892 = vst [vmem:[#allocation2 + $0x38] sm:$0xf] %v4891_v62  ;;  %v4831_v9 = vadd.f32 %v4830_v51, %v4662_v36  ;;  %v4680_v23 = vpop.permute.xlu0 %4679 }
 0x5ff   : > { %v4683_v61 = vsel %vm709_vm1, %v4680_v23, %v4682_v21  ;;  %v4038_v27 = vadd.f32 %v4037_v41, %v3976_v34  ;;  %v11413_v23 = vld [vmem:[#allocation150_spill] sm:$0xff] }
 0x600   : > { %4832 = vst [vmem:[#allocation2 + $0x4] sm:$0xf] %v4831_v9  ;;  %v4685_v26 = vadd.f32 %v4683_v61, %v10015_v17  ;;  %v4848_v17 = vld [vmem:[#allocation2 + $0x14] sm:$0xf]  ;;  %v11412_v9 = vld [vmem:[#allocation181_spill] sm:$0xff] }
 0x601   : > { %v4705_v59 = vpop.permute.xlu1 %4704  ;;  %v4204_v4 = vadd.f32 %v4202_v56, %v4038_v27  ;;  %v4637_v18 = vsel %vm612_vm0, %v11413_v23, %v11412_v9  ;;  %v11414_v61 = vld [vmem:[#allocation178_spill] sm:$0xff] }
 0x602   : > { %v4840_v37 = vadd.f32 %v4839_v3, %v4685_v26  ;;  %v4703_v2 = vpop.permute.xlu0 %4702  ;;  %v4455_v7 = vadd.f32 %v4454_v22, %v11414_v61  ;;  %v4884_v26 = vld [vmem:[#allocation2 + $0x34] sm:$0xf] }
 0x603   : > { %v4706_v6 = vsel %vm709_vm1, %v4703_v2, %v4705_v59  ;;  %v4388_v25 = vadd.f32 %v11406_v58, %v4204_v4  ;;  %v4893_v2 = vld [vmem:[#allocation2 + $0x3c] sm:$0xf] }
 0x604   : > { %4841 = vst [vmem:[#allocation2 + $0xc] sm:$0xf] %v4840_v37  ;;  %v4708_v50 = vadd.f32 %v4706_v6, %v10056_v16  ;;  %v4857_v16 = vld [vmem:[#allocation2 + $0x1c] sm:$0xf]  ;;  %v4639_v47 = vadd.f32 %v4637_v18, %v4455_v7 }
 0x605   : > { %v4728_v52 = vpop.permute.xlu1 %4727  ;;  %v4450_v0 = vadd.f32 %v4449_v8, %v4388_v25 }
 0x606   : > { %v4849_v30 = vadd.f32 %v4848_v17, %v4708_v50  ;;  %v4726_v1 = vpop.permute.xlu0 %4725 }
 0x607   : > { %v4896_v20 = vld [vmem:[#allocation2] sm:$0xff]  ;;  %v4729_v32 = vsel %vm709_vm1, %v4726_v1, %v4728_v52  ;;  %v4616_v36 = vadd.f32 %v4614_v28, %v4450_v0 }
 0x608   : > { %4897 = vst [vmem:[%s10452_s19] sm:$0xff] %v4896_v20  ;;  %4850 = vst [vmem:[#allocation2 + $0x14] sm:$0xf] %v4849_v30  ;;  %v4731_v29 = vadd.f32 %v4729_v32, %v10089_v15  ;;  %v4866_v15 = vld [vmem:[#allocation2 + $0x24] sm:$0xf] }
 0x609   : > { %v4751_v39 = vpop.permute.xlu1 %4750 }
 0x60a   : > { %v4858_v44 = vadd.f32 %v4857_v16, %v4731_v29  ;;  %v4749_v31 = vpop.permute.xlu0 %4748 }
 0x60b   : > { %v4898_v38 = vld [vmem:[#allocation2 + $0x8] sm:$0xff]  ;;  %v4752_v12 = vsel %vm709_vm1, %v4749_v31, %v4751_v39 }
 0x60c   : > { %5407 = vst [vmem:[%s10452_s19 + $0x8] sm:$0xff] %v4898_v38  ;;  %4859 = vst [vmem:[#allocation2 + $0x1c] sm:$0xf] %v4858_v44  ;;  %v4754_v40 = vadd.f32 %v4752_v12, %v11407_v60 }
 0x60d   : > { %v4774_v11 = vpop.permute.xlu1 %4773 }
 0x60e   : > { %v4867_v55 = vadd.f32 %v4866_v15, %v4754_v40  ;;  %v4772_v54 = vpop.permute.xlu0 %4771 }
 0x60f   : > { %v4901_v42 = vld [vmem:[#allocation2 + $0x10] sm:$0xff]  ;;  %v4775_v10 = vsel %vm709_vm1, %v4772_v54, %v4774_v11 }
 0x610   : > { %5408 = vst [vmem:[%s10452_s19 + $0x10] sm:$0xff] %v4901_v42  ;;  %4868 = vst [vmem:[#allocation2 + $0x24] sm:$0xf] %v4867_v55  ;;  %v4777_v13 = vadd.f32 %v4775_v10, %v11410_v57 }
 0x611   : > { %v4797_v62 = vpop.permute.xlu1 %4796 }
 0x612   : > { %v4876_v51 = vadd.f32 %v4875_v48, %v4777_v13  ;;  %v4795_v21 = vpop.permute.xlu0 %4794 }
 0x613   : > { %v4904_v53 = vld [vmem:[#allocation2 + $0x18] sm:$0xff]  ;;  %v4798_v63 = vsel %vm709_vm1, %v4795_v21, %v4797_v62 }
 0x614   : > { %5409 = vst [vmem:[%s10452_s19 + $0x18] sm:$0xff] %v4904_v53  ;;  %4877 = vst [vmem:[#allocation2 + $0x2c] sm:$0xf] %v4876_v51  ;;  %v4800_v19 = vadd.f32 %v4798_v63, %v4616_v36 }
 0x615   : > { %v4820_v14 = vpop.permute.xlu1 %4819 }
 0x616   : > { %v4885_v46 = vadd.f32 %v4884_v26, %v4800_v19  ;;  %v4818_v3 = vpop.permute.xlu0 %4817 }
 0x617   : > { %v4907_v59 = vld [vmem:[#allocation2 + $0x20] sm:$0xff]  ;;  %v4821_v33 = vsel %vm709_vm1, %v4818_v3, %v4820_v14 }
 0x618   : > { %5410 = vst [vmem:[%s10452_s19 + $0x20] sm:$0xff] %v4907_v59  ;;  %4886 = vst [vmem:[#allocation2 + $0x34] sm:$0xf] %v4885_v46  ;;  %v4823_v37 = vadd.f32 %v4821_v33, %v4639_v47 }
 0x61a   : > { %v4894_v6 = vadd.f32 %v4893_v2, %v4823_v37 }
 0x61b   : > { %v4910_v34 = vld [vmem:[#allocation2 + $0x28] sm:$0xff] }
 0x61c   : > { %5411 = vst [vmem:[%s10452_s19 + $0x28] sm:$0xff] %v4910_v34  ;;  %4895 = vst [vmem:[#allocation2 + $0x3c] sm:$0xf] %v4894_v6 }
 0x61f   : > { %v4913_v24 = vld [vmem:[#allocation2 + $0x30] sm:$0xff] }
 0x620   : > { %5412 = vst [vmem:[%s10452_s19 + $0x30] sm:$0xff] %v4913_v24 }
 0x623   : > { %v4916_v41 = vld [vmem:[#allocation2 + $0x38] sm:$0xff] }
 0x624   : > { %5413 = vst [vmem:[%s10452_s19 + $0x38] sm:$0xff] %v4916_v41 }
 0x625   : > { %5655 = shalt.err (!%p5652_p1)
}
 0x626   : > { %s5656_s12 = scalar_lea.hbm %s10487_s0, 1024  ;;  %s5660_s30 = scalar_lea.hbm %s11417_s7, 4096 }
 0x627   : > { %p5657_p10 = scmp.ne.s32.totalorder %s10487_s0, %s5656_s12  ;;  %p5661_p0 = scmp.lt.u32.totalorder %s10487_s0, %s11417_s7 }
 0x628   : > { %p5662_p9 = scmp.lt.u32.totalorder %s5660_s30, %s5656_s12  ;;  %p5664_p11 = scmp.lt.u32.totalorder %s5656_s12, %s10487_s0 }
 0x629   : > { %p5658_p5 = pnand %p5657_p10, %p11418_p13 }
 0x62a   : > { %p5663_p2 = por %p5662_p9, %p5661_p0 }
 0x62b   : > { %p5659_p12 = pneg %p5658_p5 }
 0x62c   : > { %p5665_p8 = por %p5664_p11, %p5663_p2 }
 0x62e   : > { %p5666_p7 = pnand %p5665_p8, %p5659_p12 }
 0x630   : > { %5669 = shalt.err (!%p5666_p7)
}
 0x631   : > { %s5783_s22 = smov 128   ;;  %s5784_s15 = smov 256  }
 0x632   : > { %s5785_s2 = smov 8  }
 0x633   : > { %5428 = dma.vmem_to_hbm [thread:$0]  (%p11418_p13), %s10489_s9, 1024, %s10487_s0, %s4920_s21, %s5783_s22, %s5784_s15, %s5785_s2  }
 0x634 PF: > { %s11419_s17 = sld [smem:[#allocation24_spill]]  ;;  %s11420_s16 = sld [smem:[#allocation17_spill]] }
 0x635   : > { %s11421_s13 = sld [smem:[#allocation26_spill]] }
 0x63a   : > { %p5448_p6 = scmp.ge.s32.totalorder %s11419_s17, 2  ;;  %s4952_s14 = sand.u32 1, %s11420_s16  }
 0x63b   : > { %p11422_p4 = scmp.ne.s32.totalorder %s11421_s13, 0  ;;  %s4953_s19 = scalar_lea.sflag [#allocation5], %s4952_s14 }
 0x63d   : > { %p5442_p3 = pnand %p5448_p6, %p11422_p4 }
 0x63f   : > { %5727 = dma.done.wait (!%p5442_p3), %s4953_s19, 1024  }
 0x640   : > { %5729 = vsyncadd (!%p5442_p3), %s4953_s19, 4294966272  ;;  %s23_s22 = sadd.s32 1, %s11419_s17   ;;  %s11423_s12 = sld [smem:[#allocation15_spill]] }
 0x641   : > { %p20_p1 = scmp.ge.s32.totalorder %s23_s22, 6   ;;  %s11424_s13 = sld [smem:[#allocation16_spill]] }
 0x642   : > { %s11425_s14 = sld [smem:[#allocation30_spill]]  ;;  %s11426_s15 = sld [smem:[#allocation18_spill]] }
 0x643   : > { %s11427_s16 = sld [smem:[#allocation19_spill]]  ;;  %s11428_s17 = sld [smem:[#allocation29_spill]] }
 0x644   : > { %s11429_s18 = sld [smem:[#allocation22_spill]]  ;;  %s11430_s19 = sld [smem:[#allocation23_spill]] }
 0x645   : > { %s11431_s20 = sld [smem:[#allocation27_spill]]  ;;  %s11432_s21 = sld [smem:[#allocation28_spill]] }
 0x646   :  { %22 = sbr.rel (!%p20_p1) target bundleno = 17 (0x11), region = 115 }
 0x64d   :  { %4958 = vsyncpa [#allocation4], 1 }
 0x64e   :  { %4960 = vsyncpa [#allocation4 + $0x1], 1 }
 0x64f   :  { %4961 = vsyncpa [#allocation9], 1 }
 0x650   :  { %4963 = vsyncpa [#allocation9 + $0x1], 1 }
 0x651   :  { %4964 = vsyncpa [#allocation5], 1 }
 0x652   :  { %4966 = vsyncpa [#allocation5 + $0x1], 1 }
 0x653   :  { %4967 = vsyncpa [#allocation6], 1 }
 0x654   :  { %4969 = vsyncpa [#allocation6 + $0x1], 1 }

</bundles_post_ra>
